<compile_context>
chip_gen: v7x
topology: tpu7x:2x2x1
jax: 0.10.0
libtpu: 0.0.40
codegen_flags: <defaults>
</compile_context>

<pallas_src>
import functools

import jax
import jax.numpy as jnp
from jax.experimental import pallas as pl
from jax.experimental.pallas import tpu as pltpu

# ---- scaled-down config (original: 7 convs -> 512ch, H=1024, 24 layers,
# 16 heads, FFN=4096, pos-conv kernel 128 / groups 16, seq 149) ----
BATCH = 2
AUDIO_LEN = 330
CONV_DIMS = (128, 128, 128)       # 128 channels keeps every store lane-dense
CONV_KERNELS = (10, 3, 2)
CONV_STRIDES = (5, 2, 2)
HIDDEN = 128
N_HEADS = 4
HEAD_DIM = HIDDEN // N_HEADS
FFN = 256
N_LAYERS = 2
POS_KERNEL = 8
POS_GROUPS = 4
POS_PAD = POS_KERNEL // 2
N_CLASSES = 10
N_CLASSES_PAD = 128               # classifier output padded to 128 lanes
SEQ_LEN = 16                      # follows from AUDIO_LEN and the conv strides
LN_EPS = 1e-5


def _gelu(x):
    # TODO(synk): PyTorch/HF use exact erf-based GELU; tanh approximation used
    # here for Mosaic portability.
    c = 0.7978845608028654  # sqrt(2/pi)
    return 0.5 * x * (1.0 + jnp.tanh(c * (x + 0.044715 * x * x * x)))


def _ln(x, g, b):
    x = x.astype(jnp.float32)
    mu = jnp.mean(x, axis=-1, keepdims=True)
    var = jnp.mean((x - mu) * (x - mu), axis=-1, keepdims=True)
    return (x - mu) * jax.lax.rsqrt(var + LN_EPS) * g + b


# ----------------------------- Pallas kernels ------------------------------

def _conv_ln_gelu_kernel(p_ref, w_ref, b_ref, g_ref, beta_ref, o_ref):
    """Feature-extractor layer: im2col-matmul + per-channel LN + GELU, fused."""
    y = jnp.dot(p_ref[...].astype(jnp.bfloat16), w_ref[...],
                preferred_element_type=jnp.float32) + b_ref[...]
    y = _ln(y, g_ref[...], beta_ref[...])
    o_ref[...] = _gelu(y).astype(o_ref.dtype)


def _ln_linear_kernel(x_ref, g_ref, beta_ref, w_ref, b_ref, o_ref):
    """Fused LayerNorm -> Linear (feature projection)."""
    xn = _ln(x_ref[...], g_ref[...], beta_ref[...])
    y = jnp.dot(xn.astype(jnp.bfloat16), w_ref[...],
                preferred_element_type=jnp.float32) + b_ref[...]
    o_ref[...] = y.astype(o_ref.dtype)


def _posconv_kernel(xp_ref, w_ref, b_ref, o_ref):
    """Grouped pos-conv via in-kernel tap accumulation + GELU + residual.

    xp: (B, T + 2*pad, C) padded hidden state (also supplies the residual).
    w:  (G, K, Cg, Og) per-group, per-tap weights (bf16).
    """
    g_cnt, k_size, cg, og = w_ref.shape
    bb, tt, cc = o_ref.shape
    m = bb * tt
    pad = (xp_ref.shape[1] - tt) // 2
    parts = []
    for g in range(g_cnt):
        acc = jnp.zeros((m, og), jnp.float32)
        for j in range(k_size):
            xs = xp_ref[:, j:j + tt, g * cg:(g + 1) * cg].reshape(m, cg)
            acc = acc + jnp.dot(xs.astype(jnp.bfloat16), w_ref[g, j],
                                preferred_element_type=jnp.float32)
        parts.append(acc)
    y = jnp.concatenate(parts, axis=-1) + b_ref[...]         # (M, C)
    res = xp_ref[:, pad:pad + tt, :].reshape(m, cc).astype(jnp.float32)
    o_ref[...] = (res + _gelu(y)).reshape(bb, tt, cc).astype(o_ref.dtype)


def _encoder_stack_kernel(x_ref, ln1g_ref, ln1b_ref, qkvw_ref, qkvb_ref,
                          ow_ref, ob_ref, ln2g_ref, ln2b_ref,
                          ff1w_ref, ff1b_ref, ff2w_ref, ff2b_ref,
                          fing_ref, finb_ref, o_ref, h_ref, *, n_heads):
    """One grid step = one stable-layer-norm transformer layer (fully fused).

    The residual stream is carried across grid steps in the VMEM scratch
    h_ref; the final encoder LayerNorm is applied at the last layer.
    """
    layer = pl.program_id(0)
    n_layers = pl.num_programs(0)
    bb, tt, hid = x_ref.shape
    m = bb * tt
    dh = hid // n_heads
    scale = dh ** -0.5

    @pl.when(layer == 0)
    def _():
        h_ref[...] = x_ref[...].astype(jnp.float32)

    x = h_ref[...]                                            # (B, T, H) f32

    # ---- pre-LN multi-head self-attention + out-proj + residual ----
    xn = _ln(x, ln1g_ref[...], ln1b_ref[...]).reshape(m, hid)
    qkv = jnp.dot(xn.astype(jnp.bfloat16), qkvw_ref[...],
                  preferred_element_type=jnp.float32) + qkvb_ref[...]  # (M, 3H)
    ctx_parts = []
    for hd in range(n_heads):
        qh = ((qkv[:, hd * dh:(hd + 1) * dh] * scale)
              .reshape(bb, tt, dh).astype(jnp.bfloat16))
        kh = (qkv[:, hid + hd * dh: hid + (hd + 1) * dh]
              .reshape(bb, tt, dh).astype(jnp.bfloat16))
        vh = (qkv[:, 2 * hid + hd * dh: 2 * hid + (hd + 1) * dh]
              .reshape(bb, tt, dh).astype(jnp.bfloat16))
        s = jnp.einsum("bqd,bkd->bqk", qh, kh,
                       preferred_element_type=jnp.float32)
        smax = jnp.max(s, axis=-1, keepdims=True)
        pw = jnp.exp(s - smax)
        pw = pw * pl.reciprocal(jnp.sum(pw, axis=-1, keepdims=True), approx=True)
        ctx_parts.append(jnp.einsum("bqk,bkd->bqd", pw.astype(jnp.bfloat16), vh,
                                    preferred_element_type=jnp.float32))
    ctx = jnp.concatenate(ctx_parts, axis=-1).reshape(m, hid)  # heads -> H lanes
    attn = jnp.dot(ctx.astype(jnp.bfloat16), ow_ref[...],
                   preferred_element_type=jnp.float32) + ob_ref[...]
    x = x + attn.reshape(bb, tt, hid)

    # ---- pre-LN feed-forward + residual ----
    yn = _ln(x, ln2g_ref[...], ln2b_ref[...]).reshape(m, hid)
    f1 = _gelu(jnp.dot(yn.astype(jnp.bfloat16), ff1w_ref[...],
                       preferred_element_type=jnp.float32) + ff1b_ref[...])
    f2 = jnp.dot(f1.astype(jnp.bfloat16), ff2w_ref[...],
                 preferred_element_type=jnp.float32) + ff2b_ref[...]
    out = x + f2.reshape(bb, tt, hid)

    h_ref[...] = out

    @pl.when(layer == n_layers - 1)
    def _():
        o_ref[...] = _ln(out, fing_ref[...], finb_ref[...]).astype(o_ref.dtype)

    @pl.when(layer < n_layers - 1)
    def _():
        o_ref[...] = out.astype(o_ref.dtype)


def _cls_kernel(x_ref, w_ref, b_ref, o_ref):
    """Classifier: single (B, T*H) x (T*H, N_pad) matmul."""
    y = jnp.dot(x_ref[...].astype(jnp.bfloat16), w_ref[...],
                preferred_element_type=jnp.float32) + b_ref[...]
    o_ref[...] = y.astype(o_ref.dtype)


# ------------------------------- wrappers -----------------------------------

def conv_feat_layer(x, lp, k, stride):
    """x: (B, L, Cin) channels-last -> GELU(LN(conv(x))) as (B, T, Cout)."""
    bb, ll, cin = x.shape
    kcin_pad, cout = lp["w2"].shape
    t = (ll - k) // stride + 1
    starts = jnp.arange(t) * stride
    # TODO(synk): im2col gather stays in the XLA wrapper; at checkpoint scale
    # move the windowing into the kernel with strided pl.ds loads.
    win = x[:, starts[:, None] + jnp.arange(k)[None, :], :]      # (B, T, K, Cin)
    patches = win.reshape(bb * t, k * cin)
    if kcin_pad != k * cin:     # pad the tiny first-layer contraction (10 -> 16)
        patches = jnp.pad(patches, ((0, 0), (0, kcin_pad - k * cin)))
    out = pl.pallas_call(
        _conv_ln_gelu_kernel,
        out_shape=jax.ShapeDtypeStruct((bb * t, cout), jnp.float32),
    )(patches, lp["w2"], lp["b"], lp["ln_g"], lp["ln_b"])
    return out.reshape(bb, t, cout)


def pos_conv_residual(h, w_taps, b):
    """Grouped positional conv + SamePad(drop last) + GELU + residual."""
    bb, tt, cc = h.shape
    xp = jnp.pad(h, ((0, 0), (POS_PAD, POS_PAD), (0, 0)))
    return pl.pallas_call(
        _posconv_kernel,
        out_shape=jax.ShapeDtypeStruct((bb, tt, cc), jnp.float32),
    )(xp, w_taps, b)


def encoder_stack(h, params):
    """Whole transformer stack (+ final LayerNorm) in one pallas_call."""
    bb, tt, hid = h.shape
    n_layers, _, three_h = params["qkv_w"].shape
    ffn = params["ff1_w"].shape[2]

    def lmap(l):
        return (l, 0, 0)

    def fix3(l):
        return (0, 0, 0)

    def fix2(l):
        return (0, 0)

    grid_spec = pltpu.PrefetchScalarGridSpec(
        num_scalar_prefetch=0,
        grid=(n_layers,),
        in_specs=[
            pl.BlockSpec((bb, tt, hid), fix3),            # x (residual stream in)
            pl.BlockSpec((None, 1, hid), lmap),           # ln1_g
            pl.BlockSpec((None, 1, hid), lmap),           # ln1_b
            pl.BlockSpec((None, hid, three_h), lmap),     # qkv_w
            pl.BlockSpec((None, 1, three_h), lmap),       # qkv_b
            pl.BlockSpec((None, hid, hid), lmap),         # o_w
            pl.BlockSpec((None, 1, hid), lmap),           # o_b
            pl.BlockSpec((None, 1, hid), lmap),           # ln2_g
            pl.BlockSpec((None, 1, hid), lmap),           # ln2_b
            pl.BlockSpec((None, hid, ffn), lmap),         # ff1_w
            pl.BlockSpec((None, 1, ffn), lmap),           # ff1_b
            pl.BlockSpec((None, ffn, hid), lmap),         # ff2_w
            pl.BlockSpec((None, 1, hid), lmap),           # ff2_b
            pl.BlockSpec((1, hid), fix2),                 # final enc LN gamma
            pl.BlockSpec((1, hid), fix2),                 # final enc LN beta
        ],
        out_specs=pl.BlockSpec((bb, tt, hid), fix3),
        scratch_shapes=[pltpu.VMEM((bb, tt, hid), jnp.float32)],
    )
    return pl.pallas_call(
        functools.partial(_encoder_stack_kernel, n_heads=N_HEADS),
        out_shape=jax.ShapeDtypeStruct((bb, tt, hid), jnp.float32),
        grid_spec=grid_spec,
        compiler_params=pltpu.CompilerParams(
            dimension_semantics=("arbitrary",)),
    )(h, params["ln1_g"], params["ln1_b"], params["qkv_w"], params["qkv_b"],
      params["o_w"], params["o_b"], params["ln2_g"], params["ln2_b"],
      params["ff1_w"], params["ff1_b"], params["ff2_w"], params["ff2_b"],
      params["enc_ln_g"], params["enc_ln_b"])


def wav2vec2_forward(params, audio):
    bb = audio.shape[0]
    h = audio[:, :, None]                                        # (B, L, 1)
    # Feature extractor: conv -> LayerNorm(channel) -> GELU per layer (fused).
    for lp, k, s in zip(params["feat_conv"], CONV_KERNELS, CONV_STRIDES):
        h = conv_feat_layer(h, lp, k, s)
    bc, t, c = h.shape
    # Feature projection: LayerNorm -> Linear (dropout is a no-op in eval).
    x = pl.pallas_call(
        _ln_linear_kernel,
        out_shape=jax.ShapeDtypeStruct((bc * t, HIDDEN), jnp.float32),
    )(h.reshape(bc * t, c), params["fp_ln_g"], params["fp_ln_b"],
      params["fp_w"], params["fp_b"])
    h = x.reshape(bc, t, HIDDEN)
    # Positional conv embedding + SamePad + GELU + residual, one launch.
    h = pos_conv_residual(h, params["pos_w"], params["pos_b"])
    # Transformer stack (grid over layers) + final encoder LayerNorm.
    hs = encoder_stack(h, params)
    # Flatten (B, T*H) in XLA (cheap) and classify (padded to 128 lanes).
    flat = hs.reshape(bb, t * HIDDEN)
    logits = pl.pallas_call(
        _cls_kernel,
        out_shape=jax.ShapeDtypeStruct((bb, N_CLASSES_PAD), jnp.float32),
    )(flat, params["cls_w"], params["cls_b"])
    return logits[:, :N_CLASSES]


def init_params(key):
    keys = iter(jax.random.split(key, 64))

    def w(shape, scale=0.02):
        return jax.random.normal(next(keys), shape, jnp.float32) * scale

    p = {}
    # Feature-extractor convs: weights pre-transposed to (K*Cin_pad, Cout) bf16.
    feat = []
    cin = 1
    for cout, k in zip(CONV_DIMS, CONV_KERNELS):
        raw = w((cout, cin, k))                    # PyTorch layout (Cout, Cin, K)
        kcin = k * cin
        kcin_pad = -(-kcin // 8) * 8               # round up to multiple of 8
        w2 = jnp.transpose(raw, (2, 1, 0)).reshape(kcin, cout)
        w2 = jnp.pad(w2, ((0, kcin_pad - kcin), (0, 0)))
        feat.append(dict(w2=w2.astype(jnp.bfloat16),
                         b=jnp.zeros((1, cout), jnp.float32),
                         ln_g=jnp.ones((1, cout), jnp.float32),
                         ln_b=jnp.zeros((1, cout), jnp.float32)))
        cin = cout
    p["feat_conv"] = feat

    c_last = CONV_DIMS[-1]
    p["fp_ln_g"] = jnp.ones((1, c_last), jnp.float32)
    p["fp_ln_b"] = jnp.zeros((1, c_last), jnp.float32)
    p["fp_w"] = w((c_last, HIDDEN)).astype(jnp.bfloat16)
    p["fp_b"] = jnp.zeros((1, HIDDEN), jnp.float32)

    # Positional grouped conv (weight-norm folded): stored per (group, tap).
    og = HIDDEN // POS_GROUPS
    cg = HIDDEN // POS_GROUPS
    pw = w((HIDDEN, cg, POS_KERNEL)).reshape(POS_GROUPS, og, cg, POS_KERNEL)
    p["pos_w"] = jnp.transpose(pw, (0, 3, 2, 1)).astype(jnp.bfloat16)  # (G,K,Cg,Og)
    p["pos_b"] = jnp.zeros((1, HIDDEN), jnp.float32)

    # Transformer stack: per-layer params stacked on a leading layer axis.
    def stack_w(shape):
        return jnp.stack([w(shape) for _ in range(N_LAYERS)]).astype(jnp.bfloat16)

    p["ln1_g"] = jnp.ones((N_LAYERS, 1, HIDDEN), jnp.float32)
    p["ln1_b"] = jnp.zeros((N_LAYERS, 1, HIDDEN), jnp.float32)
    p["qkv_w"] = stack_w((HIDDEN, 3 * HIDDEN))     # fused Q/K/V projection
    p["qkv_b"] = jnp.zeros((N_LAYERS, 1, 3 * HIDDEN), jnp.float32)
    p["o_w"] = stack_w((HIDDEN, HIDDEN))
    p["o_b"] = jnp.zeros((N_LAYERS, 1, HIDDEN), jnp.float32)
    p["ln2_g"] = jnp.ones((N_LAYERS, 1, HIDDEN), jnp.float32)
    p["ln2_b"] = jnp.zeros((N_LAYERS, 1, HIDDEN), jnp.float32)
    p["ff1_w"] = stack_w((HIDDEN, FFN))
    p["ff1_b"] = jnp.zeros((N_LAYERS, 1, FFN), jnp.float32)
    p["ff2_w"] = stack_w((FFN, HIDDEN))
    p["ff2_b"] = jnp.zeros((N_LAYERS, 1, HIDDEN), jnp.float32)
    p["enc_ln_g"] = jnp.ones((1, HIDDEN), jnp.float32)
    p["enc_ln_b"] = jnp.zeros((1, HIDDEN), jnp.float32)

    # Classifier: matches the module's explicit init (weight ~ U(-1e-5, 1e-5),
    # bias = 0); output padded to 128 lanes, weight stored pre-padded.
    cls = jax.random.uniform(next(keys), (SEQ_LEN * HIDDEN, N_CLASSES),
                             jnp.float32, -1e-5, 1e-5)
    p["cls_w"] = jnp.pad(cls, ((0, 0), (0, N_CLASSES_PAD - N_CLASSES))
                         ).astype(jnp.bfloat16)
    p["cls_b"] = jnp.zeros((1, N_CLASSES_PAD), jnp.float32)
    return p


if __name__ == "__main__":
    root = jax.random.PRNGKey(0)
    pkey, xkey = jax.random.split(root)
    params = init_params(pkey)
    audio = jax.random.normal(xkey, (BATCH, AUDIO_LEN), jnp.float32)
    out = jax.jit(wav2vec2_forward)(params, audio)
    out = jax.block_until_ready(out)
    assert out.shape == (BATCH, N_CLASSES), out.shape
    assert jnp.all(jnp.isfinite(out))
    print("KERNEL_OK")
</pallas_src>

<mosaic_0001>
module attributes {stable_mosaic.version = 11 : i64} {
  func.func @_conv_ln_gelu_kernel(%arg0: memref<130x16xf32, #tpu.memory_space<vmem>>, %arg1: memref<16x128xbf16, #tpu.memory_space<vmem>>, %arg2: memref<1x128xf32, #tpu.memory_space<vmem>>, %arg3: memref<1x128xf32, #tpu.memory_space<vmem>>, %arg4: memref<1x128xf32, #tpu.memory_space<vmem>>, %arg5: memref<130x128xf32, #tpu.memory_space<vmem>>) attributes {dimension_semantics = [], scalar_prefetch = 0 : i64, scratch_operands = 0 : i64, tpu.core_type = #tpu.core_type<tc>} {
    %c0 = arith.constant 0 : index
    %c0_0 = arith.constant 0 : index
    %0 = vector.load %arg0[%c0, %c0_0] : memref<130x16xf32, #tpu.memory_space<vmem>>, vector<130x16xf32>
    %1 = arith.truncf %0 : vector<130x16xf32> to vector<130x16xbf16>
    %c0_1 = arith.constant 0 : index
    %c0_2 = arith.constant 0 : index
    %2 = vector.load %arg1[%c0_1, %c0_2] : memref<16x128xbf16, #tpu.memory_space<vmem>>, vector<16x128xbf16>
    %cst = arith.constant dense<0.000000e+00> : vector<130x128xf32>
    %3 = tpu.matmul %1, %2, %cst {dimension_numbers = #tpu.dot_dimension_numbers<[1], [0], [0], [1], [0, 0, 1, 1], [], []>} : vector<130x16xbf16>, vector<16x128xbf16>, vector<130x128xf32> -> vector<130x128xf32>
    %c0_3 = arith.constant 0 : index
    %c0_4 = arith.constant 0 : index
    %4 = vector.load %arg2[%c0_3, %c0_4] : memref<1x128xf32, #tpu.memory_space<vmem>>, vector<1x128xf32>
    %5 = vector.broadcast %4 : vector<1x128xf32> to vector<130x128xf32>
    %6 = arith.addf %3, %5 : vector<130x128xf32>
    %c0_5 = arith.constant 0 : index
    %c0_6 = arith.constant 0 : index
    %7 = vector.load %arg3[%c0_5, %c0_6] : memref<1x128xf32, #tpu.memory_space<vmem>>, vector<1x128xf32>
    %c0_7 = arith.constant 0 : index
    %c0_8 = arith.constant 0 : index
    %8 = vector.load %arg4[%c0_7, %c0_8] : memref<1x128xf32, #tpu.memory_space<vmem>>, vector<1x128xf32>
    %cst_9 = arith.constant dense<0.000000e+00> : vector<130xf32>
    %9 = vector.multi_reduction <add>, %6, %cst_9 [1] : vector<130x128xf32> to vector<130xf32>
    %10 = vector.shape_cast %9 : vector<130xf32> to vector<130x1xf32>
    %cst_10 = arith.constant 1.280000e+02 : f32
    %11 = vector.broadcast %cst_10 : f32 to vector<130x1xf32>
    %12 = arith.divf %10, %11 : vector<130x1xf32>
    %13 = vector.broadcast %12 : vector<130x1xf32> to vector<130x128xf32>
    %14 = arith.subf %6, %13 : vector<130x128xf32>
    %15 = vector.broadcast %12 : vector<130x1xf32> to vector<130x128xf32>
    %16 = arith.subf %6, %15 : vector<130x128xf32>
    %17 = arith.mulf %14, %16 : vector<130x128xf32>
    %cst_11 = arith.constant dense<0.000000e+00> : vector<130xf32>
    %18 = vector.multi_reduction <add>, %17, %cst_11 [1] : vector<130x128xf32> to vector<130xf32>
    %19 = vector.shape_cast %18 : vector<130xf32> to vector<130x1xf32>
    %cst_12 = arith.constant 1.280000e+02 : f32
    %20 = vector.broadcast %cst_12 : f32 to vector<130x1xf32>
    %21 = arith.divf %19, %20 : vector<130x1xf32>
    %22 = vector.broadcast %12 : vector<130x1xf32> to vector<130x128xf32>
    %23 = arith.subf %6, %22 : vector<130x128xf32>
    %cst_13 = arith.constant 9.99999974E-6 : f32
    %24 = vector.broadcast %cst_13 : f32 to vector<130x1xf32>
    %25 = arith.addf %21, %24 : vector<130x1xf32>
    %26 = math.rsqrt %25 : vector<130x1xf32>
    %27 = vector.broadcast %26 : vector<130x1xf32> to vector<130x128xf32>
    %28 = arith.mulf %23, %27 : vector<130x128xf32>
    %29 = vector.broadcast %7 : vector<1x128xf32> to vector<130x128xf32>
    %30 = arith.mulf %28, %29 : vector<130x128xf32>
    %31 = vector.broadcast %8 : vector<1x128xf32> to vector<130x128xf32>
    %32 = arith.addf %30, %31 : vector<130x128xf32>
    %cst_14 = arith.constant 5.000000e-01 : f32
    %33 = vector.broadcast %cst_14 : f32 to vector<130x128xf32>
    %34 = arith.mulf %33, %32 : vector<130x128xf32>
    %cst_15 = arith.constant 4.471500e-02 : f32
    %35 = vector.broadcast %cst_15 : f32 to vector<130x128xf32>
    %36 = arith.mulf %35, %32 : vector<130x128xf32>
    %37 = arith.mulf %36, %32 : vector<130x128xf32>
    %38 = arith.mulf %37, %32 : vector<130x128xf32>
    %39 = arith.addf %32, %38 : vector<130x128xf32>
    %cst_16 = arith.constant 0.797884583 : f32
    %40 = vector.broadcast %cst_16 : f32 to vector<130x128xf32>
    %41 = arith.mulf %40, %39 : vector<130x128xf32>
    %42 = math.tanh %41 : vector<130x128xf32>
    %cst_17 = arith.constant 1.000000e+00 : f32
    %43 = vector.broadcast %cst_17 : f32 to vector<130x128xf32>
    %44 = arith.addf %43, %42 : vector<130x128xf32>
    %45 = arith.mulf %34, %44 : vector<130x128xf32>
    %c0_18 = arith.constant 0 : index
    %c0_19 = arith.constant 0 : index
    %46 = vector.load %arg5[%c0_18, %c0_19] : memref<130x128xf32, #tpu.memory_space<vmem>>, vector<130x128xf32>
    tpu.vector_store %arg5[%c0_18, %c0_19], %45 {strides = array<i32>} : memref<130x128xf32, #tpu.memory_space<vmem>>, vector<130x128xf32>,
    return
  }
}

module attributes {stable_mosaic.version = 11 : i64} {
  func.func @_conv_ln_gelu_kernel(%arg0: memref<64x384xf32, #tpu.memory_space<vmem>>, %arg1: memref<384x128xbf16, #tpu.memory_space<vmem>>, %arg2: memref<1x128xf32, #tpu.memory_space<vmem>>, %arg3: memref<1x128xf32, #tpu.memory_space<vmem>>, %arg4: memref<1x128xf32, #tpu.memory_space<vmem>>, %arg5: memref<64x128xf32, #tpu.memory_space<vmem>>) attributes {dimension_semantics = [], scalar_prefetch = 0 : i64, scratch_operands = 0 : i64, tpu.core_type = #tpu.core_type<tc>} {
    %c0 = arith.constant 0 : index
    %c0_0 = arith.constant 0 : index
    %0 = vector.load %arg0[%c0, %c0_0] : memref<64x384xf32, #tpu.memory_space<vmem>>, vector<64x384xf32>
    %1 = arith.truncf %0 : vector<64x384xf32> to vector<64x384xbf16>
    %c0_1 = arith.constant 0 : index
    %c0_2 = arith.constant 0 : index
    %2 = vector.load %arg1[%c0_1, %c0_2] : memref<384x128xbf16, #tpu.memory_space<vmem>>, vector<384x128xbf16>
    %cst = arith.constant dense<0.000000e+00> : vector<64x128xf32>
    %3 = tpu.matmul %1, %2, %cst {dimension_numbers = #tpu.dot_dimension_numbers<[1], [0], [0], [1], [0, 0, 1, 1], [], []>} : vector<64x384xbf16>, vector<384x128xbf16>, vector<64x128xf32> -> vector<64x128xf32>
    %c0_3 = arith.constant 0 : index
    %c0_4 = arith.constant 0 : index
    %4 = vector.load %arg2[%c0_3, %c0_4] : memref<1x128xf32, #tpu.memory_space<vmem>>, vector<1x128xf32>
    %5 = vector.broadcast %4 : vector<1x128xf32> to vector<64x128xf32>
    %6 = arith.addf %3, %5 : vector<64x128xf32>
    %c0_5 = arith.constant 0 : index
    %c0_6 = arith.constant 0 : index
    %7 = vector.load %arg3[%c0_5, %c0_6] : memref<1x128xf32, #tpu.memory_space<vmem>>, vector<1x128xf32>
    %c0_7 = arith.constant 0 : index
    %c0_8 = arith.constant 0 : index
    %8 = vector.load %arg4[%c0_7, %c0_8] : memref<1x128xf32, #tpu.memory_space<vmem>>, vector<1x128xf32>
    %cst_9 = arith.constant dense<0.000000e+00> : vector<64xf32>
    %9 = vector.multi_reduction <add>, %6, %cst_9 [1] : vector<64x128xf32> to vector<64xf32>
    %10 = vector.shape_cast %9 : vector<64xf32> to vector<64x1xf32>
    %cst_10 = arith.constant 1.280000e+02 : f32
    %11 = vector.broadcast %cst_10 : f32 to vector<64x1xf32>
    %12 = arith.divf %10, %11 : vector<64x1xf32>
    %13 = vector.broadcast %12 : vector<64x1xf32> to vector<64x128xf32>
    %14 = arith.subf %6, %13 : vector<64x128xf32>
    %15 = vector.broadcast %12 : vector<64x1xf32> to vector<64x128xf32>
    %16 = arith.subf %6, %15 : vector<64x128xf32>
    %17 = arith.mulf %14, %16 : vector<64x128xf32>
    %cst_11 = arith.constant dense<0.000000e+00> : vector<64xf32>
    %18 = vector.multi_reduction <add>, %17, %cst_11 [1] : vector<64x128xf32> to vector<64xf32>
    %19 = vector.shape_cast %18 : vector<64xf32> to vector<64x1xf32>
    %cst_12 = arith.constant 1.280000e+02 : f32
    %20 = vector.broadcast %cst_12 : f32 to vector<64x1xf32>
    %21 = arith.divf %19, %20 : vector<64x1xf32>
    %22 = vector.broadcast %12 : vector<64x1xf32> to vector<64x128xf32>
    %23 = arith.subf %6, %22 : vector<64x128xf32>
    %cst_13 = arith.constant 9.99999974E-6 : f32
    %24 = vector.broadcast %cst_13 : f32 to vector<64x1xf32>
    %25 = arith.addf %21, %24 : vector<64x1xf32>
    %26 = math.rsqrt %25 : vector<64x1xf32>
    %27 = vector.broadcast %26 : vector<64x1xf32> to vector<64x128xf32>
    %28 = arith.mulf %23, %27 : vector<64x128xf32>
    %29 = vector.broadcast %7 : vector<1x128xf32> to vector<64x128xf32>
    %30 = arith.mulf %28, %29 : vector<64x128xf32>
    %31 = vector.broadcast %8 : vector<1x128xf32> to vector<64x128xf32>
    %32 = arith.addf %30, %31 : vector<64x128xf32>
    %cst_14 = arith.constant 5.000000e-01 : f32
    %33 = vector.broadcast %cst_14 : f32 to vector<64x128xf32>
    %34 = arith.mulf %33, %32 : vector<64x128xf32>
    %cst_15 = arith.constant 4.471500e-02 : f32
    %35 = vector.broadcast %cst_15 : f32 to vector<64x128xf32>
    %36 = arith.mulf %35, %32 : vector<64x128xf32>
    %37 = arith.mulf %36, %32 : vector<64x128xf32>
    %38 = arith.mulf %37, %32 : vector<64x128xf32>
    %39 = arith.addf %32, %38 : vector<64x128xf32>
    %cst_16 = arith.constant 0.797884583 : f32
    %40 = vector.broadcast %cst_16 : f32 to vector<64x128xf32>
    %41 = arith.mulf %40, %39 : vector<64x128xf32>
    %42 = math.tanh %41 : vector<64x128xf32>
    %cst_17 = arith.constant 1.000000e+00 : f32
    %43 = vector.broadcast %cst_17 : f32 to vector<64x128xf32>
    %44 = arith.addf %43, %42 : vector<64x128xf32>
    %45 = arith.mulf %34, %44 : vector<64x128xf32>
    %c0_18 = arith.constant 0 : index
    %c0_19 = arith.constant 0 : index
    %46 = vector.load %arg5[%c0_18, %c0_19] : memref<64x128xf32, #tpu.memory_space<vmem>>, vector<64x128xf32>
    tpu.vector_store %arg5[%c0_18, %c0_19], %45 {strides = array<i32>} : memref<64x128xf32, #tpu.memory_space<vmem>>, vector<64x128xf32>,
    return
  }
}

module attributes {stable_mosaic.version = 11 : i64} {
  func.func @_conv_ln_gelu_kernel(%arg0: memref<32x256xf32, #tpu.memory_space<vmem>>, %arg1: memref<256x128xbf16, #tpu.memory_space<vmem>>, %arg2: memref<1x128xf32, #tpu.memory_space<vmem>>, %arg3: memref<1x128xf32, #tpu.memory_space<vmem>>, %arg4: memref<1x128xf32, #tpu.memory_space<vmem>>, %arg5: memref<32x128xf32, #tpu.memory_space<vmem>>) attributes {dimension_semantics = [], scalar_prefetch = 0 : i64, scratch_operands = 0 : i64, tpu.core_type = #tpu.core_type<tc>} {
    %c0 = arith.constant 0 : index
    %c0_0 = arith.constant 0 : index
    %0 = vector.load %arg0[%c0, %c0_0] : memref<32x256xf32, #tpu.memory_space<vmem>>, vector<32x256xf32>
    %1 = arith.truncf %0 : vector<32x256xf32> to vector<32x256xbf16>
    %c0_1 = arith.constant 0 : index
    %c0_2 = arith.constant 0 : index
    %2 = vector.load %arg1[%c0_1, %c0_2] : memref<256x128xbf16, #tpu.memory_space<vmem>>, vector<256x128xbf16>
    %cst = arith.constant dense<0.000000e+00> : vector<32x128xf32>
    %3 = tpu.matmul %1, %2, %cst {dimension_numbers = #tpu.dot_dimension_numbers<[1], [0], [0], [1], [0, 0, 1, 1], [], []>} : vector<32x256xbf16>, vector<256x128xbf16>, vector<32x128xf32> -> vector<32x128xf32>
    %c0_3 = arith.constant 0 : index
    %c0_4 = arith.constant 0 : index
    %4 = vector.load %arg2[%c0_3, %c0_4] : memref<1x128xf32, #tpu.memory_space<vmem>>, vector<1x128xf32>
    %5 = vector.broadcast %4 : vector<1x128xf32> to vector<32x128xf32>
    %6 = arith.addf %3, %5 : vector<32x128xf32>
    %c0_5 = arith.constant 0 : index
    %c0_6 = arith.constant 0 : index
    %7 = vector.load %arg3[%c0_5, %c0_6] : memref<1x128xf32, #tpu.memory_space<vmem>>, vector<1x128xf32>
    %c0_7 = arith.constant 0 : index
    %c0_8 = arith.constant 0 : index
    %8 = vector.load %arg4[%c0_7, %c0_8] : memref<1x128xf32, #tpu.memory_space<vmem>>, vector<1x128xf32>
    %cst_9 = arith.constant dense<0.000000e+00> : vector<32xf32>
    %9 = vector.multi_reduction <add>, %6, %cst_9 [1] : vector<32x128xf32> to vector<32xf32>
    %10 = vector.shape_cast %9 : vector<32xf32> to vector<32x1xf32>
    %cst_10 = arith.constant 1.280000e+02 : f32
    %11 = vector.broadcast %cst_10 : f32 to vector<32x1xf32>
    %12 = arith.divf %10, %11 : vector<32x1xf32>
    %13 = vector.broadcast %12 : vector<32x1xf32> to vector<32x128xf32>
    %14 = arith.subf %6, %13 : vector<32x128xf32>
    %15 = vector.broadcast %12 : vector<32x1xf32> to vector<32x128xf32>
    %16 = arith.subf %6, %15 : vector<32x128xf32>
    %17 = arith.mulf %14, %16 : vector<32x128xf32>
    %cst_11 = arith.constant dense<0.000000e+00> : vector<32xf32>
    %18 = vector.multi_reduction <add>, %17, %cst_11 [1] : vector<32x128xf32> to vector<32xf32>
    %19 = vector.shape_cast %18 : vector<32xf32> to vector<32x1xf32>
    %cst_12 = arith.constant 1.280000e+02 : f32
    %20 = vector.broadcast %cst_12 : f32 to vector<32x1xf32>
    %21 = arith.divf %19, %20 : vector<32x1xf32>
    %22 = vector.broadcast %12 : vector<32x1xf32> to vector<32x128xf32>
    %23 = arith.subf %6, %22 : vector<32x128xf32>
    %cst_13 = arith.constant 9.99999974E-6 : f32
    %24 = vector.broadcast %cst_13 : f32 to vector<32x1xf32>
    %25 = arith.addf %21, %24 : vector<32x1xf32>
    %26 = math.rsqrt %25 : vector<32x1xf32>
    %27 = vector.broadcast %26 : vector<32x1xf32> to vector<32x128xf32>
    %28 = arith.mulf %23, %27 : vector<32x128xf32>
    %29 = vector.broadcast %7 : vector<1x128xf32> to vector<32x128xf32>
    %30 = arith.mulf %28, %29 : vector<32x128xf32>
    %31 = vector.broadcast %8 : vector<1x128xf32> to vector<32x128xf32>
    %32 = arith.addf %30, %31 : vector<32x128xf32>
    %cst_14 = arith.constant 5.000000e-01 : f32
    %33 = vector.broadcast %cst_14 : f32 to vector<32x128xf32>
    %34 = arith.mulf %33, %32 : vector<32x128xf32>
    %cst_15 = arith.constant 4.471500e-02 : f32
    %35 = vector.broadcast %cst_15 : f32 to vector<32x128xf32>
    %36 = arith.mulf %35, %32 : vector<32x128xf32>
    %37 = arith.mulf %36, %32 : vector<32x128xf32>
    %38 = arith.mulf %37, %32 : vector<32x128xf32>
    %39 = arith.addf %32, %38 : vector<32x128xf32>
    %cst_16 = arith.constant 0.797884583 : f32
    %40 = vector.broadcast %cst_16 : f32 to vector<32x128xf32>
    %41 = arith.mulf %40, %39 : vector<32x128xf32>
    %42 = math.tanh %41 : vector<32x128xf32>
    %cst_17 = arith.constant 1.000000e+00 : f32
    %43 = vector.broadcast %cst_17 : f32 to vector<32x128xf32>
    %44 = arith.addf %43, %42 : vector<32x128xf32>
    %45 = arith.mulf %34, %44 : vector<32x128xf32>
    %c0_18 = arith.constant 0 : index
    %c0_19 = arith.constant 0 : index
    %46 = vector.load %arg5[%c0_18, %c0_19] : memref<32x128xf32, #tpu.memory_space<vmem>>, vector<32x128xf32>
    tpu.vector_store %arg5[%c0_18, %c0_19], %45 {strides = array<i32>} : memref<32x128xf32, #tpu.memory_space<vmem>>, vector<32x128xf32>,
    return
  }
}

module attributes {stable_mosaic.version = 11 : i64} {
  func.func @_ln_linear_kernel(%arg0: memref<32x128xf32, #tpu.memory_space<vmem>>, %arg1: memref<1x128xf32, #tpu.memory_space<vmem>>, %arg2: memref<1x128xf32, #tpu.memory_space<vmem>>, %arg3: memref<128x128xbf16, #tpu.memory_space<vmem>>, %arg4: memref<1x128xf32, #tpu.memory_space<vmem>>, %arg5: memref<32x128xf32, #tpu.memory_space<vmem>>) attributes {dimension_semantics = [], scalar_prefetch = 0 : i64, scratch_operands = 0 : i64, tpu.core_type = #tpu.core_type<tc>} {
    %c0 = arith.constant 0 : index
    %c0_0 = arith.constant 0 : index
    %0 = vector.load %arg0[%c0, %c0_0] : memref<32x128xf32, #tpu.memory_space<vmem>>, vector<32x128xf32>
    %c0_1 = arith.constant 0 : index
    %c0_2 = arith.constant 0 : index
    %1 = vector.load %arg1[%c0_1, %c0_2] : memref<1x128xf32, #tpu.memory_space<vmem>>, vector<1x128xf32>
    %c0_3 = arith.constant 0 : index
    %c0_4 = arith.constant 0 : index
    %2 = vector.load %arg2[%c0_3, %c0_4] : memref<1x128xf32, #tpu.memory_space<vmem>>, vector<1x128xf32>
    %cst = arith.constant dense<0.000000e+00> : vector<32xf32>
    %3 = vector.multi_reduction <add>, %0, %cst [1] : vector<32x128xf32> to vector<32xf32>
    %4 = vector.shape_cast %3 : vector<32xf32> to vector<32x1xf32>
    %cst_5 = arith.constant 1.280000e+02 : f32
    %5 = vector.broadcast %cst_5 : f32 to vector<32x1xf32>
    %6 = arith.divf %4, %5 : vector<32x1xf32>
    %7 = vector.broadcast %6 : vector<32x1xf32> to vector<32x128xf32>
    %8 = arith.subf %0, %7 : vector<32x128xf32>
    %9 = vector.broadcast %6 : vector<32x1xf32> to vector<32x128xf32>
    %10 = arith.subf %0, %9 : vector<32x128xf32>
    %11 = arith.mulf %8, %10 : vector<32x128xf32>
    %cst_6 = arith.constant dense<0.000000e+00> : vector<32xf32>
    %12 = vector.multi_reduction <add>, %11, %cst_6 [1] : vector<32x128xf32> to vector<32xf32>
    %13 = vector.shape_cast %12 : vector<32xf32> to vector<32x1xf32>
    %cst_7 = arith.constant 1.280000e+02 : f32
    %14 = vector.broadcast %cst_7 : f32 to vector<32x1xf32>
    %15 = arith.divf %13, %14 : vector<32x1xf32>
    %16 = vector.broadcast %6 : vector<32x1xf32> to vector<32x128xf32>
    %17 = arith.subf %0, %16 : vector<32x128xf32>
    %cst_8 = arith.constant 9.99999974E-6 : f32
    %18 = vector.broadcast %cst_8 : f32 to vector<32x1xf32>
    %19 = arith.addf %15, %18 : vector<32x1xf32>
    %20 = math.rsqrt %19 : vector<32x1xf32>
    %21 = vector.broadcast %20 : vector<32x1xf32> to vector<32x128xf32>
    %22 = arith.mulf %17, %21 : vector<32x128xf32>
    %23 = vector.broadcast %1 : vector<1x128xf32> to vector<32x128xf32>
    %24 = arith.mulf %22, %23 : vector<32x128xf32>
    %25 = vector.broadcast %2 : vector<1x128xf32> to vector<32x128xf32>
    %26 = arith.addf %24, %25 : vector<32x128xf32>
    %27 = arith.truncf %26 : vector<32x128xf32> to vector<32x128xbf16>
    %c0_9 = arith.constant 0 : index
    %c0_10 = arith.constant 0 : index
    %28 = vector.load %arg3[%c0_9, %c0_10] : memref<128x128xbf16, #tpu.memory_space<vmem>>, vector<128x128xbf16>
    %cst_11 = arith.constant dense<0.000000e+00> : vector<32x128xf32>
    %29 = tpu.matmul %27, %28, %cst_11 {dimension_numbers = #tpu.dot_dimension_numbers<[1], [0], [0], [1], [0, 0, 1, 1], [], []>} : vector<32x128xbf16>, vector<128x128xbf16>, vector<32x128xf32> -> vector<32x128xf32>
    %c0_12 = arith.constant 0 : index
    %c0_13 = arith.constant 0 : index
    %30 = vector.load %arg4[%c0_12, %c0_13] : memref<1x128xf32, #tpu.memory_space<vmem>>, vector<1x128xf32>
    %31 = vector.broadcast %30 : vector<1x128xf32> to vector<32x128xf32>
    %32 = arith.addf %29, %31 : vector<32x128xf32>
    %c0_14 = arith.constant 0 : index
    %c0_15 = arith.constant 0 : index
    %33 = vector.load %arg5[%c0_14, %c0_15] : memref<32x128xf32, #tpu.memory_space<vmem>>, vector<32x128xf32>
    tpu.vector_store %arg5[%c0_14, %c0_15], %32 {strides = array<i32>} : memref<32x128xf32, #tpu.memory_space<vmem>>, vector<32x128xf32>,
    return
  }
}

module attributes {stable_mosaic.version = 11 : i64} {
  func.func @_posconv_kernel(%arg0: memref<2x24x128xf32, #tpu.memory_space<vmem>>, %arg1: memref<4x8x32x32xbf16, #tpu.memory_space<vmem>>, %arg2: memref<1x128xf32, #tpu.memory_space<vmem>>, %arg3: memref<2x16x128xf32, #tpu.memory_space<vmem>>) attributes {dimension_semantics = [], scalar_prefetch = 0 : i64, scratch_operands = 0 : i64, tpu.core_type = #tpu.core_type<tc>} {
    %cst = arith.constant 0.000000e+00 : f32
    %0 = vector.broadcast %cst : f32 to vector<32x32xf32>
    %c0 = arith.constant 0 : index
    %c0_0 = arith.constant 0 : index
    %c0_1 = arith.constant 0 : index
    %1 = vector.load %arg0[%c0, %c0_0, %c0_1] : memref<2x24x128xf32, #tpu.memory_space<vmem>>, vector<2x16x32xf32>
    %2 = vector.shape_cast %1 : vector<2x16x32xf32> to vector<32x32xf32>
    %3 = arith.truncf %2 : vector<32x32xf32> to vector<32x32xbf16>
    %c0_2 = arith.constant 0 : index
    %c0_3 = arith.constant 0 : index
    %c0_4 = arith.constant 0 : index
    %c0_5 = arith.constant 0 : index
    %4 = vector.load %arg1[%c0_2, %c0_3, %c0_4, %c0_5] : memref<4x8x32x32xbf16, #tpu.memory_space<vmem>>, vector<1x1x32x32xbf16>
    %5 = vector.shape_cast %4 : vector<1x1x32x32xbf16> to vector<32x32xbf16>
    %cst_6 = arith.constant dense<0.000000e+00> : vector<32x32xf32>
    %6 = tpu.matmul %3, %5, %cst_6 {dimension_numbers = #tpu.dot_dimension_numbers<[1], [0], [0], [1], [0, 0, 1, 1], [], []>} : vector<32x32xbf16>, vector<32x32xbf16>, vector<32x32xf32> -> vector<32x32xf32>
    %7 = arith.addf %0, %6 : vector<32x32xf32>
    %c0_7 = arith.constant 0 : index
    %c1 = arith.constant 1 : index
    %c0_8 = arith.constant 0 : index
    %8 = vector.load %arg0[%c0_7, %c1, %c0_8] : memref<2x24x128xf32, #tpu.memory_space<vmem>>, vector<2x16x32xf32>
    %9 = vector.shape_cast %8 : vector<2x16x32xf32> to vector<32x32xf32>
    %10 = arith.truncf %9 : vector<32x32xf32> to vector<32x32xbf16>
    %c0_9 = arith.constant 0 : index
    %c1_10 = arith.constant 1 : index
    %c0_11 = arith.constant 0 : index
    %c0_12 = arith.constant 0 : index
    %11 = vector.load %arg1[%c0_9, %c1_10, %c0_11, %c0_12] : memref<4x8x32x32xbf16, #tpu.memory_space<vmem>>, vector<1x1x32x32xbf16>
    %12 = vector.shape_cast %11 : vector<1x1x32x32xbf16> to vector<32x32xbf16>
    %cst_13 = arith.constant dense<0.000000e+00> : vector<32x32xf32>
    %13 = tpu.matmul %10, %12, %cst_13 {dimension_numbers = #tpu.dot_dimension_numbers<[1], [0], [0], [1], [0, 0, 1, 1], [], []>} : vector<32x32xbf16>, vector<32x32xbf16>, vector<32x32xf32> -> vector<32x32xf32>
    %14 = arith.addf %7, %13 : vector<32x32xf32>
    %c0_14 = arith.constant 0 : index
    %c2 = arith.constant 2 : index
    %c0_15 = arith.constant 0 : index
    %15 = vector.load %arg0[%c0_14, %c2, %c0_15] : memref<2x24x128xf32, #tpu.memory_space<vmem>>, vector<2x16x32xf32>
    %16 = vector.shape_cast %15 : vector<2x16x32xf32> to vector<32x32xf32>
    %17 = arith.truncf %16 : vector<32x32xf32> to vector<32x32xbf16>
    %c0_16 = arith.constant 0 : index
    %c2_17 = arith.constant 2 : index
    %c0_18 = arith.constant 0 : index
    %c0_19 = arith.constant 0 : index
    %18 = vector.load %arg1[%c0_16, %c2_17, %c0_18, %c0_19] : memref<4x8x32x32xbf16, #tpu.memory_space<vmem>>, vector<1x1x32x32xbf16>
    %19 = vector.shape_cast %18 : vector<1x1x32x32xbf16> to vector<32x32xbf16>
    %cst_20 = arith.constant dense<0.000000e+00> : vector<32x32xf32>
    %20 = tpu.matmul %17, %19, %cst_20 {dimension_numbers = #tpu.dot_dimension_numbers<[1], [0], [0], [1], [0, 0, 1, 1], [], []>} : vector<32x32xbf16>, vector<32x32xbf16>, vector<32x32xf32> -> vector<32x32xf32>
    %21 = arith.addf %14, %20 : vector<32x32xf32>
    %c0_21 = arith.constant 0 : index
    %c3 = arith.constant 3 : index
    %c0_22 = arith.constant 0 : index
    %22 = vector.load %arg0[%c0_21, %c3, %c0_22] : memref<2x24x128xf32, #tpu.memory_space<vmem>>, vector<2x16x32xf32>
    %23 = vector.shape_cast %22 : vector<2x16x32xf32> to vector<32x32xf32>
    %24 = arith.truncf %23 : vector<32x32xf32> to vector<32x32xbf16>
    %c0_23 = arith.constant 0 : index
    %c3_24 = arith.constant 3 : index
    %c0_25 = arith.constant 0 : index
    %c0_26 = arith.constant 0 : index
    %25 = vector.load %arg1[%c0_23, %c3_24, %c0_25, %c0_26] : memref<4x8x32x32xbf16, #tpu.memory_space<vmem>>, vector<1x1x32x32xbf16>
    %26 = vector.shape_cast %25 : vector<1x1x32x32xbf16> to vector<32x32xbf16>
    %cst_27 = arith.constant dense<0.000000e+00> : vector<32x32xf32>
    %27 = tpu.matmul %24, %26, %cst_27 {dimension_numbers = #tpu.dot_dimension_numbers<[1], [0], [0], [1], [0, 0, 1, 1], [], []>} : vector<32x32xbf16>, vector<32x32xbf16>, vector<32x32xf32> -> vector<32x32xf32>
    %28 = arith.addf %21, %27 : vector<32x32xf32>
    %c0_28 = arith.constant 0 : index
    %c4 = arith.constant 4 : index
    %c0_29 = arith.constant 0 : index
    %29 = vector.load %arg0[%c0_28, %c4, %c0_29] : memref<2x24x128xf32, #tpu.memory_space<vmem>>, vector<2x16x32xf32>
    %30 = vector.shape_cast %29 : vector<2x16x32xf32> to vector<32x32xf32>
    %31 = arith.truncf %30 : vector<32x32xf32> to vector<32x32xbf16>
    %c0_30 = arith.constant 0 : index
    %c4_31 = arith.constant 4 : index
    %c0_32 = arith.constant 0 : index
    %c0_33 = arith.constant 0 : index
    %32 = vector.load %arg1[%c0_30, %c4_31, %c0_32, %c0_33] : memref<4x8x32x32xbf16, #tpu.memory_space<vmem>>, vector<1x1x32x32xbf16>
    %33 = vector.shape_cast %32 : vector<1x1x32x32xbf16> to vector<32x32xbf16>
    %cst_34 = arith.constant dense<0.000000e+00> : vector<32x32xf32>
    %34 = tpu.matmul %31, %33, %cst_34 {dimension_numbers = #tpu.dot_dimension_numbers<[1], [0], [0], [1], [0, 0, 1, 1], [], []>} : vector<32x32xbf16>, vector<32x32xbf16>, vector<32x32xf32> -> vector<32x32xf32>
    %35 = arith.addf %28, %34 : vector<32x32xf32>
    %c0_35 = arith.constant 0 : index
    %c5 = arith.constant 5 : index
    %c0_36 = arith.constant 0 : index
    %36 = vector.load %arg0[%c0_35, %c5, %c0_36] : memref<2x24x128xf32, #tpu.memory_space<vmem>>, vector<2x16x32xf32>
    %37 = vector.shape_cast %36 : vector<2x16x32xf32> to vector<32x32xf32>
    %38 = arith.truncf %37 : vector<32x32xf32> to vector<32x32xbf16>
    %c0_37 = arith.constant 0 : index
    %c5_38 = arith.constant 5 : index
    %c0_39 = arith.constant 0 : index
    %c0_40 = arith.constant 0 : index
    %39 = vector.load %arg1[%c0_37, %c5_38, %c0_39, %c0_40] : memref<4x8x32x32xbf16, #tpu.memory_space<vmem>>, vector<1x1x32x32xbf16>
    %40 = vector.shape_cast %39 : vector<1x1x32x32xbf16> to vector<32x32xbf16>
    %cst_41 = arith.constant dense<0.000000e+00> : vector<32x32xf32>
    %41 = tpu.matmul %38, %40, %cst_41 {dimension_numbers = #tpu.dot_dimension_numbers<[1], [0], [0], [1], [0, 0, 1, 1], [], []>} : vector<32x32xbf16>, vector<32x32xbf16>, vector<32x32xf32> -> vector<32x32xf32>
    %42 = arith.addf %35, %41 : vector<32x32xf32>
    %c0_42 = arith.constant 0 : index
    %c6 = arith.constant 6 : index
    %c0_43 = arith.constant 0 : index
    %43 = vector.load %arg0[%c0_42, %c6, %c0_43] : memref<2x24x128xf32, #tpu.memory_space<vmem>>, vector<2x16x32xf32>
    %44 = vector.shape_cast %43 : vector<2x16x32xf32> to vector<32x32xf32>
    %45 = arith.truncf %44 : vector<32x32xf32> to vector<32x32xbf16>
    %c0_44 = arith.constant 0 : index
    %c6_45 = arith.constant 6 : index
    %c0_46 = arith.constant 0 : index
    %c0_47 = arith.constant 0 : index
    %46 = vector.load %arg1[%c0_44, %c6_45, %c0_46, %c0_47] : memref<4x8x32x32xbf16, #tpu.memory_space<vmem>>, vector<1x1x32x32xbf16>
    %47 = vector.shape_cast %46 : vector<1x1x32x32xbf16> to vector<32x32xbf16>
    %cst_48 = arith.constant dense<0.000000e+00> : vector<32x32xf32>
    %48 = tpu.matmul %45, %47, %cst_48 {dimension_numbers = #tpu.dot_dimension_numbers<[1], [0], [0], [1], [0, 0, 1, 1], [], []>} : vector<32x32xbf16>, vector<32x32xbf16>, vector<32x32xf32> -> vector<32x32xf32>
    %49 = arith.addf %42, %48 : vector<32x32xf32>
    %c0_49 = arith.constant 0 : index
    %c7 = arith.constant 7 : index
    %c0_50 = arith.constant 0 : index
    %50 = vector.load %arg0[%c0_49, %c7, %c0_50] : memref<2x24x128xf32, #tpu.memory_space<vmem>>, vector<2x16x32xf32>
    %51 = vector.shape_cast %50 : vector<2x16x32xf32> to vector<32x32xf32>
    %52 = arith.truncf %51 : vector<32x32xf32> to vector<32x32xbf16>
    %c0_51 = arith.constant 0 : index
    %c7_52 = arith.constant 7 : index
    %c0_53 = arith.constant 0 : index
    %c0_54 = arith.constant 0 : index
    %53 = vector.load %arg1[%c0_51, %c7_52, %c0_53, %c0_54] : memref<4x8x32x32xbf16, #tpu.memory_space<vmem>>, vector<1x1x32x32xbf16>
    %54 = vector.shape_cast %53 : vector<1x1x32x32xbf16> to vector<32x32xbf16>
    %cst_55 = arith.constant dense<0.000000e+00> : vector<32x32xf32>
    %55 = tpu.matmul %52, %54, %cst_55 {dimension_numbers = #tpu.dot_dimension_numbers<[1], [0], [0], [1], [0, 0, 1, 1], [], []>} : vector<32x32xbf16>, vector<32x32xbf16>, vector<32x32xf32> -> vector<32x32xf32>
    %56 = arith.addf %49, %55 : vector<32x32xf32>
    %cst_56 = arith.constant 0.000000e+00 : f32
    %57 = vector.broadcast %cst_56 : f32 to vector<32x32xf32>
    %c0_57 = arith.constant 0 : index
    %c0_58 = arith.constant 0 : index
    %c32 = arith.constant 32 : index
    %58 = vector.load %arg0[%c0_57, %c0_58, %c32] : memref<2x24x128xf32, #tpu.memory_space<vmem>>, vector<2x16x32xf32>
    %59 = vector.shape_cast %58 : vector<2x16x32xf32> to vector<32x32xf32>
    %60 = arith.truncf %59 : vector<32x32xf32> to vector<32x32xbf16>
    %c1_59 = arith.constant 1 : index
    %c0_60 = arith.constant 0 : index
    %c0_61 = arith.constant 0 : index
    %c0_62 = arith.constant 0 : index
    %61 = vector.load %arg1[%c1_59, %c0_60, %c0_61, %c0_62] : memref<4x8x32x32xbf16, #tpu.memory_space<vmem>>, vector<1x1x32x32xbf16>
    %62 = vector.shape_cast %61 : vector<1x1x32x32xbf16> to vector<32x32xbf16>
    %cst_63 = arith.constant dense<0.000000e+00> : vector<32x32xf32>
    %63 = tpu.matmul %60, %62, %cst_63 {dimension_numbers = #tpu.dot_dimension_numbers<[1], [0], [0], [1], [0, 0, 1, 1], [], []>} : vector<32x32xbf16>, vector<32x32xbf16>, vector<32x32xf32> -> vector<32x32xf32>
    %64 = arith.addf %57, %63 : vector<32x32xf32>
    %c0_64 = arith.constant 0 : index
    %c1_65 = arith.constant 1 : index
    %c32_66 = arith.constant 32 : index
    %65 = vector.load %arg0[%c0_64, %c1_65, %c32_66] : memref<2x24x128xf32, #tpu.memory_space<vmem>>, vector<2x16x32xf32>
    %66 = vector.shape_cast %65 : vector<2x16x32xf32> to vector<32x32xf32>
    %67 = arith.truncf %66 : vector<32x32xf32> to vector<32x32xbf16>
    %c1_67 = arith.constant 1 : index
    %c1_68 = arith.constant 1 : index
    %c0_69 = arith.constant 0 : index
    %c0_70 = arith.constant 0 : index
    %68 = vector.load %arg1[%c1_67, %c1_68, %c0_69, %c0_70] : memref<4x8x32x32xbf16, #tpu.memory_space<vmem>>, vector<1x1x32x32xbf16>
    %69 = vector.shape_cast %68 : vector<1x1x32x32xbf16> to vector<32x32xbf16>
    %cst_71 = arith.constant dense<0.000000e+00> : vector<32x32xf32>
    %70 = tpu.matmul %67, %69, %cst_71 {dimension_numbers = #tpu.dot_dimension_numbers<[1], [0], [0], [1], [0, 0, 1, 1], [], []>} : vector<32x32xbf16>, vector<32x32xbf16>, vector<32x32xf32> -> vector<32x32xf32>
    %71 = arith.addf %64, %70 : vector<32x32xf32>
    %c0_72 = arith.constant 0 : index
    %c2_73 = arith.constant 2 : index
    %c32_74 = arith.constant 32 : index
    %72 = vector.load %arg0[%c0_72, %c2_73, %c32_74] : memref<2x24x128xf32, #tpu.memory_space<vmem>>, vector<2x16x32xf32>
    %73 = vector.shape_cast %72 : vector<2x16x32xf32> to vector<32x32xf32>
    %74 = arith.truncf %73 : vector<32x32xf32> to vector<32x32xbf16>
    %c1_75 = arith.constant 1 : index
    %c2_76 = arith.constant 2 : index
    %c0_77 = arith.constant 0 : index
    %c0_78 = arith.constant 0 : index
    %75 = vector.load %arg1[%c1_75, %c2_76, %c0_77, %c0_78] : memref<4x8x32x32xbf16, #tpu.memory_space<vmem>>, vector<1x1x32x32xbf16>
    %76 = vector.shape_cast %75 : vector<1x1x32x32xbf16> to vector<32x32xbf16>
    %cst_79 = arith.constant dense<0.000000e+00> : vector<32x32xf32>
    %77 = tpu.matmul %74, %76, %cst_79 {dimension_numbers = #tpu.dot_dimension_numbers<[1], [0], [0], [1], [0, 0, 1, 1], [], []>} : vector<32x32xbf16>, vector<32x32xbf16>, vector<32x32xf32> -> vector<32x32xf32>
    %78 = arith.addf %71, %77 : vector<32x32xf32>
    %c0_80 = arith.constant 0 : index
    %c3_81 = arith.constant 3 : index
    %c32_82 = arith.constant 32 : index
    %79 = vector.load %arg0[%c0_80, %c3_81, %c32_82] : memref<2x24x128xf32, #tpu.memory_space<vmem>>, vector<2x16x32xf32>
    %80 = vector.shape_cast %79 : vector<2x16x32xf32> to vector<32x32xf32>
    %81 = arith.truncf %80 : vector<32x32xf32> to vector<32x32xbf16>
    %c1_83 = arith.constant 1 : index
    %c3_84 = arith.constant 3 : index
    %c0_85 = arith.constant 0 : index
    %c0_86 = arith.constant 0 : index
    %82 = vector.load %arg1[%c1_83, %c3_84, %c0_85, %c0_86] : memref<4x8x32x32xbf16, #tpu.memory_space<vmem>>, vector<1x1x32x32xbf16>
    %83 = vector.shape_cast %82 : vector<1x1x32x32xbf16> to vector<32x32xbf16>
    %cst_87 = arith.constant dense<0.000000e+00> : vector<32x32xf32>
    %84 = tpu.matmul %81, %83, %cst_87 {dimension_numbers = #tpu.dot_dimension_numbers<[1], [0], [0], [1], [0, 0, 1, 1], [], []>} : vector<32x32xbf16>, vector<32x32xbf16>, vector<32x32xf32> -> vector<32x32xf32>
    %85 = arith.addf %78, %84 : vector<32x32xf32>
    %c0_88 = arith.constant 0 : index
    %c4_89 = arith.constant 4 : index
    %c32_90 = arith.constant 32 : index
    %86 = vector.load %arg0[%c0_88, %c4_89, %c32_90] : memref<2x24x128xf32, #tpu.memory_space<vmem>>, vector<2x16x32xf32>
    %87 = vector.shape_cast %86 : vector<2x16x32xf32> to vector<32x32xf32>
    %88 = arith.truncf %87 : vector<32x32xf32> to vector<32x32xbf16>
    %c1_91 = arith.constant 1 : index
    %c4_92 = arith.constant 4 : index
    %c0_93 = arith.constant 0 : index
    %c0_94 = arith.constant 0 : index
    %89 = vector.load %arg1[%c1_91, %c4_92, %c0_93, %c0_94] : memref<4x8x32x32xbf16, #tpu.memory_space<vmem>>, vector<1x1x32x32xbf16>
    %90 = vector.shape_cast %89 : vector<1x1x32x32xbf16> to vector<32x32xbf16>
    %cst_95 = arith.constant dense<0.000000e+00> : vector<32x32xf32>
    %91 = tpu.matmul %88, %90, %cst_95 {dimension_numbers = #tpu.dot_dimension_numbers<[1], [0], [0], [1], [0, 0, 1, 1], [], []>} : vector<32x32xbf16>, vector<32x32xbf16>, vector<32x32xf32> -> vector<32x32xf32>
    %92 = arith.addf %85, %91 : vector<32x32xf32>
    %c0_96 = arith.constant 0 : index
    %c5_97 = arith.constant 5 : index
    %c32_98 = arith.constant 32 : index
    %93 = vector.load %arg0[%c0_96, %c5_97, %c32_98] : memref<2x24x128xf32, #tpu.memory_space<vmem>>, vector<2x16x32xf32>
    %94 = vector.shape_cast %93 : vector<2x16x32xf32> to vector<32x32xf32>
    %95 = arith.truncf %94 : vector<32x32xf32> to vector<32x32xbf16>
    %c1_99 = arith.constant 1 : index
    %c5_100 = arith.constant 5 : index
    %c0_101 = arith.constant 0 : index
    %c0_102 = arith.constant 0 : index
    %96 = vector.load %arg1[%c1_99, %c5_100, %c0_101, %c0_102] : memref<4x8x32x32xbf16, #tpu.memory_space<vmem>>, vector<1x1x32x32xbf16>
    %97 = vector.shape_cast %96 : vector<1x1x32x32xbf16> to vector<32x32xbf16>
    %cst_103 = arith.constant dense<0.000000e+00> : vector<32x32xf32>
    %98 = tpu.matmul %95, %97, %cst_103 {dimension_numbers = #tpu.dot_dimension_numbers<[1], [0], [0], [1], [0, 0, 1, 1], [], []>} : vector<32x32xbf16>, vector<32x32xbf16>, vector<32x32xf32> -> vector<32x32xf32>
    %99 = arith.addf %92, %98 : vector<32x32xf32>
    %c0_104 = arith.constant 0 : index
    %c6_105 = arith.constant 6 : index
    %c32_106 = arith.constant 32 : index
    %100 = vector.load %arg0[%c0_104, %c6_105, %c32_106] : memref<2x24x128xf32, #tpu.memory_space<vmem>>, vector<2x16x32xf32>
    %101 = vector.shape_cast %100 : vector<2x16x32xf32> to vector<32x32xf32>
    %102 = arith.truncf %101 : vector<32x32xf32> to vector<32x32xbf16>
    %c1_107 = arith.constant 1 : index
    %c6_108 = arith.constant 6 : index
    %c0_109 = arith.constant 0 : index
    %c0_110 = arith.constant 0 : index
    %103 = vector.load %arg1[%c1_107, %c6_108, %c0_109, %c0_110] : memref<4x8x32x32xbf16, #tpu.memory_space<vmem>>, vector<1x1x32x32xbf16>
    %104 = vector.shape_cast %103 : vector<1x1x32x32xbf16> to vector<32x32xbf16>
    %cst_111 = arith.constant dense<0.000000e+00> : vector<32x32xf32>
    %105 = tpu.matmul %102, %104, %cst_111 {dimension_numbers = #tpu.dot_dimension_numbers<[1], [0], [0], [1], [0, 0, 1, 1], [], []>} : vector<32x32xbf16>, vector<32x32xbf16>, vector<32x32xf32> -> vector<32x32xf32>
    %106 = arith.addf %99, %105 : vector<32x32xf32>
    %c0_112 = arith.constant 0 : index
    %c7_113 = arith.constant 7 : index
    %c32_114 = arith.constant 32 : index
    %107 = vector.load %arg0[%c0_112, %c7_113, %c32_114] : memref<2x24x128xf32, #tpu.memory_space<vmem>>, vector<2x16x32xf32>
    %108 = vector.shape_cast %107 : vector<2x16x32xf32> to vector<32x32xf32>
    %109 = arith.truncf %108 : vector<32x32xf32> to vector<32x32xbf16>
    %c1_115 = arith.constant 1 : index
    %c7_116 = arith.constant 7 : index
    %c0_117 = arith.constant 0 : index
    %c0_118 = arith.constant 0 : index
    %110 = vector.load %arg1[%c1_115, %c7_116, %c0_117, %c0_118] : memref<4x8x32x32xbf16, #tpu.memory_space<vmem>>, vector<1x1x32x32xbf16>
    %111 = vector.shape_cast %110 : vector<1x1x32x32xbf16> to vector<32x32xbf16>
    %cst_119 = arith.constant dense<0.000000e+00> : vector<32x32xf32>
    %112 = tpu.matmul %109, %111, %cst_119 {dimension_numbers = #tpu.dot_dimension_numbers<[1], [0], [0], [1], [0, 0, 1, 1], [], []>} : vector<32x32xbf16>, vector<32x32xbf16>, vector<32x32xf32> -> vector<32x32xf32>
    %113 = arith.addf %106, %112 : vector<32x32xf32>
    %cst_120 = arith.constant 0.000000e+00 : f32
    %114 = vector.broadcast %cst_120 : f32 to vector<32x32xf32>
    %c0_121 = arith.constant 0 : index
    %c0_122 = arith.constant 0 : index
    %c64 = arith.constant 64 : index
    %115 = vector.load %arg0[%c0_121, %c0_122, %c64] : memref<2x24x128xf32, #tpu.memory_space<vmem>>, vector<2x16x32xf32>
    %116 = vector.shape_cast %115 : vector<2x16x32xf32> to vector<32x32xf32>
    %117 = arith.truncf %116 : vector<32x32xf32> to vector<32x32xbf16>
    %c2_123 = arith.constant 2 : index
    %c0_124 = arith.constant 0 : index
    %c0_125 = arith.constant 0 : index
    %c0_126 = arith.constant 0 : index
    %118 = vector.load %arg1[%c2_123, %c0_124, %c0_125, %c0_126] : memref<4x8x32x32xbf16, #tpu.memory_space<vmem>>, vector<1x1x32x32xbf16>
    %119 = vector.shape_cast %118 : vector<1x1x32x32xbf16> to vector<32x32xbf16>
    %cst_127 = arith.constant dense<0.000000e+00> : vector<32x32xf32>
    %120 = tpu.matmul %117, %119, %cst_127 {dimension_numbers = #tpu.dot_dimension_numbers<[1], [0], [0], [1], [0, 0, 1, 1], [], []>} : vector<32x32xbf16>, vector<32x32xbf16>, vector<32x32xf32> -> vector<32x32xf32>
    %121 = arith.addf %114, %120 : vector<32x32xf32>
    %c0_128 = arith.constant 0 : index
    %c1_129 = arith.constant 1 : index
    %c64_130 = arith.constant 64 : index
    %122 = vector.load %arg0[%c0_128, %c1_129, %c64_130] : memref<2x24x128xf32, #tpu.memory_space<vmem>>, vector<2x16x32xf32>
    %123 = vector.shape_cast %122 : vector<2x16x32xf32> to vector<32x32xf32>
    %124 = arith.truncf %123 : vector<32x32xf32> to vector<32x32xbf16>
    %c2_131 = arith.constant 2 : index
    %c1_132 = arith.constant 1 : index
    %c0_133 = arith.constant 0 : index
    %c0_134 = arith.constant 0 : index
    %125 = vector.load %arg1[%c2_131, %c1_132, %c0_133, %c0_134] : memref<4x8x32x32xbf16, #tpu.memory_space<vmem>>, vector<1x1x32x32xbf16>
    %126 = vector.shape_cast %125 : vector<1x1x32x32xbf16> to vector<32x32xbf16>
    %cst_135 = arith.constant dense<0.000000e+00> : vector<32x32xf32>
    %127 = tpu.matmul %124, %126, %cst_135 {dimension_numbers = #tpu.dot_dimension_numbers<[1], [0], [0], [1], [0, 0, 1, 1], [], []>} : vector<32x32xbf16>, vector<32x32xbf16>, vector<32x32xf32> -> vector<32x32xf32>
    %128 = arith.addf %121, %127 : vector<32x32xf32>
    %c0_136 = arith.constant 0 : index
    %c2_137 = arith.constant 2 : index
    %c64_138 = arith.constant 64 : index
    %129 = vector.load %arg0[%c0_136, %c2_137, %c64_138] : memref<2x24x128xf32, #tpu.memory_space<vmem>>, vector<2x16x32xf32>
    %130 = vector.shape_cast %129 : vector<2x16x32xf32> to vector<32x32xf32>
    %131 = arith.truncf %130 : vector<32x32xf32> to vector<32x32xbf16>
    %c2_139 = arith.constant 2 : index
    %c2_140 = arith.constant 2 : index
    %c0_141 = arith.constant 0 : index
    %c0_142 = arith.constant 0 : index
    %132 = vector.load %arg1[%c2_139, %c2_140, %c0_141, %c0_142] : memref<4x8x32x32xbf16, #tpu.memory_space<vmem>>, vector<1x1x32x32xbf16>
    %133 = vector.shape_cast %132 : vector<1x1x32x32xbf16> to vector<32x32xbf16>
    %cst_143 = arith.constant dense<0.000000e+00> : vector<32x32xf32>
    %134 = tpu.matmul %131, %133, %cst_143 {dimension_numbers = #tpu.dot_dimension_numbers<[1], [0], [0], [1], [0, 0, 1, 1], [], []>} : vector<32x32xbf16>, vector<32x32xbf16>, vector<32x32xf32> -> vector<32x32xf32>
    %135 = arith.addf %128, %134 : vector<32x32xf32>
    %c0_144 = arith.constant 0 : index
    %c3_145 = arith.constant 3 : index
    %c64_146 = arith.constant 64 : index
    %136 = vector.load %arg0[%c0_144, %c3_145, %c64_146] : memref<2x24x128xf32, #tpu.memory_space<vmem>>, vector<2x16x32xf32>
    %137 = vector.shape_cast %136 : vector<2x16x32xf32> to vector<32x32xf32>
    %138 = arith.truncf %137 : vector<32x32xf32> to vector<32x32xbf16>
    %c2_147 = arith.constant 2 : index
    %c3_148 = arith.constant 3 : index
    %c0_149 = arith.constant 0 : index
    %c0_150 = arith.constant 0 : index
    %139 = vector.load %arg1[%c2_147, %c3_148, %c0_149, %c0_150] : memref<4x8x32x32xbf16, #tpu.memory_space<vmem>>, vector<1x1x32x32xbf16>
    %140 = vector.shape_cast %139 : vector<1x1x32x32xbf16> to vector<32x32xbf16>
    %cst_151 = arith.constant dense<0.000000e+00> : vector<32x32xf32>
    %141 = tpu.matmul %138, %140, %cst_151 {dimension_numbers = #tpu.dot_dimension_numbers<[1], [0], [0], [1], [0, 0, 1, 1], [], []>} : vector<32x32xbf16>, vector<32x32xbf16>, vector<32x32xf32> -> vector<32x32xf32>
    %142 = arith.addf %135, %141 : vector<32x32xf32>
    %c0_152 = arith.constant 0 : index
    %c4_153 = arith.constant 4 : index
    %c64_154 = arith.constant 64 : index
    %143 = vector.load %arg0[%c0_152, %c4_153, %c64_154] : memref<2x24x128xf32, #tpu.memory_space<vmem>>, vector<2x16x32xf32>
    %144 = vector.shape_cast %143 : vector<2x16x32xf32> to vector<32x32xf32>
    %145 = arith.truncf %144 : vector<32x32xf32> to vector<32x32xbf16>
    %c2_155 = arith.constant 2 : index
    %c4_156 = arith.constant 4 : index
    %c0_157 = arith.constant 0 : index
    %c0_158 = arith.constant 0 : index
    %146 = vector.load %arg1[%c2_155, %c4_156, %c0_157, %c0_158] : memref<4x8x32x32xbf16, #tpu.memory_space<vmem>>, vector<1x1x32x32xbf16>
    %147 = vector.shape_cast %146 : vector<1x1x32x32xbf16> to vector<32x32xbf16>
    %cst_159 = arith.constant dense<0.000000e+00> : vector<32x32xf32>
    %148 = tpu.matmul %145, %147, %cst_159 {dimension_numbers = #tpu.dot_dimension_numbers<[1], [0], [0], [1], [0, 0, 1, 1], [], []>} : vector<32x32xbf16>, vector<32x32xbf16>, vector<32x32xf32> -> vector<32x32xf32>
    %149 = arith.addf %142, %148 : vector<32x32xf32>
    %c0_160 = arith.constant 0 : index
    %c5_161 = arith.constant 5 : index
    %c64_162 = arith.constant 64 : index
    %150 = vector.load %arg0[%c0_160, %c5_161, %c64_162] : memref<2x24x128xf32, #tpu.memory_space<vmem>>, vector<2x16x32xf32>
    %151 = vector.shape_cast %150 : vector<2x16x32xf32> to vector<32x32xf32>
    %152 = arith.truncf %151 : vector<32x32xf32> to vector<32x32xbf16>
    %c2_163 = arith.constant 2 : index
    %c5_164 = arith.constant 5 : index
    %c0_165 = arith.constant 0 : index
    %c0_166 = arith.constant 0 : index
    %153 = vector.load %arg1[%c2_163, %c5_164, %c0_165, %c0_166] : memref<4x8x32x32xbf16, #tpu.memory_space<vmem>>, vector<1x1x32x32xbf16>
    %154 = vector.shape_cast %153 : vector<1x1x32x32xbf16> to vector<32x32xbf16>
    %cst_167 = arith.constant dense<0.000000e+00> : vector<32x32xf32>
    %155 = tpu.matmul %152, %154, %cst_167 {dimension_numbers = #tpu.dot_dimension_numbers<[1], [0], [0], [1], [0, 0, 1, 1], [], []>} : vector<32x32xbf16>, vector<32x32xbf16>, vector<32x32xf32> -> vector<32x32xf32>
    %156 = arith.addf %149, %155 : vector<32x32xf32>
    %c0_168 = arith.constant 0 : index
    %c6_169 = arith.constant 6 : index
    %c64_170 = arith.constant 64 : index
    %157 = vector.load %arg0[%c0_168, %c6_169, %c64_170] : memref<2x24x128xf32, #tpu.memory_space<vmem>>, vector<2x16x32xf32>
    %158 = vector.shape_cast %157 : vector<2x16x32xf32> to vector<32x32xf32>
    %159 = arith.truncf %158 : vector<32x32xf32> to vector<32x32xbf16>
    %c2_171 = arith.constant 2 : index
    %c6_172 = arith.constant 6 : index
    %c0_173 = arith.constant 0 : index
    %c0_174 = arith.constant 0 : index
    %160 = vector.load %arg1[%c2_171, %c6_172, %c0_173, %c0_174] : memref<4x8x32x32xbf16, #tpu.memory_space<vmem>>, vector<1x1x32x32xbf16>
    %161 = vector.shape_cast %160 : vector<1x1x32x32xbf16> to vector<32x32xbf16>
    %cst_175 = arith.constant dense<0.000000e+00> : vector<32x32xf32>
    %162 = tpu.matmul %159, %161, %cst_175 {dimension_numbers = #tpu.dot_dimension_numbers<[1], [0], [0], [1], [0, 0, 1, 1], [], []>} : vector<32x32xbf16>, vector<32x32xbf16>, vector<32x32xf32> -> vector<32x32xf32>
    %163 = arith.addf %156, %162 : vector<32x32xf32>
    %c0_176 = arith.constant 0 : index
    %c7_177 = arith.constant 7 : index
    %c64_178 = arith.constant 64 : index
    %164 = vector.load %arg0[%c0_176, %c7_177, %c64_178] : memref<2x24x128xf32, #tpu.memory_space<vmem>>, vector<2x16x32xf32>
    %165 = vector.shape_cast %164 : vector<2x16x32xf32> to vector<32x32xf32>
    %166 = arith.truncf %165 : vector<32x32xf32> to vector<32x32xbf16>
    %c2_179 = arith.constant 2 : index
    %c7_180 = arith.constant 7 : index
    %c0_181 = arith.constant 0 : index
    %c0_182 = arith.constant 0 : index
    %167 = vector.load %arg1[%c2_179, %c7_180, %c0_181, %c0_182] : memref<4x8x32x32xbf16, #tpu.memory_space<vmem>>, vector<1x1x32x32xbf16>
    %168 = vector.shape_cast %167 : vector<1x1x32x32xbf16> to vector<32x32xbf16>
    %cst_183 = arith.constant dense<0.000000e+00> : vector<32x32xf32>
    %169 = tpu.matmul %166, %168, %cst_183 {dimension_numbers = #tpu.dot_dimension_numbers<[1], [0], [0], [1], [0, 0, 1, 1], [], []>} : vector<32x32xbf16>, vector<32x32xbf16>, vector<32x32xf32> -> vector<32x32xf32>
    %170 = arith.addf %163, %169 : vector<32x32xf32>
    %cst_184 = arith.constant 0.000000e+00 : f32
    %171 = vector.broadcast %cst_184 : f32 to vector<32x32xf32>
    %c0_185 = arith.constant 0 : index
    %c0_186 = arith.constant 0 : index
    %c96 = arith.constant 96 : index
    %172 = vector.load %arg0[%c0_185, %c0_186, %c96] : memref<2x24x128xf32, #tpu.memory_space<vmem>>, vector<2x16x32xf32>
    %173 = vector.shape_cast %172 : vector<2x16x32xf32> to vector<32x32xf32>
    %174 = arith.truncf %173 : vector<32x32xf32> to vector<32x32xbf16>
    %c3_187 = arith.constant 3 : index
    %c0_188 = arith.constant 0 : index
    %c0_189 = arith.constant 0 : index
    %c0_190 = arith.constant 0 : index
    %175 = vector.load %arg1[%c3_187, %c0_188, %c0_189, %c0_190] : memref<4x8x32x32xbf16, #tpu.memory_space<vmem>>, vector<1x1x32x32xbf16>
    %176 = vector.shape_cast %175 : vector<1x1x32x32xbf16> to vector<32x32xbf16>
    %cst_191 = arith.constant dense<0.000000e+00> : vector<32x32xf32>
    %177 = tpu.matmul %174, %176, %cst_191 {dimension_numbers = #tpu.dot_dimension_numbers<[1], [0], [0], [1], [0, 0, 1, 1], [], []>} : vector<32x32xbf16>, vector<32x32xbf16>, vector<32x32xf32> -> vector<32x32xf32>
    %178 = arith.addf %171, %177 : vector<32x32xf32>
    %c0_192 = arith.constant 0 : index
    %c1_193 = arith.constant 1 : index
    %c96_194 = arith.constant 96 : index
    %179 = vector.load %arg0[%c0_192, %c1_193, %c96_194] : memref<2x24x128xf32, #tpu.memory_space<vmem>>, vector<2x16x32xf32>
    %180 = vector.shape_cast %179 : vector<2x16x32xf32> to vector<32x32xf32>
    %181 = arith.truncf %180 : vector<32x32xf32> to vector<32x32xbf16>
    %c3_195 = arith.constant 3 : index
    %c1_196 = arith.constant 1 : index
    %c0_197 = arith.constant 0 : index
    %c0_198 = arith.constant 0 : index
    %182 = vector.load %arg1[%c3_195, %c1_196, %c0_197, %c0_198] : memref<4x8x32x32xbf16, #tpu.memory_space<vmem>>, vector<1x1x32x32xbf16>
    %183 = vector.shape_cast %182 : vector<1x1x32x32xbf16> to vector<32x32xbf16>
    %cst_199 = arith.constant dense<0.000000e+00> : vector<32x32xf32>
    %184 = tpu.matmul %181, %183, %cst_199 {dimension_numbers = #tpu.dot_dimension_numbers<[1], [0], [0], [1], [0, 0, 1, 1], [], []>} : vector<32x32xbf16>, vector<32x32xbf16>, vector<32x32xf32> -> vector<32x32xf32>
    %185 = arith.addf %178, %184 : vector<32x32xf32>
    %c0_200 = arith.constant 0 : index
    %c2_201 = arith.constant 2 : index
    %c96_202 = arith.constant 96 : index
    %186 = vector.load %arg0[%c0_200, %c2_201, %c96_202] : memref<2x24x128xf32, #tpu.memory_space<vmem>>, vector<2x16x32xf32>
    %187 = vector.shape_cast %186 : vector<2x16x32xf32> to vector<32x32xf32>
    %188 = arith.truncf %187 : vector<32x32xf32> to vector<32x32xbf16>
    %c3_203 = arith.constant 3 : index
    %c2_204 = arith.constant 2 : index
    %c0_205 = arith.constant 0 : index
    %c0_206 = arith.constant 0 : index
    %189 = vector.load %arg1[%c3_203, %c2_204, %c0_205, %c0_206] : memref<4x8x32x32xbf16, #tpu.memory_space<vmem>>, vector<1x1x32x32xbf16>
    %190 = vector.shape_cast %189 : vector<1x1x32x32xbf16> to vector<32x32xbf16>
    %cst_207 = arith.constant dense<0.000000e+00> : vector<32x32xf32>
    %191 = tpu.matmul %188, %190, %cst_207 {dimension_numbers = #tpu.dot_dimension_numbers<[1], [0], [0], [1], [0, 0, 1, 1], [], []>} : vector<32x32xbf16>, vector<32x32xbf16>, vector<32x32xf32> -> vector<32x32xf32>
    %192 = arith.addf %185, %191 : vector<32x32xf32>
    %c0_208 = arith.constant 0 : index
    %c3_209 = arith.constant 3 : index
    %c96_210 = arith.constant 96 : index
    %193 = vector.load %arg0[%c0_208, %c3_209, %c96_210] : memref<2x24x128xf32, #tpu.memory_space<vmem>>, vector<2x16x32xf32>
    %194 = vector.shape_cast %193 : vector<2x16x32xf32> to vector<32x32xf32>
    %195 = arith.truncf %194 : vector<32x32xf32> to vector<32x32xbf16>
    %c3_211 = arith.constant 3 : index
    %c3_212 = arith.constant 3 : index
    %c0_213 = arith.constant 0 : index
    %c0_214 = arith.constant 0 : index
    %196 = vector.load %arg1[%c3_211, %c3_212, %c0_213, %c0_214] : memref<4x8x32x32xbf16, #tpu.memory_space<vmem>>, vector<1x1x32x32xbf16>
    %197 = vector.shape_cast %196 : vector<1x1x32x32xbf16> to vector<32x32xbf16>
    %cst_215 = arith.constant dense<0.000000e+00> : vector<32x32xf32>
    %198 = tpu.matmul %195, %197, %cst_215 {dimension_numbers = #tpu.dot_dimension_numbers<[1], [0], [0], [1], [0, 0, 1, 1], [], []>} : vector<32x32xbf16>, vector<32x32xbf16>, vector<32x32xf32> -> vector<32x32xf32>
    %199 = arith.addf %192, %198 : vector<32x32xf32>
    %c0_216 = arith.constant 0 : index
    %c4_217 = arith.constant 4 : index
    %c96_218 = arith.constant 96 : index
    %200 = vector.load %arg0[%c0_216, %c4_217, %c96_218] : memref<2x24x128xf32, #tpu.memory_space<vmem>>, vector<2x16x32xf32>
    %201 = vector.shape_cast %200 : vector<2x16x32xf32> to vector<32x32xf32>
    %202 = arith.truncf %201 : vector<32x32xf32> to vector<32x32xbf16>
    %c3_219 = arith.constant 3 : index
    %c4_220 = arith.constant 4 : index
    %c0_221 = arith.constant 0 : index
    %c0_222 = arith.constant 0 : index
    %203 = vector.load %arg1[%c3_219, %c4_220, %c0_221, %c0_222] : memref<4x8x32x32xbf16, #tpu.memory_space<vmem>>, vector<1x1x32x32xbf16>
    %204 = vector.shape_cast %203 : vector<1x1x32x32xbf16> to vector<32x32xbf16>
    %cst_223 = arith.constant dense<0.000000e+00> : vector<32x32xf32>
    %205 = tpu.matmul %202, %204, %cst_223 {dimension_numbers = #tpu.dot_dimension_numbers<[1], [0], [0], [1], [0, 0, 1, 1], [], []>} : vector<32x32xbf16>, vector<32x32xbf16>, vector<32x32xf32> -> vector<32x32xf32>
    %206 = arith.addf %199, %205 : vector<32x32xf32>
    %c0_224 = arith.constant 0 : index
    %c5_225 = arith.constant 5 : index
    %c96_226 = arith.constant 96 : index
    %207 = vector.load %arg0[%c0_224, %c5_225, %c96_226] : memref<2x24x128xf32, #tpu.memory_space<vmem>>, vector<2x16x32xf32>
    %208 = vector.shape_cast %207 : vector<2x16x32xf32> to vector<32x32xf32>
    %209 = arith.truncf %208 : vector<32x32xf32> to vector<32x32xbf16>
    %c3_227 = arith.constant 3 : index
    %c5_228 = arith.constant 5 : index
    %c0_229 = arith.constant 0 : index
    %c0_230 = arith.constant 0 : index
    %210 = vector.load %arg1[%c3_227, %c5_228, %c0_229, %c0_230] : memref<4x8x32x32xbf16, #tpu.memory_space<vmem>>, vector<1x1x32x32xbf16>
    %211 = vector.shape_cast %210 : vector<1x1x32x32xbf16> to vector<32x32xbf16>
    %cst_231 = arith.constant dense<0.000000e+00> : vector<32x32xf32>
    %212 = tpu.matmul %209, %211, %cst_231 {dimension_numbers = #tpu.dot_dimension_numbers<[1], [0], [0], [1], [0, 0, 1, 1], [], []>} : vector<32x32xbf16>, vector<32x32xbf16>, vector<32x32xf32> -> vector<32x32xf32>
    %213 = arith.addf %206, %212 : vector<32x32xf32>
    %c0_232 = arith.constant 0 : index
    %c6_233 = arith.constant 6 : index
    %c96_234 = arith.constant 96 : index
    %214 = vector.load %arg0[%c0_232, %c6_233, %c96_234] : memref<2x24x128xf32, #tpu.memory_space<vmem>>, vector<2x16x32xf32>
    %215 = vector.shape_cast %214 : vector<2x16x32xf32> to vector<32x32xf32>
    %216 = arith.truncf %215 : vector<32x32xf32> to vector<32x32xbf16>
    %c3_235 = arith.constant 3 : index
    %c6_236 = arith.constant 6 : index
    %c0_237 = arith.constant 0 : index
    %c0_238 = arith.constant 0 : index
    %217 = vector.load %arg1[%c3_235, %c6_236, %c0_237, %c0_238] : memref<4x8x32x32xbf16, #tpu.memory_space<vmem>>, vector<1x1x32x32xbf16>
    %218 = vector.shape_cast %217 : vector<1x1x32x32xbf16> to vector<32x32xbf16>
    %cst_239 = arith.constant dense<0.000000e+00> : vector<32x32xf32>
    %219 = tpu.matmul %216, %218, %cst_239 {dimension_numbers = #tpu.dot_dimension_numbers<[1], [0], [0], [1], [0, 0, 1, 1], [], []>} : vector<32x32xbf16>, vector<32x32xbf16>, vector<32x32xf32> -> vector<32x32xf32>
    %220 = arith.addf %213, %219 : vector<32x32xf32>
    %c0_240 = arith.constant 0 : index
    %c7_241 = arith.constant 7 : index
    %c96_242 = arith.constant 96 : index
    %221 = vector.load %arg0[%c0_240, %c7_241, %c96_242] : memref<2x24x128xf32, #tpu.memory_space<vmem>>, vector<2x16x32xf32>
    %222 = vector.shape_cast %221 : vector<2x16x32xf32> to vector<32x32xf32>
    %223 = arith.truncf %222 : vector<32x32xf32> to vector<32x32xbf16>
    %c3_243 = arith.constant 3 : index
    %c7_244 = arith.constant 7 : index
    %c0_245 = arith.constant 0 : index
    %c0_246 = arith.constant 0 : index
    %224 = vector.load %arg1[%c3_243, %c7_244, %c0_245, %c0_246] : memref<4x8x32x32xbf16, #tpu.memory_space<vmem>>, vector<1x1x32x32xbf16>
    %225 = vector.shape_cast %224 : vector<1x1x32x32xbf16> to vector<32x32xbf16>
    %cst_247 = arith.constant dense<0.000000e+00> : vector<32x32xf32>
    %226 = tpu.matmul %223, %225, %cst_247 {dimension_numbers = #tpu.dot_dimension_numbers<[1], [0], [0], [1], [0, 0, 1, 1], [], []>} : vector<32x32xbf16>, vector<32x32xbf16>, vector<32x32xf32> -> vector<32x32xf32>
    %227 = arith.addf %220, %226 : vector<32x32xf32>
    %228 = tpu.concatenate %56, %113, %170, %227 in 1 : vector<32x32xf32>, vector<32x32xf32>, vector<32x32xf32>, vector<32x32xf32> -> vector<32x128xf32>
    %c0_248 = arith.constant 0 : index
    %c0_249 = arith.constant 0 : index
    %229 = vector.load %arg2[%c0_248, %c0_249] : memref<1x128xf32, #tpu.memory_space<vmem>>, vector<1x128xf32>
    %230 = vector.broadcast %229 : vector<1x128xf32> to vector<32x128xf32>
    %231 = arith.addf %228, %230 : vector<32x128xf32>
    %c0_250 = arith.constant 0 : index
    %c4_251 = arith.constant 4 : index
    %c0_252 = arith.constant 0 : index
    %232 = vector.load %arg0[%c0_250, %c4_251, %c0_252] : memref<2x24x128xf32, #tpu.memory_space<vmem>>, vector<2x16x128xf32>
    %233 = vector.shape_cast %232 : vector<2x16x128xf32> to vector<32x128xf32>
    %cst_253 = arith.constant 5.000000e-01 : f32
    %234 = vector.broadcast %cst_253 : f32 to vector<32x128xf32>
    %235 = arith.mulf %234, %231 : vector<32x128xf32>
    %cst_254 = arith.constant 4.471500e-02 : f32
    %236 = vector.broadcast %cst_254 : f32 to vector<32x128xf32>
    %237 = arith.mulf %236, %231 : vector<32x128xf32>
    %238 = arith.mulf %237, %231 : vector<32x128xf32>
    %239 = arith.mulf %238, %231 : vector<32x128xf32>
    %240 = arith.addf %231, %239 : vector<32x128xf32>
    %cst_255 = arith.constant 0.797884583 : f32
    %241 = vector.broadcast %cst_255 : f32 to vector<32x128xf32>
    %242 = arith.mulf %241, %240 : vector<32x128xf32>
    %243 = math.tanh %242 : vector<32x128xf32>
    %cst_256 = arith.constant 1.000000e+00 : f32
    %244 = vector.broadcast %cst_256 : f32 to vector<32x128xf32>
    %245 = arith.addf %244, %243 : vector<32x128xf32>
    %246 = arith.mulf %235, %245 : vector<32x128xf32>
    %247 = arith.addf %233, %246 : vector<32x128xf32>
    %248 = vector.shape_cast %247 : vector<32x128xf32> to vector<2x16x128xf32>
    %c0_257 = arith.constant 0 : index
    %c0_258 = arith.constant 0 : index
    %c0_259 = arith.constant 0 : index
    %249 = vector.load %arg3[%c0_257, %c0_258, %c0_259] : memref<2x16x128xf32, #tpu.memory_space<vmem>>, vector<2x16x128xf32>
    tpu.vector_store %arg3[%c0_257, %c0_258, %c0_259], %248 {strides = array<i32>} : memref<2x16x128xf32, #tpu.memory_space<vmem>>, vector<2x16x128xf32>,
    return
  }
}

module attributes {stable_mosaic.version = 11 : i64} {
  func.func @_cls_kernel(%arg0: memref<2x2048xf32, #tpu.memory_space<vmem>>, %arg1: memref<2048x128xbf16, #tpu.memory_space<vmem>>, %arg2: memref<1x128xf32, #tpu.memory_space<vmem>>, %arg3: memref<2x128xf32, #tpu.memory_space<vmem>>) attributes {dimension_semantics = [], scalar_prefetch = 0 : i64, scratch_operands = 0 : i64, tpu.core_type = #tpu.core_type<tc>} {
    %c0 = arith.constant 0 : index
    %c0_0 = arith.constant 0 : index
    %0 = vector.load %arg0[%c0, %c0_0] : memref<2x2048xf32, #tpu.memory_space<vmem>>, vector<2x2048xf32>
    %1 = arith.truncf %0 : vector<2x2048xf32> to vector<2x2048xbf16>
    %c0_1 = arith.constant 0 : index
    %c0_2 = arith.constant 0 : index
    %2 = vector.load %arg1[%c0_1, %c0_2] : memref<2048x128xbf16, #tpu.memory_space<vmem>>, vector<2048x128xbf16>
    %cst = arith.constant dense<0.000000e+00> : vector<2x128xf32>
    %3 = tpu.matmul %1, %2, %cst {dimension_numbers = #tpu.dot_dimension_numbers<[1], [0], [0], [1], [0, 0, 1, 1], [], []>} : vector<2x2048xbf16>, vector<2048x128xbf16>, vector<2x128xf32> -> vector<2x128xf32>
    %c0_3 = arith.constant 0 : index
    %c0_4 = arith.constant 0 : index
    %4 = vector.load %arg2[%c0_3, %c0_4] : memref<1x128xf32, #tpu.memory_space<vmem>>, vector<1x128xf32>
    %5 = vector.broadcast %4 : vector<1x128xf32> to vector<2x128xf32>
    %6 = arith.addf %3, %5 : vector<2x128xf32>
    %c0_5 = arith.constant 0 : index
    %c0_6 = arith.constant 0 : index
    %7 = vector.load %arg3[%c0_5, %c0_6] : memref<2x128xf32, #tpu.memory_space<vmem>>, vector<2x128xf32>
    tpu.vector_store %arg3[%c0_5, %c0_6], %6 {strides = array<i32>} : memref<2x128xf32, #tpu.memory_space<vmem>>, vector<2x128xf32>,
    return
  }
}

module attributes {stable_mosaic.version = 11 : i64} {
  func.func @_encoder_stack_kernel(%arg0: i32, %arg1: memref<2x16x128xf32, #tpu.memory_space<vmem>>, %arg2: memref<1x1x128xf32, #tpu.memory_space<vmem>>, %arg3: memref<1x1x128xf32, #tpu.memory_space<vmem>>, %arg4: memref<1x128x384xbf16, #tpu.memory_space<vmem>>, %arg5: memref<1x1x384xf32, #tpu.memory_space<vmem>>, %arg6: memref<1x128x128xbf16, #tpu.memory_space<vmem>>, %arg7: memref<1x1x128xf32, #tpu.memory_space<vmem>>, %arg8: memref<1x1x128xf32, #tpu.memory_space<vmem>>, %arg9: memref<1x1x128xf32, #tpu.memory_space<vmem>>, %arg10: memref<1x128x256xbf16, #tpu.memory_space<vmem>>, %arg11: memref<1x1x256xf32, #tpu.memory_space<vmem>>, %arg12: memref<1x256x128xbf16, #tpu.memory_space<vmem>>, %arg13: memref<1x1x128xf32, #tpu.memory_space<vmem>>, %arg14: memref<1x128xf32, #tpu.memory_space<vmem>>, %arg15: memref<1x128xf32, #tpu.memory_space<vmem>>, %arg16: memref<2x16x128xf32, #tpu.memory_space<vmem>>, %arg17: memref<2x16x128xf32, #tpu.memory_space<vmem>>) attributes {dimension_semantics = [#tpu.dimension_semantics<arbitrary>], iteration_bounds = array<i64: 2>, scalar_prefetch = 0 : i64, scratch_operands = 1 : i64, tpu.core_type = #tpu.core_type<tc>, window_params = [{pipeline_mode = #tpu.pipeline_mode<synchronous>, transform_indices = @transform_0, window_bounds = array<i64: 2, 16, 128>}, {transform_indices = @transform_1, window_bounds = array<i64: 1, 1, 128>}, {transform_indices = @transform_2, window_bounds = array<i64: 1, 1, 128>}, {transform_indices = @transform_3, window_bounds = array<i64: 1, 128, 384>}, {transform_indices = @transform_4, window_bounds = array<i64: 1, 1, 384>}, {transform_indices = @transform_5, window_bounds = array<i64: 1, 128, 128>}, {transform_indices = @transform_6, window_bounds = array<i64: 1, 1, 128>}, {transform_indices = @transform_7, window_bounds = array<i64: 1, 1, 128>}, {transform_indices = @transform_8, window_bounds = array<i64: 1, 1, 128>}, {transform_indices = @transform_9, window_bounds = array<i64: 1, 128, 256>}, {transform_indices = @transform_10, window_bounds = array<i64: 1, 1, 256>}, {transform_indices = @transform_11, window_bounds = array<i64: 1, 256, 128>}, {transform_indices = @transform_12, window_bounds = array<i64: 1, 1, 128>}, {pipeline_mode = #tpu.pipeline_mode<synchronous>, transform_indices = @transform_13, window_bounds = array<i64: 1, 128>}, {pipeline_mode = #tpu.pipeline_mode<synchronous>, transform_indices = @transform_14, window_bounds = array<i64: 1, 128>}, {pipeline_mode = #tpu.pipeline_mode<synchronous>, transform_indices = @transform_15, window_bounds = array<i64: 2, 16, 128>}]} {
    %c0_i32 = arith.constant 0 : i32
    %0 = arith.cmpi eq, %arg0, %c0_i32 : i32
    %1 = arith.extui %0 : i1 to i32
    %c0_i32_0 = arith.constant 0 : i32
    %2 = arith.cmpi ne, %1, %c0_i32_0 : i32
    scf.if %2 {
      %c0_82 = arith.constant 0 : index
      %c0_83 = arith.constant 0 : index
      %c0_84 = arith.constant 0 : index
      %220 = vector.load %arg1[%c0_82, %c0_83, %c0_84] : memref<2x16x128xf32, #tpu.memory_space<vmem>>, vector<2x16x128xf32>
      %c0_85 = arith.constant 0 : index
      %c0_86 = arith.constant 0 : index
      %c0_87 = arith.constant 0 : index
      %221 = vector.load %arg17[%c0_85, %c0_86, %c0_87] : memref<2x16x128xf32, #tpu.memory_space<vmem>>, vector<2x16x128xf32>
      tpu.vector_store %arg17[%c0_85, %c0_86, %c0_87], %220 {strides = array<i32>} : memref<2x16x128xf32, #tpu.memory_space<vmem>>, vector<2x16x128xf32>,
    } else {
    }
    %c0 = arith.constant 0 : index
    %c0_1 = arith.constant 0 : index
    %c0_2 = arith.constant 0 : index
    %3 = vector.load %arg17[%c0, %c0_1, %c0_2] : memref<2x16x128xf32, #tpu.memory_space<vmem>>, vector<2x16x128xf32>
    %c0_3 = arith.constant 0 : index
    %c0_4 = arith.constant 0 : index
    %c0_5 = arith.constant 0 : index
    %4 = vector.load %arg2[%c0_3, %c0_4, %c0_5] : memref<1x1x128xf32, #tpu.memory_space<vmem>>, vector<1x1x128xf32>
    %5 = vector.shape_cast %4 : vector<1x1x128xf32> to vector<1x128xf32>
    %c0_6 = arith.constant 0 : index
    %c0_7 = arith.constant 0 : index
    %c0_8 = arith.constant 0 : index
    %6 = vector.load %arg3[%c0_6, %c0_7, %c0_8] : memref<1x1x128xf32, #tpu.memory_space<vmem>>, vector<1x1x128xf32>
    %7 = vector.shape_cast %6 : vector<1x1x128xf32> to vector<1x128xf32>
    %cst = arith.constant dense<0.000000e+00> : vector<2x16xf32>
    %8 = vector.multi_reduction <add>, %3, %cst [2] : vector<2x16x128xf32> to vector<2x16xf32>
    %9 = vector.shape_cast %8 : vector<2x16xf32> to vector<2x16x1xf32>
    %cst_9 = arith.constant 1.280000e+02 : f32
    %10 = vector.broadcast %cst_9 : f32 to vector<2x16x1xf32>
    %11 = arith.divf %9, %10 : vector<2x16x1xf32>
    %12 = vector.broadcast %11 : vector<2x16x1xf32> to vector<2x16x128xf32>
    %13 = arith.subf %3, %12 : vector<2x16x128xf32>
    %14 = vector.broadcast %11 : vector<2x16x1xf32> to vector<2x16x128xf32>
    %15 = arith.subf %3, %14 : vector<2x16x128xf32>
    %16 = arith.mulf %13, %15 : vector<2x16x128xf32>
    %cst_10 = arith.constant dense<0.000000e+00> : vector<2x16xf32>
    %17 = vector.multi_reduction <add>, %16, %cst_10 [2] : vector<2x16x128xf32> to vector<2x16xf32>
    %18 = vector.shape_cast %17 : vector<2x16xf32> to vector<2x16x1xf32>
    %cst_11 = arith.constant 1.280000e+02 : f32
    %19 = vector.broadcast %cst_11 : f32 to vector<2x16x1xf32>
    %20 = arith.divf %18, %19 : vector<2x16x1xf32>
    %21 = vector.broadcast %11 : vector<2x16x1xf32> to vector<2x16x128xf32>
    %22 = arith.subf %3, %21 : vector<2x16x128xf32>
    %cst_12 = arith.constant 9.99999974E-6 : f32
    %23 = vector.broadcast %cst_12 : f32 to vector<2x16x1xf32>
    %24 = arith.addf %20, %23 : vector<2x16x1xf32>
    %25 = math.rsqrt %24 : vector<2x16x1xf32>
    %26 = vector.broadcast %25 : vector<2x16x1xf32> to vector<2x16x128xf32>
    %27 = arith.mulf %22, %26 : vector<2x16x128xf32>
    %28 = vector.shape_cast %5 : vector<1x128xf32> to vector<1x1x128xf32>
    %29 = vector.broadcast %28 : vector<1x1x128xf32> to vector<2x16x128xf32>
    %30 = arith.mulf %27, %29 : vector<2x16x128xf32>
    %31 = vector.shape_cast %7 : vector<1x128xf32> to vector<1x1x128xf32>
    %32 = vector.broadcast %31 : vector<1x1x128xf32> to vector<2x16x128xf32>
    %33 = arith.addf %30, %32 : vector<2x16x128xf32>
    %34 = vector.shape_cast %33 : vector<2x16x128xf32> to vector<32x128xf32>
    %35 = arith.truncf %34 : vector<32x128xf32> to vector<32x128xbf16>
    %c0_13 = arith.constant 0 : index
    %c0_14 = arith.constant 0 : index
    %c0_15 = arith.constant 0 : index
    %36 = vector.load %arg4[%c0_13, %c0_14, %c0_15] : memref<1x128x384xbf16, #tpu.memory_space<vmem>>, vector<1x128x384xbf16>
    %37 = vector.shape_cast %36 : vector<1x128x384xbf16> to vector<128x384xbf16>
    %cst_16 = arith.constant dense<0.000000e+00> : vector<32x384xf32>
    %38 = tpu.matmul %35, %37, %cst_16 {dimension_numbers = #tpu.dot_dimension_numbers<[1], [0], [0], [1], [0, 0, 1, 1], [], []>} : vector<32x128xbf16>, vector<128x384xbf16>, vector<32x384xf32> -> vector<32x384xf32>
    %c0_17 = arith.constant 0 : index
    %c0_18 = arith.constant 0 : index
    %c0_19 = arith.constant 0 : index
    %39 = vector.load %arg5[%c0_17, %c0_18, %c0_19] : memref<1x1x384xf32, #tpu.memory_space<vmem>>, vector<1x1x384xf32>
    %40 = vector.shape_cast %39 : vector<1x1x384xf32> to vector<1x384xf32>
    %41 = vector.broadcast %40 : vector<1x384xf32> to vector<32x384xf32>
    %42 = arith.addf %38, %41 : vector<32x384xf32>
    %43 = vector.extract_strided_slice %42 {offsets = [0, 0], sizes = [32, 32], strides = [1, 1]} : vector<32x384xf32> to vector<32x32xf32>
    %cst_20 = arith.constant 0.176776692 : f32
    %44 = vector.broadcast %cst_20 : f32 to vector<32x32xf32>
    %45 = arith.mulf %43, %44 : vector<32x32xf32>
    %46 = vector.shape_cast %45 : vector<32x32xf32> to vector<2x16x32xf32>
    %47 = arith.truncf %46 : vector<2x16x32xf32> to vector<2x16x32xbf16>
    %48 = vector.extract_strided_slice %42 {offsets = [0, 128], sizes = [32, 32], strides = [1, 1]} : vector<32x384xf32> to vector<32x32xf32>
    %49 = vector.shape_cast %48 : vector<32x32xf32> to vector<2x16x32xf32>
    %50 = arith.truncf %49 : vector<2x16x32xf32> to vector<2x16x32xbf16>
    %51 = vector.extract_strided_slice %42 {offsets = [0, 256], sizes = [32, 32], strides = [1, 1]} : vector<32x384xf32> to vector<32x32xf32>
    %52 = vector.shape_cast %51 : vector<32x32xf32> to vector<2x16x32xf32>
    %53 = arith.truncf %52 : vector<2x16x32xf32> to vector<2x16x32xbf16>
    "tpu.trace_start"() <{level = 10 : i32, message = "bqd,bkd->bqk"}> : () -> ()
    %cst_21 = arith.constant dense<0.000000e+00> : vector<2x16x16xf32>
    %54 = tpu.matmul %47, %50, %cst_21 {dimension_numbers = #tpu.dot_dimension_numbers<[2], [2], [1], [1], [0, 0, 0, 1, 1, 1], [0], [0]>} : vector<2x16x32xbf16>, vector<2x16x32xbf16>, vector<2x16x16xf32> -> vector<2x16x16xf32>
    "tpu.trace_stop"() : () -> ()
    %cst_22 = arith.constant dense<0xFF800000> : vector<2x16xf32>
    %55 = vector.multi_reduction <maximumf>, %54, %cst_22 [2] : vector<2x16x16xf32> to vector<2x16xf32>
    %56 = vector.shape_cast %55 : vector<2x16xf32> to vector<2x16x1xf32>
    %57 = vector.broadcast %56 : vector<2x16x1xf32> to vector<2x16x16xf32>
    %58 = arith.subf %54, %57 : vector<2x16x16xf32>
    %59 = math.exp %58 : vector<2x16x16xf32>
    %cst_23 = arith.constant dense<0.000000e+00> : vector<2x16xf32>
    %60 = vector.multi_reduction <add>, %59, %cst_23 [2] : vector<2x16x16xf32> to vector<2x16xf32>
    %61 = vector.shape_cast %60 : vector<2x16xf32> to vector<2x16x1xf32>
    %62 = tpu.reciprocal %61 {approx = true} : vector<2x16x1xf32> -> vector<2x16x1xf32>
    %63 = vector.broadcast %62 : vector<2x16x1xf32> to vector<2x16x16xf32>
    %64 = arith.mulf %59, %63 : vector<2x16x16xf32>
    %65 = arith.truncf %64 : vector<2x16x16xf32> to vector<2x16x16xbf16>
    "tpu.trace_start"() <{level = 10 : i32, message = "bqk,bkd->bqd"}> : () -> ()
    %cst_24 = arith.constant dense<0.000000e+00> : vector<2x16x32xf32>
    %66 = tpu.matmul %65, %53, %cst_24 {dimension_numbers = #tpu.dot_dimension_numbers<[2], [1], [1], [2], [0, 0, 0, 1, 1, 2], [0], [0]>} : vector<2x16x16xbf16>, vector<2x16x32xbf16>, vector<2x16x32xf32> -> vector<2x16x32xf32>
    "tpu.trace_stop"() : () -> ()
    %67 = vector.extract_strided_slice %42 {offsets = [0, 32], sizes = [32, 32], strides = [1, 1]} : vector<32x384xf32> to vector<32x32xf32>
    %cst_25 = arith.constant 0.176776692 : f32
    %68 = vector.broadcast %cst_25 : f32 to vector<32x32xf32>
    %69 = arith.mulf %67, %68 : vector<32x32xf32>
    %70 = vector.shape_cast %69 : vector<32x32xf32> to vector<2x16x32xf32>
    %71 = arith.truncf %70 : vector<2x16x32xf32> to vector<2x16x32xbf16>
    %72 = vector.extract_strided_slice %42 {offsets = [0, 160], sizes = [32, 32], strides = [1, 1]} : vector<32x384xf32> to vector<32x32xf32>
    %73 = vector.shape_cast %72 : vector<32x32xf32> to vector<2x16x32xf32>
    %74 = arith.truncf %73 : vector<2x16x32xf32> to vector<2x16x32xbf16>
    %75 = vector.extract_strided_slice %42 {offsets = [0, 288], sizes = [32, 32], strides = [1, 1]} : vector<32x384xf32> to vector<32x32xf32>
    %76 = vector.shape_cast %75 : vector<32x32xf32> to vector<2x16x32xf32>
    %77 = arith.truncf %76 : vector<2x16x32xf32> to vector<2x16x32xbf16>
    "tpu.trace_start"() <{level = 10 : i32, message = "bqd,bkd->bqk"}> : () -> ()
    %cst_26 = arith.constant dense<0.000000e+00> : vector<2x16x16xf32>
    %78 = tpu.matmul %71, %74, %cst_26 {dimension_numbers = #tpu.dot_dimension_numbers<[2], [2], [1], [1], [0, 0, 0, 1, 1, 1], [0], [0]>} : vector<2x16x32xbf16>, vector<2x16x32xbf16>, vector<2x16x16xf32> -> vector<2x16x16xf32>
    "tpu.trace_stop"() : () -> ()
    %cst_27 = arith.constant dense<0xFF800000> : vector<2x16xf32>
    %79 = vector.multi_reduction <maximumf>, %78, %cst_27 [2] : vector<2x16x16xf32> to vector<2x16xf32>
    %80 = vector.shape_cast %79 : vector<2x16xf32> to vector<2x16x1xf32>
    %81 = vector.broadcast %80 : vector<2x16x1xf32> to vector<2x16x16xf32>
    %82 = arith.subf %78, %81 : vector<2x16x16xf32>
    %83 = math.exp %82 : vector<2x16x16xf32>
    %cst_28 = arith.constant dense<0.000000e+00> : vector<2x16xf32>
    %84 = vector.multi_reduction <add>, %83, %cst_28 [2] : vector<2x16x16xf32> to vector<2x16xf32>
    %85 = vector.shape_cast %84 : vector<2x16xf32> to vector<2x16x1xf32>
    %86 = tpu.reciprocal %85 {approx = true} : vector<2x16x1xf32> -> vector<2x16x1xf32>
    %87 = vector.broadcast %86 : vector<2x16x1xf32> to vector<2x16x16xf32>
    %88 = arith.mulf %83, %87 : vector<2x16x16xf32>
    %89 = arith.truncf %88 : vector<2x16x16xf32> to vector<2x16x16xbf16>
    "tpu.trace_start"() <{level = 10 : i32, message = "bqk,bkd->bqd"}> : () -> ()
    %cst_29 = arith.constant dense<0.000000e+00> : vector<2x16x32xf32>
    %90 = tpu.matmul %89, %77, %cst_29 {dimension_numbers = #tpu.dot_dimension_numbers<[2], [1], [1], [2], [0, 0, 0, 1, 1, 2], [0], [0]>} : vector<2x16x16xbf16>, vector<2x16x32xbf16>, vector<2x16x32xf32> -> vector<2x16x32xf32>
    "tpu.trace_stop"() : () -> ()
    %91 = vector.extract_strided_slice %42 {offsets = [0, 64], sizes = [32, 32], strides = [1, 1]} : vector<32x384xf32> to vector<32x32xf32>
    %cst_30 = arith.constant 0.176776692 : f32
    %92 = vector.broadcast %cst_30 : f32 to vector<32x32xf32>
    %93 = arith.mulf %91, %92 : vector<32x32xf32>
    %94 = vector.shape_cast %93 : vector<32x32xf32> to vector<2x16x32xf32>
    %95 = arith.truncf %94 : vector<2x16x32xf32> to vector<2x16x32xbf16>
    %96 = vector.extract_strided_slice %42 {offsets = [0, 192], sizes = [32, 32], strides = [1, 1]} : vector<32x384xf32> to vector<32x32xf32>
    %97 = vector.shape_cast %96 : vector<32x32xf32> to vector<2x16x32xf32>
    %98 = arith.truncf %97 : vector<2x16x32xf32> to vector<2x16x32xbf16>
    %99 = vector.extract_strided_slice %42 {offsets = [0, 320], sizes = [32, 32], strides = [1, 1]} : vector<32x384xf32> to vector<32x32xf32>
    %100 = vector.shape_cast %99 : vector<32x32xf32> to vector<2x16x32xf32>
    %101 = arith.truncf %100 : vector<2x16x32xf32> to vector<2x16x32xbf16>
    "tpu.trace_start"() <{level = 10 : i32, message = "bqd,bkd->bqk"}> : () -> ()
    %cst_31 = arith.constant dense<0.000000e+00> : vector<2x16x16xf32>
    %102 = tpu.matmul %95, %98, %cst_31 {dimension_numbers = #tpu.dot_dimension_numbers<[2], [2], [1], [1], [0, 0, 0, 1, 1, 1], [0], [0]>} : vector<2x16x32xbf16>, vector<2x16x32xbf16>, vector<2x16x16xf32> -> vector<2x16x16xf32>
    "tpu.trace_stop"() : () -> ()
    %cst_32 = arith.constant dense<0xFF800000> : vector<2x16xf32>
    %103 = vector.multi_reduction <maximumf>, %102, %cst_32 [2] : vector<2x16x16xf32> to vector<2x16xf32>
    %104 = vector.shape_cast %103 : vector<2x16xf32> to vector<2x16x1xf32>
    %105 = vector.broadcast %104 : vector<2x16x1xf32> to vector<2x16x16xf32>
    %106 = arith.subf %102, %105 : vector<2x16x16xf32>
    %107 = math.exp %106 : vector<2x16x16xf32>
    %cst_33 = arith.constant dense<0.000000e+00> : vector<2x16xf32>
    %108 = vector.multi_reduction <add>, %107, %cst_33 [2] : vector<2x16x16xf32> to vector<2x16xf32>
    %109 = vector.shape_cast %108 : vector<2x16xf32> to vector<2x16x1xf32>
    %110 = tpu.reciprocal %109 {approx = true} : vector<2x16x1xf32> -> vector<2x16x1xf32>
    %111 = vector.broadcast %110 : vector<2x16x1xf32> to vector<2x16x16xf32>
    %112 = arith.mulf %107, %111 : vector<2x16x16xf32>
    %113 = arith.truncf %112 : vector<2x16x16xf32> to vector<2x16x16xbf16>
    "tpu.trace_start"() <{level = 10 : i32, message = "bqk,bkd->bqd"}> : () -> ()
    %cst_34 = arith.constant dense<0.000000e+00> : vector<2x16x32xf32>
    %114 = tpu.matmul %113, %101, %cst_34 {dimension_numbers = #tpu.dot_dimension_numbers<[2], [1], [1], [2], [0, 0, 0, 1, 1, 2], [0], [0]>} : vector<2x16x16xbf16>, vector<2x16x32xbf16>, vector<2x16x32xf32> -> vector<2x16x32xf32>
    "tpu.trace_stop"() : () -> ()
    %115 = vector.extract_strided_slice %42 {offsets = [0, 96], sizes = [32, 32], strides = [1, 1]} : vector<32x384xf32> to vector<32x32xf32>
    %cst_35 = arith.constant 0.176776692 : f32
    %116 = vector.broadcast %cst_35 : f32 to vector<32x32xf32>
    %117 = arith.mulf %115, %116 : vector<32x32xf32>
    %118 = vector.shape_cast %117 : vector<32x32xf32> to vector<2x16x32xf32>
    %119 = arith.truncf %118 : vector<2x16x32xf32> to vector<2x16x32xbf16>
    %120 = vector.extract_strided_slice %42 {offsets = [0, 224], sizes = [32, 32], strides = [1, 1]} : vector<32x384xf32> to vector<32x32xf32>
    %121 = vector.shape_cast %120 : vector<32x32xf32> to vector<2x16x32xf32>
    %122 = arith.truncf %121 : vector<2x16x32xf32> to vector<2x16x32xbf16>
    %123 = vector.extract_strided_slice %42 {offsets = [0, 352], sizes = [32, 32], strides = [1, 1]} : vector<32x384xf32> to vector<32x32xf32>
    %124 = vector.shape_cast %123 : vector<32x32xf32> to vector<2x16x32xf32>
    %125 = arith.truncf %124 : vector<2x16x32xf32> to vector<2x16x32xbf16>
    "tpu.trace_start"() <{level = 10 : i32, message = "bqd,bkd->bqk"}> : () -> ()
    %cst_36 = arith.constant dense<0.000000e+00> : vector<2x16x16xf32>
    %126 = tpu.matmul %119, %122, %cst_36 {dimension_numbers = #tpu.dot_dimension_numbers<[2], [2], [1], [1], [0, 0, 0, 1, 1, 1], [0], [0]>} : vector<2x16x32xbf16>, vector<2x16x32xbf16>, vector<2x16x16xf32> -> vector<2x16x16xf32>
    "tpu.trace_stop"() : () -> ()
    %cst_37 = arith.constant dense<0xFF800000> : vector<2x16xf32>
    %127 = vector.multi_reduction <maximumf>, %126, %cst_37 [2] : vector<2x16x16xf32> to vector<2x16xf32>
    %128 = vector.shape_cast %127 : vector<2x16xf32> to vector<2x16x1xf32>
    %129 = vector.broadcast %128 : vector<2x16x1xf32> to vector<2x16x16xf32>
    %130 = arith.subf %126, %129 : vector<2x16x16xf32>
    %131 = math.exp %130 : vector<2x16x16xf32>
    %cst_38 = arith.constant dense<0.000000e+00> : vector<2x16xf32>
    %132 = vector.multi_reduction <add>, %131, %cst_38 [2] : vector<2x16x16xf32> to vector<2x16xf32>
    %133 = vector.shape_cast %132 : vector<2x16xf32> to vector<2x16x1xf32>
    %134 = tpu.reciprocal %133 {approx = true} : vector<2x16x1xf32> -> vector<2x16x1xf32>
    %135 = vector.broadcast %134 : vector<2x16x1xf32> to vector<2x16x16xf32>
    %136 = arith.mulf %131, %135 : vector<2x16x16xf32>
    %137 = arith.truncf %136 : vector<2x16x16xf32> to vector<2x16x16xbf16>
    "tpu.trace_start"() <{level = 10 : i32, message = "bqk,bkd->bqd"}> : () -> ()
    %cst_39 = arith.constant dense<0.000000e+00> : vector<2x16x32xf32>
    %138 = tpu.matmul %137, %125, %cst_39 {dimension_numbers = #tpu.dot_dimension_numbers<[2], [1], [1], [2], [0, 0, 0, 1, 1, 2], [0], [0]>} : vector<2x16x16xbf16>, vector<2x16x32xbf16>, vector<2x16x32xf32> -> vector<2x16x32xf32>
    "tpu.trace_stop"() : () -> ()
    %139 = tpu.concatenate %66, %90, %114, %138 in 2 : vector<2x16x32xf32>, vector<2x16x32xf32>, vector<2x16x32xf32>, vector<2x16x32xf32> -> vector<2x16x128xf32>
    %140 = vector.shape_cast %139 : vector<2x16x128xf32> to vector<32x128xf32>
    %141 = arith.truncf %140 : vector<32x128xf32> to vector<32x128xbf16>
    %c0_40 = arith.constant 0 : index
    %c0_41 = arith.constant 0 : index
    %c0_42 = arith.constant 0 : index
    %142 = vector.load %arg6[%c0_40, %c0_41, %c0_42] : memref<1x128x128xbf16, #tpu.memory_space<vmem>>, vector<1x128x128xbf16>
    %143 = vector.shape_cast %142 : vector<1x128x128xbf16> to vector<128x128xbf16>
    %cst_43 = arith.constant dense<0.000000e+00> : vector<32x128xf32>
    %144 = tpu.matmul %141, %143, %cst_43 {dimension_numbers = #tpu.dot_dimension_numbers<[1], [0], [0], [1], [0, 0, 1, 1], [], []>} : vector<32x128xbf16>, vector<128x128xbf16>, vector<32x128xf32> -> vector<32x128xf32>
    %c0_44 = arith.constant 0 : index
    %c0_45 = arith.constant 0 : index
    %c0_46 = arith.constant 0 : index
    %145 = vector.load %arg7[%c0_44, %c0_45, %c0_46] : memref<1x1x128xf32, #tpu.memory_space<vmem>>, vector<1x1x128xf32>
    %146 = vector.shape_cast %145 : vector<1x1x128xf32> to vector<1x128xf32>
    %147 = vector.broadcast %146 : vector<1x128xf32> to vector<32x128xf32>
    %148 = arith.addf %144, %147 : vector<32x128xf32>
    %149 = vector.shape_cast %148 : vector<32x128xf32> to vector<2x16x128xf32>
    %150 = arith.addf %3, %149 : vector<2x16x128xf32>
    %c0_47 = arith.constant 0 : index
    %c0_48 = arith.constant 0 : index
    %c0_49 = arith.constant 0 : index
    %151 = vector.load %arg8[%c0_47, %c0_48, %c0_49] : memref<1x1x128xf32, #tpu.memory_space<vmem>>, vector<1x1x128xf32>
    %152 = vector.shape_cast %151 : vector<1x1x128xf32> to vector<1x128xf32>
    %c0_50 = arith.constant 0 : index
    %c0_51 = arith.constant 0 : index
    %c0_52 = arith.constant 0 : index
    %153 = vector.load %arg9[%c0_50, %c0_51, %c0_52] : memref<1x1x128xf32, #tpu.memory_space<vmem>>, vector<1x1x128xf32>
    %154 = vector.shape_cast %153 : vector<1x1x128xf32> to vector<1x128xf32>
    %cst_53 = arith.constant dense<0.000000e+00> : vector<2x16xf32>
    %155 = vector.multi_reduction <add>, %150, %cst_53 [2] : vector<2x16x128xf32> to vector<2x16xf32>
    %156 = vector.shape_cast %155 : vector<2x16xf32> to vector<2x16x1xf32>
    %cst_54 = arith.constant 1.280000e+02 : f32
    %157 = vector.broadcast %cst_54 : f32 to vector<2x16x1xf32>
    %158 = arith.divf %156, %157 : vector<2x16x1xf32>
    %159 = vector.broadcast %158 : vector<2x16x1xf32> to vector<2x16x128xf32>
    %160 = arith.subf %150, %159 : vector<2x16x128xf32>
    %161 = vector.broadcast %158 : vector<2x16x1xf32> to vector<2x16x128xf32>
    %162 = arith.subf %150, %161 : vector<2x16x128xf32>
    %163 = arith.mulf %160, %162 : vector<2x16x128xf32>
    %cst_55 = arith.constant dense<0.000000e+00> : vector<2x16xf32>
    %164 = vector.multi_reduction <add>, %163, %cst_55 [2] : vector<2x16x128xf32> to vector<2x16xf32>
    %165 = vector.shape_cast %164 : vector<2x16xf32> to vector<2x16x1xf32>
    %cst_56 = arith.constant 1.280000e+02 : f32
    %166 = vector.broadcast %cst_56 : f32 to vector<2x16x1xf32>
    %167 = arith.divf %165, %166 : vector<2x16x1xf32>
    %168 = vector.broadcast %158 : vector<2x16x1xf32> to vector<2x16x128xf32>
    %169 = arith.subf %150, %168 : vector<2x16x128xf32>
    %cst_57 = arith.constant 9.99999974E-6 : f32
    %170 = vector.broadcast %cst_57 : f32 to vector<2x16x1xf32>
    %171 = arith.addf %167, %170 : vector<2x16x1xf32>
    %172 = math.rsqrt %171 : vector<2x16x1xf32>
    %173 = vector.broadcast %172 : vector<2x16x1xf32> to vector<2x16x128xf32>
    %174 = arith.mulf %169, %173 : vector<2x16x128xf32>
    %175 = vector.shape_cast %152 : vector<1x128xf32> to vector<1x1x128xf32>
    %176 = vector.broadcast %175 : vector<1x1x128xf32> to vector<2x16x128xf32>
    %177 = arith.mulf %174, %176 : vector<2x16x128xf32>
    %178 = vector.shape_cast %154 : vector<1x128xf32> to vector<1x1x128xf32>
    %179 = vector.broadcast %178 : vector<1x1x128xf32> to vector<2x16x128xf32>
    %180 = arith.addf %177, %179 : vector<2x16x128xf32>
    %181 = vector.shape_cast %180 : vector<2x16x128xf32> to vector<32x128xf32>
    %182 = arith.truncf %181 : vector<32x128xf32> to vector<32x128xbf16>
    %c0_58 = arith.constant 0 : index
    %c0_59 = arith.constant 0 : index
    %c0_60 = arith.constant 0 : index
    %183 = vector.load %arg10[%c0_58, %c0_59, %c0_60] : memref<1x128x256xbf16, #tpu.memory_space<vmem>>, vector<1x128x256xbf16>
    %184 = vector.shape_cast %183 : vector<1x128x256xbf16> to vector<128x256xbf16>
    %cst_61 = arith.constant dense<0.000000e+00> : vector<32x256xf32>
    %185 = tpu.matmul %182, %184, %cst_61 {dimension_numbers = #tpu.dot_dimension_numbers<[1], [0], [0], [1], [0, 0, 1, 1], [], []>} : vector<32x128xbf16>, vector<128x256xbf16>, vector<32x256xf32> -> vector<32x256xf32>
    %c0_62 = arith.constant 0 : index
    %c0_63 = arith.constant 0 : index
    %c0_64 = arith.constant 0 : index
    %186 = vector.load %arg11[%c0_62, %c0_63, %c0_64] : memref<1x1x256xf32, #tpu.memory_space<vmem>>, vector<1x1x256xf32>
    %187 = vector.shape_cast %186 : vector<1x1x256xf32> to vector<1x256xf32>
    %188 = vector.broadcast %187 : vector<1x256xf32> to vector<32x256xf32>
    %189 = arith.addf %185, %188 : vector<32x256xf32>
    %cst_65 = arith.constant 5.000000e-01 : f32
    %190 = vector.broadcast %cst_65 : f32 to vector<32x256xf32>
    %191 = arith.mulf %190, %189 : vector<32x256xf32>
    %cst_66 = arith.constant 4.471500e-02 : f32
    %192 = vector.broadcast %cst_66 : f32 to vector<32x256xf32>
    %193 = arith.mulf %192, %189 : vector<32x256xf32>
    %194 = arith.mulf %193, %189 : vector<32x256xf32>
    %195 = arith.mulf %194, %189 : vector<32x256xf32>
    %196 = arith.addf %189, %195 : vector<32x256xf32>
    %cst_67 = arith.constant 0.797884583 : f32
    %197 = vector.broadcast %cst_67 : f32 to vector<32x256xf32>
    %198 = arith.mulf %197, %196 : vector<32x256xf32>
    %199 = math.tanh %198 : vector<32x256xf32>
    %cst_68 = arith.constant 1.000000e+00 : f32
    %200 = vector.broadcast %cst_68 : f32 to vector<32x256xf32>
    %201 = arith.addf %200, %199 : vector<32x256xf32>
    %202 = arith.mulf %191, %201 : vector<32x256xf32>
    %203 = arith.truncf %202 : vector<32x256xf32> to vector<32x256xbf16>
    %c0_69 = arith.constant 0 : index
    %c0_70 = arith.constant 0 : index
    %c0_71 = arith.constant 0 : index
    %204 = vector.load %arg12[%c0_69, %c0_70, %c0_71] : memref<1x256x128xbf16, #tpu.memory_space<vmem>>, vector<1x256x128xbf16>
    %205 = vector.shape_cast %204 : vector<1x256x128xbf16> to vector<256x128xbf16>
    %cst_72 = arith.constant dense<0.000000e+00> : vector<32x128xf32>
    %206 = tpu.matmul %203, %205, %cst_72 {dimension_numbers = #tpu.dot_dimension_numbers<[1], [0], [0], [1], [0, 0, 1, 1], [], []>} : vector<32x256xbf16>, vector<256x128xbf16>, vector<32x128xf32> -> vector<32x128xf32>
    %c0_73 = arith.constant 0 : index
    %c0_74 = arith.constant 0 : index
    %c0_75 = arith.constant 0 : index
    %207 = vector.load %arg13[%c0_73, %c0_74, %c0_75] : memref<1x1x128xf32, #tpu.memory_space<vmem>>, vector<1x1x128xf32>
    %208 = vector.shape_cast %207 : vector<1x1x128xf32> to vector<1x128xf32>
    %209 = vector.broadcast %208 : vector<1x128xf32> to vector<32x128xf32>
    %210 = arith.addf %206, %209 : vector<32x128xf32>
    %211 = vector.shape_cast %210 : vector<32x128xf32> to vector<2x16x128xf32>
    %212 = arith.addf %150, %211 : vector<2x16x128xf32>
    %c0_76 = arith.constant 0 : index
    %c0_77 = arith.constant 0 : index
    %c0_78 = arith.constant 0 : index
    %213 = vector.load %arg17[%c0_76, %c0_77, %c0_78] : memref<2x16x128xf32, #tpu.memory_space<vmem>>, vector<2x16x128xf32>
    tpu.vector_store %arg17[%c0_76, %c0_77, %c0_78], %212 {strides = array<i32>} : memref<2x16x128xf32, #tpu.memory_space<vmem>>, vector<2x16x128xf32>,
    %c1_i32 = arith.constant 1 : i32
    %214 = arith.cmpi eq, %arg0, %c1_i32 : i32
    %215 = arith.extui %214 : i1 to i32
    %c0_i32_79 = arith.constant 0 : i32
    %216 = arith.cmpi ne, %215, %c0_i32_79 : i32
    scf.if %216 {
      %c0_82 = arith.constant 0 : index
      %c0_83 = arith.constant 0 : index
      %220 = vector.load %arg14[%c0_82, %c0_83] : memref<1x128xf32, #tpu.memory_space<vmem>>, vector<1x128xf32>
      %c0_84 = arith.constant 0 : index
      %c0_85 = arith.constant 0 : index
      %221 = vector.load %arg15[%c0_84, %c0_85] : memref<1x128xf32, #tpu.memory_space<vmem>>, vector<1x128xf32>
      %cst_86 = arith.constant dense<0.000000e+00> : vector<2x16xf32>
      %222 = vector.multi_reduction <add>, %212, %cst_86 [2] : vector<2x16x128xf32> to vector<2x16xf32>
      %223 = vector.shape_cast %222 : vector<2x16xf32> to vector<2x16x1xf32>
      %cst_87 = arith.constant 1.280000e+02 : f32
      %224 = vector.broadcast %cst_87 : f32 to vector<2x16x1xf32>
      %225 = arith.divf %223, %224 : vector<2x16x1xf32>
      %226 = vector.broadcast %225 : vector<2x16x1xf32> to vector<2x16x128xf32>
      %227 = arith.subf %212, %226 : vector<2x16x128xf32>
      %228 = vector.broadcast %225 : vector<2x16x1xf32> to vector<2x16x128xf32>
      %229 = arith.subf %212, %228 : vector<2x16x128xf32>
      %230 = arith.mulf %227, %229 : vector<2x16x128xf32>
      %cst_88 = arith.constant dense<0.000000e+00> : vector<2x16xf32>
      %231 = vector.multi_reduction <add>, %230, %cst_88 [2] : vector<2x16x128xf32> to vector<2x16xf32>
      %232 = vector.shape_cast %231 : vector<2x16xf32> to vector<2x16x1xf32>
      %cst_89 = arith.constant 1.280000e+02 : f32
      %233 = vector.broadcast %cst_89 : f32 to vector<2x16x1xf32>
      %234 = arith.divf %232, %233 : vector<2x16x1xf32>
      %235 = vector.broadcast %225 : vector<2x16x1xf32> to vector<2x16x128xf32>
      %236 = arith.subf %212, %235 : vector<2x16x128xf32>
      %cst_90 = arith.constant 9.99999974E-6 : f32
      %237 = vector.broadcast %cst_90 : f32 to vector<2x16x1xf32>
      %238 = arith.addf %234, %237 : vector<2x16x1xf32>
      %239 = math.rsqrt %238 : vector<2x16x1xf32>
      %240 = vector.broadcast %239 : vector<2x16x1xf32> to vector<2x16x128xf32>
      %241 = arith.mulf %236, %240 : vector<2x16x128xf32>
      %242 = vector.shape_cast %220 : vector<1x128xf32> to vector<1x1x128xf32>
      %243 = vector.broadcast %242 : vector<1x1x128xf32> to vector<2x16x128xf32>
      %244 = arith.mulf %241, %243 : vector<2x16x128xf32>
      %245 = vector.shape_cast %221 : vector<1x128xf32> to vector<1x1x128xf32>
      %246 = vector.broadcast %245 : vector<1x1x128xf32> to vector<2x16x128xf32>
      %247 = arith.addf %244, %246 : vector<2x16x128xf32>
      %c0_91 = arith.constant 0 : index
      %c0_92 = arith.constant 0 : index
      %c0_93 = arith.constant 0 : index
      %248 = vector.load %arg16[%c0_91, %c0_92, %c0_93] : memref<2x16x128xf32, #tpu.memory_space<vmem>>, vector<2x16x128xf32>
      tpu.vector_store %arg16[%c0_91, %c0_92, %c0_93], %247 {strides = array<i32>} : memref<2x16x128xf32, #tpu.memory_space<vmem>>, vector<2x16x128xf32>,
    } else {
    }
    %c1_i32_80 = arith.constant 1 : i32
    %217 = arith.cmpi slt, %arg0, %c1_i32_80 : i32
    %218 = arith.extui %217 : i1 to i32
    %c0_i32_81 = arith.constant 0 : i32
    %219 = arith.cmpi ne, %218, %c0_i32_81 : i32
    scf.if %219 {
      %c0_82 = arith.constant 0 : index
      %c0_83 = arith.constant 0 : index
      %c0_84 = arith.constant 0 : index
      %220 = vector.load %arg16[%c0_82, %c0_83, %c0_84] : memref<2x16x128xf32, #tpu.memory_space<vmem>>, vector<2x16x128xf32>
      tpu.vector_store %arg16[%c0_82, %c0_83, %c0_84], %212 {strides = array<i32>} : memref<2x16x128xf32, #tpu.memory_space<vmem>>, vector<2x16x128xf32>,
    } else {
    }
    return
  }
  func.func @transform_0(%arg0: i32) -> (i32, i32, i32) {
    %c0_i32 = arith.constant 0 : i32
    %c0_i32_0 = arith.constant 0 : i32
    %c0_i32_1 = arith.constant 0 : i32
    %c0_i32_2 = arith.constant 0 : i32
    return %c0_i32, %c0_i32_0, %c0_i32_1 : i32, i32, i32
  }
  func.func @transform_1(%arg0: i32) -> (i32, i32, i32) {
    %c0_i32 = arith.constant 0 : i32
    %c0_i32_0 = arith.constant 0 : i32
    %c0_i32_1 = arith.constant 0 : i32
    return %arg0, %c0_i32, %c0_i32_0 : i32, i32, i32
  }
  func.func @transform_2(%arg0: i32) -> (i32, i32, i32) {
    %c0_i32 = arith.constant 0 : i32
    %c0_i32_0 = arith.constant 0 : i32
    %c0_i32_1 = arith.constant 0 : i32
    return %arg0, %c0_i32, %c0_i32_0 : i32, i32, i32
  }
  func.func @transform_3(%arg0: i32) -> (i32, i32, i32) {
    %c0_i32 = arith.constant 0 : i32
    %c0_i32_0 = arith.constant 0 : i32
    %c0_i32_1 = arith.constant 0 : i32
    return %arg0, %c0_i32, %c0_i32_0 : i32, i32, i32
  }
  func.func @transform_4(%arg0: i32) -> (i32, i32, i32) {
    %c0_i32 = arith.constant 0 : i32
    %c0_i32_0 = arith.constant 0 : i32
    %c0_i32_1 = arith.constant 0 : i32
    return %arg0, %c0_i32, %c0_i32_0 : i32, i32, i32
  }
  func.func @transform_5(%arg0: i32) -> (i32, i32, i32) {
    %c0_i32 = arith.constant 0 : i32
    %c0_i32_0 = arith.constant 0 : i32
    %c0_i32_1 = arith.constant 0 : i32
    return %arg0, %c0_i32, %c0_i32_0 : i32, i32, i32
  }
  func.func @transform_6(%arg0: i32) -> (i32, i32, i32) {
    %c0_i32 = arith.constant 0 : i32
    %c0_i32_0 = arith.constant 0 : i32
    %c0_i32_1 = arith.constant 0 : i32
    return %arg0, %c0_i32, %c0_i32_0 : i32, i32, i32
  }
  func.func @transform_7(%arg0: i32) -> (i32, i32, i32) {
    %c0_i32 = arith.constant 0 : i32
    %c0_i32_0 = arith.constant 0 : i32
    %c0_i32_1 = arith.constant 0 : i32
    return %arg0, %c0_i32, %c0_i32_0 : i32, i32, i32
  }
  func.func @transform_8(%arg0: i32) -> (i32, i32, i32) {
    %c0_i32 = arith.constant 0 : i32
    %c0_i32_0 = arith.constant 0 : i32
    %c0_i32_1 = arith.constant 0 : i32
    return %arg0, %c0_i32, %c0_i32_0 : i32, i32, i32
  }
  func.func @transform_9(%arg0: i32) -> (i32, i32, i32) {
    %c0_i32 = arith.constant 0 : i32
    %c0_i32_0 = arith.constant 0 : i32
    %c0_i32_1 = arith.constant 0 : i32
    return %arg0, %c0_i32, %c0_i32_0 : i32, i32, i32
  }
  func.func @transform_10(%arg0: i32) -> (i32, i32, i32) {
    %c0_i32 = arith.constant 0 : i32
    %c0_i32_0 = arith.constant 0 : i32
    %c0_i32_1 = arith.constant 0 : i32
    return %arg0, %c0_i32, %c0_i32_0 : i32, i32, i32
  }
  func.func @transform_11(%arg0: i32) -> (i32, i32, i32) {
    %c0_i32 = arith.constant 0 : i32
    %c0_i32_0 = arith.constant 0 : i32
    %c0_i32_1 = arith.constant 0 : i32
    return %arg0, %c0_i32, %c0_i32_0 : i32, i32, i32
  }
  func.func @transform_12(%arg0: i32) -> (i32, i32, i32) {
    %c0_i32 = arith.constant 0 : i32
    %c0_i32_0 = arith.constant 0 : i32
    %c0_i32_1 = arith.constant 0 : i32
    return %arg0, %c0_i32, %c0_i32_0 : i32, i32, i32
  }
  func.func @transform_13(%arg0: i32) -> (i32, i32) {
    %c0_i32 = arith.constant 0 : i32
    %c0_i32_0 = arith.constant 0 : i32
    %c0_i32_1 = arith.constant 0 : i32
    return %c0_i32, %c0_i32_0 : i32, i32
  }
  func.func @transform_14(%arg0: i32) -> (i32, i32) {
    %c0_i32 = arith.constant 0 : i32
    %c0_i32_0 = arith.constant 0 : i32
    %c0_i32_1 = arith.constant 0 : i32
    return %c0_i32, %c0_i32_0 : i32, i32
  }
  func.func @transform_15(%arg0: i32) -> (i32, i32, i32) {
    %c0_i32 = arith.constant 0 : i32
    %c0_i32_0 = arith.constant 0 : i32
    %c0_i32_1 = arith.constant 0 : i32
    %c0_i32_2 = arith.constant 0 : i32
    return %c0_i32, %c0_i32_0, %c0_i32_1 : i32, i32, i32
  }
}

</mosaic_0001>

<bundles_post_ra>
// kernel: wav2vec2_forward.7
= control target key start
LH: loop header
LB: loop body
LE: loop exit
PB: predicated region body
PF: predicated region fallthrough
CT: control target
= control target key end

     0   :  { %v741_v0 = vmov 0.0   ;;  %vm742_vm0 = vmmov 0   ;;  %vm62_vm1 = vcmask 130048   ;;  %vm228_vm2 = vcmask 1041408   ;;  %s1187_s1 = inlined_call_operand.vmem [shape: bf16[16,128], index: 1, kind: input, shape index: {}]   ;;  %s1188_s0 = inlined_call_operand.vmem [shape: f32[130,16], index: 0, kind: input, shape index: {}]   ;;  %s1189_s2 = inlined_call_operand.vmem [shape: f32[1,128], index: 2, kind: input, shape index: {}]   ;;  %s1190_s3 = inlined_call_operand.vmem [shape: f32[1,128], index: 3, kind: input, shape index: {}]   ;;  %s1191_s4 = inlined_call_operand.vmem [shape: f32[1,128], index: 4, kind: input, shape index: {}]   ;;  %s1192_s5 = inlined_call_operand.vmem [shape: f32[130,128], index: 5, kind: output, shape index: {}]  }
   0x1   :  { %630 = vmatprep.subr.bf16.mxu0 %v741_v0  ;;  %668 = vmatprep.subr.bf16.mxu1 %v741_v0  ;;  %v672_v1 = vld [vmem:[%s1187_s1] sm:$0xff]   ;;  %v22_v3 = vld [vmem:[%s1188_s0 + $0x8] sm:$0xff]  ;;  %v31_v4 = vld [vmem:[%s1188_s0 + $0x50] sm:$0xff] }
   0x2   :  { %632 = vmatprep.mubr.msk.bf16.mxu0 %vm742_vm0, %v741_v0  ;;  %652 = vmatprep.mubr.msk.bf16.mxu1 %vm742_vm0, %v741_v0  ;;  %v21_v2 = vld [vmem:[%s1188_s0] sm:$0xff]  ;;  %v32_v6 = vld [vmem:[%s1188_s0 + $0x58] sm:$0xff]  ;;  %v23_v8 = vld [vmem:[%s1188_s0 + $0x10] sm:$0xff] }
   0x3   :  { %631 = vmatpush3.bf16.msra.mxu0 %v672_v1  ;;  %669 = vmatpush3.bf16.msra.mxu1 %v672_v1  ;;  %v38_v5 = vpack.c.bf16 %v22_v3, %v21_v2  ;;  %v43_v7 = vpack.c.bf16 %v32_v6, %v31_v4  ;;  %v24_v9 = vld [vmem:[%s1188_s0 + $0x18] sm:$0xff]  ;;  %v33_v10 = vld [vmem:[%s1188_s0 + $0x60] sm:$0xff]  ;;  %v34_v11 = vld [vmem:[%s1188_s0 + $0x68] sm:$0xff] }
   0x4   :  { %v39_v12 = vpack.c.bf16 %v24_v9, %v23_v8  ;;  %v44_v13 = vpack.c.bf16 %v34_v11, %v33_v10  ;;  %v25_v14 = vld [vmem:[%s1188_s0 + $0x20] sm:$0xff]  ;;  %v26_v15 = vld [vmem:[%s1188_s0 + $0x28] sm:$0xff]  ;;  %v35_v16 = vld [vmem:[%s1188_s0 + $0x70] sm:$0xff] }
   0x5   :  { %v36_v17 = vld [vmem:[%s1188_s0 + $0x78] sm:$0xff]  ;;  %v40_v18 = vpack.c.bf16 %v26_v15, %v25_v14  ;;  %v27_v20 = vld [vmem:[%s1188_s0 + $0x30] sm:$0xff]  ;;  %v37_v22 = vld [vmem:[%s1188_s0 + $0x80] sm:$0x3] }
   0x6   :  { %633 = vmatmul.mubr.msk.bf16.vlgmr.msra.gmra.mrb[0].mxu0 %vm62_vm1, %v38_v5  ;;  %653 = vmatmul.mubr.msk.bf16.vlgmr.msra.gmra.mrb[0].mxu1 %vm62_vm1, %v43_v7  ;;  %v45_v19 = vpack.c.bf16 %v36_v17, %v35_v16  ;;  %v28_v21 = vld [vmem:[%s1188_s0 + $0x38] sm:$0xff]  ;;  %v46_v24 = vpack.c.bf16 %v37_v22, %v37_v22  ;;  %v29_v25 = vld [vmem:[%s1188_s0 + $0x40] sm:$0xff]  ;;  %v30_v26 = vld [vmem:[%s1188_s0 + $0x48] sm:$0xff] }
   0x7   :  { %636 = vmatprep.mubr.msk.bf16.mxu0 %vm742_vm0, %v741_v0  ;;  %656 = vmatprep.mubr.msk.bf16.mxu1 %vm742_vm0, %v741_v0  ;;  %v41_v23 = vpack.c.bf16 %v28_v21, %v27_v20  ;;  %v42_v27 = vpack.c.bf16 %v30_v26, %v29_v25  ;;  %v848_v28 = vld [vmem:[%s1189_s2] ss:$0 sm:$0xff] }
   0xe   :  { %637 = vmatmul.mubr.msk.bf16.gmra.mrb[4].mxu0 %vm62_vm1, %v39_v12  ;;  %657 = vmatmul.mubr.msk.bf16.gmra.mrb[4].mxu1 %vm62_vm1, %v44_v13 }
   0xf   :  { %640 = vmatprep.mubr.msk.bf16.mxu0 %vm742_vm0, %v741_v0  ;;  %660 = vmatprep.mubr.msk.bf16.mxu1 %vm742_vm0, %v741_v0 }
  0x16   :  { %641 = vmatmul.mubr.msk.bf16.gmra.mrb[8].mxu0 %vm62_vm1, %v40_v18  ;;  %661 = vmatmul.mubr.msk.bf16.gmra.mrb[8].mxu1 %vm62_vm1, %v45_v19 }
  0x17   :  { %644 = vmatprep.mubr.msk.bf16.mxu0 %vm742_vm0, %v741_v0  ;;  %664 = vmatprep.mubr.msk.bf16.mxu1 %vm742_vm0, %v741_v0 }
  0x1e   :  { %645 = vmatmul.mubr.msk.bf16.gmra.mrb[12].mxu0 %vm62_vm1, %v41_v23  ;;  %665 = vmatmul.mubr.msk.bf16.gmra.mrb[12].mxu1 %vm62_vm1, %v46_v24 }
  0x1f   :  { %648 = vmatprep.mubr.msk.bf16.mxu0 %vm742_vm0, %v741_v0 }
  0x26   :  { %649 = vmatmul.mubr.msk.bf16.gmra.mrb[16].mxu0 %vm62_vm1, %v42_v27 }
  0xd9   :  { %v124_v29 = vpop.f32.mrb[0].mxu0  ;;  %v164_v30 = vpop.f32.mrb[0].mxu1 }
  0xda   :  { %v851_v31 = vadd.f32 %v848_v28, %v124_v29  ;;  %v854_v32 = vadd.f32 %v848_v28, %v164_v30  ;;  %v634_v33 = vpop.f32.mrb[1].mxu0  ;;  %v654_v34 = vpop.f32.mrb[1].mxu1 }
  0xdb   :  { %v127_v35 = vpop.f32.mrb[2].mxu0  ;;  %v167_v36 = vpop.f32.mrb[2].mxu1 }
  0xdc   :  { %216 = vadd.xlane.f32.xlu1 %v854_v32  ;;  %196 = vadd.xlane.f32.xlu0 %v851_v31  ;;  %v635_v37 = vpop.f32.mrb[3].mxu0  ;;  %v859_v38 = vadd.f32 %v848_v28, %v167_v36  ;;  %v655_v39 = vpop.f32.mrb[3].mxu1  ;;  %v862_v40 = vadd.f32 %v848_v28, %v127_v35 }
  0xe0   :  { %218 = vadd.xlane.f32.xlu0 %v859_v38  ;;  %198 = vadd.xlane.f32.xlu1 %v862_v40 }
  0xe1   :  { %v132_v41 = vpop.f32.mrb[4].mxu0  ;;  %v172_v42 = vpop.f32.mrb[4].mxu1 }
  0xe2   :  { %v867_v43 = vadd.f32 %v848_v28, %v132_v41  ;;  %v638_v44 = vpop.f32.mrb[5].mxu0  ;;  %v658_v45 = vpop.f32.mrb[5].mxu1  ;;  %v874_v50 = vadd.f32 %v848_v28, %v172_v42 }
  0xe3   :  { %v135_v46 = vpop.f32.mrb[6].mxu0  ;;  %v175_v47 = vpop.f32.mrb[6].mxu1 }
  0xe4   :  { %v870_v48 = vadd.f32 %v848_v28, %v135_v46  ;;  %200 = vadd.xlane.f32.xlu1 %v867_v43  ;;  %v639_v49 = vpop.f32.mrb[7].mxu0  ;;  %v659_v51 = vpop.f32.mrb[7].mxu1  ;;  %v878_v52 = vadd.f32 %v848_v28, %v175_v47 }
  0xe6   :  { %202 = vadd.xlane.f32.xlu0 %v870_v48 }
  0xe8   :  { %220 = vadd.xlane.f32.xlu1 %v874_v50 }
  0xe9   :  { %v140_v53 = vpop.f32.mrb[8].mxu0  ;;  %v180_v54 = vpop.f32.mrb[8].mxu1 }
  0xea   :  { %v882_v55 = vadd.f32 %v848_v28, %v140_v53  ;;  %222 = vadd.xlane.f32.xlu0 %v878_v52  ;;  %v642_v56 = vpop.f32.mrb[9].mxu0  ;;  %v662_v57 = vpop.f32.mrb[9].mxu1  ;;  %v911_v17 = vadd.f32 %v848_v28, %v180_v54 }
  0xeb   :  { %v143_v58 = vpop.f32.mrb[10].mxu0  ;;  %v183_v59 = vpop.f32.mrb[10].mxu1 }
  0xec   :  { %v886_v60 = vadd.f32 %v848_v28, %v143_v58  ;;  %204 = vadd.xlane.f32.xlu1 %v882_v55  ;;  %v643_v61 = vpop.f32.mrb[11].mxu0  ;;  %v663_v62 = vpop.f32.mrb[11].mxu1  ;;  %v915_v18 = vadd.f32 %v848_v28, %v183_v59 }
  0xee   :  { %206 = vadd.xlane.f32.xlu0 %v886_v60 }
  0xf1   :  { %v148_v63 = vpop.f32.mrb[12].mxu0  ;;  %v188_v0 = vpop.f32.mrb[12].mxu1 }
  0xf2   :  { %v891_v1 = vadd.f32 %v848_v28, %v148_v63  ;;  %v894_v2 = vadd.f32 %v848_v28, %v188_v0  ;;  %v646_v3 = vpop.f32.mrb[13].mxu0  ;;  %v666_v4 = vpop.f32.mrb[13].mxu1 }
  0xf3   :  { %v151_v5 = vpop.f32.mrb[14].mxu0  ;;  %v191_v6 = vpop.f32.mrb[14].mxu1 }
  0xf4   :  { %208 = vadd.xlane.f32.xlu1 %v891_v1  ;;  %v647_v7 = vpop.f32.mrb[15].mxu0  ;;  %v229_v8 = vsel %vm228_vm2, %v894_v2, 0.0  ;;  %v667_v9 = vpop.f32.mrb[15].mxu1  ;;  %v900_v10 = vadd.f32 %v848_v28, %v151_v5 }
  0xf5   :  { %230 = vadd.xlane.f32.xlu0 %v229_v8 }
  0xf9   :  { %210 = vadd.xlane.f32.xlu0 %v900_v10  ;;  %v156_v11 = vpop.f32.mrb[16].mxu0 }
  0xfa   :  { %v904_v12 = vadd.f32 %v848_v28, %v156_v11  ;;  %v650_v13 = vpop.f32.mrb[17].mxu0 }
  0xfb   :  { %v159_v14 = vpop.f32.mrb[18].mxu0 }
  0xfc   :  { %v907_v15 = vadd.f32 %v848_v28, %v159_v14  ;;  %212 = vadd.xlane.f32.xlu1 %v904_v12  ;;  %v651_v16 = vpop.f32.mrb[19].mxu0 }
  0xfe   :  { %214 = vadd.xlane.f32.xlu0 %v907_v15 }
 0x100   :  { %224 = vadd.xlane.f32.xlu1 %v911_v17 }
 0x102   :  { %226 = vadd.xlane.f32.xlu0 %v915_v18 }
 0x169   :  { %v217_v19 = vpop.xlane.xlu1 %216  ;;  %v197_v20 = vpop.xlane.xlu0 %196 }
 0x16a   :  { %v243_v21 = vmul.f32 0.0078125, %v217_v19  ;;  %v233_v22 = vmul.f32 0.0078125, %v197_v20 }
 0x16c   :  { %v920_v23 = vsub.f32 %v851_v31, %v233_v22  ;;  %v923_v26 = vsub.f32 %v854_v32, %v243_v21 }
 0x16d   :  { %v219_v24 = vpop.xlane.xlu0 %218  ;;  %v199_v25 = vpop.xlane.xlu1 %198 }
 0x16e   :  { %v244_v27 = vmul.f32 0.0078125, %v219_v24  ;;  %v234_v29 = vmul.f32 0.0078125, %v199_v25  ;;  %v267_v28 = vmul.f32 %v920_v23, %v920_v23  ;;  %v277_v35 = vmul.f32 %v923_v26, %v923_v26 }
 0x170   :  { %v928_v30 = vsub.f32 %v862_v40, %v234_v29  ;;  %284 = vadd.xlane.f32.xlu1 %v267_v28  ;;  %v931_v34 = vsub.f32 %v859_v38, %v244_v27 }
 0x171   :  { %v201_v33 = vpop.xlane.xlu1 %200 }
 0x172   :  { %v235_v31 = vmul.f32 0.0078125, %v201_v33  ;;  %v268_v32 = vmul.f32 %v928_v30, %v928_v30  ;;  %v278_v44 = vmul.f32 %v931_v34, %v931_v34 }
 0x173   :  { %v203_v36 = vpop.xlane.xlu0 %202 }
 0x174   :  { %v938_v37 = vsub.f32 %v867_v43, %v235_v31  ;;  %v236_v39 = vmul.f32 0.0078125, %v203_v36  ;;  %304 = vadd.xlane.f32.xlu1 %v277_v35  ;;  %286 = vadd.xlane.f32.xlu0 %v268_v32 }
 0x175   :  { %v221_v40 = vpop.xlane.xlu1 %220 }
 0x176   :  { %v941_v41 = vsub.f32 %v870_v48, %v236_v39  ;;  %v245_v38 = vmul.f32 0.0078125, %v221_v40  ;;  %v269_v42 = vmul.f32 %v938_v37, %v938_v37 }
 0x177   :  { %v223_v45 = vpop.xlane.xlu0 %222 }
 0x178   :  { %v948_v46 = vsub.f32 %v874_v50, %v245_v38  ;;  %v246_v43 = vmul.f32 0.0078125, %v223_v45  ;;  %288 = vadd.xlane.f32.xlu1 %v269_v42  ;;  %306 = vadd.xlane.f32.xlu0 %v278_v44  ;;  %v270_v53 = vmul.f32 %v941_v41, %v941_v41 }
 0x179   :  { %v205_v47 = vpop.xlane.xlu1 %204 }
 0x17a   :  { %v951_v49 = vsub.f32 %v878_v52, %v246_v43  ;;  %v237_v48 = vmul.f32 0.0078125, %v205_v47  ;;  %v279_v51 = vmul.f32 %v948_v46, %v948_v46 }
 0x17b   :  { %v207_v54 = vpop.xlane.xlu0 %206 }
 0x17c   :  { %v958_v56 = vsub.f32 %v882_v55, %v237_v48  ;;  %v238_v50 = vmul.f32 0.0078125, %v207_v54  ;;  %308 = vadd.xlane.f32.xlu1 %v279_v51  ;;  %290 = vadd.xlane.f32.xlu0 %v270_v53  ;;  %v280_v58 = vmul.f32 %v951_v49, %v951_v49  ;;  %v1008_v54 = vld [vmem:[%s1190_s3] ss:$0 sm:$0xff] }
 0x17e   :  { %v961_v57 = vsub.f32 %v886_v60, %v238_v50  ;;  %v271_v52 = vmul.f32 %v958_v56, %v958_v56 }
 0x180   :  { %292 = vadd.xlane.f32.xlu1 %v271_v52  ;;  %310 = vadd.xlane.f32.xlu0 %v280_v58  ;;  %v272_v61 = vmul.f32 %v961_v57, %v961_v57 }
 0x181   :  { %v209_v55 = vpop.xlane.xlu1 %208 }
 0x182   :  { %v231_v59 = vpop.xlane.xlu0 %230  ;;  %v239_v7 = vmul.f32 0.0078125, %v209_v55  ;;  %v1014_v55 = vld [vmem:[%s1191_s4] ss:$0 sm:$0xff] }
 0x183   :  { %v249_v21 = vmul.f32 0.0078125, %v231_v59 }
 0x184   :  { %294 = vadd.xlane.f32.xlu0 %v272_v61  ;;  %v983_v16 = vsub.f32 %v891_v1, %v239_v7 }
 0x185   :  { %v998_v24 = vsub.f32 %v894_v2, %v249_v21 }
 0x186   :  { %v211_v62 = vpop.xlane.xlu0 %210  ;;  %v273_v1 = vmul.f32 %v983_v16, %v983_v16 }
 0x187   :  { %v240_v63 = vmul.f32 0.0078125, %v211_v62  ;;  %v283_v25 = vmul.f32 %v998_v24, %v998_v24 }
 0x189   :  { %v970_v0 = vsub.f32 %v900_v10, %v240_v63  ;;  %v213_v60 = vpop.xlane.xlu1 %212  ;;  %v316_v27 = vsel %vm228_vm2, %v283_v25, 0.0 }
 0x18a   :  { %v241_v19 = vmul.f32 0.0078125, %v213_v60 }
 0x18b   :  { %v215_v3 = vpop.xlane.xlu0 %214  ;;  %v274_v4 = vmul.f32 %v970_v0, %v970_v0 }
 0x18c   :  { %v242_v5 = vmul.f32 0.0078125, %v215_v3  ;;  %v993_v22 = vsub.f32 %v904_v12, %v241_v19 }
 0x18d   :  { %v225_v6 = vpop.xlane.xlu1 %224  ;;  %298 = vadd.xlane.f32.xlu0 %v274_v4 }
 0x18e   :  { %v975_v8 = vsub.f32 %v907_v15, %v242_v5  ;;  %v247_v9 = vmul.f32 0.0078125, %v225_v6 }
 0x18f   :  { %v227_v11 = vpop.xlane.xlu0 %226 }
 0x190   :  { %v978_v13 = vsub.f32 %v911_v17, %v247_v9  ;;  %v248_v14 = vmul.f32 0.0078125, %v227_v11  ;;  %v276_v10 = vmul.f32 %v975_v8, %v975_v8 }
 0x192   :  { %v986_v20 = vsub.f32 %v915_v18, %v248_v14  ;;  %302 = vadd.xlane.f32.xlu0 %v276_v10  ;;  %v281_v15 = vmul.f32 %v978_v13, %v978_v13  ;;  %v275_v18 = vmul.f32 %v993_v22, %v993_v22 }
 0x194   :  { %312 = vadd.xlane.f32.xlu1 %v281_v15  ;;  %v282_v17 = vmul.f32 %v986_v20, %v986_v20 }
 0x196   :  { %314 = vadd.xlane.f32.xlu0 %v282_v17 }
 0x198   :  { %296 = vadd.xlane.f32.xlu1 %v273_v1 }
 0x19c   :  { %300 = vadd.xlane.f32.xlu1 %v275_v18 }
 0x1a0   :  { %317 = vadd.xlane.f32.xlu1 %v316_v27 }
 0x1fd   :  { %v285_v12 = vpop.xlane.xlu1 %284 }
 0x1fe   :  { %v319_v29 = vmul.f32 0.0078125, %v285_v12 }
 0x200   :  { %v336_v28 = vadd.f32 1e-05, %v319_v29 }
 0x201   :  { %v305_v33 = vpop.xlane.xlu1 %304  ;;  %v287_v31 = vpop.xlane.xlu0 %286 }
 0x202   :  { %673 = vrsqrt.f32 %v336_v28  ;;  %v329_v35 = vmul.f32 0.0078125, %v305_v33  ;;  %v320_v2 = vmul.f32 0.0078125, %v287_v31 }
 0x204   :  { %v346_v32 = vadd.f32 1e-05, %v329_v35  ;;  %v337_v36 = vadd.f32 1e-05, %v320_v2 }
 0x205   :  { %v289_v39 = vpop.xlane.xlu1 %288  ;;  %v307_v40 = vpop.xlane.xlu0 %306 }
 0x206   :  { %675 = vrsqrt.f32 %v346_v32  ;;  %v321_v38 = vmul.f32 0.0078125, %v289_v39  ;;  %v330_v42 = vmul.f32 0.0078125, %v307_v40 }
 0x207   :  { %677 = vrsqrt.f32 %v337_v36 }
 0x208   :  { %v338_v44 = vadd.f32 1e-05, %v321_v38  ;;  %v347_v45 = vadd.f32 1e-05, %v330_v42 }
 0x209   :  { %v309_v43 = vpop.xlane.xlu1 %308  ;;  %v291_v47 = vpop.xlane.xlu0 %290 }
 0x20a   :  { %679 = vrsqrt.f32 %v338_v44  ;;  %v331_v48 = vmul.f32 0.0078125, %v309_v43  ;;  %v322_v51 = vmul.f32 0.0078125, %v291_v47 }
 0x20b   :  { %681 = vrsqrt.f32 %v347_v45 }
 0x20c   :  { %v674_v53 = vpop.eup %673  ;;  %v348_v50 = vadd.f32 1e-05, %v331_v48  ;;  %v339_v52 = vadd.f32 1e-05, %v322_v51 }
 0x20d   :  { %v370_v58 = vmul.f32 %v674_v53, %v920_v23  ;;  %v293_v59 = vpop.xlane.xlu1 %292  ;;  %v311_v61 = vpop.xlane.xlu0 %310 }
 0x20e   :  { %683 = vrsqrt.f32 %v348_v50  ;;  %v323_v62 = vmul.f32 0.0078125, %v293_v59  ;;  %v332_v63 = vmul.f32 0.0078125, %v311_v61 }
 0x20f   :  { %v393_v60 = vmul.f32 %v1008_v54, %v370_v58  ;;  %685 = vrsqrt.f32 %v339_v52 }
 0x210   :  { %v676_v3 = vpop.eup %675  ;;  %v340_v4 = vadd.f32 1e-05, %v323_v62  ;;  %v349_v5 = vadd.f32 1e-05, %v332_v63 }
 0x211   :  { %v678_v6 = vpop.eup %677  ;;  %v416_v7 = vadd.f32 %v1014_v55, %v393_v60  ;;  %v380_v23 = vmul.f32 %v676_v3, %v923_v26  ;;  %v295_v9 = vpop.xlane.xlu0 %294 }
 0x212   :  { %v371_v11 = vmul.f32 %v678_v6, %v928_v30  ;;  %687 = vrsqrt.f32 %v340_v4  ;;  %v324_v14 = vmul.f32 0.0078125, %v295_v9 }
 0x213   :  { %v450_v10 = vmul.f32 0.044715, %v416_v7  ;;  %v403_v19 = vmul.f32 %v1008_v54, %v380_v23  ;;  %689 = vrsqrt.f32 %v349_v5  ;;  %v433_v6 = vmul.f32 0.5, %v416_v7 }
 0x214   :  { %v680_v15 = vpop.eup %679  ;;  %v394_v21 = vmul.f32 %v1008_v54, %v371_v11  ;;  %v341_v17 = vadd.f32 1e-05, %v324_v14 }
 0x215   :  { %v682_v1 = vpop.eup %681  ;;  %v467_v18 = vmul.f32 %v450_v10, %v416_v7  ;;  %v426_v25 = vadd.f32 %v1014_v55, %v403_v19  ;;  %v372_v27 = vmul.f32 %v680_v15, %v938_v37 }
 0x216   :  { %v1025_v26 = vadd.f32 %v1014_v55, %v394_v21  ;;  %v381_v30 = vmul.f32 %v682_v1, %v931_v34  ;;  %691 = vrsqrt.f32 %v341_v17 }
 0x217   :  { %v484_v12 = vmul.f32 %v467_v18, %v416_v7  ;;  %v460_v29 = vmul.f32 0.044715, %v426_v25  ;;  %v395_v28 = vmul.f32 %v1008_v54, %v372_v27  ;;  %v443_v14 = vmul.f32 0.5, %v426_v25 }
 0x218   :  { %v684_v33 = vpop.eup %683  ;;  %v451_v31 = vmul.f32 0.044715, %v1025_v26  ;;  %v404_v35 = vmul.f32 %v1008_v54, %v381_v30 }
 0x219   :  { %v686_v2 = vpop.eup %685  ;;  %v501_v32 = vadd.f32 %v484_v12, %v416_v7  ;;  %v477_v36 = vmul.f32 %v460_v29, %v426_v25  ;;  %v418_v37 = vadd.f32 %v1014_v55, %v395_v28  ;;  %v382_v39 = vmul.f32 %v684_v33, %v948_v46 }
 0x21a   :  { %v468_v40 = vmul.f32 %v451_v31, %v1025_v26  ;;  %v1035_v34 = vadd.f32 %v1014_v55, %v404_v35  ;;  %v373_v38 = vmul.f32 %v686_v2, %v941_v41  ;;  %v299_v4 = vpop.xlane.xlu0 %298  ;;  %v434_v2 = vmul.f32 0.5, %v1025_v26 }
 0x21b   :  { %v518_v42 = vmul.f32 0.7978846, %v501_v32  ;;  %v494_v44 = vmul.f32 %v477_v36, %v426_v25  ;;  %v452_v45 = vmul.f32 0.044715, %v418_v37  ;;  %v405_v51 = vmul.f32 %v1008_v54, %v382_v39 }
 0x21c   :  { %v688_v43 = vpop.eup %687  ;;  %v485_v47 = vmul.f32 %v468_v40, %v1025_v26  ;;  %v461_v48 = vmul.f32 0.044715, %v1035_v34  ;;  %v396_v52 = vmul.f32 %v1008_v54, %v373_v38  ;;  %v326_v12 = vmul.f32 0.0078125, %v299_v4 }
 0x21d   :  { %v690_v53 = vpop.eup %689  ;;  %693 = vtanh.f32 %v518_v42  ;;  %v511_v46 = vadd.f32 %v494_v44, %v426_v25  ;;  %v469_v50 = vmul.f32 %v452_v45, %v418_v37  ;;  %v1045_v59 = vadd.f32 %v1014_v55, %v405_v51 }
 0x21e   :  { %v502_v58 = vadd.f32 %v485_v47, %v1025_v26  ;;  %v478_v41 = vmul.f32 %v461_v48, %v1035_v34  ;;  %v374_v61 = vmul.f32 %v688_v43, %v958_v56  ;;  %v1049_v60 = vadd.f32 %v1014_v55, %v396_v52 }
 0x21f   :  { %v528_v62 = vmul.f32 0.7978846, %v511_v46  ;;  %v486_v63 = vmul.f32 %v469_v50, %v418_v37  ;;  %v383_v3 = vmul.f32 %v690_v53, %v951_v49  ;;  %v462_v11 = vmul.f32 0.044715, %v1045_v59  ;;  %v303_v31 = vpop.xlane.xlu0 %302 }
 0x220   :  { %v692_v5 = vpop.eup %691  ;;  %v519_v23 = vmul.f32 0.7978846, %v502_v58  ;;  %v495_v9 = vmul.f32 %v478_v41, %v1035_v34  ;;  %v453_v56 = vmul.f32 0.044715, %v1049_v60  ;;  %v397_v49 = vmul.f32 %v1008_v54, %v374_v61 }
 0x221   :  { %695 = vtanh.f32 %v528_v62  ;;  %v503_v10 = vadd.f32 %v486_v63, %v418_v37  ;;  %v313_v19 = vpop.xlane.xlu1 %312  ;;  %v479_v21 = vmul.f32 %v462_v11, %v1045_v59  ;;  %v406_v1 = vmul.f32 %v1008_v54, %v383_v3 }
 0x222   :  { %697 = vtanh.f32 %v519_v23  ;;  %v512_v15 = vadd.f32 %v495_v9, %v1035_v34  ;;  %v470_v7 = vmul.f32 %v453_v56, %v1049_v60  ;;  %v375_v18 = vmul.f32 %v692_v5, %v961_v57 }
 0x223   :  { %v520_v17 = vmul.f32 0.7978846, %v503_v10  ;;  %v496_v27 = vmul.f32 %v479_v21, %v1045_v59  ;;  %v1063_v30 = vadd.f32 %v1014_v55, %v397_v49  ;;  %v1067_v28 = vadd.f32 %v1014_v55, %v406_v1  ;;  %v315_v63 = vpop.xlane.xlu0 %314 }
 0x224   :  { %v529_v25 = vmul.f32 0.7978846, %v512_v15  ;;  %v487_v29 = vmul.f32 %v470_v7, %v1049_v60  ;;  %v398_v33 = vmul.f32 %v1008_v54, %v375_v18  ;;  %v435_v39 = vmul.f32 0.5, %v418_v37 }
 0x225   :  { %699 = vtanh.f32 %v520_v17  ;;  %v297_v35 = vpop.xlane.xlu1 %296  ;;  %v513_v57 = vadd.f32 %v496_v27, %v1045_v59  ;;  %v454_v32 = vmul.f32 0.044715, %v1063_v30  ;;  %v463_v38 = vmul.f32 0.044715, %v1067_v28 }
 0x226   :  { %701 = vtanh.f32 %v529_v25  ;;  %v504_v40 = vadd.f32 %v487_v29, %v1049_v60  ;;  %v1076_v42 = vadd.f32 %v1014_v55, %v398_v33  ;;  %v343_v47 = vadd.f32 1e-05, %v326_v12 }
 0x227   :  { %v694_v36 = vpop.eup %693  ;;  %v530_v45 = vmul.f32 0.7978846, %v513_v57  ;;  %v471_v43 = vmul.f32 %v454_v32, %v1063_v30  ;;  %v444_v26 = vmul.f32 0.5, %v1035_v34  ;;  %v480_v51 = vmul.f32 %v463_v38, %v1067_v28 }
 0x228   :  { %v552_v44 = vadd.f32 1.0, %v694_v36  ;;  %v521_v48 = vmul.f32 0.7978846, %v504_v40  ;;  %v455_v53 = vmul.f32 0.044715, %v1076_v42  ;;  %v328_v52 = vmul.f32 0.0078125, %v303_v31 }
 0x229   :  { %v301_v37 = vpop.xlane.xlu1 %300  ;;  %703 = vtanh.f32 %v530_v45  ;;  %v488_v50 = vmul.f32 %v471_v43, %v1063_v30  ;;  %v497_v41 = vmul.f32 %v480_v51, %v1067_v28  ;;  %v333_v62 = vmul.f32 0.0078125, %v313_v19 }
 0x22a   :  { %v569_v46 = vmul.f32 %v552_v44, %v433_v6  ;;  %705 = vtanh.f32 %v521_v48  ;;  %v472_v61 = vmul.f32 %v455_v53, %v1076_v42  ;;  %v345_v5 = vadd.f32 1e-05, %v328_v52 }
 0x22b   :  { %v696_v58 = vpop.eup %695  ;;  %v505_v4 = vadd.f32 %v488_v50, %v1063_v30  ;;  %707 = vrsqrt.f32 %v343_v47  ;;  %v514_v23 = vadd.f32 %v497_v41, %v1067_v28  ;;  %v350_v11 = vadd.f32 1e-05, %v333_v62 }
 0x22c   :  { %v698_v34 = vpop.eup %697  ;;  %586 = vst [vmem:[%s1192_s5] sm:$0xff] %v569_v46  ;;  %v562_v3 = vadd.f32 1.0, %v696_v58  ;;  %v489_v9 = vmul.f32 %v472_v61, %v1076_v42  ;;  %709 = vrsqrt.f32 %v345_v5  ;;  %v334_v19 = vmul.f32 0.0078125, %v315_v63 }
 0x22d   :  { %v553_v6 = vadd.f32 1.0, %v698_v34  ;;  %v522_v56 = vmul.f32 0.7978846, %v505_v4  ;;  %v531_v49 = vmul.f32 0.7978846, %v514_v23  ;;  %711 = vrsqrt.f32 %v350_v11  ;;  %v318_v7 = vpop.xlane.xlu1 %317 }
 0x22e   :  { %v579_v10 = vmul.f32 %v562_v3, %v443_v14  ;;  %v506_v17 = vadd.f32 %v489_v9, %v1076_v42  ;;  %v351_v25 = vadd.f32 1e-05, %v334_v19  ;;  %v325_v27 = vmul.f32 0.0078125, %v297_v35 }
 0x22f   :  { %v700_v15 = vpop.eup %699  ;;  %v570_v21 = vmul.f32 %v553_v6, %v434_v2  ;;  %713 = vtanh.f32 %v522_v56  ;;  %v327_v29 = vmul.f32 0.0078125, %v301_v37  ;;  %v335_v2 = vmul.f32 0.0078125, %v318_v7 }
 0x230   :  { %v702_v1 = vpop.eup %701  ;;  %596 = vst [vmem:[%s1192_s5 + $0x50] sm:$0xff] %v579_v10  ;;  %v554_v18 = vadd.f32 1.0, %v700_v15  ;;  %715 = vtanh.f32 %v531_v49  ;;  %v523_v12 = vmul.f32 0.7978846, %v506_v17  ;;  %v342_v31 = vadd.f32 1e-05, %v325_v27 }
 0x231   :  { %587 = vst [vmem:[%s1192_s5 + $0x8] sm:$0xff] %v570_v21  ;;  %v563_v14 = vadd.f32 1.0, %v702_v1  ;;  %717 = vrsqrt.f32 %v351_v25  ;;  %v344_v32 = vadd.f32 1e-05, %v327_v29  ;;  %v352_v35 = vadd.f32 1e-05, %v335_v2 }
 0x232   :  { %v571_v33 = vmul.f32 %v554_v18, %v435_v39  ;;  %719 = vtanh.f32 %v523_v12  ;;  %v445_v39 = vmul.f32 0.5, %v1045_v59  ;;  %v436_v45 = vmul.f32 0.5, %v1049_v60 }
 0x233   :  { %v580_v57 = vmul.f32 %v563_v14, %v444_v26  ;;  %v704_v36 = vpop.eup %703  ;;  %721 = vrsqrt.f32 %v342_v31  ;;  %v446_v62 = vmul.f32 0.5, %v1067_v28  ;;  %v438_v4 = vmul.f32 0.5, %v1076_v42 }
 0x234   :  { %588 = vst [vmem:[%s1192_s5 + $0x10] sm:$0xff] %v571_v33  ;;  %v706_v40 = vpop.eup %705  ;;  %v564_v38 = vadd.f32 1.0, %v704_v36  ;;  %723 = vrsqrt.f32 %v344_v32 }
 0x235   :  { %597 = vst [vmem:[%s1192_s5 + $0x58] sm:$0xff] %v580_v57  ;;  %v708_v44 = vpop.eup %707  ;;  %v555_v43 = vadd.f32 1.0, %v706_v40  ;;  %725 = vrsqrt.f32 %v352_v35 }
 0x236   :  { %v581_v47 = vmul.f32 %v564_v38, %v445_v39  ;;  %v377_v26 = vmul.f32 %v708_v44, %v970_v0  ;;  %v710_v48 = vpop.eup %709  ;;  %v437_v0 = vmul.f32 0.5, %v1063_v30 }
 0x237   :  { %v572_v51 = vmul.f32 %v555_v43, %v436_v45  ;;  %v712_v53 = vpop.eup %711  ;;  %v379_v59 = vmul.f32 %v710_v48, %v975_v8 }
 0x238   :  { %598 = vst [vmem:[%s1192_s5 + $0x60] sm:$0xff] %v581_v47  ;;  %v400_v37 = vmul.f32 %v1008_v54, %v377_v26  ;;  %v384_v60 = vmul.f32 %v712_v53, %v978_v13 }
 0x239   :  { %v714_v46 = vpop.eup %713  ;;  %589 = vst [vmem:[%s1192_s5 + $0x18] sm:$0xff] %v572_v51  ;;  %v402_v41 = vmul.f32 %v1008_v54, %v379_v59 }
 0x23a   :  { %v716_v50 = vpop.eup %715  ;;  %v556_v52 = vadd.f32 1.0, %v714_v46  ;;  %v1118_v58 = vadd.f32 %v1014_v55, %v400_v37  ;;  %v407_v63 = vmul.f32 %v1008_v54, %v384_v60 }
 0x23b   :  { %v718_v61 = vpop.eup %717  ;;  %v565_v8 = vadd.f32 1.0, %v716_v50  ;;  %v1126_v30 = vadd.f32 %v1014_v55, %v402_v41 }
 0x23c   :  { %v720_v34 = vpop.eup %719  ;;  %v573_v3 = vmul.f32 %v556_v52, %v437_v0  ;;  %v457_v13 = vmul.f32 0.044715, %v1118_v58  ;;  %v1129_v9 = vadd.f32 %v1014_v55, %v407_v63  ;;  %v385_v28 = vmul.f32 %v718_v61, %v986_v20 }
 0x23d   :  { %v722_v5 = vpop.eup %721  ;;  %v582_v6 = vmul.f32 %v565_v8, %v446_v62  ;;  %v557_v23 = vadd.f32 1.0, %v720_v34  ;;  %v459_v10 = vmul.f32 0.044715, %v1126_v30  ;;  %v440_v61 = vmul.f32 0.5, %v1118_v58 }
 0x23e   :  { %v724_v11 = vpop.eup %723  ;;  %590 = vst [vmem:[%s1192_s5 + $0x20] sm:$0xff] %v573_v3  ;;  %v474_v42 = vmul.f32 %v457_v13, %v1118_v58  ;;  %v376_v56 = vmul.f32 %v722_v5, %v983_v16  ;;  %v464_v21 = vmul.f32 0.044715, %v1129_v9  ;;  %v408_v20 = vmul.f32 %v1008_v54, %v385_v28 }
 0x23f   :  { %v726_v19 = vpop.eup %725  ;;  %599 = vst [vmem:[%s1192_s5 + $0x68] sm:$0xff] %v582_v6  ;;  %v574_v15 = vmul.f32 %v557_v23, %v438_v4  ;;  %v476_v17 = vmul.f32 %v459_v10, %v1126_v30  ;;  %v378_v1 = vmul.f32 %v724_v11, %v993_v22  ;;  %v442_v3 = vmul.f32 0.5, %v1126_v30 }
 0x240   :  { %v491_v49 = vmul.f32 %v474_v42, %v1118_v58  ;;  %v399_v7 = vmul.f32 %v1008_v54, %v376_v56  ;;  %v481_v16 = vmul.f32 %v464_v21, %v1129_v9  ;;  %v431_v18 = vadd.f32 %v1014_v55, %v408_v20 }
 0x241   :  { %591 = vst [vmem:[%s1192_s5 + $0x28] sm:$0xff] %v574_v15  ;;  %v386_v25 = vmul.f32 %v726_v19, %v998_v24  ;;  %v493_v14 = vmul.f32 %v476_v17, %v1126_v30  ;;  %v401_v29 = vmul.f32 %v1008_v54, %v378_v1  ;;  %v447_v13 = vmul.f32 0.5, %v1129_v9 }
 0x242   :  { %v508_v27 = vadd.f32 %v491_v49, %v1118_v58  ;;  %v422_v12 = vadd.f32 %v1014_v55, %v399_v7  ;;  %v498_v22 = vmul.f32 %v481_v16, %v1129_v9  ;;  %v465_v33 = vmul.f32 0.044715, %v431_v18 }
 0x243   :  { %v409_v31 = vmul.f32 %v1008_v54, %v386_v25  ;;  %v510_v57 = vadd.f32 %v493_v14, %v1126_v30  ;;  %v424_v35 = vadd.f32 %v1014_v55, %v401_v29  ;;  %v448_v30 = vmul.f32 0.5, %v431_v18 }
 0x244   :  { %v525_v2 = vmul.f32 0.7978846, %v508_v27  ;;  %v456_v32 = vmul.f32 0.044715, %v422_v12  ;;  %v515_v36 = vadd.f32 %v498_v22, %v1129_v9  ;;  %v482_v24 = vmul.f32 %v465_v33, %v431_v18 }
 0x245   :  { %v432_v40 = vadd.f32 %v1014_v55, %v409_v31  ;;  %v527_v39 = vmul.f32 0.7978846, %v510_v57  ;;  %v458_v43 = vmul.f32 0.044715, %v424_v35  ;;  %v439_v9 = vmul.f32 0.5, %v422_v12 }
 0x246   :  { %727 = vtanh.f32 %v525_v2  ;;  %v473_v38 = vmul.f32 %v456_v32, %v422_v12  ;;  %v532_v44 = vmul.f32 0.7978846, %v515_v36  ;;  %v499_v45 = vmul.f32 %v482_v24, %v431_v18 }
 0x247   :  { %729 = vtanh.f32 %v527_v39  ;;  %v466_v54 = vmul.f32 0.044715, %v432_v40  ;;  %v475_v48 = vmul.f32 %v458_v43, %v424_v35  ;;  %v441_v21 = vmul.f32 0.5, %v424_v35 }
 0x248   :  { %v490_v47 = vmul.f32 %v473_v38, %v422_v12  ;;  %731 = vtanh.f32 %v532_v44  ;;  %v516_v26 = vadd.f32 %v499_v45, %v431_v18  ;;  %v449_v49 = vmul.f32 0.5, %v432_v40 }
 0x249   :  { %v483_v53 = vmul.f32 %v466_v54, %v432_v40  ;;  %v492_v59 = vmul.f32 %v475_v48, %v424_v35 }
 0x24a   :  { %v507_v51 = vadd.f32 %v490_v47, %v422_v12  ;;  %v533_v37 = vmul.f32 0.7978846, %v516_v26 }
 0x24b   :  { %v500_v60 = vmul.f32 %v483_v53, %v432_v40  ;;  %v509_v55 = vadd.f32 %v492_v59, %v424_v35 }
 0x24c   :  { %v524_v46 = vmul.f32 0.7978846, %v507_v51  ;;  %733 = vtanh.f32 %v533_v37 }
 0x24d   :  { %v517_v50 = vadd.f32 %v500_v60, %v432_v40  ;;  %v526_v0 = vmul.f32 0.7978846, %v509_v55 }
 0x24e   :  { %735 = vtanh.f32 %v524_v46 }
 0x24f   :  { %v534_v41 = vmul.f32 0.7978846, %v517_v50  ;;  %737 = vtanh.f32 %v526_v0 }
 0x250   :  { %v728_v52 = vpop.eup %727 }
 0x251   :  { %v559_v62 = vadd.f32 1.0, %v728_v52  ;;  %v730_v8 = vpop.eup %729  ;;  %739 = vtanh.f32 %v534_v41 }
 0x252   :  { %v732_v63 = vpop.eup %731  ;;  %v561_v4 = vadd.f32 1.0, %v730_v8 }
 0x253   :  { %v576_v34 = vmul.f32 %v559_v62, %v440_v61  ;;  %v566_v5 = vadd.f32 1.0, %v732_v63 }
 0x254   :  { %v578_v6 = vmul.f32 %v561_v4, %v442_v3 }
 0x255   :  { %593 = vst [vmem:[%s1192_s5 + $0x38] sm:$0xff] %v576_v34  ;;  %v583_v23 = vmul.f32 %v566_v5, %v447_v13 }
 0x256   :  { %v734_v28 = vpop.eup %733  ;;  %595 = vst [vmem:[%s1192_s5 + $0x48] sm:$0xff] %v578_v6 }
 0x257   :  { %600 = vst [vmem:[%s1192_s5 + $0x70] sm:$0xff] %v583_v23  ;;  %v567_v11 = vadd.f32 1.0, %v734_v28 }
 0x258   :  { %v736_v58 = vpop.eup %735 }
 0x259   :  { %v558_v42 = vadd.f32 1.0, %v736_v58  ;;  %v584_v10 = vmul.f32 %v567_v11, %v448_v30  ;;  %v738_v56 = vpop.eup %737 }
 0x25a   :  { %v560_v20 = vadd.f32 1.0, %v738_v56 }
 0x25b   :  { %v575_v19 = vmul.f32 %v558_v42, %v439_v9  ;;  %v740_v15 = vpop.eup %739  ;;  %601 = vst [vmem:[%s1192_s5 + $0x78] sm:$0xff] %v584_v10 }
 0x25c   :  { %v568_v17 = vadd.f32 1.0, %v740_v15  ;;  %v577_v7 = vmul.f32 %v560_v20, %v441_v21 }
 0x25d   :  { %592 = vst [vmem:[%s1192_s5 + $0x30] sm:$0xff] %v575_v19 }
 0x25e   :  { %v585_v1 = vmul.f32 %v568_v17, %v449_v49  ;;  %594 = vst [vmem:[%s1192_s5 + $0x40] sm:$0xff] %v577_v7 }
 0x260   :  { %602 = vst [vmem:[%s1192_s5 + $0x80] sm:$0x3] %v585_v1 }

// kernel: wav2vec2_forward.8
= control target key start
LH: loop header
LB: loop body
LE: loop exit
PB: predicated region body
PF: predicated region fallthrough
CT: control target
= control target key end

     0   :  { %s1045_s1 = inlined_call_operand.vmem [shape: bf16[384,128], index: 1, kind: input, shape index: {}]   ;;  %s1046_s0 = inlined_call_operand.vmem [shape: f32[64,384], index: 0, kind: input, shape index: {}]   ;;  %s1047_s2 = inlined_call_operand.vmem [shape: f32[1,128], index: 2, kind: input, shape index: {}]   ;;  %s1048_s3 = inlined_call_operand.vmem [shape: f32[1,128], index: 3, kind: input, shape index: {}]   ;;  %s1049_s4 = inlined_call_operand.vmem [shape: f32[1,128], index: 4, kind: input, shape index: {}]   ;;  %s1050_s5 = inlined_call_operand.vmem [shape: f32[64,128], index: 5, kind: output, shape index: {}]  }
   0x1   :  { %v692_v0 = vld [vmem:[%s1045_s1 + $0x40] sm:$0xff]   ;;  %v694_v2 = vld [vmem:[%s1045_s1 + $0x48] sm:$0xff]   ;;  %v697_v5 = vld [vmem:[%s1045_s1 + $0x50] sm:$0xff]  }
   0x2   :  { %v693_v1 = vld [vmem:[%s1045_s1] sm:$0xff]   ;;  %616 = vmatprep.subr.bf16.mxu0 %v692_v0  ;;  %v696_v4 = vld [vmem:[%s1045_s1 + $0x8] sm:$0xff]   ;;  %v699_v7 = vld [vmem:[%s1045_s1 + $0x10] sm:$0xff]  }
   0x3   :  { %617 = vmatpush3.bf16.msra.mxu0 %v693_v1  ;;  %v695_v3 = vld [vmem:[%s1045_s1 + $0x80] sm:$0xff]   ;;  %v698_v6 = vld [vmem:[%s1045_s1 + $0x88] sm:$0xff]   ;;  %v700_v8 = vld [vmem:[%s1045_s1 + $0x58] sm:$0xff]  }
   0x4   :  { %618 = vmatprep.subr.bf16.mxu0 %v694_v2  ;;  %668 = vmatprep.subr.bf16.mxu1 %v695_v3  ;;  %v701_v9 = vld [vmem:[%s1045_s1 + $0x90] sm:$0xff]   ;;  %v702_v10 = vld [vmem:[%s1045_s1 + $0x18] sm:$0xff]   ;;  %v703_v11 = vld [vmem:[%s1045_s1 + $0x60] sm:$0xff]  }
   0x5   :  { %669 = vmatpush3.bf16.msra.mxu1 %v695_v3  ;;  %v704_v12 = vld [vmem:[%s1045_s1 + $0x98] sm:$0xff]   ;;  %v705_v13 = vld [vmem:[%s1045_s1 + $0x20] sm:$0xff]   ;;  %v706_v15 = vld [vmem:[%s1045_s1 + $0x68] sm:$0xff]  }
   0x6   :  { %670 = vmatprep.subr.bf16.mxu1 %v698_v6  ;;  %v707_v14 = vld [vmem:[%s1045_s1 + $0xa0] sm:$0xff]   ;;  %v708_v16 = vld [vmem:[%s1045_s1 + $0x28] sm:$0xff]   ;;  %v709_v18 = vld [vmem:[%s1045_s1 + $0x70] sm:$0xff]  }
   0x7   :  { %619 = vmatpush3.bf16.msra.mxu0 %v696_v4  ;;  %v710_v17 = vld [vmem:[%s1045_s1 + $0xa8] sm:$0xff]   ;;  %v711_v19 = vld [vmem:[%s1045_s1 + $0x30] sm:$0xff]   ;;  %v25_v22 = vld [vmem:[%s1046_s0 + $0x20] sm:$0xff] }
   0x8   :  { %620 = vmatprep.subr.bf16.mxu0 %v697_v5  ;;  %v713_v20 = vld [vmem:[%s1045_s1 + $0xb0] sm:$0xff]   ;;  %v22_v21 = vld [vmem:[%s1046_s0 + $0x8] sm:$0xff]  ;;  %v712_v23 = vld [vmem:[%s1045_s1 + $0x78] sm:$0xff]  }
   0x9   :  { %671 = vmatpush3.bf16.msra.mxu1 %v698_v6  ;;  %v46_v24 = vpack.c.bf16 %v25_v22, %v22_v21  ;;  %v23_v25 = vld [vmem:[%s1046_s0 + $0x10] sm:$0xff]  ;;  %v26_v26 = vld [vmem:[%s1046_s0 + $0x28] sm:$0xff]  ;;  %v714_v27 = vld [vmem:[%s1045_s1 + $0x38] sm:$0xff]  }
   0xa   :  { %672 = vmatprep.subr.bf16.mxu1 %v701_v9  ;;  %v47_v28 = vpack.c.bf16 %v26_v26, %v23_v25  ;;  %v21_v29 = vld [vmem:[%s1046_s0] sm:$0xff]  ;;  %v24_v30 = vld [vmem:[%s1046_s0 + $0x18] sm:$0xff]  ;;  %v31_v33 = vld [vmem:[%s1046_s0 + $0x50] sm:$0xff] }
   0xb   :  { %621 = vmatpush3.bf16.msra.mxu0 %v699_v7  ;;  %288 = vmatprep.mubr.bf16.mxu0 %v46_v24  ;;  %v715_v31 = vld [vmem:[%s1045_s1 + $0xb8] sm:$0xff]   ;;  %v45_v34 = vpack.c.bf16 %v24_v30, %v21_v29  ;;  %v29_v35 = vld [vmem:[%s1046_s0 + $0x40] sm:$0xff]  ;;  %v35_v38 = vld [vmem:[%s1046_s0 + $0x70] sm:$0xff] }
   0xc   :  { %622 = vmatprep.subr.bf16.mxu0 %v700_v8  ;;  %684 = vmatprep.mubr.bf16.mxu1 %v47_v28  ;;  %v28_v32 = vld [vmem:[%s1046_s0 + $0x38] sm:$0xff]  ;;  %v38_v39 = vld [vmem:[%s1046_s0 + $0x88] sm:$0xff]  ;;  %v27_v42 = vld [vmem:[%s1046_s0 + $0x30] sm:$0xff] }
   0xd   :  { %673 = vmatpush3.bf16.msra.mxu1 %v701_v9  ;;  %v32_v36 = vld [vmem:[%s1046_s0 + $0x58] sm:$0xff]  ;;  %v49_v37 = vpack.c.bf16 %v31_v33, %v28_v32  ;;  %v53_v41 = vpack.c.bf16 %v38_v39, %v35_v38  ;;  %v30_v43 = vld [vmem:[%s1046_s0 + $0x48] sm:$0xff]  ;;  %v37_v45 = vld [vmem:[%s1046_s0 + $0x80] sm:$0xff] }
   0xe   :  { %674 = vmatprep.subr.bf16.mxu1 %v704_v12  ;;  %v50_v40 = vpack.c.bf16 %v32_v36, %v29_v35  ;;  %v34_v44 = vld [vmem:[%s1046_s0 + $0x68] sm:$0xff]  ;;  %v48_v46 = vpack.c.bf16 %v30_v43, %v27_v42  ;;  %v41_v47 = vld [vmem:[%s1046_s0 + $0xa0] sm:$0xff]  ;;  %v44_v48 = vld [vmem:[%s1046_s0 + $0xb8] sm:$0xff] }
   0xf   :  { %623 = vmatpush3.bf16.msra.mxu0 %v702_v10  ;;  %v52_v49 = vpack.c.bf16 %v37_v45, %v34_v44  ;;  %v56_v50 = vpack.c.bf16 %v44_v48, %v41_v47  ;;  %v33_v51 = vld [vmem:[%s1046_s0 + $0x60] sm:$0xff]  ;;  %v36_v52 = vld [vmem:[%s1046_s0 + $0x78] sm:$0xff]  ;;  %v43_v54 = vld [vmem:[%s1046_s0 + $0xb0] sm:$0xff] }
  0x10   :  { %624 = vmatprep.subr.bf16.mxu0 %v703_v11  ;;  %v40_v53 = vld [vmem:[%s1046_s0 + $0x98] sm:$0xff]  ;;  %v51_v55 = vpack.c.bf16 %v36_v52, %v33_v51  ;;  %v39_v57 = vld [vmem:[%s1046_s0 + $0x90] sm:$0xff]  ;;  %v42_v58 = vld [vmem:[%s1046_s0 + $0xa8] sm:$0xff] }
  0x11   :  { %675 = vmatpush3.bf16.msra.mxu1 %v704_v12  ;;  %v55_v56 = vpack.c.bf16 %v43_v54, %v40_v53  ;;  %v54_v59 = vpack.c.bf16 %v42_v58, %v39_v57  ;;  %v589_v62 = vld [vmem:[%s1047_s2] ss:$0 sm:$0xff] }
  0x12   :  { %676 = vmatprep.subr.bf16.mxu1 %v707_v14 }
  0x13   :  { %625 = vmatpush3.bf16.msra.mxu0 %v705_v13 }
  0x14   :  { %626 = vmatprep.subr.bf16.mxu0 %v706_v15 }
  0x15   :  { %677 = vmatpush3.bf16.msra.mxu1 %v707_v14 }
  0x16   :  { %678 = vmatprep.subr.bf16.mxu1 %v710_v17 }
  0x17   :  { %627 = vmatpush3.bf16.msra.mxu0 %v708_v16 }
  0x18   :  { %628 = vmatprep.subr.bf16.mxu0 %v709_v18 }
  0x19   :  { %679 = vmatpush3.bf16.msra.mxu1 %v710_v17 }
  0x1a   :  { %680 = vmatprep.subr.bf16.mxu1 %v713_v20 }
  0x1b   :  { %629 = vmatpush3.bf16.msra.mxu0 %v711_v19 }
  0x1c   :  { %630 = vmatprep.subr.bf16.mxu0 %v712_v23 }
  0x1d   :  { %681 = vmatpush3.bf16.msra.mxu1 %v713_v20 }
  0x1e   :  { %682 = vmatprep.subr.bf16.mxu1 %v715_v31 }
  0x1f   :  { %631 = vmatpush3.bf16.msra.mxu0 %v714_v27 }
  0x21   :  { %683 = vmatpush3.bf16.msra.mxu1 %v715_v31 }
  0x22   :  { %289 = vmatmul.mubr.bf16.vlgmr.msra.gmra.mrb[0].mxu0 %v45_v34 }
  0x23   :  { %296 = vmatprep.mubr.bf16.mxu0 %v49_v37 }
  0x24   :  { %685 = vmatmul.mubr.bf16.vlgmr.msra.gmra.mrb[0].mxu1 %v50_v40 }
  0x25   :  { %688 = vmatprep.mubr.bf16.mxu1 %v53_v41 }
  0x2a   :  { %297 = vmatmul.mubr.bf16.gmra.mrb[4].mxu0 %v48_v46 }
  0x2b   :  { %304 = vmatprep.mubr.bf16.mxu0 %v52_v49 }
  0x2c   :  { %689 = vmatmul.mubr.bf16.gmra.mrb[4].mxu1 %v56_v50 }
  0x32   :  { %305 = vmatmul.mubr.bf16.gmra.mrb[8].mxu0 %v51_v55 }
  0x33   :  { %312 = vmatprep.mubr.bf16.mxu0 %v55_v56 }
  0x3a   :  { %313 = vmatmul.mubr.bf16.gmra.mrb[12].mxu0 %v54_v59 }
  0xf5   :  { %v632_v60 = vpop.f32.mrb[0].mxu0 }
  0xf6   :  { %v633_v61 = vpop.f32.mrb[1].mxu0 }
  0xf7   :  { %v634_v63 = vadd.f32 %v633_v61, %v632_v60  ;;  %v635_v0 = vpop.f32.mrb[2].mxu0  ;;  %v686_v2 = vpop.f32.mrb[0].mxu1 }
  0xf8   :  { %v636_v1 = vpop.f32.mrb[3].mxu0  ;;  %v355_v5 = vpop.f32.mrb[1].mxu1 }
  0xf9   :  { %v637_v3 = vadd.f32 %v636_v1, %v635_v0  ;;  %v291_v4 = vadd.f32 %v634_v63, %v589_v62  ;;  %v687_v6 = vpop.f32.mrb[2].mxu1 }
  0xfa   :  { %v358_v9 = vpop.f32.mrb[3].mxu1 }
  0xfb   :  { %v356_v7 = vadd.f32 %v355_v5, %v291_v4  ;;  %v294_v8 = vadd.f32 %v637_v3, %v589_v62 }
  0xfd   :  { %v359_v10 = vadd.f32 %v358_v9, %v294_v8  ;;  %v638_v11 = vpop.f32.mrb[4].mxu0  ;;  %388 = vadd.xlane.f32.xlu0 %v356_v7 }
  0xfe   :  { %v639_v12 = vpop.f32.mrb[5].mxu0 }
  0xff   :  { %v640_v13 = vadd.f32 %v639_v12, %v638_v11  ;;  %v641_v14 = vpop.f32.mrb[6].mxu0  ;;  %v690_v16 = vpop.f32.mrb[4].mxu1 }
 0x100   :  { %v642_v15 = vpop.f32.mrb[7].mxu0  ;;  %v371_v19 = vpop.f32.mrb[5].mxu1 }
 0x101   :  { %v299_v17 = vadd.f32 %v640_v13, %v589_v62  ;;  %v643_v18 = vadd.f32 %v642_v15, %v641_v14  ;;  %390 = vadd.xlane.f32.xlu0 %v359_v10  ;;  %v691_v20 = vpop.f32.mrb[6].mxu1 }
 0x102   :  { %v374_v23 = vpop.f32.mrb[7].mxu1 }
 0x103   :  { %v302_v21 = vadd.f32 %v643_v18, %v589_v62  ;;  %v364_v22 = vadd.f32 %v686_v2, %v299_v17 }
 0x105   :  { %v644_v24 = vpop.f32.mrb[8].mxu0  ;;  %392 = vadd.xlane.f32.xlu1 %v364_v22  ;;  %v367_v25 = vadd.f32 %v687_v6, %v302_v21 }
 0x106   :  { %v645_v26 = vpop.f32.mrb[9].mxu0 }
 0x107   :  { %v646_v27 = vadd.f32 %v645_v26, %v644_v24  ;;  %v647_v28 = vpop.f32.mrb[10].mxu0 }
 0x108   :  { %v648_v29 = vpop.f32.mrb[11].mxu0 }
 0x109   :  { %v649_v30 = vadd.f32 %v648_v29, %v647_v28  ;;  %394 = vadd.xlane.f32.xlu1 %v367_v25  ;;  %v307_v31 = vadd.f32 %v646_v27, %v589_v62  ;;  %v961_v29 = vld [vmem:[%s1049_s4] ss:$0 sm:$0xff] }
 0x10b   :  { %v372_v32 = vadd.f32 %v371_v19, %v307_v31  ;;  %v310_v33 = vadd.f32 %v649_v30, %v589_v62 }
 0x10d   :  { %v375_v34 = vadd.f32 %v374_v23, %v310_v33  ;;  %v650_v35 = vpop.f32.mrb[12].mxu0  ;;  %396 = vadd.xlane.f32.xlu0 %v372_v32 }
 0x10e   :  { %v651_v36 = vpop.f32.mrb[13].mxu0 }
 0x10f   :  { %v652_v37 = vadd.f32 %v651_v36, %v650_v35  ;;  %v653_v38 = vpop.f32.mrb[14].mxu0  ;;  %398 = vadd.xlane.f32.xlu1 %v375_v34 }
 0x110   :  { %v654_v39 = vpop.f32.mrb[15].mxu0 }
 0x111   :  { %v315_v40 = vadd.f32 %v652_v37, %v589_v62  ;;  %v655_v41 = vadd.f32 %v654_v39, %v653_v38 }
 0x113   :  { %v318_v42 = vadd.f32 %v655_v41, %v589_v62  ;;  %v380_v43 = vadd.f32 %v690_v16, %v315_v40 }
 0x115   :  { %400 = vadd.xlane.f32.xlu0 %v380_v43  ;;  %v383_v44 = vadd.f32 %v691_v20, %v318_v42 }
 0x117   :  { %402 = vadd.xlane.f32.xlu1 %v383_v44 }
 0x18a   :  { %v389_v45 = vpop.xlane.xlu0 %388 }
 0x18b   :  { %v405_v46 = vmul.f32 0.0078125, %v389_v45 }
 0x18d   :  { %v413_v47 = vsub.f32 %v356_v7, %v405_v46 }
 0x18e   :  { %v391_v48 = vpop.xlane.xlu0 %390 }
 0x18f   :  { %v406_v49 = vmul.f32 0.0078125, %v391_v48  ;;  %v421_v50 = vmul.f32 %v413_v47, %v413_v47 }
 0x191   :  { %v925_v51 = vsub.f32 %v359_v10, %v406_v49  ;;  %429 = vadd.xlane.f32.xlu0 %v421_v50 }
 0x192   :  { %v393_v52 = vpop.xlane.xlu1 %392 }
 0x193   :  { %v407_v53 = vmul.f32 0.0078125, %v393_v52  ;;  %v422_v54 = vmul.f32 %v925_v51, %v925_v51 }
 0x195   :  { %v929_v55 = vsub.f32 %v364_v22, %v407_v53  ;;  %431 = vadd.xlane.f32.xlu1 %v422_v54 }
 0x196   :  { %v395_v56 = vpop.xlane.xlu1 %394 }
 0x197   :  { %v408_v57 = vmul.f32 0.0078125, %v395_v56  ;;  %v423_v58 = vmul.f32 %v929_v55, %v929_v55 }
 0x199   :  { %v933_v59 = vsub.f32 %v367_v25, %v408_v57  ;;  %433 = vadd.xlane.f32.xlu0 %v423_v58  ;;  %v956_v25 = vld [vmem:[%s1048_s3] ss:$0 sm:$0xff] }
 0x19a   :  { %v397_v60 = vpop.xlane.xlu0 %396 }
 0x19b   :  { %v409_v61 = vmul.f32 0.0078125, %v397_v60  ;;  %v424_v62 = vmul.f32 %v933_v59, %v933_v59 }
 0x19c   :  { %v399_v63 = vpop.xlane.xlu1 %398 }
 0x19d   :  { %v937_v0 = vsub.f32 %v372_v32, %v409_v61  ;;  %v410_v1 = vmul.f32 0.0078125, %v399_v63  ;;  %435 = vadd.xlane.f32.xlu1 %v424_v62 }
 0x19f   :  { %v939_v2 = vsub.f32 %v375_v34, %v410_v1  ;;  %v425_v3 = vmul.f32 %v937_v0, %v937_v0 }
 0x1a1   :  { %437 = vadd.xlane.f32.xlu0 %v425_v3  ;;  %v426_v4 = vmul.f32 %v939_v2, %v939_v2 }
 0x1a2   :  { %v401_v5 = vpop.xlane.xlu0 %400 }
 0x1a3   :  { %v411_v6 = vmul.f32 0.0078125, %v401_v5  ;;  %439 = vadd.xlane.f32.xlu1 %v426_v4 }
 0x1a4   :  { %v403_v7 = vpop.xlane.xlu1 %402 }
 0x1a5   :  { %v945_v8 = vsub.f32 %v380_v43, %v411_v6  ;;  %v412_v9 = vmul.f32 0.0078125, %v403_v7 }
 0x1a7   :  { %v947_v10 = vsub.f32 %v383_v44, %v412_v9  ;;  %v427_v11 = vmul.f32 %v945_v8, %v945_v8 }
 0x1a9   :  { %441 = vadd.xlane.f32.xlu0 %v427_v11  ;;  %v428_v12 = vmul.f32 %v947_v10, %v947_v10 }
 0x1ab   :  { %443 = vadd.xlane.f32.xlu1 %v428_v12 }
 0x21e   :  { %v430_v13 = vpop.xlane.xlu0 %429 }
 0x21f   :  { %v445_v14 = vmul.f32 0.0078125, %v430_v13 }
 0x221   :  { %v453_v15 = vadd.f32 1e-05, %v445_v14 }
 0x222   :  { %v432_v16 = vpop.xlane.xlu1 %431 }
 0x223   :  { %716 = vrsqrt.f32 %v453_v15  ;;  %v446_v17 = vmul.f32 0.0078125, %v432_v16 }
 0x225   :  { %v454_v18 = vadd.f32 1e-05, %v446_v17 }
 0x226   :  { %v434_v19 = vpop.xlane.xlu0 %433 }
 0x227   :  { %718 = vrsqrt.f32 %v454_v18  ;;  %v447_v20 = vmul.f32 0.0078125, %v434_v19 }
 0x229   :  { %v455_v21 = vadd.f32 1e-05, %v447_v20 }
 0x22a   :  { %v436_v22 = vpop.xlane.xlu1 %435 }
 0x22b   :  { %720 = vrsqrt.f32 %v455_v21  ;;  %v448_v23 = vmul.f32 0.0078125, %v436_v22 }
 0x22d   :  { %v717_v24 = vpop.eup %716  ;;  %v456_v26 = vadd.f32 1e-05, %v448_v23 }
 0x22e   :  { %v469_v27 = vmul.f32 %v717_v24, %v413_v47  ;;  %v438_v28 = vpop.xlane.xlu0 %437 }
 0x22f   :  { %722 = vrsqrt.f32 %v456_v26  ;;  %v449_v30 = vmul.f32 0.0078125, %v438_v28 }
 0x230   :  { %v483_v31 = vmul.f32 %v956_v25, %v469_v27  ;;  %v440_v32 = vpop.xlane.xlu1 %439 }
 0x231   :  { %v719_v33 = vpop.eup %718  ;;  %v457_v34 = vadd.f32 1e-05, %v449_v30  ;;  %v450_v35 = vmul.f32 0.0078125, %v440_v32 }
 0x232   :  { %v965_v36 = vadd.f32 %v961_v29, %v483_v31  ;;  %v470_v37 = vmul.f32 %v719_v33, %v925_v51 }
 0x233   :  { %724 = vrsqrt.f32 %v457_v34  ;;  %v458_v38 = vadd.f32 1e-05, %v450_v35 }
 0x234   :  { %v513_v39 = vmul.f32 0.044715, %v965_v36  ;;  %v484_v40 = vmul.f32 %v956_v25, %v470_v37  ;;  %v505_v32 = vmul.f32 0.5, %v965_v36 }
 0x235   :  { %v721_v41 = vpop.eup %720  ;;  %726 = vrsqrt.f32 %v458_v38 }
 0x236   :  { %v521_v42 = vmul.f32 %v513_v39, %v965_v36  ;;  %v972_v43 = vadd.f32 %v961_v29, %v484_v40  ;;  %v471_v44 = vmul.f32 %v721_v41, %v929_v55  ;;  %v442_v45 = vpop.xlane.xlu0 %441 }
 0x237   :  { %v451_v46 = vmul.f32 0.0078125, %v442_v45 }
 0x238   :  { %v529_v47 = vmul.f32 %v521_v42, %v965_v36  ;;  %v514_v48 = vmul.f32 0.044715, %v972_v43  ;;  %v485_v49 = vmul.f32 %v956_v25, %v471_v44  ;;  %v444_v50 = vpop.xlane.xlu1 %443 }
 0x239   :  { %v723_v51 = vpop.eup %722  ;;  %v459_v52 = vadd.f32 1e-05, %v451_v46  ;;  %v452_v53 = vmul.f32 0.0078125, %v444_v50 }
 0x23a   :  { %v537_v54 = vadd.f32 %v529_v47, %v965_v36  ;;  %v522_v56 = vmul.f32 %v514_v48, %v972_v43  ;;  %v981_v57 = vadd.f32 %v961_v29, %v485_v49  ;;  %v472_v55 = vmul.f32 %v723_v51, %v933_v59 }
 0x23b   :  { %728 = vrsqrt.f32 %v459_v52  ;;  %v460_v58 = vadd.f32 1e-05, %v452_v53  ;;  %v506_v36 = vmul.f32 0.5, %v972_v43 }
 0x23c   :  { %v545_v60 = vmul.f32 0.7978846, %v537_v54  ;;  %v530_v61 = vmul.f32 %v522_v56, %v972_v43  ;;  %v515_v62 = vmul.f32 0.044715, %v981_v57  ;;  %v486_v1 = vmul.f32 %v956_v25, %v472_v55 }
 0x23d   :  { %v725_v63 = vpop.eup %724  ;;  %730 = vrsqrt.f32 %v460_v58 }
 0x23e   :  { %732 = vtanh.f32 %v545_v60  ;;  %v538_v3 = vadd.f32 %v530_v61, %v972_v43  ;;  %v523_v4 = vmul.f32 %v515_v62, %v981_v57  ;;  %v473_v5 = vmul.f32 %v725_v63, %v937_v0 }
 0x23f   :  { %v727_v6 = vpop.eup %726  ;;  %v991_v59 = vadd.f32 %v961_v29, %v486_v1 }
 0x240   :  { %v546_v7 = vmul.f32 0.7978846, %v538_v3  ;;  %v531_v9 = vmul.f32 %v523_v4, %v981_v57  ;;  %v487_v11 = vmul.f32 %v956_v25, %v473_v5  ;;  %v474_v12 = vmul.f32 %v727_v6, %v939_v2 }
 0x241   :  { %v516_v13 = vmul.f32 0.044715, %v991_v59  ;;  %v508_v61 = vmul.f32 0.5, %v991_v59 }
 0x242   :  { %734 = vtanh.f32 %v546_v7  ;;  %v539_v14 = vadd.f32 %v531_v9, %v981_v57  ;;  %v501_v15 = vadd.f32 %v961_v29, %v487_v11  ;;  %v488_v0 = vmul.f32 %v956_v25, %v474_v12 }
 0x243   :  { %v524_v16 = vmul.f32 %v516_v13, %v991_v59 }
 0x244   :  { %v547_v17 = vmul.f32 0.7978846, %v539_v14  ;;  %v517_v18 = vmul.f32 0.044715, %v501_v15  ;;  %v1002_v19 = vadd.f32 %v961_v29, %v488_v0 }
 0x245   :  { %v729_v20 = vpop.eup %728  ;;  %v532_v21 = vmul.f32 %v524_v16, %v991_v59 }
 0x246   :  { %736 = vtanh.f32 %v547_v17  ;;  %v525_v2 = vmul.f32 %v517_v18, %v501_v15  ;;  %v518_v22 = vmul.f32 0.044715, %v1002_v19  ;;  %v475_v26 = vmul.f32 %v729_v20, %v945_v8 }
 0x247   :  { %v731_v23 = vpop.eup %730  ;;  %v540_v24 = vadd.f32 %v532_v21, %v991_v59  ;;  %v510_v7 = vmul.f32 0.5, %v1002_v19 }
 0x248   :  { %v733_v27 = vpop.eup %732  ;;  %v533_v28 = vmul.f32 %v525_v2, %v501_v15  ;;  %v526_v30 = vmul.f32 %v518_v22, %v1002_v19  ;;  %v476_v31 = vmul.f32 %v731_v23, %v947_v10  ;;  %v489_v35 = vmul.f32 %v956_v25, %v475_v26 }
 0x249   :  { %v561_v33 = vadd.f32 1.0, %v733_v27  ;;  %v548_v34 = vmul.f32 0.7978846, %v540_v24 }
 0x24a   :  { %v541_v37 = vadd.f32 %v533_v28, %v501_v15  ;;  %v534_v38 = vmul.f32 %v526_v30, %v1002_v19  ;;  %v490_v39 = vmul.f32 %v956_v25, %v476_v31  ;;  %v503_v8 = vadd.f32 %v961_v29, %v489_v35 }
 0x24b   :  { %v569_v40 = vmul.f32 %v561_v33, %v505_v32  ;;  %738 = vtanh.f32 %v548_v34 }
 0x24c   :  { %v735_v41 = vpop.eup %734  ;;  %v549_v42 = vmul.f32 0.7978846, %v541_v37  ;;  %v542_v44 = vadd.f32 %v534_v38, %v1002_v19  ;;  %v504_v10 = vadd.f32 %v961_v29, %v490_v39  ;;  %v519_v46 = vmul.f32 0.044715, %v503_v8 }
 0x24d   :  { %577 = vst [vmem:[%s1050_s5] sm:$0xff] %v569_v40  ;;  %v562_v45 = vadd.f32 1.0, %v735_v41  ;;  %v507_v29 = vmul.f32 0.5, %v981_v57  ;;  %v509_v57 = vmul.f32 0.5, %v501_v15  ;;  %v511_v13 = vmul.f32 0.5, %v503_v8 }
 0x24e   :  { %740 = vtanh.f32 %v549_v42  ;;  %v550_v25 = vmul.f32 0.7978846, %v542_v44  ;;  %v520_v47 = vmul.f32 0.044715, %v504_v10  ;;  %v527_v49 = vmul.f32 %v519_v46, %v503_v8 }
 0x24f   :  { %v570_v48 = vmul.f32 %v562_v45, %v506_v36  ;;  %v512_v15 = vmul.f32 0.5, %v504_v10 }
 0x250   :  { %v737_v50 = vpop.eup %736  ;;  %742 = vtanh.f32 %v550_v25  ;;  %v528_v51 = vmul.f32 %v520_v47, %v504_v10  ;;  %v535_v53 = vmul.f32 %v527_v49, %v503_v8 }
 0x251   :  { %578 = vst [vmem:[%s1050_s5 + $0x8] sm:$0xff] %v570_v48  ;;  %v563_v52 = vadd.f32 1.0, %v737_v50 }
 0x252   :  { %v536_v54 = vmul.f32 %v528_v51, %v504_v10  ;;  %v543_v56 = vadd.f32 %v535_v53, %v503_v8 }
 0x253   :  { %v571_v43 = vmul.f32 %v563_v52, %v507_v29 }
 0x254   :  { %v544_v55 = vadd.f32 %v536_v54, %v504_v10  ;;  %v551_v60 = vmul.f32 0.7978846, %v543_v56 }
 0x255   :  { %v739_v58 = vpop.eup %738  ;;  %579 = vst [vmem:[%s1050_s5 + $0x10] sm:$0xff] %v571_v43 }
 0x256   :  { %v564_v62 = vadd.f32 1.0, %v739_v58  ;;  %v552_v63 = vmul.f32 0.7978846, %v544_v55  ;;  %744 = vtanh.f32 %v551_v60 }
 0x258   :  { %v741_v1 = vpop.eup %740  ;;  %v572_v3 = vmul.f32 %v564_v62, %v508_v61  ;;  %746 = vtanh.f32 %v552_v63 }
 0x259   :  { %v565_v4 = vadd.f32 1.0, %v741_v1 }
 0x25a   :  { %v743_v5 = vpop.eup %742  ;;  %580 = vst [vmem:[%s1050_s5 + $0x18] sm:$0xff] %v572_v3 }
 0x25b   :  { %v573_v6 = vmul.f32 %v565_v4, %v509_v57  ;;  %v566_v9 = vadd.f32 1.0, %v743_v5 }
 0x25d   :  { %581 = vst [vmem:[%s1050_s5 + $0x20] sm:$0xff] %v573_v6  ;;  %v574_v59 = vmul.f32 %v566_v9, %v510_v7 }
 0x25f   :  { %582 = vst [vmem:[%s1050_s5 + $0x28] sm:$0xff] %v574_v59 }
 0x260   :  { %v745_v11 = vpop.eup %744 }
 0x261   :  { %v567_v14 = vadd.f32 1.0, %v745_v11 }
 0x262   :  { %v747_v12 = vpop.eup %746 }
 0x263   :  { %v568_v0 = vadd.f32 1.0, %v747_v12  ;;  %v575_v16 = vmul.f32 %v567_v14, %v511_v13 }
 0x265   :  { %v576_v17 = vmul.f32 %v568_v0, %v512_v15  ;;  %583 = vst [vmem:[%s1050_s5 + $0x30] sm:$0xff] %v575_v16 }
 0x267   :  { %584 = vst [vmem:[%s1050_s5 + $0x38] sm:$0xff] %v576_v17 }

// kernel: wav2vec2_forward.10
= control target key start
LH: loop header
LB: loop body
LE: loop exit
PB: predicated region body
PF: predicated region fallthrough
CT: control target
= control target key end

     0   :  { %s366_s0 = inlined_call_operand.vmem [shape: f32[32,128], index: 0, kind: input, shape index: {}]   ;;  %s367_s3 = inlined_call_operand.vmem [shape: bf16[128,128], index: 3, kind: input, shape index: {}]   ;;  %s368_s1 = inlined_call_operand.vmem [shape: f32[1,128], index: 1, kind: input, shape index: {}]   ;;  %s369_s2 = inlined_call_operand.vmem [shape: f32[1,128], index: 2, kind: input, shape index: {}]   ;;  %s370_s4 = inlined_call_operand.vmem [shape: f32[1,128], index: 4, kind: input, shape index: {}]   ;;  %s371_s5 = inlined_call_operand.vmem [shape: f32[32,128], index: 5, kind: output, shape index: {}]  }
   0x1   :  { %v21_v0 = vld [vmem:[%s366_s0] sm:$0xff]  ;;  %v23_v1 = vld [vmem:[%s366_s0 + $0x10] sm:$0xff]  ;;  %v22_v2 = vld [vmem:[%s366_s0 + $0x8] sm:$0xff] }
   0x2   :  { %27 = vadd.xlane.f32.xlu0 %v21_v0  ;;  %31 = vadd.xlane.f32.xlu1 %v23_v1  ;;  %v24_v3 = vld [vmem:[%s366_s0 + $0x18] sm:$0xff]  ;;  %v263_v4 = vld [vmem:[%s367_s3] sm:$0xff]   ;;  %v264_v21 = vld [vmem:[%s367_s3 + $0x8] sm:$0xff]  }
   0x3   :  { %243 = vmatprep.subr.bf16.mxu0 %v263_v4  ;;  %v265_v22 = vld [vmem:[%s367_s3 + $0x10] sm:$0xff]   ;;  %v266_v23 = vld [vmem:[%s367_s3 + $0x18] sm:$0xff]   ;;  %v267_v24 = vld [vmem:[%s367_s3 + $0x20] sm:$0xff]  }
   0x4   :  { %244 = vmatpush3.bf16.msra.mxu0 %v263_v4  ;;  %v268_v25 = vld [vmem:[%s367_s3 + $0x28] sm:$0xff]   ;;  %v269_v26 = vld [vmem:[%s367_s3 + $0x30] sm:$0xff]   ;;  %v270_v27 = vld [vmem:[%s367_s3 + $0x38] sm:$0xff]  }
   0x5   :  { %245 = vmatprep.subr.bf16.mxu0 %v264_v21  ;;  %v222_v42 = vld [vmem:[%s368_s1] ss:$0 sm:$0xff] }
   0x6   :  { %29 = vadd.xlane.f32.xlu0 %v22_v2  ;;  %33 = vadd.xlane.f32.xlu1 %v24_v3  ;;  %v223_v47 = vld [vmem:[%s369_s2] ss:$0 sm:$0xff] }
   0x7   :  { %v224_v60 = vld [vmem:[%s370_s4] ss:$0 sm:$0xff] }
   0x8   :  { %246 = vmatpush3.bf16.msra.mxu0 %v264_v21 }
   0x9   :  { %247 = vmatprep.subr.bf16.mxu0 %v265_v22 }
   0xc   :  { %248 = vmatpush3.bf16.msra.mxu0 %v265_v22 }
   0xd   :  { %249 = vmatprep.subr.bf16.mxu0 %v266_v23 }
  0x10   :  { %250 = vmatpush3.bf16.msra.mxu0 %v266_v23 }
  0x11   :  { %251 = vmatprep.subr.bf16.mxu0 %v267_v24 }
  0x14   :  { %252 = vmatpush3.bf16.msra.mxu0 %v267_v24 }
  0x15   :  { %253 = vmatprep.subr.bf16.mxu0 %v268_v25 }
  0x18   :  { %254 = vmatpush3.bf16.msra.mxu0 %v268_v25 }
  0x19   :  { %255 = vmatprep.subr.bf16.mxu0 %v269_v26 }
  0x1c   :  { %256 = vmatpush3.bf16.msra.mxu0 %v269_v26 }
  0x1d   :  { %257 = vmatprep.subr.bf16.mxu0 %v270_v27 }
  0x20   :  { %258 = vmatpush3.bf16.msra.mxu0 %v270_v27 }
  0x8f   :  { %v28_v5 = vpop.xlane.xlu0 %27  ;;  %v32_v6 = vpop.xlane.xlu1 %31 }
  0x90   :  { %v36_v7 = vmul.f32 0.0078125, %v28_v5  ;;  %v38_v8 = vmul.f32 0.0078125, %v32_v6 }
  0x92   :  { %v40_v9 = vsub.f32 %v21_v0, %v36_v7  ;;  %v42_v10 = vsub.f32 %v23_v1, %v38_v8 }
  0x93   :  { %v30_v11 = vpop.xlane.xlu0 %29  ;;  %v34_v12 = vpop.xlane.xlu1 %33 }
  0x94   :  { %v37_v13 = vmul.f32 0.0078125, %v30_v11  ;;  %v44_v14 = vmul.f32 %v40_v9, %v40_v9  ;;  %v39_v15 = vmul.f32 0.0078125, %v34_v12  ;;  %v46_v18 = vmul.f32 %v42_v10, %v42_v10 }
  0x96   :  { %v41_v16 = vsub.f32 %v22_v2, %v37_v13  ;;  %48 = vadd.xlane.f32.xlu0 %v44_v14  ;;  %v43_v17 = vsub.f32 %v24_v3, %v39_v15 }
  0x98   :  { %v45_v19 = vmul.f32 %v41_v16, %v41_v16  ;;  %v47_v20 = vmul.f32 %v43_v17, %v43_v17 }
  0x9a   :  { %52 = vadd.xlane.f32.xlu0 %v46_v18  ;;  %50 = vadd.xlane.f32.xlu1 %v45_v19 }
  0x9e   :  { %54 = vadd.xlane.f32.xlu1 %v47_v20 }
 0x123   :  { %v49_v28 = vpop.xlane.xlu0 %48 }
 0x124   :  { %v56_v29 = vmul.f32 0.0078125, %v49_v28 }
 0x126   :  { %v60_v30 = vadd.f32 1e-05, %v56_v29 }
 0x127   :  { %v51_v31 = vpop.xlane.xlu1 %50  ;;  %v53_v32 = vpop.xlane.xlu0 %52 }
 0x128   :  { %271 = vrsqrt.f32 %v60_v30  ;;  %v57_v33 = vmul.f32 0.0078125, %v51_v31  ;;  %v58_v34 = vmul.f32 0.0078125, %v53_v32 }
 0x12a   :  { %v61_v35 = vadd.f32 1e-05, %v57_v33  ;;  %v62_v36 = vadd.f32 1e-05, %v58_v34 }
 0x12b   :  { %v55_v37 = vpop.xlane.xlu1 %54 }
 0x12c   :  { %273 = vrsqrt.f32 %v61_v35  ;;  %v59_v38 = vmul.f32 0.0078125, %v55_v37 }
 0x12d   :  { %275 = vrsqrt.f32 %v62_v36 }
 0x12e   :  { %v63_v39 = vadd.f32 1e-05, %v59_v38 }
 0x130   :  { %277 = vrsqrt.f32 %v63_v39 }
 0x132   :  { %v272_v40 = vpop.eup %271 }
 0x133   :  { %v68_v41 = vmul.f32 %v272_v40, %v40_v9 }
 0x135   :  { %v78_v46 = vmul.f32 %v222_v42, %v68_v41 }
 0x136   :  { %v274_v43 = vpop.eup %273 }
 0x137   :  { %v276_v44 = vpop.eup %275  ;;  %v69_v45 = vmul.f32 %v274_v43, %v41_v16  ;;  %v88_v51 = vadd.f32 %v223_v47, %v78_v46 }
 0x138   :  { %v70_v48 = vmul.f32 %v276_v44, %v42_v10 }
 0x139   :  { %v79_v49 = vmul.f32 %v222_v42, %v69_v45 }
 0x13a   :  { %v278_v50 = vpop.eup %277  ;;  %v80_v54 = vmul.f32 %v222_v42, %v70_v48 }
 0x13b   :  { %v89_v52 = vadd.f32 %v223_v47, %v79_v49  ;;  %v71_v53 = vmul.f32 %v278_v50, %v43_v17 }
 0x13c   :  { %v90_v57 = vadd.f32 %v223_v47, %v80_v54 }
 0x13d   :  { %v92_v55 = vpack.c.bf16 %v89_v52, %v88_v51  ;;  %v81_v56 = vmul.f32 %v222_v42, %v71_v53 }
 0x13f   :  { %259 = vmatprep.mubr.bf16.mxu0 %v92_v55  ;;  %v91_v58 = vadd.f32 %v223_v47, %v81_v56 }
 0x141   :  { %v93_v59 = vpack.c.bf16 %v91_v58, %v90_v57 }
 0x143   :  { %260 = vmatmul.mubr.bf16.vlgmr.msra.gmra.mrb[0].mxu0 %v93_v59 }
 0x216   :  { %v261_v61 = vpop.f32.mrb[0].mxu0 }
 0x217   :  { %v208_v62 = vadd.f32 %v261_v61, %v224_v60  ;;  %v199_v63 = vpop.f32.mrb[1].mxu0 }
 0x218   :  { %v200_v0 = vadd.f32 %v224_v60, %v199_v63  ;;  %v262_v1 = vpop.f32.mrb[2].mxu0 }
 0x219   :  { %216 = vst [vmem:[%s371_s5 + $0x10] sm:$0xff] %v208_v62  ;;  %v211_v2 = vadd.f32 %v262_v1, %v224_v60  ;;  %v202_v3 = vpop.f32.mrb[3].mxu0 }
 0x21a   :  { %214 = vst [vmem:[%s371_s5] sm:$0xff] %v200_v0  ;;  %v203_v4 = vadd.f32 %v224_v60, %v202_v3 }
 0x21b   :  { %217 = vst [vmem:[%s371_s5 + $0x18] sm:$0xff] %v211_v2 }
 0x21c   :  { %215 = vst [vmem:[%s371_s5 + $0x8] sm:$0xff] %v203_v4 }

// kernel: wav2vec2_forward.9
= control target key start
LH: loop header
LB: loop body
LE: loop exit
PB: predicated region body
PF: predicated region fallthrough
CT: control target
= control target key end

     0   :  { %s546_s1 = inlined_call_operand.vmem [shape: bf16[256,128], index: 1, kind: input, shape index: {}]   ;;  %s547_s0 = inlined_call_operand.vmem [shape: f32[32,256], index: 0, kind: input, shape index: {}]   ;;  %s548_s2 = inlined_call_operand.vmem [shape: f32[1,128], index: 2, kind: input, shape index: {}]   ;;  %s549_s3 = inlined_call_operand.vmem [shape: f32[1,128], index: 3, kind: input, shape index: {}]   ;;  %s550_s4 = inlined_call_operand.vmem [shape: f32[1,128], index: 4, kind: input, shape index: {}]   ;;  %s551_s5 = inlined_call_operand.vmem [shape: f32[32,128], index: 5, kind: output, shape index: {}]  }
   0x1   :  { %v391_v0 = vld [vmem:[%s546_s1 + $0x40] sm:$0xff]   ;;  %v393_v2 = vld [vmem:[%s546_s1 + $0x48] sm:$0xff]   ;;  %v395_v4 = vld [vmem:[%s546_s1 + $0x50] sm:$0xff]  }
   0x2   :  { %v392_v1 = vld [vmem:[%s546_s1] sm:$0xff]   ;;  %347 = vmatprep.subr.bf16.mxu0 %v391_v0  ;;  %375 = vmatprep.subr.bf16.mxu1 %v391_v0  ;;  %v394_v3 = vld [vmem:[%s546_s1 + $0x8] sm:$0xff]   ;;  %v396_v5 = vld [vmem:[%s546_s1 + $0x10] sm:$0xff]  }
   0x3   :  { %348 = vmatpush3.bf16.msra.mxu0 %v392_v1  ;;  %383 = vmatpush3.bf16.msra.mxu1 %v392_v1  ;;  %v397_v6 = vld [vmem:[%s546_s1 + $0x58] sm:$0xff]   ;;  %v399_v8 = vld [vmem:[%s546_s1 + $0x60] sm:$0xff]   ;;  %v401_v10 = vld [vmem:[%s546_s1 + $0x68] sm:$0xff]  }
   0x4   :  { %349 = vmatprep.subr.bf16.mxu0 %v393_v2  ;;  %376 = vmatprep.subr.bf16.mxu1 %v393_v2  ;;  %v398_v7 = vld [vmem:[%s546_s1 + $0x18] sm:$0xff]   ;;  %v400_v9 = vld [vmem:[%s546_s1 + $0x20] sm:$0xff]   ;;  %v22_v11 = vld [vmem:[%s547_s0 + $0x8] sm:$0xff] }
   0x5   :  { %v24_v12 = vld [vmem:[%s547_s0 + $0x18] sm:$0xff]  ;;  %v26_v13 = vld [vmem:[%s547_s0 + $0x28] sm:$0xff]  ;;  %v403_v18 = vld [vmem:[%s546_s1 + $0x70] sm:$0xff]  }
   0x6   :  { %v30_v14 = vpack.c.bf16 %v24_v12, %v22_v11  ;;  %v28_v15 = vld [vmem:[%s547_s0 + $0x38] sm:$0xff]  ;;  %v402_v17 = vld [vmem:[%s546_s1 + $0x28] sm:$0xff]   ;;  %v404_v19 = vld [vmem:[%s546_s1 + $0x30] sm:$0xff]  }
   0x7   :  { %350 = vmatpush3.bf16.msra.mxu0 %v394_v3  ;;  %384 = vmatpush3.bf16.msra.mxu1 %v394_v3  ;;  %v32_v16 = vpack.c.bf16 %v28_v15, %v26_v13  ;;  %v405_v20 = vld [vmem:[%s546_s1 + $0x78] sm:$0xff]   ;;  %v21_v22 = vld [vmem:[%s547_s0] sm:$0xff]  ;;  %v23_v23 = vld [vmem:[%s547_s0 + $0x10] sm:$0xff] }
   0x8   :  { %351 = vmatprep.subr.bf16.mxu0 %v395_v4  ;;  %377 = vmatprep.subr.bf16.mxu1 %v395_v4  ;;  %v406_v21 = vld [vmem:[%s546_s1 + $0x38] sm:$0xff]   ;;  %v25_v24 = vld [vmem:[%s547_s0 + $0x20] sm:$0xff]  ;;  %v27_v25 = vld [vmem:[%s547_s0 + $0x30] sm:$0xff]  ;;  %v29_v26 = vpack.c.bf16 %v23_v23, %v21_v22 }
   0x9   :  { %200 = vmatprep.mubr.bf16.mxu0 %v30_v14  ;;  %208 = vmatprep.mubr.bf16.mxu1 %v32_v16  ;;  %v31_v27 = vpack.c.bf16 %v27_v25, %v25_v24  ;;  %v328_v32 = vld [vmem:[%s548_s2] ss:$0 sm:$0xff] }
   0xa   :  { %v346_v12 = vld [vmem:[%s550_s4] ss:$0 sm:$0xff] }
   0xb   :  { %352 = vmatpush3.bf16.msra.mxu0 %v396_v5  ;;  %385 = vmatpush3.bf16.msra.mxu1 %v396_v5 }
   0xc   :  { %353 = vmatprep.subr.bf16.mxu0 %v397_v6  ;;  %378 = vmatprep.subr.bf16.mxu1 %v397_v6 }
   0xf   :  { %354 = vmatpush3.bf16.msra.mxu0 %v398_v7  ;;  %386 = vmatpush3.bf16.msra.mxu1 %v398_v7 }
  0x10   :  { %355 = vmatprep.subr.bf16.mxu0 %v399_v8  ;;  %379 = vmatprep.subr.bf16.mxu1 %v399_v8 }
  0x13   :  { %356 = vmatpush3.bf16.msra.mxu0 %v400_v9  ;;  %387 = vmatpush3.bf16.msra.mxu1 %v400_v9 }
  0x14   :  { %357 = vmatprep.subr.bf16.mxu0 %v401_v10  ;;  %380 = vmatprep.subr.bf16.mxu1 %v401_v10  ;;  %v345_v10 = vld [vmem:[%s549_s3] ss:$0 sm:$0xff] }
  0x17   :  { %358 = vmatpush3.bf16.msra.mxu0 %v402_v17  ;;  %388 = vmatpush3.bf16.msra.mxu1 %v402_v17 }
  0x18   :  { %359 = vmatprep.subr.bf16.mxu0 %v403_v18  ;;  %381 = vmatprep.subr.bf16.mxu1 %v403_v18 }
  0x1b   :  { %360 = vmatpush3.bf16.msra.mxu0 %v404_v19  ;;  %389 = vmatpush3.bf16.msra.mxu1 %v404_v19 }
  0x1c   :  { %361 = vmatprep.subr.bf16.mxu0 %v405_v20  ;;  %382 = vmatprep.subr.bf16.mxu1 %v405_v20 }
  0x1f   :  { %362 = vmatpush3.bf16.msra.mxu0 %v406_v21  ;;  %390 = vmatpush3.bf16.msra.mxu1 %v406_v21 }
  0x22   :  { %201 = vmatmul.mubr.bf16.vlgmr.msra.gmra.mrb[0].mxu0 %v29_v26  ;;  %209 = vmatmul.mubr.bf16.vlgmr.msra.gmra.mrb[0].mxu1 %v31_v27 }
  0xf5   :  { %v363_v28 = vpop.f32.mrb[0].mxu0  ;;  %v369_v29 = vpop.f32.mrb[0].mxu1 }
  0xf6   :  { %v364_v30 = vpop.f32.mrb[1].mxu0  ;;  %v370_v31 = vpop.f32.mrb[1].mxu1 }
  0xf7   :  { %v365_v33 = vadd.f32 %v364_v30, %v363_v28  ;;  %v371_v34 = vadd.f32 %v370_v31, %v369_v29  ;;  %v366_v35 = vpop.f32.mrb[2].mxu0  ;;  %v372_v36 = vpop.f32.mrb[2].mxu1 }
  0xf8   :  { %v367_v37 = vpop.f32.mrb[3].mxu0  ;;  %v373_v38 = vpop.f32.mrb[3].mxu1 }
  0xf9   :  { %v368_v39 = vadd.f32 %v367_v37, %v366_v35  ;;  %v374_v40 = vadd.f32 %v373_v38, %v372_v36  ;;  %v211_v41 = vadd.f32 %v371_v34, %v328_v32  ;;  %v203_v42 = vadd.f32 %v365_v33, %v328_v32 }
  0xfb   :  { %223 = vadd.xlane.f32.xlu1 %v211_v41  ;;  %219 = vadd.xlane.f32.xlu0 %v203_v42  ;;  %v214_v43 = vadd.f32 %v374_v40, %v328_v32  ;;  %v206_v44 = vadd.f32 %v368_v39, %v328_v32 }
  0xff   :  { %225 = vadd.xlane.f32.xlu1 %v214_v43  ;;  %221 = vadd.xlane.f32.xlu0 %v206_v44 }
 0x188   :  { %v224_v45 = vpop.xlane.xlu1 %223  ;;  %v220_v46 = vpop.xlane.xlu0 %219 }
 0x189   :  { %v230_v47 = vmul.f32 0.0078125, %v224_v45  ;;  %v228_v48 = vmul.f32 0.0078125, %v220_v46 }
 0x18b   :  { %v232_v49 = vsub.f32 %v203_v42, %v228_v48  ;;  %v234_v52 = vsub.f32 %v211_v41, %v230_v47 }
 0x18c   :  { %v226_v50 = vpop.xlane.xlu1 %225  ;;  %v222_v51 = vpop.xlane.xlu0 %221 }
 0x18d   :  { %v231_v53 = vmul.f32 0.0078125, %v226_v50  ;;  %v229_v54 = vmul.f32 0.0078125, %v222_v51  ;;  %v236_v55 = vmul.f32 %v232_v49, %v232_v49  ;;  %v238_v58 = vmul.f32 %v234_v52, %v234_v52 }
 0x18f   :  { %v233_v56 = vsub.f32 %v206_v44, %v229_v54  ;;  %240 = vadd.xlane.f32.xlu0 %v236_v55  ;;  %v235_v57 = vsub.f32 %v214_v43, %v231_v53 }
 0x191   :  { %v237_v59 = vmul.f32 %v233_v56, %v233_v56  ;;  %v239_v60 = vmul.f32 %v235_v57, %v235_v57 }
 0x193   :  { %244 = vadd.xlane.f32.xlu0 %v238_v58  ;;  %242 = vadd.xlane.f32.xlu1 %v237_v59 }
 0x197   :  { %246 = vadd.xlane.f32.xlu1 %v239_v60 }
 0x21c   :  { %v241_v61 = vpop.xlane.xlu0 %240 }
 0x21d   :  { %v248_v62 = vmul.f32 0.0078125, %v241_v61 }
 0x21f   :  { %v252_v63 = vadd.f32 1e-05, %v248_v62 }
 0x220   :  { %v243_v0 = vpop.xlane.xlu1 %242  ;;  %v245_v1 = vpop.xlane.xlu0 %244 }
 0x221   :  { %407 = vrsqrt.f32 %v252_v63  ;;  %v249_v2 = vmul.f32 0.0078125, %v243_v0  ;;  %v250_v3 = vmul.f32 0.0078125, %v245_v1 }
 0x223   :  { %v253_v4 = vadd.f32 1e-05, %v249_v2  ;;  %v254_v5 = vadd.f32 1e-05, %v250_v3 }
 0x224   :  { %v247_v6 = vpop.xlane.xlu1 %246 }
 0x225   :  { %409 = vrsqrt.f32 %v253_v4  ;;  %v251_v7 = vmul.f32 0.0078125, %v247_v6 }
 0x226   :  { %411 = vrsqrt.f32 %v254_v5 }
 0x227   :  { %v255_v8 = vadd.f32 1e-05, %v251_v7 }
 0x229   :  { %413 = vrsqrt.f32 %v255_v8 }
 0x22b   :  { %v408_v9 = vpop.eup %407 }
 0x22c   :  { %v260_v11 = vmul.f32 %v408_v9, %v232_v49 }
 0x22e   :  { %v270_v13 = vmul.f32 %v345_v10, %v260_v11 }
 0x22f   :  { %v410_v14 = vpop.eup %409 }
 0x230   :  { %v412_v15 = vpop.eup %411  ;;  %v280_v16 = vadd.f32 %v346_v12, %v270_v13  ;;  %v261_v17 = vmul.f32 %v410_v14, %v233_v56 }
 0x231   :  { %v262_v18 = vmul.f32 %v412_v15, %v234_v52 }
 0x232   :  { %v288_v19 = vmul.f32 0.044715, %v280_v16  ;;  %v271_v20 = vmul.f32 %v345_v10, %v261_v17  ;;  %v284_v48 = vmul.f32 0.5, %v280_v16 }
 0x233   :  { %v414_v21 = vpop.eup %413  ;;  %v272_v22 = vmul.f32 %v345_v10, %v262_v18 }
 0x234   :  { %v292_v23 = vmul.f32 %v288_v19, %v280_v16  ;;  %v281_v24 = vadd.f32 %v346_v12, %v271_v20  ;;  %v263_v25 = vmul.f32 %v414_v21, %v235_v57 }
 0x235   :  { %v282_v26 = vadd.f32 %v346_v12, %v272_v22 }
 0x236   :  { %v296_v27 = vmul.f32 %v292_v23, %v280_v16  ;;  %v289_v28 = vmul.f32 0.044715, %v281_v24  ;;  %v273_v29 = vmul.f32 %v345_v10, %v263_v25  ;;  %v285_v53 = vmul.f32 0.5, %v281_v24 }
 0x237   :  { %v290_v30 = vmul.f32 0.044715, %v282_v26  ;;  %v286_v55 = vmul.f32 0.5, %v282_v26 }
 0x238   :  { %v300_v31 = vadd.f32 %v296_v27, %v280_v16  ;;  %v293_v32 = vmul.f32 %v289_v28, %v281_v24  ;;  %v283_v33 = vadd.f32 %v346_v12, %v273_v29 }
 0x239   :  { %v294_v34 = vmul.f32 %v290_v30, %v282_v26 }
 0x23a   :  { %v304_v35 = vmul.f32 0.7978846, %v300_v31  ;;  %v297_v36 = vmul.f32 %v293_v32, %v281_v24  ;;  %v291_v37 = vmul.f32 0.044715, %v283_v33  ;;  %v287_v60 = vmul.f32 0.5, %v283_v33 }
 0x23b   :  { %v298_v38 = vmul.f32 %v294_v34, %v282_v26 }
 0x23c   :  { %415 = vtanh.f32 %v304_v35  ;;  %v301_v39 = vadd.f32 %v297_v36, %v281_v24  ;;  %v295_v40 = vmul.f32 %v291_v37, %v283_v33 }
 0x23d   :  { %v302_v41 = vadd.f32 %v298_v38, %v282_v26 }
 0x23e   :  { %v305_v42 = vmul.f32 0.7978846, %v301_v39  ;;  %v299_v43 = vmul.f32 %v295_v40, %v283_v33 }
 0x23f   :  { %v306_v44 = vmul.f32 0.7978846, %v302_v41 }
 0x240   :  { %417 = vtanh.f32 %v305_v42  ;;  %v303_v45 = vadd.f32 %v299_v43, %v283_v33 }
 0x241   :  { %419 = vtanh.f32 %v306_v44 }
 0x242   :  { %v307_v46 = vmul.f32 0.7978846, %v303_v45 }
 0x244   :  { %421 = vtanh.f32 %v307_v46 }
 0x246   :  { %v416_v47 = vpop.eup %415 }
 0x247   :  { %v312_v49 = vadd.f32 1.0, %v416_v47 }
 0x249   :  { %v316_v50 = vmul.f32 %v312_v49, %v284_v48 }
 0x24a   :  { %v418_v51 = vpop.eup %417 }
 0x24b   :  { %v420_v52 = vpop.eup %419  ;;  %320 = vst [vmem:[%s551_s5] sm:$0xff] %v316_v50  ;;  %v313_v54 = vadd.f32 1.0, %v418_v51 }
 0x24c   :  { %v314_v56 = vadd.f32 1.0, %v420_v52 }
 0x24d   :  { %v317_v57 = vmul.f32 %v313_v54, %v285_v53 }
 0x24e   :  { %v422_v58 = vpop.eup %421  ;;  %v318_v59 = vmul.f32 %v314_v56, %v286_v55 }
 0x24f   :  { %321 = vst [vmem:[%s551_s5 + $0x8] sm:$0xff] %v317_v57  ;;  %v315_v61 = vadd.f32 1.0, %v422_v58 }
 0x250   :  { %322 = vst [vmem:[%s551_s5 + $0x10] sm:$0xff] %v318_v59 }
 0x251   :  { %v319_v62 = vmul.f32 %v315_v61, %v287_v60 }
 0x253   :  { %323 = vst [vmem:[%s551_s5 + $0x18] sm:$0xff] %v319_v62 }

// kernel: wav2vec2_forward.13
= control target key start
LH: loop header
LB: loop body
LE: loop exit
PB: predicated region body
PF: predicated region fallthrough
CT: control target
= control target key end

     0   :  { %v28_v28 = vlaneseq  ;;  %v1953_v36 = vmov 1983009808   ;;  %s2396_s0 = inlined_call_operand.vmem [shape: f32[2,2048], index: 0, kind: input, shape index: {}]   ;;  %s2397_s1 = inlined_call_operand.vmem [shape: bf16[2048,128], index: 1, kind: input, shape index: {}]   ;;  %s2398_s2 = inlined_call_operand.vmem [shape: f32[1,128], index: 2, kind: input, shape index: {}]   ;;  %s2399_s3 = inlined_call_operand.hbm [shape: f32[2,128], index: 3, kind: output, shape index: {}]  }
   0x1   :  { %v1797_v0 = vld [vmem:[%s2397_s1 + $0x40] sm:$0xff]   ;;  %v1801_v4 = vld [vmem:[%s2397_s1 + $0x48] sm:$0xff]   ;;  %v1805_v8 = vld [vmem:[%s2397_s1 + $0x50] sm:$0xff]   ;;  %v26_v37 = vunpack.c.l.s4 %v1953_v36 }
   0x2   :  { %v1798_v1 = vld [vmem:[%s2397_s1 + $0xc0] sm:$0xff]   ;;  %1619 = vmatprep.subr.bf16.mxu0 %v1797_v0  ;;  %v1802_v5 = vld [vmem:[%s2397_s1 + $0xc8] sm:$0xff]   ;;  %v1806_v9 = vld [vmem:[%s2397_s1 + $0xd0] sm:$0xff]   ;;  %v29_v33 = vshrl.u32 %v28_v28, 7 }
   0x3   :  { %v1799_v2 = vld [vmem:[%s2397_s1] sm:$0xff]   ;;  %1641 = vmatprep.subr.bf16.mxu1 %v1798_v1  ;;  %v1803_v6 = vld [vmem:[%s2397_s1 + $0x8] sm:$0xff]   ;;  %v1807_v10 = vld [vmem:[%s2397_s1 + $0x10] sm:$0xff]   ;;  %v27_v39 = vunpack.c.0.s8 %v26_v37 }
   0x4   :  { %v1800_v3 = vld [vmem:[%s2397_s1 + $0x80] sm:$0xff]   ;;  %1620 = vmatpush3.bf16.msra.mxu0 %v1799_v2  ;;  %v1804_v7 = vld [vmem:[%s2397_s1 + $0x88] sm:$0xff]   ;;  %v1808_v11 = vld [vmem:[%s2397_s1 + $0x90] sm:$0xff]  }
   0x5   :  { %1642 = vmatpush3.bf16.msra.mxu1 %v1800_v3  ;;  %1621 = vmatprep.subr.bf16.mxu0 %v1801_v4  ;;  %v1809_v12 = vld [vmem:[%s2397_s1 + $0x58] sm:$0xff]   ;;  %v1813_v16 = vld [vmem:[%s2397_s1 + $0x60] sm:$0xff]   ;;  %v1817_v20 = vld [vmem:[%s2397_s1 + $0x68] sm:$0xff]   ;;  %v2080_v41 = vsub.s32 %v27_v39, %v29_v33 }
   0x6   :  { %1643 = vmatprep.subr.bf16.mxu1 %v1802_v5  ;;  %v1810_v13 = vld [vmem:[%s2397_s1 + $0xd8] sm:$0xff]   ;;  %v1814_v17 = vld [vmem:[%s2397_s1 + $0xe0] sm:$0xff]   ;;  %v1818_v21 = vld [vmem:[%s2397_s1 + $0xe8] sm:$0xff]  }
   0x7   :  { %v1811_v14 = vld [vmem:[%s2397_s1 + $0x18] sm:$0xff]   ;;  %v1815_v18 = vld [vmem:[%s2397_s1 + $0x20] sm:$0xff]   ;;  %v1819_v22 = vld [vmem:[%s2397_s1 + $0x28] sm:$0xff]  }
   0x8   :  { %1622 = vmatpush3.bf16.msra.mxu0 %v1803_v6  ;;  %v1812_v15 = vld [vmem:[%s2397_s1 + $0x98] sm:$0xff]   ;;  %v1816_v19 = vld [vmem:[%s2397_s1 + $0xa0] sm:$0xff]   ;;  %v1820_v23 = vld [vmem:[%s2397_s1 + $0xa8] sm:$0xff]  }
   0x9   :  { %1644 = vmatpush3.bf16.msra.mxu1 %v1804_v7  ;;  %1623 = vmatprep.subr.bf16.mxu0 %v1805_v8  ;;  %v1821_v24 = vld [vmem:[%s2397_s1 + $0x70] sm:$0xff]   ;;  %v1825_v29 = vld [vmem:[%s2397_s1 + $0x78] sm:$0xff]   ;;  %v16_v34 = vld [vmem:[%s2396_s0] sm:$0xff] }
   0xa   :  { %1645 = vmatprep.subr.bf16.mxu1 %v1806_v9  ;;  %v1822_v25 = vld [vmem:[%s2397_s1 + $0xf0] sm:$0xff]   ;;  %v1826_v30 = vld [vmem:[%s2397_s1 + $0xf8] sm:$0xff]   ;;  %v1830_v35 = vld [vmem:[%s2397_s1 + $0x140] sm:$0xff]   ;;  %v24_v40 = vcombine.high %v16_v34, %v16_v34  ;;  %v31_v42 = vrot.slane %v16_v34, %v2080_v41 }
   0xb   :  { %v1823_v26 = vld [vmem:[%s2397_s1 + $0x30] sm:$0xff]   ;;  %v1827_v31 = vld [vmem:[%s2397_s1 + $0x38] sm:$0xff]   ;;  %v1831_v38 = vld [vmem:[%s2397_s1 + $0x1c0] sm:$0xff]  }
   0xc   :  { %1624 = vmatpush3.bf16.msra.mxu0 %v1807_v10  ;;  %v1824_v27 = vld [vmem:[%s2397_s1 + $0xb0] sm:$0xff]   ;;  %v1828_v32 = vld [vmem:[%s2397_s1 + $0xb8] sm:$0xff]   ;;  %v38_v43 = vrot.slane %v24_v40, %v2080_v41  ;;  %v39_v44 = vcombine.high %v31_v42, %v31_v42  ;;  %v1832_v46 = vld [vmem:[%s2397_s1 + $0x100] sm:$0xff]   ;;  %v108_v47 = vpack.c.bf16 %v31_v42, %v31_v42 }
   0xd   :  { %1646 = vmatpush3.bf16.msra.mxu1 %v1808_v11  ;;  %1625 = vmatprep.subr.bf16.mxu0 %v1809_v12  ;;  %v1833_v49 = vld [vmem:[%s2397_s1 + $0x180] sm:$0xff]   ;;  %v1834_v52 = vld [vmem:[%s2397_s1 + $0x148] sm:$0xff]   ;;  %v1838_v56 = vld [vmem:[%s2397_s1 + $0x150] sm:$0xff]  }
   0xe   :  { %1647 = vmatprep.subr.bf16.mxu1 %v1810_v13  ;;  %v40_v45 = vcombine.high %v38_v43, %v38_v43  ;;  %v110_v48 = vpack.c.bf16 %v38_v43, %v38_v43  ;;  %v109_v50 = vpack.c.bf16 %v39_v44, %v39_v44  ;;  %v1835_v53 = vld [vmem:[%s2397_s1 + $0x1c8] sm:$0xff]   ;;  %v1839_v57 = vld [vmem:[%s2397_s1 + $0x1d0] sm:$0xff]   ;;  %v1842_v60 = vld [vmem:[%s2397_s1 + $0x158] sm:$0xff]  }
   0xf   :  { %v1836_v54 = vld [vmem:[%s2397_s1 + $0x108] sm:$0xff]   ;;  %v1840_v58 = vld [vmem:[%s2397_s1 + $0x110] sm:$0xff]   ;;  %v1843_v61 = vld [vmem:[%s2397_s1 + $0x1d8] sm:$0xff]  }
  0x10   :  { %1626 = vmatpush3.bf16.msra.mxu0 %v1811_v14  ;;  %v111_v51 = vpack.c.bf16 %v40_v45, %v40_v45  ;;  %1187 = vmatprep.mubr.bf16.mxu0 %v109_v50  ;;  %v1837_v55 = vld [vmem:[%s2397_s1 + $0x188] sm:$0xff]   ;;  %v1841_v59 = vld [vmem:[%s2397_s1 + $0x190] sm:$0xff]   ;;  %v1844_v62 = vld [vmem:[%s2397_s1 + $0x118] sm:$0xff]  }
  0x11   :  { %1648 = vmatpush3.bf16.msra.mxu1 %v1812_v15  ;;  %1627 = vmatprep.subr.bf16.mxu0 %v1813_v16  ;;  %v1845_v63 = vld [vmem:[%s2397_s1 + $0x198] sm:$0xff]   ;;  %v1846_v0 = vld [vmem:[%s2397_s1 + $0x160] sm:$0xff]   ;;  %v1850_v4 = vld [vmem:[%s2397_s1 + $0x168] sm:$0xff]  }
  0x12   :  { %1649 = vmatprep.subr.bf16.mxu1 %v1814_v17  ;;  %1227 = vmatprep.mubr.bf16.mxu1 %v111_v51  ;;  %v1847_v1 = vld [vmem:[%s2397_s1 + $0x1e0] sm:$0xff]   ;;  %v1851_v5 = vld [vmem:[%s2397_s1 + $0x1e8] sm:$0xff]   ;;  %v1854_v8 = vld [vmem:[%s2397_s1 + $0x170] sm:$0xff]  }
  0x13   :  { %v1848_v2 = vld [vmem:[%s2397_s1 + $0x120] sm:$0xff]   ;;  %v1852_v6 = vld [vmem:[%s2397_s1 + $0x128] sm:$0xff]   ;;  %v1855_v9 = vld [vmem:[%s2397_s1 + $0x1f0] sm:$0xff]  }
  0x14   :  { %1628 = vmatpush3.bf16.msra.mxu0 %v1815_v18  ;;  %v1849_v3 = vld [vmem:[%s2397_s1 + $0x1a0] sm:$0xff]   ;;  %v1853_v7 = vld [vmem:[%s2397_s1 + $0x1a8] sm:$0xff]   ;;  %v1856_v11 = vld [vmem:[%s2397_s1 + $0x130] sm:$0xff]  }
  0x15   :  { %1650 = vmatpush3.bf16.msra.mxu1 %v1816_v19  ;;  %1629 = vmatprep.subr.bf16.mxu0 %v1817_v20  ;;  %v17_v10 = vld [vmem:[%s2396_s0 + $0x8] sm:$0xff]  ;;  %v1857_v14 = vld [vmem:[%s2397_s1 + $0x1b0] sm:$0xff]   ;;  %v1858_v15 = vld [vmem:[%s2397_s1 + $0x178] sm:$0xff]  }
  0x16   :  { %1651 = vmatprep.subr.bf16.mxu1 %v1818_v21  ;;  %v48_v12 = vrot.slane %v17_v10, %v2080_v41  ;;  %v41_v13 = vcombine.high %v17_v10, %v17_v10  ;;  %v1859_v18 = vld [vmem:[%s2397_s1 + $0x1f8] sm:$0xff]   ;;  %v1870_v33 = vld [vmem:[%s2397_s1 + $0x288] sm:$0xff]   ;;  %v1871_v34 = vld [vmem:[%s2397_s1 + $0x250] sm:$0xff]  }
  0x17   :  { %v1860_v19 = vld [vmem:[%s2397_s1 + $0x138] sm:$0xff]   ;;  %v1873_v36 = vld [vmem:[%s2397_s1 + $0x210] sm:$0xff]   ;;  %v1879_v43 = vld [vmem:[%s2397_s1 + $0x260] sm:$0xff]  }
  0x18   :  { %1630 = vmatpush3.bf16.msra.mxu0 %v1819_v22  ;;  %v56_v16 = vcombine.high %v48_v12, %v48_v12  ;;  %v55_v17 = vrot.slane %v41_v13, %v2080_v41  ;;  %v1861_v22 = vld [vmem:[%s2397_s1 + $0x1b8] sm:$0xff]   ;;  %v1874_v37 = vld [vmem:[%s2397_s1 + $0x290] sm:$0xff]   ;;  %v1880_v44 = vld [vmem:[%s2397_s1 + $0x2e0] sm:$0xff]  }
  0x19   :  { %1652 = vmatpush3.bf16.msra.mxu1 %v1820_v23  ;;  %1631 = vmatprep.subr.bf16.mxu0 %v1821_v24  ;;  %v1863_v24 = vld [vmem:[%s2397_s1 + $0x240] sm:$0xff]   ;;  %v1876_v39 = vld [vmem:[%s2397_s1 + $0x2d8] sm:$0xff]   ;;  %v1886_v50 = vld [vmem:[%s2397_s1 + $0x2a8] sm:$0xff]  }
  0x1a   :  { %1653 = vmatprep.subr.bf16.mxu1 %v1822_v25  ;;  %v113_v20 = vpack.c.bf16 %v56_v16, %v56_v16  ;;  %v57_v21 = vcombine.high %v55_v17, %v55_v17  ;;  %v1864_v25 = vld [vmem:[%s2397_s1 + $0x2c0] sm:$0xff]   ;;  %v114_v28 = vpack.c.bf16 %v55_v17, %v55_v17  ;;  %v1877_v40 = vld [vmem:[%s2397_s1 + $0x218] sm:$0xff]   ;;  %v1887_v51 = vld [vmem:[%s2397_s1 + $0x270] sm:$0xff]  }
  0x1b   :  { %v1878_v42 = vld [vmem:[%s2397_s1 + $0x298] sm:$0xff]   ;;  %v1881_v45 = vld [vmem:[%s2397_s1 + $0x220] sm:$0xff]   ;;  %v1901_v10 = vld [vmem:[%s2397_s1 + $0x3c8] sm:$0xff]  }
  0x1c   :  { %1632 = vmatpush3.bf16.msra.mxu0 %v1823_v26  ;;  %v115_v23 = vpack.c.bf16 %v57_v21, %v57_v21  ;;  %v1865_v26 = vld [vmem:[%s2397_s1 + $0x200] sm:$0xff]   ;;  %v1904_v13 = vld [vmem:[%s2397_s1 + $0x350] sm:$0xff]   ;;  %v1908_v17 = vld [vmem:[%s2397_s1 + $0x358] sm:$0xff]  }
  0x1d   :  { %1654 = vmatpush3.bf16.msra.mxu1 %v1824_v27  ;;  %1633 = vmatprep.subr.bf16.mxu0 %v1825_v29  ;;  %v112_v27 = vpack.c.bf16 %v48_v12, %v48_v12  ;;  %v1866_v29 = vld [vmem:[%s2397_s1 + $0x280] sm:$0xff]   ;;  %v1903_v12 = vld [vmem:[%s2397_s1 + $0x388] sm:$0xff]   ;;  %v1907_v16 = vld [vmem:[%s2397_s1 + $0x390] sm:$0xff]  }
  0x1e   :  { %1655 = vmatprep.subr.bf16.mxu1 %v1826_v30  ;;  %v1867_v30 = vld [vmem:[%s2397_s1 + $0x248] sm:$0xff]   ;;  %v1912_v21 = vld [vmem:[%s2397_s1 + $0x360] sm:$0xff]  }
  0x20   :  { %1634 = vmatpush3.bf16.msra.mxu0 %v1827_v31  ;;  %v1868_v31 = vld [vmem:[%s2397_s1 + $0x2c8] sm:$0xff]  }
  0x21   :  { %1656 = vmatpush3.bf16.msra.mxu1 %v1828_v32  ;;  %1663 = vmatprep.subr.bf16.mxu0 %v1830_v35  ;;  %v1869_v32 = vld [vmem:[%s2397_s1 + $0x208] sm:$0xff]   ;;  %v1872_v35 = vld [vmem:[%s2397_s1 + $0x2d0] sm:$0xff]  }
  0x22   :  { %1685 = vmatprep.subr.bf16.mxu1 %v1831_v38  ;;  %v1875_v38 = vld [vmem:[%s2397_s1 + $0x258] sm:$0xff]  }
  0x23   :  { %1188 = vmatmul.mubr.bf16.vlgmr.msra.gmra.mrb[0].mxu0 %v108_v47  ;;  %v1883_v47 = vld [vmem:[%s2397_s1 + $0x268] sm:$0xff]  }
  0x24   :  { %1228 = vmatmul.mubr.bf16.vlgmr.msra.gmra.mrb[0].mxu1 %v110_v48  ;;  %1664 = vmatpush3.bf16.msra.mxu0 %v1832_v46  ;;  %v1882_v46 = vld [vmem:[%s2397_s1 + $0x2a0] sm:$0xff]   ;;  %v1884_v48 = vld [vmem:[%s2397_s1 + $0x2e8] sm:$0xff]  }
  0x25   :  { %1686 = vmatpush3.bf16.msra.mxu1 %v1833_v49  ;;  %1665 = vmatprep.subr.bf16.mxu0 %v1834_v52  ;;  %v1885_v49 = vld [vmem:[%s2397_s1 + $0x228] sm:$0xff]   ;;  %v1888_v52 = vld [vmem:[%s2397_s1 + $0x2f0] sm:$0xff]  }
  0x26   :  { %1687 = vmatprep.subr.bf16.mxu1 %v1835_v53  ;;  %1267 = vmatprep.mubr.bf16.mxu0 %v113_v20  ;;  %v18_v53 = vld [vmem:[%s2396_s0 + $0x10] sm:$0xff]  ;;  %v1911_v20 = vld [vmem:[%s2397_s1 + $0x398] sm:$0xff]  }
  0x27   :  { %1307 = vmatprep.mubr.bf16.mxu1 %v115_v23  ;;  %v1914_v23 = vld [vmem:[%s2397_s1 + $0x320] sm:$0xff]  }
  0x28   :  { %1666 = vmatpush3.bf16.msra.mxu0 %v1836_v54  ;;  %v1889_v54 = vld [vmem:[%s2397_s1 + $0x230] sm:$0xff]  }
  0x29   :  { %1688 = vmatpush3.bf16.msra.mxu1 %v1837_v55  ;;  %1667 = vmatprep.subr.bf16.mxu0 %v1838_v56  ;;  %v65_v55 = vrot.slane %v18_v53, %v2080_v41  ;;  %v58_v56 = vcombine.high %v18_v53, %v18_v53 }
  0x2a   :  { %1689 = vmatprep.subr.bf16.mxu1 %v1839_v57  ;;  %v1890_v57 = vld [vmem:[%s2397_s1 + $0x2b0] sm:$0xff]  }
  0x2c   :  { %1668 = vmatpush3.bf16.msra.mxu0 %v1840_v58  ;;  %v1891_v58 = vld [vmem:[%s2397_s1 + $0x278] sm:$0xff]  }
  0x2d   :  { %1690 = vmatpush3.bf16.msra.mxu1 %v1841_v59  ;;  %1669 = vmatprep.subr.bf16.mxu0 %v1842_v60  ;;  %v73_v59 = vcombine.high %v65_v55, %v65_v55  ;;  %v72_v60 = vrot.slane %v58_v56, %v2080_v41 }
  0x2e   :  { %1691 = vmatprep.subr.bf16.mxu1 %v1843_v61  ;;  %v1892_v61 = vld [vmem:[%s2397_s1 + $0x2f8] sm:$0xff]  }
  0x30   :  { %1670 = vmatpush3.bf16.msra.mxu0 %v1844_v62  ;;  %v1893_v62 = vld [vmem:[%s2397_s1 + $0x238] sm:$0xff]  }
  0x31   :  { %1692 = vmatpush3.bf16.msra.mxu1 %v1845_v63  ;;  %1671 = vmatprep.subr.bf16.mxu0 %v1846_v0  ;;  %v117_v63 = vpack.c.bf16 %v73_v59, %v73_v59  ;;  %v74_v0 = vcombine.high %v72_v60, %v72_v60 }
  0x32   :  { %1693 = vmatprep.subr.bf16.mxu1 %v1847_v1  ;;  %v1894_v1 = vld [vmem:[%s2397_s1 + $0x2b8] sm:$0xff]  }
  0x34   :  { %1672 = vmatpush3.bf16.msra.mxu0 %v1848_v2  ;;  %v119_v2 = vpack.c.bf16 %v74_v0, %v74_v0 }
  0x35   :  { %1694 = vmatpush3.bf16.msra.mxu1 %v1849_v3  ;;  %1673 = vmatprep.subr.bf16.mxu0 %v1850_v4  ;;  %v1896_v3 = vld [vmem:[%s2397_s1 + $0x340] sm:$0xff]  }
  0x36   :  { %1695 = vmatprep.subr.bf16.mxu1 %v1851_v5  ;;  %v1897_v4 = vld [vmem:[%s2397_s1 + $0x3c0] sm:$0xff]  }
  0x37   :  { %v1898_v5 = vld [vmem:[%s2397_s1 + $0x300] sm:$0xff]  }
  0x38   :  { %1674 = vmatpush3.bf16.msra.mxu0 %v1852_v6  ;;  %v116_v6 = vpack.c.bf16 %v65_v55, %v65_v55 }
  0x39   :  { %1696 = vmatpush3.bf16.msra.mxu1 %v1853_v7  ;;  %1675 = vmatprep.subr.bf16.mxu0 %v1854_v8  ;;  %v118_v7 = vpack.c.bf16 %v72_v60, %v72_v60  ;;  %v1899_v8 = vld [vmem:[%s2397_s1 + $0x380] sm:$0xff]  }
  0x3a   :  { %1697 = vmatprep.subr.bf16.mxu1 %v1855_v9  ;;  %v1900_v9 = vld [vmem:[%s2397_s1 + $0x348] sm:$0xff]  }
  0x3c   :  { %1676 = vmatpush3.bf16.msra.mxu0 %v1856_v11  ;;  %v1902_v11 = vld [vmem:[%s2397_s1 + $0x308] sm:$0xff]  }
  0x3d   :  { %1698 = vmatpush3.bf16.msra.mxu1 %v1857_v14  ;;  %1677 = vmatprep.subr.bf16.mxu0 %v1858_v15  ;;  %v1905_v14 = vld [vmem:[%s2397_s1 + $0x3d0] sm:$0xff]  }
  0x3e   :  { %1699 = vmatprep.subr.bf16.mxu1 %v1859_v18  ;;  %v1906_v15 = vld [vmem:[%s2397_s1 + $0x310] sm:$0xff]   ;;  %v1909_v18 = vld [vmem:[%s2397_s1 + $0x3d8] sm:$0xff]  }
  0x40   :  { %1678 = vmatpush3.bf16.msra.mxu0 %v1860_v19  ;;  %v1910_v19 = vld [vmem:[%s2397_s1 + $0x318] sm:$0xff]  }
  0x41   :  { %1700 = vmatpush3.bf16.msra.mxu1 %v1861_v22  ;;  %1707 = vmatprep.subr.bf16.mxu0 %v1863_v24  ;;  %v1913_v22 = vld [vmem:[%s2397_s1 + $0x3e0] sm:$0xff]  }
  0x42   :  { %1729 = vmatprep.subr.bf16.mxu1 %v1864_v25  ;;  %v1915_v24 = vld [vmem:[%s2397_s1 + $0x3a0] sm:$0xff]   ;;  %v1916_v25 = vld [vmem:[%s2397_s1 + $0x368] sm:$0xff]  }
  0x43   :  { %1268 = vmatmul.mubr.bf16.vlgmr.msra.gmra.mrb[4].mxu0 %v112_v27  ;;  %v1918_v27 = vld [vmem:[%s2397_s1 + $0x328] sm:$0xff]  }
  0x44   :  { %1308 = vmatmul.mubr.bf16.vlgmr.msra.gmra.mrb[4].mxu1 %v114_v28  ;;  %1708 = vmatpush3.bf16.msra.mxu0 %v1865_v26  ;;  %v1917_v26 = vld [vmem:[%s2397_s1 + $0x3e8] sm:$0xff]  }
  0x45   :  { %1730 = vmatpush3.bf16.msra.mxu1 %v1866_v29  ;;  %1709 = vmatprep.subr.bf16.mxu0 %v1867_v30  ;;  %v1919_v28 = vld [vmem:[%s2397_s1 + $0x3a8] sm:$0xff]   ;;  %v1920_v29 = vld [vmem:[%s2397_s1 + $0x370] sm:$0xff]  }
  0x46   :  { %1731 = vmatprep.subr.bf16.mxu1 %v1868_v31  ;;  %1347 = vmatprep.mubr.bf16.mxu0 %v117_v63  ;;  %v1921_v30 = vld [vmem:[%s2397_s1 + $0x3f0] sm:$0xff]   ;;  %v19_v31 = vld [vmem:[%s2396_s0 + $0x18] sm:$0xff] }
  0x47   :  { %1387 = vmatprep.mubr.bf16.mxu1 %v119_v2 }
  0x48   :  { %1710 = vmatpush3.bf16.msra.mxu0 %v1869_v32 }
  0x49   :  { %1732 = vmatpush3.bf16.msra.mxu1 %v1870_v33  ;;  %1711 = vmatprep.subr.bf16.mxu0 %v1871_v34 }
  0x4a   :  { %1733 = vmatprep.subr.bf16.mxu1 %v1872_v35 }
  0x4c   :  { %1712 = vmatpush3.bf16.msra.mxu0 %v1873_v36 }
  0x4d   :  { %1734 = vmatpush3.bf16.msra.mxu1 %v1874_v37  ;;  %1713 = vmatprep.subr.bf16.mxu0 %v1875_v38 }
  0x4e   :  { %1735 = vmatprep.subr.bf16.mxu1 %v1876_v39 }
  0x50   :  { %1714 = vmatpush3.bf16.msra.mxu0 %v1877_v40 }
  0x51   :  { %1736 = vmatpush3.bf16.msra.mxu1 %v1878_v42  ;;  %1715 = vmatprep.subr.bf16.mxu0 %v1879_v43 }
  0x52   :  { %1737 = vmatprep.subr.bf16.mxu1 %v1880_v44 }
  0x54   :  { %1716 = vmatpush3.bf16.msra.mxu0 %v1881_v45 }
  0x55   :  { %1738 = vmatpush3.bf16.msra.mxu1 %v1882_v46  ;;  %1717 = vmatprep.subr.bf16.mxu0 %v1883_v47 }
  0x56   :  { %1739 = vmatprep.subr.bf16.mxu1 %v1884_v48 }
  0x58   :  { %1718 = vmatpush3.bf16.msra.mxu0 %v1885_v49 }
  0x59   :  { %1740 = vmatpush3.bf16.msra.mxu1 %v1886_v50  ;;  %1719 = vmatprep.subr.bf16.mxu0 %v1887_v51 }
  0x5a   :  { %1741 = vmatprep.subr.bf16.mxu1 %v1888_v52 }
  0x5c   :  { %1720 = vmatpush3.bf16.msra.mxu0 %v1889_v54 }
  0x5d   :  { %1742 = vmatpush3.bf16.msra.mxu1 %v1890_v57  ;;  %1721 = vmatprep.subr.bf16.mxu0 %v1891_v58 }
  0x5e   :  { %1743 = vmatprep.subr.bf16.mxu1 %v1892_v61 }
  0x60   :  { %1722 = vmatpush3.bf16.msra.mxu0 %v1893_v62 }
  0x61   :  { %1744 = vmatpush3.bf16.msra.mxu1 %v1894_v1  ;;  %1751 = vmatprep.subr.bf16.mxu0 %v1896_v3 }
  0x62   :  { %1773 = vmatprep.subr.bf16.mxu1 %v1897_v4 }
  0x63   :  { %1348 = vmatmul.mubr.bf16.vlgmr.msra.gmra.mrb[8].mxu0 %v116_v6 }
  0x64   :  { %1388 = vmatmul.mubr.bf16.vlgmr.msra.gmra.mrb[8].mxu1 %v118_v7  ;;  %1752 = vmatpush3.bf16.msra.mxu0 %v1898_v5 }
  0x65   :  { %1774 = vmatpush3.bf16.msra.mxu1 %v1899_v8  ;;  %1753 = vmatprep.subr.bf16.mxu0 %v1900_v9 }
  0x66   :  { %1775 = vmatprep.subr.bf16.mxu1 %v1901_v10 }
  0x68   :  { %1754 = vmatpush3.bf16.msra.mxu0 %v1902_v11 }
  0x69   :  { %1776 = vmatpush3.bf16.msra.mxu1 %v1903_v12  ;;  %1755 = vmatprep.subr.bf16.mxu0 %v1904_v13 }
  0x6a   :  { %1777 = vmatprep.subr.bf16.mxu1 %v1905_v14 }
  0x6c   :  { %1756 = vmatpush3.bf16.msra.mxu0 %v1906_v15 }
  0x6d   :  { %1778 = vmatpush3.bf16.msra.mxu1 %v1907_v16  ;;  %1757 = vmatprep.subr.bf16.mxu0 %v1908_v17 }
  0x6e   :  { %1779 = vmatprep.subr.bf16.mxu1 %v1909_v18 }
  0x70   :  { %1758 = vmatpush3.bf16.msra.mxu0 %v1910_v19 }
  0x71   :  { %1780 = vmatpush3.bf16.msra.mxu1 %v1911_v20  ;;  %1759 = vmatprep.subr.bf16.mxu0 %v1912_v21 }
  0x72   :  { %1781 = vmatprep.subr.bf16.mxu1 %v1913_v22 }
  0x74   :  { %1760 = vmatpush3.bf16.msra.mxu0 %v1914_v23 }
  0x75   :  { %1782 = vmatpush3.bf16.msra.mxu1 %v1915_v24  ;;  %1761 = vmatprep.subr.bf16.mxu0 %v1916_v25 }
  0x76   :  { %1783 = vmatprep.subr.bf16.mxu1 %v1917_v26 }
  0x77   :  { %8 = vsyncpa [#allocation3], 0  ;;  %v82_v32 = vrot.slane %v19_v31, %v2080_v41  ;;  %v75_v33 = vcombine.high %v19_v31, %v19_v31  ;;  %v1922_v34 = vld [vmem:[%s2397_s1 + $0x330] sm:$0xff]   ;;  %v1924_v36 = vld [vmem:[%s2397_s1 + $0x378] sm:$0xff]  }
  0x78   :  { %1762 = vmatpush3.bf16.msra.mxu0 %v1918_v27  ;;  %v1923_v35 = vld [vmem:[%s2397_s1 + $0x3b0] sm:$0xff]   ;;  %v1925_v37 = vld [vmem:[%s2397_s1 + $0x3f8] sm:$0xff]   ;;  %v1490_v49 = vld [vmem:[%s2398_s2] ss:$0 sm:$0xff] }
  0x79   :  { %1784 = vmatpush3.bf16.msra.mxu1 %v1919_v28  ;;  %1763 = vmatprep.subr.bf16.mxu0 %v1920_v29  ;;  %v90_v38 = vcombine.high %v82_v32, %v82_v32  ;;  %v89_v39 = vrot.slane %v75_v33, %v2080_v41  ;;  %v1926_v43 = vld [vmem:[%s2397_s1 + $0x338] sm:$0xff]   ;;  %v120_v46 = vpack.c.bf16 %v82_v32, %v82_v32 }
  0x7a   :  { %1785 = vmatprep.subr.bf16.mxu1 %v1921_v30  ;;  %v1927_v44 = vld [vmem:[%s2397_s1 + $0x3b8] sm:$0xff]   ;;  %s1954_s1 = smov [#allocation2]  }
  0x7b   :  { %v121_v40 = vpack.c.bf16 %v90_v38, %v90_v38  ;;  %v91_v42 = vcombine.high %v89_v39, %v89_v39  ;;  %v122_v47 = vpack.c.bf16 %v89_v39, %v89_v39  ;;  %s1482_s2 = sshll.u32 %s1954_s1, 4  ;;  %s1483_s2 = int_to_ptr.vmem [resolvable:$true] %s1482_s2 }
  0x7c   :  { %1764 = vmatpush3.bf16.msra.mxu0 %v1922_v34  ;;  %s1929_s7 = scalar_lea.vmem %s1483_s2, 32  ;;  %p1934_p1 = scmp.lt.s32.totalorder %s1483_s2, %s1483_s2 }
  0x7d   :  { %1786 = vmatpush3.bf16.msra.mxu1 %v1923_v35  ;;  %1765 = vmatprep.subr.bf16.mxu0 %v1924_v36  ;;  %v123_v45 = vpack.c.bf16 %v91_v42, %v91_v42  ;;  %p1930_p0 = scmp.ne.s32.totalorder %s1483_s2, %s1929_s7  ;;  %p1935_p2 = scmp.lt.s32.totalorder %s1929_s7, %s1929_s7 }
  0x7e   :  { %1787 = vmatprep.subr.bf16.mxu1 %v1925_v37  ;;  %1427 = vmatprep.mubr.bf16.mxu0 %v121_v40 }
  0x7f   :  { %1467 = vmatprep.mubr.bf16.mxu1 %v123_v45  ;;  %p1936_p3 = por %p1935_p2, %p1934_p1 }
  0x80   :  { %1766 = vmatpush3.bf16.msra.mxu0 %v1926_v43 }
  0x81   :  { %1788 = vmatpush3.bf16.msra.mxu1 %v1927_v44  ;;  %p1937_p4 = pnand %p1936_p3, %p1930_p0 }
  0x83   :  { %1428 = vmatmul.mubr.bf16.vlgmr.msra.gmra.mrb[12].mxu0 %v120_v46 }
  0x84   :  { %1468 = vmatmul.mubr.bf16.vlgmr.msra.gmra.mrb[12].mxu1 %v122_v47 }
  0xf6   :  { %v1635_v41 = vpop.f32.mrb[0].mxu0 }
  0xf7   :  { %v1657_v48 = vpop.f32.mrb[0].mxu1  ;;  %v1636_v50 = vpop.f32.mrb[1].mxu0 }
  0xf8   :  { %v1658_v51 = vpop.f32.mrb[1].mxu1  ;;  %v1637_v52 = vadd.f32 %v1636_v50, %v1635_v41  ;;  %v1638_v54 = vpop.f32.mrb[2].mxu0 }
  0xf9   :  { %v1659_v53 = vadd.f32 %v1658_v51, %v1657_v48  ;;  %v1660_v55 = vpop.f32.mrb[2].mxu1  ;;  %v1639_v56 = vpop.f32.mrb[3].mxu0 }
  0xfa   :  { %v1661_v57 = vpop.f32.mrb[3].mxu1  ;;  %v1190_v58 = vadd.f32 %v1637_v52, %v1490_v49 }
  0xfc   :  { %v1230_v59 = vadd.f32 %v1659_v53, %v1190_v58 }
 0x116   :  { %v1679_v60 = vpop.f32.mrb[4].mxu0 }
 0x117   :  { %v1701_v61 = vpop.f32.mrb[4].mxu1  ;;  %v1680_v62 = vpop.f32.mrb[5].mxu0 }
 0x118   :  { %v1702_v63 = vpop.f32.mrb[5].mxu1  ;;  %v1681_v0 = vadd.f32 %v1680_v62, %v1679_v60  ;;  %v1682_v2 = vpop.f32.mrb[6].mxu0 }
 0x119   :  { %v1703_v1 = vadd.f32 %v1702_v63, %v1701_v61  ;;  %v1704_v3 = vpop.f32.mrb[6].mxu1  ;;  %v1683_v4 = vpop.f32.mrb[7].mxu0 }
 0x11a   :  { %v1705_v5 = vpop.f32.mrb[7].mxu1  ;;  %v1270_v6 = vadd.f32 %v1681_v0, %v1230_v59 }
 0x11c   :  { %v1310_v7 = vadd.f32 %v1703_v1, %v1270_v6 }
 0x136   :  { %v1723_v8 = vpop.f32.mrb[8].mxu0 }
 0x137   :  { %v1745_v9 = vpop.f32.mrb[8].mxu1  ;;  %v1724_v10 = vpop.f32.mrb[9].mxu0 }
 0x138   :  { %v1746_v11 = vpop.f32.mrb[9].mxu1  ;;  %v1725_v12 = vadd.f32 %v1724_v10, %v1723_v8  ;;  %v1726_v14 = vpop.f32.mrb[10].mxu0 }
 0x139   :  { %v1747_v13 = vadd.f32 %v1746_v11, %v1745_v9  ;;  %v1748_v15 = vpop.f32.mrb[10].mxu1  ;;  %v1727_v16 = vpop.f32.mrb[11].mxu0 }
 0x13a   :  { %v1749_v17 = vpop.f32.mrb[11].mxu1  ;;  %v1350_v18 = vadd.f32 %v1725_v12, %v1310_v7 }
 0x13c   :  { %v1390_v19 = vadd.f32 %v1747_v13, %v1350_v18 }
 0x156   :  { %v1767_v20 = vpop.f32.mrb[12].mxu0 }
 0x157   :  { %v1789_v21 = vpop.f32.mrb[12].mxu1  ;;  %v1768_v22 = vpop.f32.mrb[13].mxu0 }
 0x158   :  { %v1790_v23 = vpop.f32.mrb[13].mxu1  ;;  %v1769_v24 = vadd.f32 %v1768_v22, %v1767_v20  ;;  %v1770_v26 = vpop.f32.mrb[14].mxu0 }
 0x159   :  { %v1791_v25 = vadd.f32 %v1790_v23, %v1789_v21  ;;  %v1792_v27 = vpop.f32.mrb[14].mxu1  ;;  %v1771_v28 = vpop.f32.mrb[15].mxu0 }
 0x15a   :  { %v1793_v29 = vpop.f32.mrb[15].mxu1  ;;  %v1430_v30 = vadd.f32 %v1769_v24, %v1390_v19 }
 0x15c   :  { %v1470_v31 = vadd.f32 %v1791_v25, %v1430_v30 }
 0x15e   :  { %1475 = vst [vmem:[#allocation2] sm:$0x3] %v1470_v31 }
 0x15f   :  { %1940 = shalt.err (!%p1937_p4)
}
 0x160   :  { %s1941_s10 = scalar_lea.hbm %s2399_s3, 32 }
 0x161   :  { %p1942_p5 = scmp.ne.s32.totalorder %s2399_s3, %s1941_s10  ;;  %p1945_p6 = scmp.lt.u32.totalorder %s1941_s10, %s2399_s3 }
 0x163   :  { %p1947_p7 = pnand %p1945_p6, %p1942_p5 }
 0x165   :  { %1950 = shalt.err (!%p1947_p7)
}
 0x166   :  { %1485 = dma.vmem_to_hbm [thread:$0]  %s1483_s2, 32, %s2399_s3, [#allocation3]  }
 0x167   :  { %1951 = dma.done.wait [#allocation3], 32  }
 0x168   :  { %1952 = vsyncadd [#allocation3], 4294967264 }
 0x169   :  { %1489 = vsyncpa [#allocation3], 1 }

// kernel: wav2vec2_forward.11
= control target key start
LH: loop header
LB: loop body
LE: loop exit
PB: predicated region body
PF: predicated region fallthrough
CT: control target
= control target key end

     0   :  { %vm48_vm0 = vcmask 261120   ;;  %s3524_s28 = smov 96   ;;  %s3525_s18 = smov 64   ;;  %vm2632_vm1 = vcmask 785408   ;;  %vm2627_vm2 = vcmask 523264   ;;  %s4146_s0 = inlined_call_operand.vmem [shape: f32[2,24,128], index: 0, kind: input, shape index: {}]   ;;  %s4147_s1 = inlined_call_operand.vmem [shape: bf16[4,8,32,32], index: 1, kind: input, shape index: {}]   ;;  %s4148_s2 = inlined_call_operand.vmem [shape: f32[1,128], index: 2, kind: input, shape index: {}]   ;;  %s4149_s3 = inlined_call_operand.vmem [shape: f32[2,16,128], index: 3, kind: output, shape index: {}]  }
   0x1   :  { %v25_v0 = vld [vmem:[%s4146_s0 + $0x1] sm:$0xff]  ;;  %v26_v1 = vld [vmem:[%s4146_s0 + $0x9] sm:$0xff]  ;;  %v27_v5 = vld [vmem:[%s4146_s0 + $0x19] sm:$0xff]  ;;  %s3526_s21 = smov 32  }
   0x2   :  { %v15_v2 = vld [vmem:[%s4146_s0] sm:$0xff]  ;;  %v3556_v3 = vpack.c.bf16 %v26_v1, %v25_v0  ;;  %v16_v4 = vld [vmem:[%s4146_s0 + $0x8] sm:$0xff]  ;;  %v17_v8 = vld [vmem:[%s4146_s0 + $0x18] sm:$0xff] }
   0x3   :  { %v28_v6 = vld [vmem:[%s4146_s0 + $0x21] sm:$0xff]  ;;  %v3567_v7 = vpack.c.bf16 %v16_v4, %v15_v2  ;;  %v172_v13 = vld [vmem:[%s4146_s0 + $0xa] sm:$0xff]  ;;  %v3449_v18 = vld [vmem:[%s4147_s1 + $0x18] sm:$0xff]  }
   0x4   :  { %v18_v9 = vld [vmem:[%s4146_s0 + $0x20] sm:$0xff]  ;;  %675 = vrot.lane.b32.xlu0 %v3556_v3, %s3524_s28  ;;  %v3577_v10 = vpack.c.bf16 %v28_v6, %v27_v5  ;;  %3081 = vmatprep.mubr.msk.bf16.mxu0 %vm48_vm0, %v3556_v3  ;;  %v3448_v16 = vld [vmem:[%s4147_s1 + $0x10] sm:$0xff]   ;;  %v3451_v31 = vld [vmem:[%s4147_s1 + $0x8] sm:$0xff]  }
   0x5   :  { %v171_v11 = vld [vmem:[%s4146_s0 + $0x2] sm:$0xff]  ;;  %748 = vrot.lane.b32.xlu1 %v3567_v7, %s3524_s28  ;;  %v3586_v12 = vpack.c.bf16 %v18_v9, %v17_v8  ;;  %v173_v14 = vld [vmem:[%s4146_s0 + $0x1a] sm:$0xff]  ;;  %3077 = vmatprep.subr.bf16.mxu0 %v3448_v16  ;;  %v254_v21 = vld [vmem:[%s4146_s0 + $0xb] sm:$0xff] }
   0x6   :  { %v174_v15 = vld [vmem:[%s4146_s0 + $0x22] sm:$0xff]  ;;  %v3602_v17 = vpack.c.bf16 %v172_v13, %v171_v11  ;;  %3078 = vmatpush3.bf16.msra.mxu0 %v3448_v16  ;;  %v336_v28 = vld [vmem:[%s4146_s0 + $0xc] sm:$0xff]  ;;  %v3465_v56 = vld [vmem:[%s4147_s1 + $0x98] sm:$0xff]  }
   0x7   :  { %v3609_v19 = vpack.c.bf16 %v174_v15, %v173_v14  ;;  %v253_v20 = vld [vmem:[%s4146_s0 + $0x3] sm:$0xff]  ;;  %v255_v22 = vld [vmem:[%s4146_s0 + $0x1b] sm:$0xff]  ;;  %3079 = vmatprep.subr.bf16.mxu0 %v3449_v18  ;;  %v418_v33 = vld [vmem:[%s4146_s0 + $0xd] sm:$0xff] }
   0x8   :  { %677 = vrot.lane.b32.xlu0 %v3577_v10, %s3524_s28  ;;  %v256_v23 = vld [vmem:[%s4146_s0 + $0x23] sm:$0xff]  ;;  %v3625_v24 = vpack.c.bf16 %v254_v21, %v253_v20  ;;  %v500_v41 = vld [vmem:[%s4146_s0 + $0xe] sm:$0xff]  ;;  %v3455_v58 = vld [vmem:[%s4147_s1 + $0x38] sm:$0xff]  }
   0x9   :  { %750 = vrot.lane.b32.xlu1 %v3586_v12, %s3524_s28  ;;  %v335_v25 = vld [vmem:[%s4146_s0 + $0x4] sm:$0xff]  ;;  %v3635_v27 = vpack.c.bf16 %v256_v23, %v255_v22  ;;  %v337_v29 = vld [vmem:[%s4146_s0 + $0x1c] sm:$0xff]  ;;  %v582_v46 = vld [vmem:[%s4146_s0 + $0xf] sm:$0xff] }
   0xa   :  { %v3450_v26 = vld [vmem:[%s4147_s1] sm:$0xff]   ;;  %3080 = vmatpush3.bf16.msra.mxu0 %v3449_v18  ;;  %v3657_v34 = vpack.c.bf16 %v336_v28, %v335_v25  ;;  %v3453_v51 = vld [vmem:[%s4147_s1 + $0x28] sm:$0xff]   ;;  %v3464_v53 = vld [vmem:[%s4147_s1 + $0x90] sm:$0xff]  }
   0xb   :  { %v338_v30 = vld [vmem:[%s4146_s0 + $0x24] sm:$0xff]  ;;  %3085 = vmatprep.subr.bf16.mxu0 %v3450_v26  ;;  %v3454_v55 = vld [vmem:[%s4147_s1 + $0x30] sm:$0xff]   ;;  %3141 = vmatprep.subr.bf16.mxu1 %v3464_v53  ;;  %v3459_v62 = vld [vmem:[%s4147_s1 + $0x58] sm:$0xff]  }
   0xc   :  { %826 = vrot.lane.b32.xlu0 %v3602_v17, %s3524_s28  ;;  %v417_v32 = vld [vmem:[%s4146_s0 + $0x5] sm:$0xff]  ;;  %v419_v35 = vld [vmem:[%s4146_s0 + $0x1d] sm:$0xff]  ;;  %v3666_v36 = vpack.c.bf16 %v338_v30, %v337_v29  ;;  %3142 = vmatpush3.bf16.msra.mxu1 %v3464_v53  ;;  %v3458_v61 = vld [vmem:[%s4147_s1 + $0x50] sm:$0xff]  }
   0xd   :  { %828 = vrot.lane.b32.xlu1 %v3609_v19, %s3524_s28  ;;  %3082 = vmatmul.mubr.msk.bf16.vlgmr.msra.gmra.mrb[0].mxu0 %vm48_vm0, %v3577_v10  ;;  %v420_v37 = vld [vmem:[%s4146_s0 + $0x25] sm:$0xff]  ;;  %v3681_v40 = vpack.c.bf16 %v418_v33, %v417_v32  ;;  %v3462_v1 = vld [vmem:[%s4147_s1 + $0x70] sm:$0xff]   ;;  %v3463_v2 = vld [vmem:[%s4147_s1 + $0x78] sm:$0xff]  }
   0xe   :  { %3086 = vmatpush3.bf16.msra.mxu0 %v3450_v26  ;;  %3089 = vmatprep.mubr.msk.bf16.mxu0 %vm48_vm0, %v3567_v7  ;;  %v3452_v38 = vld [vmem:[%s4147_s1 + $0x20] sm:$0xff]   ;;  %v3688_v42 = vpack.c.bf16 %v420_v37, %v419_v35  ;;  %v3457_v60 = vld [vmem:[%s4147_s1 + $0x48] sm:$0xff]   ;;  %v3472_v4 = vld [vmem:[%s4147_s1 + $0x118] sm:$0xff]  }
   0xf   :  { %3087 = vmatprep.subr.bf16.mxu0 %v3451_v31  ;;  %v499_v39 = vld [vmem:[%s4146_s0 + $0x6] sm:$0xff]  ;;  %v501_v43 = vld [vmem:[%s4146_s0 + $0x1e] sm:$0xff]  ;;  %3143 = vmatprep.subr.bf16.mxu1 %v3465_v56  ;;  %v3479_v37 = vld [vmem:[%s4147_s1 + $0xd0] sm:$0xff]  }
  0x10   :  { %908 = vrot.lane.b32.xlu0 %v3625_v24, %s3524_s28  ;;  %v502_v44 = vld [vmem:[%s4146_s0 + $0x26] sm:$0xff]  ;;  %v3704_v47 = vpack.c.bf16 %v500_v41, %v499_v39  ;;  %3144 = vmatpush3.bf16.msra.mxu1 %v3465_v56  ;;  %v3482_v41 = vld [vmem:[%s4147_s1 + $0x130] sm:$0xff]  }
  0x11   :  { %910 = vrot.lane.b32.xlu1 %v3635_v27, %s3524_s28  ;;  %v581_v45 = vld [vmem:[%s4146_s0 + $0x7] sm:$0xff]  ;;  %v583_v48 = vld [vmem:[%s4146_s0 + $0x1f] sm:$0xff]  ;;  %v3711_v49 = vpack.c.bf16 %v502_v44, %v501_v43 }
  0x12   :  { %3088 = vmatpush3.bf16.msra.mxu0 %v3451_v31  ;;  %v584_v50 = vld [vmem:[%s4146_s0 + $0x27] sm:$0xff]  ;;  %v3721_v52 = vpack.c.bf16 %v582_v46, %v581_v45  ;;  %v3481_v43 = vld [vmem:[%s4147_s1 + $0xd8] sm:$0xff]  }
  0x13   :  { %3093 = vmatprep.subr.bf16.mxu0 %v3452_v38  ;;  %v3730_v54 = vpack.c.bf16 %v584_v50, %v583_v48  ;;  %v3747_v57 = vld [vmem:[%s4147_s1 + $0x80] sm:$0xff]   ;;  %v3461_v0 = vld [vmem:[%s4147_s1 + $0x68] sm:$0xff]  }
  0x14   :  { %990 = vrot.lane.b32.xlu0 %v3657_v34, %s3524_s28  ;;  %3149 = vmatprep.subr.bf16.mxu1 %v3747_v57  ;;  %v3456_v59 = vld [vmem:[%s4147_s1 + $0x40] sm:$0xff]   ;;  %v3467_v8 = vld [vmem:[%s4147_s1 + $0x88] sm:$0xff]  }
  0x15   :  { %992 = vrot.lane.b32.xlu1 %v3666_v36, %s3524_s28  ;;  %v3460_v63 = vld [vmem:[%s4147_s1 + $0x60] sm:$0xff]   ;;  %v3469_v16 = vld [vmem:[%s4147_s1 + $0xa8] sm:$0xff]  }
  0x16   :  { %v3474_v5 = vld [vmem:[%s4147_s1 + $0x100] sm:$0xff]   ;;  %v3476_v29 = vld [vmem:[%s4147_s1 + $0x108] sm:$0xff]  }
  0x17   :  { %v3468_v11 = vld [vmem:[%s4147_s1 + $0xa0] sm:$0xff]   ;;  %v3480_v39 = vld [vmem:[%s4147_s1 + $0x128] sm:$0xff]  }
  0x18   :  { %1072 = vrot.lane.b32.xlu0 %v3681_v40, %s3524_s28  ;;  %v3478_v32 = vld [vmem:[%s4147_s1 + $0x120] sm:$0xff]  }
  0x19   :  { %1074 = vrot.lane.b32.xlu1 %v3688_v42, %s3524_s28  ;;  %3090 = vmatmul.mubr.msk.bf16.vlgmr.msra.gmra.mrb[0].mxu0 %vm48_vm0, %v3586_v12  ;;  %v3483_v46 = vld [vmem:[%s4147_s1 + $0xe0] sm:$0xff]  }
  0x1a   :  { %3094 = vmatpush3.bf16.msra.mxu0 %v3452_v38  ;;  %3097 = vmatprep.mubr.msk.bf16.mxu0 %vm48_vm0, %v3602_v17 }
  0x1b   :  { %3095 = vmatprep.subr.bf16.mxu0 %v3453_v51 }
  0x1c   :  { %1154 = vrot.lane.b32.xlu0 %v3704_v47, %s3524_s28 }
  0x1d   :  { %1156 = vrot.lane.b32.xlu1 %v3711_v49, %s3524_s28 }
  0x1e   :  { %3096 = vmatpush3.bf16.msra.mxu0 %v3453_v51  ;;  %v3485_v51 = vld [vmem:[%s4147_s1 + $0xe8] sm:$0xff]  }
  0x1f   :  { %3101 = vmatprep.subr.bf16.mxu0 %v3454_v55 }
  0x20   :  { %1236 = vrot.lane.b32.xlu0 %v3721_v52, %s3524_s28 }
  0x21   :  { %1238 = vrot.lane.b32.xlu1 %v3730_v54, %s3524_s28 }
  0x24   :  { %1321 = vrot.lane.b32.xlu0 %v3556_v3, %s3525_s18 }
  0x25   :  { %1323 = vrot.lane.b32.xlu1 %v3577_v10, %s3525_s18  ;;  %3098 = vmatmul.mubr.msk.bf16.vlgmr.msra.gmra.mrb[0].mxu0 %vm48_vm0, %v3609_v19 }
  0x26   :  { %3102 = vmatpush3.bf16.msra.mxu0 %v3454_v55  ;;  %3105 = vmatprep.mubr.msk.bf16.mxu0 %vm48_vm0, %v3625_v24  ;;  %v3488_v55 = vld [vmem:[%s4147_s1 + $0x148] sm:$0xff]  }
  0x27   :  { %3103 = vmatprep.subr.bf16.mxu0 %v3455_v58 }
  0x28   :  { %1953 = vrot.lane.b32.xlu0 %v3556_v3, %s3526_s21  ;;  %v3470_v3 = vld [vmem:[%s4147_s1 + $0x110] sm:$0xff]  }
  0x29   :  { %1955 = vrot.lane.b32.xlu1 %v3577_v10, %s3526_s21 }
  0x2a   :  { %3104 = vmatpush3.bf16.msra.mxu0 %v3455_v58 }
  0x2b   :  { %3109 = vmatprep.subr.bf16.mxu0 %v3456_v59 }
  0x2c   :  { %1392 = vrot.lane.b32.xlu0 %v3567_v7, %s3525_s18 }
  0x2d   :  { %1394 = vrot.lane.b32.xlu1 %v3586_v12, %s3525_s18 }
  0x30   :  { %2024 = vrot.lane.b32.xlu0 %v3567_v7, %s3526_s21 }
  0x31   :  { %2026 = vrot.lane.b32.xlu1 %v3586_v12, %s3526_s21  ;;  %3106 = vmatmul.mubr.msk.bf16.vlgmr.msra.gmra.mrb[0].mxu0 %vm48_vm0, %v3635_v27 }
  0x32   :  { %3110 = vmatpush3.bf16.msra.mxu0 %v3456_v59  ;;  %3113 = vmatprep.mubr.msk.bf16.mxu0 %vm48_vm0, %v3657_v34  ;;  %v3489_v59 = vld [vmem:[%s4147_s1 + $0xf8] sm:$0xff]  }
  0x33   :  { %3111 = vmatprep.subr.bf16.mxu0 %v3457_v60 }
  0x34   :  { %1468 = vrot.lane.b32.xlu0 %v3602_v17, %s3525_s18 }
  0x35   :  { %1470 = vrot.lane.b32.xlu1 %v3609_v19, %s3525_s18 }
  0x36   :  { %3112 = vmatpush3.bf16.msra.mxu0 %v3457_v60 }
  0x37   :  { %3117 = vmatprep.subr.bf16.mxu0 %v3458_v61 }
  0x38   :  { %2100 = vrot.lane.b32.xlu0 %v3602_v17, %s3526_s21 }
  0x39   :  { %2102 = vrot.lane.b32.xlu1 %v3609_v19, %s3526_s21  ;;  %v3471_v19 = vld [vmem:[%s4147_s1 + $0xb0] sm:$0xff]  }
  0x3c   :  { %1548 = vrot.lane.b32.xlu0 %v3625_v24, %s3525_s18 }
  0x3d   :  { %1550 = vrot.lane.b32.xlu1 %v3635_v27, %s3525_s18  ;;  %3114 = vmatmul.mubr.msk.bf16.vlgmr.msra.gmra.mrb[0].mxu0 %vm48_vm0, %v3666_v36 }
  0x3e   :  { %3118 = vmatpush3.bf16.msra.mxu0 %v3458_v61  ;;  %3121 = vmatprep.mubr.msk.bf16.mxu0 %vm48_vm0, %v3681_v40 }
  0x3f   :  { %3119 = vmatprep.subr.bf16.mxu0 %v3459_v62 }
  0x40   :  { %2180 = vrot.lane.b32.xlu0 %v3625_v24, %s3526_s21  ;;  %v3473_v24 = vld [vmem:[%s4147_s1 + $0xb8] sm:$0xff]  }
  0x41   :  { %2182 = vrot.lane.b32.xlu1 %v3635_v27, %s3526_s21  ;;  %v3475_v27 = vld [vmem:[%s4147_s1 + $0xc0] sm:$0xff]  }
  0x42   :  { %3120 = vmatpush3.bf16.msra.mxu0 %v3459_v62  ;;  %v3491_v62 = vld [vmem:[%s4147_s1 + $0x190] sm:$0xff]  }
  0x43   :  { %3125 = vmatprep.subr.bf16.mxu0 %v3460_v63 }
  0x44   :  { %1628 = vrot.lane.b32.xlu0 %v3657_v34, %s3525_s18 }
  0x45   :  { %1630 = vrot.lane.b32.xlu1 %v3666_v36, %s3525_s18 }
  0x48   :  { %2260 = vrot.lane.b32.xlu0 %v3657_v34, %s3526_s21  ;;  %v3477_v34 = vld [vmem:[%s4147_s1 + $0xc8] sm:$0xff]  }
  0x49   :  { %2262 = vrot.lane.b32.xlu1 %v3666_v36, %s3526_s21  ;;  %3122 = vmatmul.mubr.msk.bf16.vlgmr.msra.gmra.mrb[0].mxu0 %vm48_vm0, %v3688_v42 }
  0x4a   :  { %3126 = vmatpush3.bf16.msra.mxu0 %v3460_v63  ;;  %3129 = vmatprep.mubr.msk.bf16.mxu0 %vm48_vm0, %v3704_v47  ;;  %v3492_v63 = vld [vmem:[%s4147_s1 + $0x158] sm:$0xff]  }
  0x4b   :  { %3127 = vmatprep.subr.bf16.mxu0 %v3461_v0 }
  0x4c   :  { %1708 = vrot.lane.b32.xlu0 %v3681_v40, %s3525_s18 }
  0x4d   :  { %1710 = vrot.lane.b32.xlu1 %v3688_v42, %s3525_s18 }
  0x4e   :  { %3128 = vmatpush3.bf16.msra.mxu0 %v3461_v0 }
  0x4f   :  { %3133 = vmatprep.subr.bf16.mxu0 %v3462_v1 }
  0x50   :  { %2340 = vrot.lane.b32.xlu0 %v3681_v40, %s3526_s21 }
  0x51   :  { %2342 = vrot.lane.b32.xlu1 %v3688_v42, %s3526_s21 }
  0x54   :  { %1788 = vrot.lane.b32.xlu0 %v3704_v47, %s3525_s18 }
  0x55   :  { %1790 = vrot.lane.b32.xlu1 %v3711_v49, %s3525_s18  ;;  %3130 = vmatmul.mubr.msk.bf16.vlgmr.msra.gmra.mrb[0].mxu0 %vm48_vm0, %v3711_v49 }
  0x56   :  { %3134 = vmatpush3.bf16.msra.mxu0 %v3462_v1  ;;  %3137 = vmatprep.mubr.msk.bf16.mxu0 %vm48_vm0, %v3721_v52  ;;  %v3495_v1 = vld [vmem:[%s4147_s1 + $0x160] sm:$0xff]  }
  0x57   :  { %3135 = vmatprep.subr.bf16.mxu0 %v3463_v2 }
  0x58   :  { %2420 = vrot.lane.b32.xlu0 %v3704_v47, %s3526_s21  ;;  %v3484_v47 = vld [vmem:[%s4147_s1 + $0x138] sm:$0xff]  }
  0x59   :  { %2422 = vrot.lane.b32.xlu1 %v3711_v49, %s3526_s21  ;;  %v3486_v49 = vld [vmem:[%s4147_s1 + $0x140] sm:$0xff]  }
  0x5a   :  { %3136 = vmatpush3.bf16.msra.mxu0 %v3463_v2 }
  0x5b   :  { %3205 = vmatprep.subr.bf16.mxu0 %v3470_v3 }
  0x5c   :  { %1868 = vrot.lane.b32.xlu0 %v3721_v52, %s3525_s18 }
  0x5d   :  { %1870 = vrot.lane.b32.xlu1 %v3730_v54, %s3525_s18 }
  0x60   :  { %2500 = vrot.lane.b32.xlu0 %v3721_v52, %s3526_s21 }
  0x61   :  { %2502 = vrot.lane.b32.xlu1 %v3730_v54, %s3526_s21  ;;  %3138 = vmatmul.mubr.msk.bf16.vlgmr.msra.gmra.mrb[0].mxu0 %vm48_vm0, %v3730_v54  ;;  %v3487_v54 = vld [vmem:[%s4147_s1 + $0xf0] sm:$0xff]  }
  0x62   :  { %3206 = vmatpush3.bf16.msra.mxu0 %v3470_v3  ;;  %v3493_v3 = vld [vmem:[%s4147_s1 + $0x198] sm:$0xff]  }
  0x63   :  { %3207 = vmatprep.subr.bf16.mxu0 %v3472_v4 }
  0x66   :  { %3208 = vmatpush3.bf16.msra.mxu0 %v3472_v4 }
  0x67   :  { %3213 = vmatprep.subr.bf16.mxu0 %v3474_v5 }
  0x76   :  { %v676_v6 = vpop.permute.xlu0 %675 }
  0x77   :  { %3145 = vmatprep.mubr.msk.bf16.mxu1 %vm48_vm0, %v676_v6  ;;  %v749_v7 = vpop.permute.xlu1 %748  ;;  %v3494_v6 = vld [vmem:[%s4147_s1 + $0x180] sm:$0xff]  }
  0x7a   :  { %v678_v9 = vpop.permute.xlu0 %677 }
  0x7b   :  { %3146 = vmatmul.mubr.msk.bf16.vlgmr.msra.gmra.mrb[0].mxu1 %vm48_vm0, %v678_v9  ;;  %v751_v10 = vpop.permute.xlu1 %750  ;;  %v3497_v9 = vld [vmem:[%s4147_s1 + $0x188] sm:$0xff]  }
  0x7c   :  { %3150 = vmatpush3.bf16.msra.mxu1 %v3747_v57  ;;  %3153 = vmatprep.mubr.msk.bf16.mxu1 %vm48_vm0, %v749_v7  ;;  %v3490_v57 = vld [vmem:[%s4147_s1 + $0x150] sm:$0xff]   ;;  %v3496_v7 = vld [vmem:[%s4147_s1 + $0x168] sm:$0xff]  }
  0x7d   :  { %3151 = vmatprep.subr.bf16.mxu1 %v3467_v8 }
  0x7e   :  { %v827_v12 = vpop.permute.xlu0 %826 }
  0x7f   :  { %v829_v13 = vpop.permute.xlu1 %828 }
  0x80   :  { %3152 = vmatpush3.bf16.msra.mxu1 %v3467_v8 }
  0x81   :  { %3157 = vmatprep.subr.bf16.mxu1 %v3468_v11 }
  0x82   :  { %v909_v14 = vpop.permute.xlu0 %908 }
  0x83   :  { %v911_v15 = vpop.permute.xlu1 %910 }
  0x86   :  { %v991_v17 = vpop.permute.xlu0 %990 }
  0x87   :  { %3154 = vmatmul.mubr.msk.bf16.vlgmr.msra.gmra.mrb[0].mxu1 %vm48_vm0, %v751_v10  ;;  %v993_v18 = vpop.permute.xlu1 %992  ;;  %v3499_v10 = vld [vmem:[%s4147_s1 + $0x170] sm:$0xff]  }
  0x88   :  { %3158 = vmatpush3.bf16.msra.mxu1 %v3468_v11  ;;  %3161 = vmatprep.mubr.msk.bf16.mxu1 %vm48_vm0, %v827_v12 }
  0x89   :  { %3159 = vmatprep.subr.bf16.mxu1 %v3469_v16 }
  0x8a   :  { %v1073_v20 = vpop.permute.xlu0 %1072 }
  0x8b   :  { %v3890_v21 = vpop.permute.xlu1 %1074 }
  0x8c   :  { %3160 = vmatpush3.bf16.msra.mxu1 %v3469_v16 }
  0x8d   :  { %3165 = vmatprep.subr.bf16.mxu1 %v3471_v19 }
  0x8e   :  { %v3892_v22 = vpop.permute.xlu0 %1154 }
  0x8f   :  { %v3894_v23 = vpop.permute.xlu1 %1156 }
  0x92   :  { %v3899_v25 = vpop.permute.xlu0 %1236 }
  0x93   :  { %3162 = vmatmul.mubr.msk.bf16.vlgmr.msra.gmra.mrb[0].mxu1 %vm48_vm0, %v829_v13  ;;  %v3902_v26 = vpop.permute.xlu1 %1238  ;;  %v3498_v13 = vld [vmem:[%s4147_s1 + $0x1a0] sm:$0xff]  }
  0x94   :  { %3166 = vmatpush3.bf16.msra.mxu1 %v3471_v19  ;;  %3169 = vmatprep.mubr.msk.bf16.mxu1 %vm48_vm0, %v909_v14  ;;  %v3502_v19 = vld [vmem:[%s4147_s1 + $0x1b0] sm:$0xff]  }
  0x95   :  { %3167 = vmatprep.subr.bf16.mxu1 %v3473_v24 }
  0x96   :  { %v1322_v28 = vpop.permute.xlu0 %1321 }
  0x97   :  { %v1324_v30 = vpop.permute.xlu1 %1323  ;;  %3209 = vmatprep.mubr.msk.bf16.mxu0 %vm48_vm0, %v1322_v28  ;;  %v3510_v28 = vld [vmem:[%s4147_s1 + $0x1f0] sm:$0xff]  }
  0x98   :  { %3210 = vmatmul.mubr.msk.bf16.vlgmr.msra.gmra.mrb[4].mxu0 %vm48_vm0, %v1324_v30  ;;  %3168 = vmatpush3.bf16.msra.mxu1 %v3473_v24  ;;  %v3506_v24 = vld [vmem:[%s4147_s1 + $0x1d0] sm:$0xff]  }
  0x99   :  { %3214 = vmatpush3.bf16.msra.mxu0 %v3474_v5  ;;  %3173 = vmatprep.subr.bf16.mxu1 %v3475_v27 }
  0x9a   :  { %v3913_v31 = vpop.permute.xlu0 %1953  ;;  %3215 = vmatprep.subr.bf16.mxu0 %v3476_v29 }
  0x9b   :  { %v3918_v33 = vpop.permute.xlu1 %1955 }
  0x9d   :  { %3216 = vmatpush3.bf16.msra.mxu0 %v3476_v29  ;;  %v3511_v29 = vld [vmem:[%s4147_s1 + $0x1f8] sm:$0xff]  }
  0x9e   :  { %v1393_v35 = vpop.permute.xlu0 %1392  ;;  %3221 = vmatprep.subr.bf16.mxu0 %v3478_v32 }
  0x9f   :  { %3170 = vmatmul.mubr.msk.bf16.vlgmr.msra.gmra.mrb[0].mxu1 %vm48_vm0, %v911_v15  ;;  %3217 = vmatprep.mubr.msk.bf16.mxu0 %vm48_vm0, %v1393_v35  ;;  %v1395_v36 = vpop.permute.xlu1 %1394  ;;  %v3500_v15 = vld [vmem:[%s4147_s1 + $0x178] sm:$0xff]  }
  0xa0   :  { %3174 = vmatpush3.bf16.msra.mxu1 %v3475_v27  ;;  %3177 = vmatprep.mubr.msk.bf16.mxu1 %vm48_vm0, %v991_v17  ;;  %v3501_v17 = vld [vmem:[%s4147_s1 + $0x1a8] sm:$0xff]  }
  0xa1   :  { %3175 = vmatprep.subr.bf16.mxu1 %v3477_v34  ;;  %v3509_v27 = vld [vmem:[%s4147_s1 + $0x1e8] sm:$0xff]  }
  0xa2   :  { %v3929_v38 = vpop.permute.xlu0 %2024 }
  0xa3   :  { %v3938_v42 = vpop.permute.xlu1 %2026 }
  0xa4   :  { %3218 = vmatmul.mubr.msk.bf16.vlgmr.msra.gmra.mrb[4].mxu0 %vm48_vm0, %v1395_v36  ;;  %3176 = vmatpush3.bf16.msra.mxu1 %v3477_v34 }
  0xa5   :  { %3222 = vmatpush3.bf16.msra.mxu0 %v3478_v32  ;;  %3181 = vmatprep.subr.bf16.mxu1 %v3479_v37 }
  0xa6   :  { %3223 = vmatprep.subr.bf16.mxu0 %v3480_v39  ;;  %v1469_v40 = vpop.permute.xlu0 %1468 }
  0xa7   :  { %3225 = vmatprep.mubr.msk.bf16.mxu0 %vm48_vm0, %v1469_v40  ;;  %v1471_v45 = vpop.permute.xlu1 %1470 }
  0xa9   :  { %3224 = vmatpush3.bf16.msra.mxu0 %v3480_v39 }
  0xaa   :  { %3229 = vmatprep.subr.bf16.mxu0 %v3482_v41  ;;  %v3944_v44 = vpop.permute.xlu0 %2100 }
  0xab   :  { %3178 = vmatmul.mubr.msk.bf16.vlgmr.msra.gmra.mrb[0].mxu1 %vm48_vm0, %v993_v18  ;;  %v3959_v50 = vpop.permute.xlu1 %2102 }
  0xac   :  { %3182 = vmatpush3.bf16.msra.mxu1 %v3479_v37  ;;  %3185 = vmatprep.mubr.msk.bf16.mxu1 %vm48_vm0, %v1073_v20 }
  0xad   :  { %3183 = vmatprep.subr.bf16.mxu1 %v3481_v43 }
  0xae   :  { %v1549_v48 = vpop.permute.xlu0 %1548 }
  0xaf   :  { %v1551_v53 = vpop.permute.xlu1 %1550 }
  0xb0   :  { %3226 = vmatmul.mubr.msk.bf16.vlgmr.msra.gmra.mrb[4].mxu0 %vm48_vm0, %v1471_v45  ;;  %3184 = vmatpush3.bf16.msra.mxu1 %v3481_v43 }
  0xb1   :  { %3230 = vmatpush3.bf16.msra.mxu0 %v3482_v41  ;;  %3189 = vmatprep.subr.bf16.mxu1 %v3483_v46 }
  0xb2   :  { %3231 = vmatprep.subr.bf16.mxu0 %v3484_v47  ;;  %3233 = vmatprep.mubr.msk.bf16.mxu0 %vm48_vm0, %v1549_v48  ;;  %v3964_v52 = vpop.permute.xlu0 %2180 }
  0xb3   :  { %v3981_v58 = vpop.permute.xlu1 %2182 }
  0xb5   :  { %3232 = vmatpush3.bf16.msra.mxu0 %v3484_v47 }
  0xb6   :  { %3237 = vmatprep.subr.bf16.mxu0 %v3486_v49  ;;  %v1629_v56 = vpop.permute.xlu0 %1628 }
  0xb7   :  { %3186 = vmatmul.mubr.msk.bf16.vlgmr.msra.gmra.mrb[0].mxu1 %vm48_vm0, %v3890_v21  ;;  %v1631_v61 = vpop.permute.xlu1 %1630  ;;  %v3503_v21 = vld [vmem:[%s4147_s1 + $0x1b8] sm:$0xff]  }
  0xb8   :  { %3190 = vmatpush3.bf16.msra.mxu1 %v3483_v46  ;;  %3193 = vmatprep.mubr.msk.bf16.mxu1 %vm48_vm0, %v3892_v22  ;;  %v3504_v22 = vld [vmem:[%s4147_s1 + $0x1c0] sm:$0xff]  }
  0xb9   :  { %3191 = vmatprep.subr.bf16.mxu1 %v3485_v51 }
  0xba   :  { %v3986_v60 = vpop.permute.xlu0 %2260 }
  0xbb   :  { %v4003_v2 = vpop.permute.xlu1 %2262 }
  0xbc   :  { %3234 = vmatmul.mubr.msk.bf16.vlgmr.msra.gmra.mrb[4].mxu0 %vm48_vm0, %v1551_v53  ;;  %3192 = vmatpush3.bf16.msra.mxu1 %v3485_v51 }
  0xbd   :  { %3238 = vmatpush3.bf16.msra.mxu0 %v3486_v49  ;;  %3197 = vmatprep.subr.bf16.mxu1 %v3487_v54 }
  0xbe   :  { %3239 = vmatprep.subr.bf16.mxu0 %v3488_v55  ;;  %3241 = vmatprep.mubr.msk.bf16.mxu0 %vm48_vm0, %v1629_v56  ;;  %v1709_v0 = vpop.permute.xlu0 %1708 }
  0xbf   :  { %v1711_v5 = vpop.permute.xlu1 %1710 }
  0xc1   :  { %3240 = vmatpush3.bf16.msra.mxu0 %v3488_v55 }
  0xc2   :  { %3245 = vmatprep.subr.bf16.mxu0 %v3490_v57  ;;  %v4008_v4 = vpop.permute.xlu0 %2340 }
  0xc3   :  { %3194 = vmatmul.mubr.msk.bf16.vlgmr.msra.gmra.mrb[0].mxu1 %vm48_vm0, %v3894_v23  ;;  %v2343_v11 = vpop.permute.xlu1 %2342  ;;  %v3505_v23 = vld [vmem:[%s4147_s1 + $0x1c8] sm:$0xff]  }
  0xc4   :  { %3198 = vmatpush3.bf16.msra.mxu1 %v3487_v54  ;;  %3201 = vmatprep.mubr.msk.bf16.mxu1 %vm48_vm0, %v3899_v25  ;;  %v3507_v25 = vld [vmem:[%s4147_s1 + $0x1d8] sm:$0xff]  }
  0xc5   :  { %3199 = vmatprep.subr.bf16.mxu1 %v3489_v59 }
  0xc6   :  { %v1789_v8 = vpop.permute.xlu0 %1788 }
  0xc7   :  { %v1791_v14 = vpop.permute.xlu1 %1790 }
  0xc8   :  { %3242 = vmatmul.mubr.msk.bf16.vlgmr.msra.gmra.mrb[4].mxu0 %vm48_vm0, %v1631_v61  ;;  %3200 = vmatpush3.bf16.msra.mxu1 %v3489_v59 }
  0xc9   :  { %3246 = vmatpush3.bf16.msra.mxu0 %v3490_v57  ;;  %3269 = vmatprep.subr.bf16.mxu1 %v3491_v62  ;;  %v2948_v57 = vld [vmem:[%s4148_s2] ss:$0 sm:$0xff] }
  0xca   :  { %3247 = vmatprep.subr.bf16.mxu0 %v3492_v63  ;;  %3249 = vmatprep.mubr.msk.bf16.mxu0 %vm48_vm0, %v1709_v0  ;;  %v2421_v12 = vpop.permute.xlu0 %2420 }
  0xcb   :  { %v2423_v18 = vpop.permute.xlu1 %2422 }
  0xcd   :  { %3248 = vmatpush3.bf16.msra.mxu0 %v3492_v63 }
  0xce   :  { %3253 = vmatprep.subr.bf16.mxu0 %v3495_v1  ;;  %v1869_v16 = vpop.permute.xlu0 %1868 }
  0xcf   :  { %3202 = vmatmul.mubr.msk.bf16.vlgmr.msra.gmra.mrb[0].mxu1 %vm48_vm0, %v3902_v26  ;;  %v1871_v20 = vpop.permute.xlu1 %1870  ;;  %v3508_v26 = vld [vmem:[%s4147_s1 + $0x1e0] sm:$0xff]  }
  0xd0   :  { %3270 = vmatpush3.bf16.msra.mxu1 %v3491_v62  ;;  %3273 = vmatprep.mubr.msk.bf16.mxu1 %vm48_vm0, %v3913_v31 }
  0xd1   :  { %3271 = vmatprep.subr.bf16.mxu1 %v3493_v3 }
  0xd2   :  { %v2501_v30 = vpop.permute.xlu0 %2500 }
  0xd3   :  { %v2503_v31 = vpop.permute.xlu1 %2502 }
  0xd4   :  { %3272 = vmatpush3.bf16.msra.mxu1 %v3493_v3  ;;  %3250 = vmatmul.mubr.msk.bf16.vlgmr.msra.gmra.mrb[4].mxu0 %vm48_vm0, %v1711_v5 }
  0xd5   :  { %3277 = vmatprep.subr.bf16.mxu1 %v3494_v6  ;;  %3254 = vmatpush3.bf16.msra.mxu0 %v3495_v1 }
  0xd6   :  { %3255 = vmatprep.subr.bf16.mxu0 %v3496_v7  ;;  %3257 = vmatprep.mubr.msk.bf16.mxu0 %vm48_vm0, %v1789_v8 }
  0xd7   :  { %3274 = vmatmul.mubr.msk.bf16.vlgmr.msra.gmra.mrb[4].mxu1 %vm48_vm0, %v3918_v33 }
  0xd8   :  { %3278 = vmatpush3.bf16.msra.mxu1 %v3494_v6  ;;  %3281 = vmatprep.mubr.msk.bf16.mxu1 %vm48_vm0, %v3929_v38 }
  0xd9   :  { %3279 = vmatprep.subr.bf16.mxu1 %v3497_v9  ;;  %3256 = vmatpush3.bf16.msra.mxu0 %v3496_v7 }
  0xda   :  { %3261 = vmatprep.subr.bf16.mxu0 %v3499_v10 }
  0xdc   :  { %3280 = vmatpush3.bf16.msra.mxu1 %v3497_v9 }
  0xdd   :  { %3285 = vmatprep.subr.bf16.mxu1 %v3498_v13 }
  0xe0   :  { %3258 = vmatmul.mubr.msk.bf16.vlgmr.msra.gmra.mrb[4].mxu0 %vm48_vm0, %v1791_v14 }
  0xe1   :  { %3262 = vmatpush3.bf16.msra.mxu0 %v3499_v10  ;;  %3265 = vmatprep.mubr.msk.bf16.mxu0 %vm48_vm0, %v1869_v16 }
  0xe2   :  { %3263 = vmatprep.subr.bf16.mxu0 %v3500_v15 }
  0xe3   :  { %3282 = vmatmul.mubr.msk.bf16.vlgmr.msra.gmra.mrb[4].mxu1 %vm48_vm0, %v3938_v42 }
  0xe4   :  { %3286 = vmatpush3.bf16.msra.mxu1 %v3498_v13  ;;  %3289 = vmatprep.mubr.msk.bf16.mxu1 %vm48_vm0, %v3944_v44 }
  0xe5   :  { %3287 = vmatprep.subr.bf16.mxu1 %v3501_v17  ;;  %3264 = vmatpush3.bf16.msra.mxu0 %v3500_v15 }
  0xe8   :  { %3288 = vmatpush3.bf16.msra.mxu1 %v3501_v17 }
  0xe9   :  { %3293 = vmatprep.subr.bf16.mxu1 %v3502_v19 }
  0xec   :  { %3266 = vmatmul.mubr.msk.bf16.vlgmr.msra.gmra.mrb[4].mxu0 %vm48_vm0, %v1871_v20 }
  0xef   :  { %3290 = vmatmul.mubr.msk.bf16.vlgmr.msra.gmra.mrb[4].mxu1 %vm48_vm0, %v3959_v50 }
  0xf0   :  { %3294 = vmatpush3.bf16.msra.mxu1 %v3502_v19  ;;  %3297 = vmatprep.mubr.msk.bf16.mxu1 %vm48_vm0, %v3964_v52 }
  0xf1   :  { %3295 = vmatprep.subr.bf16.mxu1 %v3503_v21 }
  0xf4   :  { %3296 = vmatpush3.bf16.msra.mxu1 %v3503_v21 }
  0xf5   :  { %3301 = vmatprep.subr.bf16.mxu1 %v3504_v22 }
  0xfb   :  { %3298 = vmatmul.mubr.msk.bf16.vlgmr.msra.gmra.mrb[4].mxu1 %vm48_vm0, %v3981_v58 }
  0xfc   :  { %3302 = vmatpush3.bf16.msra.mxu1 %v3504_v22  ;;  %3305 = vmatprep.mubr.msk.bf16.mxu1 %vm48_vm0, %v3986_v60 }
  0xfd   :  { %3303 = vmatprep.subr.bf16.mxu1 %v3505_v23 }
 0x100   :  { %3304 = vmatpush3.bf16.msra.mxu1 %v3505_v23 }
 0x101   :  { %3309 = vmatprep.subr.bf16.mxu1 %v3506_v24 }
 0x107   :  { %3306 = vmatmul.mubr.msk.bf16.vlgmr.msra.gmra.mrb[4].mxu1 %vm48_vm0, %v4003_v2 }
 0x108   :  { %3310 = vmatpush3.bf16.msra.mxu1 %v3506_v24  ;;  %3313 = vmatprep.mubr.msk.bf16.mxu1 %vm48_vm0, %v4008_v4 }
 0x109   :  { %3311 = vmatprep.subr.bf16.mxu1 %v3507_v25 }
 0x10c   :  { %3312 = vmatpush3.bf16.msra.mxu1 %v3507_v25 }
 0x10d   :  { %3317 = vmatprep.subr.bf16.mxu1 %v3508_v26 }
 0x113   :  { %3314 = vmatmul.mubr.msk.bf16.vlgmr.msra.gmra.mrb[4].mxu1 %vm48_vm0, %v2343_v11 }
 0x114   :  { %3318 = vmatpush3.bf16.msra.mxu1 %v3508_v26  ;;  %3321 = vmatprep.mubr.msk.bf16.mxu1 %vm48_vm0, %v2421_v12 }
 0x115   :  { %3319 = vmatprep.subr.bf16.mxu1 %v3509_v27 }
 0x118   :  { %3320 = vmatpush3.bf16.msra.mxu1 %v3509_v27 }
 0x119   :  { %3325 = vmatprep.subr.bf16.mxu1 %v3510_v28 }
 0x11f   :  { %3322 = vmatmul.mubr.msk.bf16.vlgmr.msra.gmra.mrb[4].mxu1 %vm48_vm0, %v2423_v18 }
 0x120   :  { %3326 = vmatpush3.bf16.msra.mxu1 %v3510_v28  ;;  %3329 = vmatprep.mubr.msk.bf16.mxu1 %vm48_vm0, %v2501_v30 }
 0x121   :  { %3327 = vmatprep.subr.bf16.mxu1 %v3511_v29 }
 0x124   :  { %3328 = vmatpush3.bf16.msra.mxu1 %v3511_v29 }
 0x12b   :  { %3330 = vmatmul.mubr.msk.bf16.vlgmr.msra.gmra.mrb[4].mxu1 %vm48_vm0, %v2503_v31 }
 0x134   :  { %v3139_v32 = vpop.f32.mrb[0].mxu0 }
 0x135   :  { %v644_v33 = vpop.f32.mrb[1].mxu0 }
 0x136   :  { %v3140_v34 = vpop.f32.mrb[2].mxu0 }
 0x137   :  { %v647_v35 = vpop.f32.mrb[3].mxu0 }
 0x1a2   :  { %v3203_v36 = vpop.f32.mrb[0].mxu1 }
 0x1a3   :  { %2583 = vrot.lane.b32.xlu0 %v3203_v36, %s3526_s21  ;;  %v1292_v37 = vpop.f32.mrb[1].mxu1 }
 0x1a4   :  { %v3204_v38 = vpop.f32.mrb[2].mxu1 }
 0x1a5   :  { %2585 = vrot.lane.b32.xlu1 %v3204_v38, %s3526_s21  ;;  %v1295_v39 = vpop.f32.mrb[3].mxu1 }
 0x1bf   :  { %v3267_v40 = vpop.f32.mrb[4].mxu0 }
 0x1c0   :  { %2599 = vrot.lane.b32.xlu0 %v3267_v40, %s3525_s18  ;;  %v1924_v41 = vpop.f32.mrb[5].mxu0 }
 0x1c1   :  { %v3268_v42 = vpop.f32.mrb[6].mxu0 }
 0x1c2   :  { %2601 = vrot.lane.b32.xlu1 %v3268_v42, %s3525_s18  ;;  %v1927_v43 = vpop.f32.mrb[7].mxu0 }
 0x1c4   :  { %2579 = vrot.lane.b32.xlu0 %v1292_v37, %s3526_s21 }
 0x1c6   :  { %2581 = vrot.lane.b32.xlu1 %v1295_v39, %s3526_s21 }
 0x1c8   :  { %2595 = vrot.lane.b32.xlu0 %v1924_v41, %s3525_s18  ;;  %v3520_v41 = vld [vmem:[%s4146_s0 + $0x4] sm:$0xff] }
 0x1ca   :  { %2597 = vrot.lane.b32.xlu1 %v1927_v43, %s3525_s18 }
 0x1fe   :  { %v3331_v44 = vpop.f32.mrb[4].mxu1 }
 0x1ff   :  { %v2556_v45 = vpop.f32.mrb[5].mxu1 }
 0x200   :  { %v3332_v46 = vpop.f32.mrb[6].mxu1  ;;  %2611 = vrot.lane.b32.xlu0 %v2556_v45, %s3524_s28 }
 0x201   :  { %v2559_v47 = vpop.f32.mrb[7].mxu1 }
 0x202   :  { %2613 = vrot.lane.b32.xlu1 %v2559_v47, %s3524_s28  ;;  %v3521_v47 = vld [vmem:[%s4146_s0 + $0xc] sm:$0xff] }
 0x204   :  { %2615 = vrot.lane.b32.xlu0 %v3331_v44, %s3524_s28 }
 0x206   :  { %2617 = vrot.lane.b32.xlu1 %v3332_v46, %s3524_s28 }
 0x215   :  { %v2584_v48 = vpop.permute.xlu0 %2583 }
 0x216   :  { %v2625_v1 = vsel %vm48_vm0, %v3139_v32, %v2584_v48 }
 0x217   :  { %v2586_v49 = vpop.permute.xlu1 %2585 }
 0x218   :  { %v2626_v7 = vsel %vm48_vm0, %v3140_v34, %v2586_v49 }
 0x232   :  { %v2600_v50 = vpop.permute.xlu0 %2599 }
 0x233   :  { %v2630_v3 = vsel %vm2627_vm2, %v2625_v1, %v2600_v50 }
 0x234   :  { %v2602_v51 = vpop.permute.xlu1 %2601 }
 0x235   :  { %v2631_v9 = vsel %vm2627_vm2, %v2626_v7, %v2602_v51 }
 0x236   :  { %v2580_v52 = vpop.permute.xlu0 %2579 }
 0x237   :  { %v2623_v56 = vsel %vm48_vm0, %v644_v33, %v2580_v52  ;;  %v3522_v52 = vld [vmem:[%s4146_s0 + $0x1c] sm:$0xff] }
 0x238   :  { %v2582_v53 = vpop.permute.xlu1 %2581 }
 0x239   :  { %v2624_v60 = vsel %vm48_vm0, %v647_v35, %v2582_v53 }
 0x23a   :  { %v2596_v54 = vpop.permute.xlu0 %2595 }
 0x23b   :  { %v2628_v58 = vsel %vm2627_vm2, %v2623_v56, %v2596_v54 }
 0x23c   :  { %v2598_v55 = vpop.permute.xlu1 %2597 }
 0x23d   :  { %v2629_v62 = vsel %vm2627_vm2, %v2624_v60, %v2598_v55  ;;  %v3523_v55 = vld [vmem:[%s4146_s0 + $0x24] sm:$0xff] }
 0x272   :  { %v2612_v59 = vpop.permute.xlu0 %2611 }
 0x273   :  { %v2633_v61 = vsel %vm2632_vm1, %v2628_v58, %v2612_v59 }
 0x274   :  { %v2644_v63 = vadd.f32 %v2948_v57, %v2633_v61  ;;  %v2614_v0 = vpop.permute.xlu1 %2613 }
 0x275   :  { %v2634_v2 = vsel %vm2632_vm1, %v2629_v62, %v2614_v0 }
 0x276   :  { %v2652_v4 = vmul.f32 0.044715, %v2644_v63  ;;  %v2645_v5 = vadd.f32 %v2948_v57, %v2634_v2  ;;  %v2616_v6 = vpop.permute.xlu0 %2615  ;;  %v2648_v34 = vmul.f32 0.5, %v2644_v63 }
 0x277   :  { %v2635_v8 = vsel %vm2632_vm1, %v2630_v3, %v2616_v6 }
 0x278   :  { %v2656_v10 = vmul.f32 %v2652_v4, %v2644_v63  ;;  %v2653_v11 = vmul.f32 0.044715, %v2645_v5  ;;  %v2646_v12 = vadd.f32 %v2948_v57, %v2635_v8  ;;  %v2618_v13 = vpop.permute.xlu1 %2617  ;;  %v2649_v38 = vmul.f32 0.5, %v2645_v5 }
 0x279   :  { %v2636_v14 = vsel %vm2632_vm1, %v2631_v9, %v2618_v13 }
 0x27a   :  { %v2660_v15 = vmul.f32 %v2656_v10, %v2644_v63  ;;  %v2657_v16 = vmul.f32 %v2653_v11, %v2645_v5  ;;  %v2654_v17 = vmul.f32 0.044715, %v2646_v12  ;;  %v2647_v18 = vadd.f32 %v2948_v57, %v2636_v14 }
 0x27b   :  { %v2650_v44 = vmul.f32 0.5, %v2646_v12 }
 0x27c   :  { %v2664_v19 = vadd.f32 %v2660_v15, %v2644_v63  ;;  %v2661_v20 = vmul.f32 %v2657_v16, %v2645_v5  ;;  %v2658_v21 = vmul.f32 %v2654_v17, %v2646_v12  ;;  %v2655_v22 = vmul.f32 0.044715, %v2647_v18 }
 0x27d   :  { %v2651_v50 = vmul.f32 0.5, %v2647_v18 }
 0x27e   :  { %v2668_v23 = vmul.f32 0.7978846, %v2664_v19  ;;  %v2665_v24 = vadd.f32 %v2661_v20, %v2645_v5  ;;  %v2662_v25 = vmul.f32 %v2658_v21, %v2646_v12  ;;  %v2659_v26 = vmul.f32 %v2655_v22, %v2647_v18 }
 0x280   :  { %3512 = vtanh.f32 %v2668_v23  ;;  %v2669_v27 = vmul.f32 0.7978846, %v2665_v24  ;;  %v2666_v28 = vadd.f32 %v2662_v25, %v2646_v12  ;;  %v2663_v29 = vmul.f32 %v2659_v26, %v2647_v18 }
 0x282   :  { %3514 = vtanh.f32 %v2669_v27  ;;  %v2670_v30 = vmul.f32 0.7978846, %v2666_v28  ;;  %v2667_v31 = vadd.f32 %v2663_v29, %v2647_v18 }
 0x284   :  { %3516 = vtanh.f32 %v2670_v30  ;;  %v2671_v32 = vmul.f32 0.7978846, %v2667_v31 }
 0x286   :  { %3518 = vtanh.f32 %v2671_v32 }
 0x28a   :  { %v3513_v33 = vpop.eup %3512 }
 0x28b   :  { %v2676_v35 = vadd.f32 1.0, %v3513_v33 }
 0x28c   :  { %v3515_v36 = vpop.eup %3514 }
 0x28d   :  { %v2680_v37 = vmul.f32 %v2676_v35, %v2648_v34  ;;  %v2677_v39 = vadd.f32 1.0, %v3515_v36 }
 0x28e   :  { %v3517_v40 = vpop.eup %3516 }
 0x28f   :  { %v2684_v42 = vadd.f32 %v3520_v41, %v2680_v37  ;;  %v2681_v43 = vmul.f32 %v2677_v39, %v2649_v38  ;;  %v2678_v45 = vadd.f32 1.0, %v3517_v40 }
 0x290   :  { %v3519_v46 = vpop.eup %3518 }
 0x291   :  { %2688 = vst [vmem:[%s4149_s3] sm:$0xff] %v2684_v42  ;;  %v2685_v48 = vadd.f32 %v3521_v47, %v2681_v43  ;;  %v2682_v49 = vmul.f32 %v2678_v45, %v2650_v44  ;;  %v2679_v51 = vadd.f32 1.0, %v3519_v46 }
 0x293   :  { %2689 = vst [vmem:[%s4149_s3 + $0x8] sm:$0xff] %v2685_v48  ;;  %v2686_v53 = vadd.f32 %v3522_v52, %v2682_v49  ;;  %v2683_v54 = vmul.f32 %v2679_v51, %v2651_v50 }
 0x295   :  { %2690 = vst [vmem:[%s4149_s3 + $0x10] sm:$0xff] %v2686_v53  ;;  %v2687_v56 = vadd.f32 %v3523_v55, %v2683_v54 }
 0x297   :  { %2691 = vst [vmem:[%s4149_s3 + $0x18] sm:$0xff] %v2687_v56 }

// kernel: wav2vec2_forward.12
= control target key start
LH: loop header
LB: loop body
LE: loop exit
PB: predicated region body
PF: predicated region fallthrough
CT: control target
= control target key end

     0   :  { %s3556_s18 = smov 0   ;;  %s4102_s0 = inlined_call_operand.vmem [shape: f32[2,16,128], index: 0, kind: input, shape index: {}]   ;;  %s4103_s1 = inlined_call_operand.vmem [shape: f32[2,1,128], index: 1, kind: input, shape index: {}]   ;;  %s4104_s2 = inlined_call_operand.vmem [shape: f32[2,1,128], index: 2, kind: input, shape index: {}]   ;;  %s4105_s3 = inlined_call_operand.vmem [shape: bf16[2,128,384], index: 3, kind: input, shape index: {}]   ;;  %s4106_s4 = inlined_call_operand.vmem [shape: f32[2,1,384], index: 4, kind: input, shape index: {}]   ;;  %s4107_s5 = inlined_call_operand.vmem [shape: bf16[2,128,128], index: 5, kind: input, shape index: {}]   ;;  %s4108_s6 = inlined_call_operand.vmem [shape: f32[2,1,128], index: 6, kind: input, shape index: {}]   ;;  %s4109_s7 = inlined_call_operand.vmem [shape: f32[2,1,128], index: 7, kind: input, shape index: {}]   ;;  %s4110_s8 = inlined_call_operand.vmem [shape: f32[2,1,128], index: 8, kind: input, shape index: {}]   ;;  %s4111_s9 = inlined_call_operand.vmem [shape: bf16[2,128,256], index: 9, kind: input, shape index: {}]   ;;  %s4112_s10 = inlined_call_operand.vmem [shape: f32[2,1,256], index: 10, kind: input, shape index: {}]   ;;  %s4113_s11 = inlined_call_operand.vmem [shape: bf16[2,256,128], index: 11, kind: input, shape index: {}]   ;;  %s4114_s12 = inlined_call_operand.vmem [shape: f32[2,1,128], index: 12, kind: input, shape index: {}]   ;;  %s4115_s13 = inlined_call_operand.vmem [shape: f32[1,128], index: 13, kind: input, shape index: {}]   ;;  %s4116_s14 = inlined_call_operand.vmem [shape: f32[1,128], index: 14, kind: input, shape index: {}]   ;;  %s4117_s15 = inlined_call_operand.vmem [shape: f32[2,16,128], index: 15, kind: output, shape index: {}]  }
   0x1   :  { %4121 = sst [smem:[#allocation4_spill]] %s4104_s2 }
   0x2   :  { %4122 = sst [smem:[#allocation5_spill]] %s4105_s3 }
   0x3   :  { %4123 = sst [smem:[#allocation6_spill]] %s4107_s5 }
   0x4   :  { %4124 = sst [smem:[#allocation7_spill]] %s4115_s13 }
   0x5   :  { %4125 = sst [smem:[#allocation8_spill]] %s4116_s14 }
   0x6   :  { %4126 = sst [smem:[#allocation9_spill]] %s4117_s15 }
   0x7 LB: > { %4127 = sst [smem:[#allocation3_spill]] %s3468_s18  ;;  %s3562_s19 = sadd.s32 4294967295, %s3468_s18   ;;  %s3468_s18 = sphi %s3556_s18, %s25_s18  }
   0x8   : > { %p2907_p0 = scmp.ge.s32.totalorder %s3468_s18, 1  ;;  %p528_p1 = scmp.lt.s32.totalorder %s3468_s18, 3 }
   0xa   : > { %p529_p2 = pnand %p2907_p0, %p528_p1 }
   0xb   : > { %p612_p3 = scmp.lt.s32.totalorder (!%p529_p2), %s3562_s19, 1  ;;  %s4129_s5 = sld [smem:[#allocation6_spill]] (!%p529_p2) }
   0xc   : > { %532 = sbr.rel (%p529_p2) target bundleno = 4495 (0x118f), region = 80  ;;  %s4130_s3 = sld [smem:[#allocation5_spill]] (!%p529_p2) }
   0xd   : > { %p2916_p4 = scmp.ne.s32.totalorder (!%p529_p2), %s3562_s19, 0 }
  0x13   : > { %s3568_s20 = scalar_select %p612_p3, %s3562_s19, 1 }
  0x14   : > { %v663_v0 = vld [vmem:[%s4102_s0] sm:$0xff] (!%p2916_p4)  ;;  %v664_v1 = vld [vmem:[%s4102_s0 + $0x8] sm:$0xff] (!%p2916_p4)  ;;  %v665_v2 = vld [vmem:[%s4102_s0 + $0x10] sm:$0xff] (!%p2916_p4) }
  0x15   : > { %s3228_s27 = smul.u32 192, %s3568_s20  ;;  %s3009_s28 = sshll.u32 %s3568_s20, 6  ;;  %667 = vst [vmem:[#allocation2] sm:$0xff] (!%p2916_p4), %v663_v0  ;;  %668 = vst [vmem:[#allocation2 + $0x8] sm:$0xff] (!%p2916_p4), %v664_v1  ;;  %v666_v3 = vld [vmem:[%s4102_s0 + $0x18] sm:$0xff] (!%p2916_p4) }
  0x16   : > { %s3229_s29 = smul.u32 3, %s3568_s20  ;;  %s3584_s17 = scalar_lea.vmem %s4129_s5, %s3009_s28  ;;  %669 = vst [vmem:[#allocation2 + $0x10] sm:$0xff] (!%p2916_p4), %v665_v2  ;;  %670 = vst [vmem:[#allocation2 + $0x18] sm:$0xff] (!%p2916_p4), %v666_v3 }
  0x17   : > { %s3589_s18 = scalar_lea.vmem %s4130_s3, %s3228_s27  ;;  %s637_s30 = scalar_lea.vmem %s4109_s7, %s3568_s20 }
  0x18   : > { %s3598_s26 = scalar_lea.vmem %s4106_s4, %s3229_s29  ;;  %s3010_s21 = sshll.u32 %s3568_s20, 7 }
  0x19   : > { %s3612_s3 = scalar_lea.vmem %s4111_s9, %s3010_s21  ;;  %s2913_s15 = sshll.u32 %s3568_s20, 1 }
  0x1a   : > { %s3618_s29 = scalar_lea.vmem %s4112_s10, %s2913_s15  ;;  %s3623_s2 = scalar_lea.vmem %s4113_s11, %s3010_s21 }
  0x1b   : > { %s657_s16 = scalar_lea.vmem %s4114_s12, %s3568_s20  ;;  %662 = sbr.rel (%p2916_p4) target bundleno = 34 (0x22), region = 84 }
  0x22 PF: > { %v671_v4 = vld [vmem:[#allocation2] sm:$0xff]  ;;  %v673_v5 = vld [vmem:[#allocation2 + $0x10] sm:$0xff]  ;;  %v672_v6 = vld [vmem:[#allocation2 + $0x8] sm:$0xff]  ;;  %v3470_v43 = vmov 0   ;;  %s4131_s25 = scalar_lea.vmem %s4103_s1, %s3568_s20  ;;  %s4132_s27 = sld [smem:[#allocation4_spill]]  ;;  %vm3472_vm0 = vmmov 0  }
  0x23   : > { %677 = vadd.xlane.f32.xlu0 %v671_v4  ;;  %681 = vadd.xlane.f32.xlu1 %v673_v5  ;;  %v674_v7 = vld [vmem:[#allocation2 + $0x18] sm:$0xff]  ;;  %v3274_v8 = vld [vmem:[%s3589_s18 + $0x4] ss:$12 sps:$4 sm:$0xff]   ;;  %v3276_v9 = vld [vmem:[%s3589_s18] ss:$12 sps:$4 sm:$0xff]   ;;  %vm1033_vm1 = vcmask 261120   ;;  %s4134_s21 = scalar_lea.vmem %s4108_s6, %s3568_s20 }
  0x24   : > { %v3277_v10 = vld [vmem:[%s3589_s18 + $0x1c] ss:$12 sps:$4 sm:$0xff]   ;;  %921 = vmatprep.subr.bf16.mxu0 %v3274_v8  ;;  %v3280_v28 = vld [vmem:[%s3589_s18 + $0x18] ss:$12 sps:$4 sm:$0xff]   ;;  %v3281_v29 = vld [vmem:[%s3589_s18 + $0x34] ss:$12 sps:$4 sm:$0xff]   ;;  %953 = vmatprep.mubr.bf16.mxu0 %v3470_v43 }
  0x25   : > { %v3279_v11 = vld [vmem:[%s3589_s18 + $0x8] ss:$12 sps:$4 sm:$0xff]   ;;  %922 = vmatpush1.bf16.msra.mxu0 %v3276_v9  ;;  %v3283_v30 = vld [vmem:[%s3589_s18 + $0x20] ss:$12 sps:$4 sm:$0xff]   ;;  %v3284_v31 = vld [vmem:[%s3589_s18 + $0x30] ss:$12 sps:$4 sm:$0xff]  }
  0x26   : > { %3092 = vmatprep.subr.bf16.mxu1 %v3279_v11  ;;  %923 = vmatprep.subr.bf16.mxu0 %v3277_v10  ;;  %v3285_v32 = vld [vmem:[%s3589_s18 + $0x4c] ss:$12 sps:$4 sm:$0xff]   ;;  %v3288_v34 = vld [vmem:[%s3589_s18 + $0x48] ss:$12 sps:$4 sm:$0xff]   ;;  %v3289_v35 = vld [vmem:[%s3589_s18 + $0x64] ss:$12 sps:$4 sm:$0xff]  }
  0x27   : > { %679 = vadd.xlane.f32.xlu0 %v672_v6  ;;  %683 = vadd.xlane.f32.xlu1 %v674_v7  ;;  %v3287_v33 = vld [vmem:[%s3589_s18 + $0x38] ss:$12 sps:$4 sm:$0xff]   ;;  %v3291_v36 = vld [vmem:[%s3589_s18 + $0x50] ss:$12 sps:$4 sm:$0xff]   ;;  %v3292_v37 = vld [vmem:[%s3589_s18 + $0x60] ss:$12 sps:$4 sm:$0xff]  }
  0x28   : > { %3093 = vmatpush3.bf16.msra.mxu1 %v3279_v11  ;;  %v3293_v38 = vld [vmem:[%s3589_s18 + $0x7c] ss:$12 sps:$4 sm:$0xff]   ;;  %v3296_v40 = vld [vmem:[%s3589_s18 + $0x78] ss:$12 sps:$4 sm:$0xff]   ;;  %v3297_v41 = vld [vmem:[%s3589_s18 + $0x94] ss:$12 sps:$4 sm:$0xff]   ;;  %s4133_s22 = scalar_lea.vmem %s4132_s27, %s3568_s20 }
  0x29   : > { %924 = vmatpush1.bf16.msra.mxu0 %v3280_v28  ;;  %3094 = vmatprep.subr.bf16.mxu1 %v3283_v30  ;;  %v3295_v39 = vld [vmem:[%s3589_s18 + $0x68] ss:$12 sps:$4 sm:$0xff]   ;;  %v3299_v42 = vld [vmem:[%s3589_s18 + $0x80] ss:$12 sps:$4 sm:$0xff]   ;;  %v3300_v44 = vld [vmem:[%s3589_s18 + $0x90] ss:$12 sps:$4 sm:$0xff]  }
  0x2a   : > { %925 = vmatprep.subr.bf16.mxu0 %v3281_v29  ;;  %v3301_v45 = vld [vmem:[%s3589_s18 + $0xac] ss:$12 sps:$4 sm:$0xff]   ;;  %v3304_v47 = vld [vmem:[%s3589_s18 + $0xa8] ss:$12 sps:$4 sm:$0xff]   ;;  %v3305_v48 = vld [vmem:[%s3589_s18 + $0xb0] ss:$12 sps:$4 sm:$0xff]  }
  0x2b   : > { %v3303_v46 = vld [vmem:[%s3589_s18 + $0x98] ss:$12 sps:$4 sm:$0xff]   ;;  %v2917_v63 = vld [vmem:[%s4131_s25] ss:$0 sm:$0xff]  ;;  %vm1128_vm2 = vcmask 130048   ;;  %s3474_s14 = smov 64   ;;  %s4135_s25 = scalar_lea.vmem %s4110_s8, %s3568_s20 }
  0x2c   : > { %3095 = vmatpush3.bf16.msra.mxu1 %v3283_v30  ;;  %s3475_s15 = smov 32   ;;  %vm2047_vm3 = vcmask 523264   ;;  %vm2052_vm4 = vcmask 785408   ;;  %p3003_p5 = scmp.ne.s32.totalorder %s3562_s19, 1 }
  0x2d   : > { %926 = vmatpush1.bf16.msra.mxu0 %v3284_v31  ;;  %3096 = vmatprep.subr.bf16.mxu1 %v3287_v33  ;;  %s4137_s27 = sld [smem:[#allocation8_spill]] (!%p3003_p5) }
  0x2e   : > { %927 = vmatprep.subr.bf16.mxu0 %v3285_v32 }
  0x30   : > { %3097 = vmatpush3.bf16.msra.mxu1 %v3287_v33 }
  0x31   : > { %928 = vmatpush1.bf16.msra.mxu0 %v3288_v34  ;;  %3098 = vmatprep.subr.bf16.mxu1 %v3291_v36 }
  0x32   : > { %929 = vmatprep.subr.bf16.mxu0 %v3289_v35 }
  0x34   : > { %3099 = vmatpush3.bf16.msra.mxu1 %v3291_v36 }
  0x35   : > { %930 = vmatpush1.bf16.msra.mxu0 %v3292_v37  ;;  %3100 = vmatprep.subr.bf16.mxu1 %v3295_v39 }
  0x36   : > { %931 = vmatprep.subr.bf16.mxu0 %v3293_v38 }
  0x38   : > { %3101 = vmatpush3.bf16.msra.mxu1 %v3295_v39 }
  0x39   : > { %932 = vmatpush1.bf16.msra.mxu0 %v3296_v40  ;;  %3102 = vmatprep.subr.bf16.mxu1 %v3299_v42 }
  0x3a   : > { %933 = vmatprep.subr.bf16.mxu0 %v3297_v41 }
  0x3c   : > { %3103 = vmatpush3.bf16.msra.mxu1 %v3299_v42 }
  0x3d   : > { %934 = vmatpush1.bf16.msra.mxu0 %v3300_v44  ;;  %3104 = vmatprep.subr.bf16.mxu1 %v3303_v46 }
  0x3e   : > { %935 = vmatprep.subr.bf16.mxu0 %v3301_v45 }
  0x40   : > { %3105 = vmatpush3.bf16.msra.mxu1 %v3303_v46 }
  0x41   : > { %936 = vmatpush1.bf16.msra.mxu0 %v3304_v47  ;;  %3106 = vmatprep.subr.bf16.mxu1 %v3305_v48 }
  0x44   : > { %3107 = vmatpush3.bf16.msra.mxu1 %v3305_v48 }
  0xb0   : > { %v678_v12 = vpop.xlane.xlu0 %677  ;;  %v682_v13 = vpop.xlane.xlu1 %681 }
  0xb1   : > { %v686_v14 = vmul.f32 0.0078125, %v678_v12  ;;  %v688_v15 = vmul.f32 0.0078125, %v682_v13 }
  0xb3   : > { %v3646_v16 = vsub.f32 %v671_v4, %v686_v14  ;;  %v3648_v17 = vsub.f32 %v673_v5, %v688_v15  ;;  %v2918_v4 = vld [vmem:[%s4133_s22] ss:$0 sm:$0xff] }
  0xb4   : > { %v680_v18 = vpop.xlane.xlu0 %679  ;;  %v684_v19 = vpop.xlane.xlu1 %683 }
  0xb5   : > { %v687_v20 = vmul.f32 0.0078125, %v680_v18  ;;  %v694_v21 = vmul.f32 %v3646_v16, %v3646_v16  ;;  %v689_v22 = vmul.f32 0.0078125, %v684_v19  ;;  %v696_v25 = vmul.f32 %v3648_v17, %v3648_v17 }
  0xb6   : > { %v778_v18 = vlaneseq }
  0xb7   : > { %v3652_v23 = vsub.f32 %v672_v6, %v687_v20  ;;  %698 = vadd.xlane.f32.xlu0 %v694_v21  ;;  %v3654_v24 = vsub.f32 %v674_v7, %v689_v22  ;;  %v776_v21 = vld [vmem:[%s3598_s26] sm:$0x7]  ;;  %s3473_s26 = smov 96  }
  0xb8   : > { %v3704_v19 = vshrl.u32 %v778_v18, 7 }
  0xb9   : > { %v695_v26 = vmul.f32 %v3652_v23, %v3652_v23  ;;  %v697_v27 = vmul.f32 %v3654_v24, %v3654_v24 }
  0xba   : > { %v780_v20 = vsub.s32 0, %v3704_v19  ;;  %v784_v22 = vsub.s32 1, %v3704_v19 }
  0xbb   : > { %702 = vadd.xlane.f32.xlu0 %v696_v25  ;;  %700 = vadd.xlane.f32.xlu1 %v695_v26 }
  0xbc   : > { %v785_v26 = vrot.slane %v776_v21, %v784_v22 }
  0xbf   : > { %704 = vadd.xlane.f32.xlu1 %v697_v27 }
 0x144   : > { %v699_v49 = vpop.xlane.xlu0 %698 }
 0x145   : > { %v706_v50 = vmul.f32 0.0078125, %v699_v49 }
 0x147   : > { %v710_v51 = vadd.f32 1e-05, %v706_v50 }
 0x148   : > { %v701_v52 = vpop.xlane.xlu1 %700  ;;  %v703_v53 = vpop.xlane.xlu0 %702 }
 0x149   : > { %3354 = vrsqrt.f32 %v710_v51  ;;  %v707_v54 = vmul.f32 0.0078125, %v701_v52  ;;  %v708_v55 = vmul.f32 0.0078125, %v703_v53 }
 0x14b   : > { %v711_v56 = vadd.f32 1e-05, %v707_v54  ;;  %v712_v57 = vadd.f32 1e-05, %v708_v55 }
 0x14c   : > { %v705_v58 = vpop.xlane.xlu1 %704 }
 0x14d   : > { %3356 = vrsqrt.f32 %v711_v56  ;;  %v709_v59 = vmul.f32 0.0078125, %v705_v58 }
 0x14e   : > { %3358 = vrsqrt.f32 %v712_v57 }
 0x14f   : > { %v713_v60 = vadd.f32 1e-05, %v709_v59 }
 0x151   : > { %3360 = vrsqrt.f32 %v713_v60 }
 0x153   : > { %v3355_v61 = vpop.eup %3354 }
 0x154   : > { %v718_v62 = vmul.f32 %v3355_v61, %v3646_v16 }
 0x156   : > { %v728_v3 = vmul.f32 %v2917_v63, %v718_v62 }
 0x157   : > { %v3357_v0 = vpop.eup %3356 }
 0x158   : > { %v3359_v1 = vpop.eup %3358  ;;  %v719_v2 = vmul.f32 %v3357_v0, %v3652_v23  ;;  %v738_v8 = vadd.f32 %v2918_v4, %v728_v3  ;;  %v781_v23 = vrot.slane %v776_v21, %v780_v20 }
 0x159   : > { %v720_v5 = vmul.f32 %v3359_v1, %v3648_v17  ;;  %v3471_v17 = vmov 0.0  }
 0x15a   : > { %v729_v6 = vmul.f32 %v2917_v63, %v719_v2  ;;  %3112 = vmatprep.subr.bf16.mxu0 %v3471_v17  ;;  %3124 = vmatprep.subr.bf16.mxu1 %v3471_v17 }
 0x15b   : > { %v3361_v7 = vpop.eup %3360  ;;  %v730_v11 = vmul.f32 %v2917_v63, %v720_v5 }
 0x15c   : > { %v739_v9 = vadd.f32 %v2918_v4, %v729_v6  ;;  %v721_v10 = vmul.f32 %v3361_v7, %v3654_v24  ;;  %v788_v24 = vsub.s32 2, %v3704_v19 }
 0x15d   : > { %v740_v14 = vadd.f32 %v2918_v4, %v730_v11 }
 0x15e   : > { %v742_v12 = vpack.c.bf16 %v739_v9, %v738_v8  ;;  %v731_v13 = vmul.f32 %v2917_v63, %v721_v10  ;;  %v789_v32 = vrot.slane %v776_v21, %v788_v24 }
 0x160   : > { %954 = vmatmul.mubr.bf16.vlgmr.msra.gmra.mrb[0].mxu0 %v742_v12  ;;  %3108 = vmatprep.mubr.bf16.mxu1 %v742_v12  ;;  %v741_v15 = vadd.f32 %v2918_v4, %v731_v13 }
 0x161   : > { %963 = vmatprep.mubr.bf16.mxu0 %v3470_v43 }
 0x162   : > { %v743_v16 = vpack.c.bf16 %v741_v15, %v740_v14 }
 0x164   : > { %3109 = vmatmul.mubr.bf16.vlgmr.msra.gmra.mrb[0].mxu1 %v743_v16 }
 0x165   : > { %3126 = vmatprep.mubr.msk.bf16.mxu1 %vm3472_vm0, %v3471_v17 }
 0x168   : > { %964 = vmatmul.mubr.bf16.gmra.mrb[4].mxu0 %v743_v16 }
 0x169   : > { %3114 = vmatprep.mubr.msk.bf16.mxu0 %vm3472_vm0, %v3471_v17 }
 0x233   : > { %v955_v25 = vpop.f32.mrb[0].mxu0 }
 0x234   : > { %v956_v27 = vadd.f32 %v955_v25, %v781_v23  ;;  %v957_v28 = vpop.f32.mrb[1].mxu0 }
 0x235   : > { %v959_v29 = vpop.f32.mrb[2].mxu0  ;;  %v958_v33 = vadd.f32 %v957_v28, %v785_v26 }
 0x236   : > { %v960_v30 = vadd.f32 %v959_v29, %v781_v23  ;;  %v961_v31 = vpop.f32.mrb[3].mxu0  ;;  %v1023_v36 = vmul.f32 0.17677669, %v956_v27 }
 0x237   : > { %v962_v34 = vadd.f32 %v961_v31, %v785_v26  ;;  %v3110_v35 = vpop.f32.mrb[0].mxu1 }
 0x238   : > { %v1024_v37 = vmul.f32 0.17677669, %v960_v30  ;;  %v1008_v38 = vpop.f32.mrb[1].mxu1  ;;  %v1017_v42 = vadd.f32 %v3110_v35, %v789_v32 }
 0x239   : > { %v3714_v39 = vpack.c.bf16 %v962_v34, %v958_v33  ;;  %v3111_v40 = vpop.f32.mrb[2].mxu1  ;;  %v1009_v46 = vadd.f32 %v1008_v38, %v789_v32 }
 0x23a   : > { %v3716_v41 = vpack.c.bf16 %v1024_v37, %v1023_v36  ;;  %v1020_v44 = vadd.f32 %v3111_v40, %v789_v32  ;;  %v1011_v45 = vpop.f32.mrb[3].mxu1 }
 0x23b   : > { %v1012_v47 = vadd.f32 %v1011_v45, %v789_v32  ;;  %v965_v48 = vpop.f32.mrb[4].mxu0  ;;  %v1038_v49 = vsel %vm1033_vm1, %v3714_v39, 0 }
 0x23c   : > { %v3720_v50 = vpack.c.bf16 %v1020_v44, %v1017_v42  ;;  %v966_v51 = vadd.f32 %v965_v48, %v781_v23  ;;  %v967_v52 = vpop.f32.mrb[5].mxu0  ;;  %3113 = vmatpush3.bf16.xpose.msra.mxu0 %v1038_v49 }
 0x23d   : > { %v3722_v53 = vpack.c.bf16 %v1012_v47, %v1009_v46  ;;  %v969_v54 = vpop.f32.mrb[6].mxu0  ;;  %3118 = vmatprep.subr.bf16.mxu0 %v3471_v17  ;;  %v968_v57 = vadd.f32 %v967_v52, %v785_v26 }
 0x23e   : > { %v970_v55 = vadd.f32 %v969_v54, %v781_v23  ;;  %v971_v56 = vpop.f32.mrb[7].mxu0  ;;  %v1025_v59 = vmul.f32 0.17677669, %v966_v51 }
 0x23f   : > { %v972_v58 = vadd.f32 %v971_v56, %v785_v26  ;;  %3125 = vmatpush3.bf16.msra.mxu1 %v3722_v53 }
 0x240   : > { %v1026_v60 = vmul.f32 0.17677669, %v970_v55  ;;  %3136 = vmatprep.subr.bf16.mxu1 %v3471_v17 }
 0x241   : > { %v3727_v61 = vpack.c.bf16 %v972_v58, %v968_v57 }
 0x242   : > { %v3729_v62 = vpack.c.bf16 %v1026_v60, %v1025_v59 }
 0x243   : > { %3115 = vmatmul.mubr.msk.bf16.vlgmr.msra.gmra.mrb[8].mxu0 %vm1033_vm1, %v3716_v41  ;;  %v1085_v63 = vsel %vm1033_vm1, %v3727_v61, 0 }
 0x244   : > { %3119 = vmatpush3.bf16.xpose.msra.mxu0 %v1085_v63  ;;  %3120 = vmatprep.mubr.msk.bf16.mxu0 %vm3472_vm0, %v3471_v17 }
 0x245   : > { %3130 = vmatprep.subr.bf16.mxu0 %v3471_v17 }
 0x24b   : > { %3121 = vmatmul.mubr.msk.bf16.vlgmr.msra.gmra.mrb[12].mxu0 %vm1033_vm1, %v3729_v62 }
 0x24c   : > { %3131 = vmatpush3.bf16.msra.mxu0 %v3720_v50  ;;  %3132 = vmatprep.mubr.msk.bf16.mxu0 %vm3472_vm0, %v3471_v17 }
 0x24d   : > { %3142 = vmatprep.subr.bf16.mxu0 %v3471_v17 }
 0x316   : > { %v1074_v0 = vpop.f32.mrb[8].mxu0 }
 0x317   : > { %v3116_v1 = vpop.f32.mrb[9].mxu0  ;;  %v1129_v2 = vsel %vm1128_vm2, %v1074_v0, -inf }
 0x318   : > { %1130 = vmax.xlane.f32.xlu0 %v1129_v2  ;;  %v1077_v3 = vpop.f32.mrb[10].mxu0 }
 0x319   : > { %v3117_v4 = vpop.f32.mrb[11].mxu0  ;;  %v1132_v5 = vsel %vm1128_vm2, %v1077_v3, -inf }
 0x31a   : > { %1133 = vmax.xlane.f32.xlu1 %v1132_v5 }
 0x31e   : > { %v1121_v6 = vpop.f32.mrb[12].mxu0 }
 0x31f   : > { %v3122_v7 = vpop.f32.mrb[13].mxu0  ;;  %v1135_v8 = vsel %vm1128_vm2, %v1121_v6, -inf }
 0x320   : > { %1136 = vmax.xlane.f32.xlu0 %v1135_v8  ;;  %v1124_v9 = vpop.f32.mrb[14].mxu0 }
 0x321   : > { %v3123_v10 = vpop.f32.mrb[15].mxu0  ;;  %v1138_v11 = vsel %vm1128_vm2, %v1124_v9, -inf }
 0x322   : > { %1139 = vmax.xlane.f32.xlu1 %v1138_v11 }
 0x3a5   : > { %v1131_v12 = vpop.xlane.xlu0 %1130 }
 0x3a6   : > { %v1141_v13 = vsub.f32 %v1074_v0, %v1131_v12 }
 0x3a7   : > { %v1134_v14 = vpop.xlane.xlu1 %1133 }
 0x3a8   : > { %v1145_v15 = vmul.f32 1.442695, %v1141_v13  ;;  %v1142_v16 = vsub.f32 %v1077_v3, %v1134_v14 }
 0x3aa   : > { %3362 = vpow2.f32 %v1145_v15  ;;  %v1147_v18 = vmul.f32 1.442695, %v1142_v16 }
 0x3ac   : > { %3364 = vpow2.f32 %v1147_v18 }
 0x3ad   : > { %v1137_v21 = vpop.xlane.xlu0 %1136 }
 0x3ae   : > { %v1143_v23 = vsub.f32 %v1121_v6, %v1137_v21 }
 0x3af   : > { %v1140_v31 = vpop.xlane.xlu1 %1139 }
 0x3b0   : > { %v1149_v24 = vmul.f32 1.442695, %v1143_v23  ;;  %v1144_v32 = vsub.f32 %v1124_v9, %v1140_v31 }
 0x3b2   : > { %3366 = vpow2.f32 %v1149_v24  ;;  %v1151_v33 = vmul.f32 1.442695, %v1144_v32 }
 0x3b4   : > { %v3363_v25 = vpop.eup %3362  ;;  %3368 = vpow2.f32 %v1151_v33 }
 0x3b5   : > { %v1153_v26 = vsel %vm1128_vm2, %v3363_v25, 0.0 }
 0x3b6   : > { %v3365_v27 = vpop.eup %3364  ;;  %1154 = vadd.xlane.f32.xlu0 %v1153_v26 }
 0x3b7   : > { %v1156_v28 = vsel %vm1128_vm2, %v3365_v27, 0.0 }
 0x3b8   : > { %1157 = vadd.xlane.f32.xlu1 %v1156_v28 }
 0x3bc   : > { %v3367_v29 = vpop.eup %3366 }
 0x3bd   : > { %v1159_v30 = vsel %vm1128_vm2, %v3367_v29, 0.0 }
 0x3be   : > { %1160 = vadd.xlane.f32.xlu0 %v1159_v30  ;;  %v3369_v34 = vpop.eup %3368 }
 0x3bf   : > { %v1162_v35 = vsel %vm1128_vm2, %v3369_v34, 0.0 }
 0x3c9   : > { %1320 = vrot.lane.b32.xlu1 %v3727_v61, %s3473_s26 }
 0x3d4   : > { %1267 = vrot.lane.b32.xlu0 %v3714_v39, %s3473_s26 }
 0x3ed   : > { %1163 = vadd.xlane.f32.xlu1 %v1162_v35 }
 0x3fe   : > { %1264 = vrot.lane.b32.xlu1 %v3716_v41, %s3473_s26 }
 0x402   : > { %1317 = vrot.lane.b32.xlu1 %v3729_v62, %s3473_s26 }
 0x443   : > { %v1155_v36 = vpop.xlane.xlu0 %1154 }
 0x444   : > { %3370 = vrcp.f32 %v1155_v36 }
 0x445   : > { %v1158_v37 = vpop.xlane.xlu1 %1157 }
 0x446   : > { %3372 = vrcp.f32 %v1158_v37 }
 0x449   : > { %v1321_v49 = vpop.permute.xlu1 %1320 }
 0x44a   : > { %v1326_v59 = vsel %vm1033_vm1, %v1321_v49, 0 }
 0x44b   : > { %v1161_v38 = vpop.xlane.xlu0 %1160 }
 0x44c   : > { %3374 = vrcp.f32 %v1161_v38 }
 0x44e   : > { %v3371_v40 = vpop.eup %3370 }
 0x44f   : > { %v1169_v44 = vmul.f32 %v3371_v40, %v3363_v25  ;;  %v1268_v46 = vpop.permute.xlu0 %1267 }
 0x450   : > { %v3373_v42 = vpop.eup %3372  ;;  %v1273_v48 = vsel %vm1033_vm1, %v1268_v46, 0 }
 0x451   : > { %v1170_v45 = vmul.f32 %v3373_v42, %v3365_v27 }
 0x453   : > { %v1173_v47 = vpack.c.bf16 %v1170_v45, %v1169_v44 }
 0x455   : > { %3127 = vmatmul.mubr.msk.bf16.vlgmr.msra.gmra.mrb[4].mxu1 %vm1128_vm2, %v1173_v47 }
 0x456   : > { %3137 = vmatpush3.bf16.xpose.msra.mxu1 %v1273_v48  ;;  %3138 = vmatprep.mubr.msk.bf16.mxu1 %vm3472_vm0, %v3471_v17  ;;  %v3375_v54 = vpop.eup %3374 }
 0x457   : > { %3148 = vmatprep.subr.bf16.mxu1 %v3471_v17  ;;  %v1171_v56 = vmul.f32 %v3375_v54, %v3367_v29 }
 0x47a   : > { %v1164_v51 = vpop.xlane.xlu1 %1163 }
 0x47b   : > { %3376 = vrcp.f32 %v1164_v51 }
 0x47e   : > { %v1265_v52 = vpop.permute.xlu1 %1264 }
 0x47f   : > { %3139 = vmatmul.mubr.msk.bf16.vlgmr.msra.gmra.mrb[8].mxu1 %vm1033_vm1, %v1265_v52 }
 0x480   : > { %3150 = vmatprep.mubr.msk.bf16.mxu1 %vm3472_vm0, %v3471_v17 }
 0x482   : > { %v1318_v60 = vpop.permute.xlu1 %1317 }
 0x485   : > { %v3377_v55 = vpop.eup %3376 }
 0x486   : > { %v1172_v57 = vmul.f32 %v3377_v55, %v3369_v34 }
 0x488   : > { %v1174_v58 = vpack.c.bf16 %v1172_v57, %v1171_v56 }
 0x48a   : > { %3133 = vmatmul.mubr.msk.bf16.vlgmr.msra.gmra.mrb[16].mxu0 %vm1128_vm2, %v1174_v58 }
 0x48b   : > { %3143 = vmatpush3.bf16.xpose.msra.mxu0 %v1326_v59  ;;  %3144 = vmatprep.mubr.msk.bf16.mxu0 %vm3472_vm0, %v3471_v17 }
 0x48c   : > { %3154 = vmatprep.subr.bf16.mxu0 %v3471_v17 }
 0x492   : > { %3145 = vmatmul.mubr.msk.bf16.vlgmr.msra.gmra.mrb[20].mxu0 %vm1033_vm1, %v1318_v60 }
 0x493   : > { %3156 = vmatprep.mubr.msk.bf16.mxu0 %vm3472_vm0, %v3471_v17 }
 0x528   : > { %v3776_v63 = vpop.f32.mrb[4].mxu1 }
 0x529   : > { %v3128_v0 = vpop.f32.mrb[5].mxu1 }
 0x52a   : > { %v3778_v1 = vpop.f32.mrb[6].mxu1 }
 0x52b   : > { %v3129_v2 = vpop.f32.mrb[7].mxu1 }
 0x552   : > { %v1309_v3 = vpop.f32.mrb[8].mxu1 }
 0x553   : > { %v3140_v4 = vpop.f32.mrb[9].mxu1  ;;  %v1369_v5 = vsel %vm1128_vm2, %v1309_v3, -inf }
 0x554   : > { %1370 = vmax.xlane.f32.xlu0 %v1369_v5  ;;  %v1312_v6 = vpop.f32.mrb[10].mxu1 }
 0x555   : > { %v3141_v7 = vpop.f32.mrb[11].mxu1  ;;  %v1372_v8 = vsel %vm1128_vm2, %v1312_v6, -inf }
 0x556   : > { %1373 = vmax.xlane.f32.xlu1 %v1372_v8 }
 0x55d   : > { %v3782_v9 = vpop.f32.mrb[16].mxu0 }
 0x55e   : > { %v3134_v10 = vpop.f32.mrb[17].mxu0 }
 0x55f   : > { %v3784_v11 = vpop.f32.mrb[18].mxu0 }
 0x560   : > { %v3135_v12 = vpop.f32.mrb[19].mxu0 }
 0x565   : > { %v1362_v13 = vpop.f32.mrb[20].mxu0 }
 0x566   : > { %v3146_v14 = vpop.f32.mrb[21].mxu0  ;;  %v1375_v15 = vsel %vm1128_vm2, %v1362_v13, -inf }
 0x567   : > { %1376 = vmax.xlane.f32.xlu0 %v1375_v15  ;;  %v1365_v16 = vpop.f32.mrb[22].mxu0 }
 0x568   : > { %v3147_v18 = vpop.f32.mrb[23].mxu0  ;;  %v1378_v21 = vsel %vm1128_vm2, %v1365_v16, -inf }
 0x56b   : > { %1379 = vmax.xlane.f32.xlu0 %v1378_v21 }
 0x5e1   : > { %v1371_v23 = vpop.xlane.xlu0 %1370 }
 0x5e2   : > { %v1381_v24 = vsub.f32 %v1309_v3, %v1371_v23 }
 0x5e3   : > { %v1374_v25 = vpop.xlane.xlu1 %1373 }
 0x5e4   : > { %v1385_v26 = vmul.f32 1.442695, %v1381_v24  ;;  %v1382_v27 = vsub.f32 %v1312_v6, %v1374_v25 }
 0x5e6   : > { %3378 = vpow2.f32 %v1385_v26  ;;  %v1387_v28 = vmul.f32 1.442695, %v1382_v27 }
 0x5e8   : > { %3380 = vpow2.f32 %v1387_v28 }
 0x5f0   : > { %v3379_v29 = vpop.eup %3378 }
 0x5f1   : > { %v1393_v30 = vsel %vm1128_vm2, %v3379_v29, 0.0 }
 0x5f2   : > { %v3381_v31 = vpop.eup %3380  ;;  %1394 = vadd.xlane.f32.xlu0 %v1393_v30 }
 0x5f3   : > { %v1396_v32 = vsel %vm1128_vm2, %v3381_v31, 0.0 }
 0x5f4   : > { %1397 = vadd.xlane.f32.xlu1 %v1396_v32  ;;  %v1377_v33 = vpop.xlane.xlu0 %1376 }
 0x5f5   : > { %v1383_v34 = vsub.f32 %v1362_v13, %v1377_v33 }
 0x5f7   : > { %v1389_v35 = vmul.f32 1.442695, %v1383_v34 }
 0x5f8   : > { %v1380_v38 = vpop.xlane.xlu0 %1379 }
 0x5f9   : > { %3382 = vpow2.f32 %v1389_v35  ;;  %v1384_v40 = vsub.f32 %v1365_v16, %v1380_v38 }
 0x5fb   : > { %v1391_v42 = vmul.f32 1.442695, %v1384_v40 }
 0x5fd   : > { %3384 = vpow2.f32 %v1391_v42 }
 0x603   : > { %v3383_v36 = vpop.eup %3382 }
 0x604   : > { %v1399_v37 = vsel %vm1128_vm2, %v3383_v36, 0.0 }
 0x605   : > { %1464 = vrot.lane.b32.xlu1 %v3720_v50, %s3473_s26  ;;  %1400 = vadd.xlane.f32.xlu0 %v1399_v37 }
 0x607   : > { %v3385_v44 = vpop.eup %3384 }
 0x608   : > { %v1402_v45 = vsel %vm1128_vm2, %v3385_v44, 0.0 }
 0x609   : > { %1513 = vrot.lane.b32.xlu1 %v3714_v39, %s3474_s14 }
 0x61b   : > { %1416 = vrot.lane.b32.xlu0 %v3722_v53, %s3473_s26 }
 0x61f   : > { %1511 = vrot.lane.b32.xlu0 %v3716_v41, %s3474_s14 }
 0x62d   : > { %1403 = vadd.xlane.f32.xlu1 %v1402_v45 }
 0x63e   : > { %1564 = vrot.lane.b32.xlu1 %v3727_v61, %s3474_s14 }
 0x642   : > { %1562 = vrot.lane.b32.xlu1 %v3729_v62, %s3474_s14 }
 0x67f   : > { %v1395_v48 = vpop.xlane.xlu0 %1394 }
 0x681   : > { %v1398_v46 = vpop.xlane.xlu1 %1397 }
 0x682   : > { %3386 = vrcp.f32 %v1398_v46 }
 0x683   : > { %3388 = vrcp.f32 %v1395_v48 }
 0x685   : > { %v1465_v47 = vpop.permute.xlu1 %1464 }
 0x686   : > { %3155 = vmatpush3.bf16.msra.mxu0 %v1465_v47 }
 0x687   : > { %3166 = vmatprep.subr.bf16.mxu0 %v3471_v17 }
 0x689   : > { %v1514_v58 = vpop.permute.xlu1 %1513 }
 0x68a   : > { %v1519_v59 = vsel %vm1033_vm1, %v1514_v58, 0 }
 0x68c   : > { %v3387_v49 = vpop.eup %3386 }
 0x68d   : > { %v3389_v52 = vpop.eup %3388  ;;  %v1410_v54 = vmul.f32 %v3387_v49, %v3381_v31 }
 0x68e   : > { %v1409_v55 = vmul.f32 %v3389_v52, %v3379_v29 }
 0x690   : > { %v1413_v57 = vpack.c.bf16 %v1410_v54, %v1409_v55 }
 0x692   : > { %v1401_v51 = vpop.xlane.xlu0 %1400 }
 0x693   : > { %3390 = vrcp.f32 %v1401_v51 }
 0x696   : > { %v1417_v56 = vpop.permute.xlu0 %1416 }
 0x697   : > { %3149 = vmatpush3.bf16.msra.mxu1 %v1417_v56 }
 0x698   : > { %3160 = vmatprep.subr.bf16.mxu1 %v3471_v17 }
 0x69a   : > { %3151 = vmatmul.mubr.msk.bf16.vlgmr.msra.gmra.mrb[12].mxu1 %vm1128_vm2, %v1413_v57  ;;  %v1512_v60 = vpop.permute.xlu0 %1511 }
 0x69b   : > { %3162 = vmatprep.mubr.msk.bf16.mxu1 %vm3472_vm0, %v3471_v17 }
 0x69d   : > { %v3391_v2 = vpop.eup %3390 }
 0x69e   : > { %v1411_v4 = vmul.f32 %v3391_v2, %v3383_v36 }
 0x6a0   : > { %3161 = vmatpush3.bf16.xpose.msra.mxu1 %v1519_v59 }
 0x6a1   : > { %3172 = vmatprep.subr.bf16.mxu1 %v3471_v17 }
 0x6a7   : > { %3163 = vmatmul.mubr.msk.bf16.vlgmr.msra.gmra.mrb[16].mxu1 %vm1033_vm1, %v1512_v60 }
 0x6a8   : > { %3174 = vmatprep.mubr.msk.bf16.mxu1 %vm3472_vm0, %v3471_v17 }
 0x6ba   : > { %v1404_v0 = vpop.xlane.xlu1 %1403 }
 0x6bb   : > { %3392 = vrcp.f32 %v1404_v0 }
 0x6be   : > { %v1565_v6 = vpop.permute.xlu1 %1564 }
 0x6bf   : > { %v1570_v8 = vsel %vm1033_vm1, %v1565_v6, 0 }
 0x6c2   : > { %v1563_v10 = vpop.permute.xlu1 %1562 }
 0x6c5   : > { %v3393_v3 = vpop.eup %3392 }
 0x6c6   : > { %v1412_v5 = vmul.f32 %v3393_v3, %v3385_v44 }
 0x6c8   : > { %v1414_v7 = vpack.c.bf16 %v1412_v5, %v1411_v4 }
 0x6ca   : > { %3157 = vmatmul.mubr.msk.bf16.vlgmr.msra.gmra.mrb[24].mxu0 %vm1128_vm2, %v1414_v7 }
 0x6cb   : > { %3167 = vmatpush3.bf16.xpose.msra.mxu0 %v1570_v8  ;;  %3168 = vmatprep.mubr.msk.bf16.mxu0 %vm3472_vm0, %v3471_v17 }
 0x6cc   : > { %3178 = vmatprep.subr.bf16.mxu0 %v3471_v17 }
 0x6d2   : > { %3169 = vmatmul.mubr.msk.bf16.vlgmr.msra.gmra.mrb[28].mxu0 %vm1033_vm1, %v1563_v10 }
 0x6d3   : > { %3180 = vmatprep.mubr.msk.bf16.mxu0 %vm3472_vm0, %v3471_v17 }
 0x76d   : > { %v3822_v12 = vpop.f32.mrb[12].mxu1 }
 0x76e   : > { %v3152_v13 = vpop.f32.mrb[13].mxu1 }
 0x76f   : > { %v3824_v14 = vpop.f32.mrb[14].mxu1 }
 0x770   : > { %v3244_v15 = vpack.i.bf16 %v3824_v14, %v3822_v12  ;;  %v3153_v16 = vpop.f32.mrb[15].mxu1 }
 0x77a   : > { %v1555_v18 = vpop.f32.mrb[16].mxu1 }
 0x77b   : > { %v3164_v21 = vpop.f32.mrb[17].mxu1  ;;  %v1613_v23 = vsel %vm1128_vm2, %v1555_v18, -inf }
 0x77c   : > { %1614 = vmax.xlane.f32.xlu0 %v1613_v23  ;;  %v1558_v24 = vpop.f32.mrb[18].mxu1 }
 0x77d   : > { %v3165_v25 = vpop.f32.mrb[19].mxu1  ;;  %v1616_v26 = vsel %vm1128_vm2, %v1558_v24, -inf }
 0x77e   : > { %1617 = vmax.xlane.f32.xlu1 %v1616_v26 }
 0x79d   : > { %v3830_v27 = vpop.f32.mrb[24].mxu0 }
 0x79e   : > { %v3158_v28 = vpop.f32.mrb[25].mxu0 }
 0x79f   : > { %v3832_v29 = vpop.f32.mrb[26].mxu0 }
 0x7a0   : > { %v3249_v30 = vpack.i.bf16 %v3832_v29, %v3830_v27  ;;  %v3159_v31 = vpop.f32.mrb[27].mxu0 }
 0x7a5   : > { %v1606_v32 = vpop.f32.mrb[28].mxu0 }
 0x7a6   : > { %v3170_v33 = vpop.f32.mrb[29].mxu0  ;;  %v1619_v34 = vsel %vm1128_vm2, %v1606_v32, -inf }
 0x7a7   : > { %1620 = vmax.xlane.f32.xlu0 %v1619_v34  ;;  %v1609_v35 = vpop.f32.mrb[30].mxu0 }
 0x7a8   : > { %v3171_v36 = vpop.f32.mrb[31].mxu0  ;;  %v1622_v37 = vsel %vm1128_vm2, %v1609_v35, -inf }
 0x7ab   : > { %1623 = vmax.xlane.f32.xlu0 %v1622_v37 }
 0x809   : > { %v1615_v38 = vpop.xlane.xlu0 %1614 }
 0x80a   : > { %v1625_v40 = vsub.f32 %v1555_v18, %v1615_v38 }
 0x80b   : > { %v1618_v42 = vpop.xlane.xlu1 %1617 }
 0x80c   : > { %v1629_v44 = vmul.f32 1.442695, %v1625_v40  ;;  %v1626_v45 = vsub.f32 %v1558_v24, %v1618_v42 }
 0x80e   : > { %3394 = vpow2.f32 %v1629_v44  ;;  %v1631_v46 = vmul.f32 1.442695, %v1626_v45 }
 0x810   : > { %3396 = vpow2.f32 %v1631_v46 }
 0x818   : > { %v3395_v47 = vpop.eup %3394 }
 0x819   : > { %v1637_v48 = vsel %vm1128_vm2, %v3395_v47, 0.0 }
 0x81a   : > { %v3397_v49 = vpop.eup %3396  ;;  %1638 = vadd.xlane.f32.xlu0 %v1637_v48 }
 0x81b   : > { %v1640_v51 = vsel %vm1128_vm2, %v3397_v49, 0.0 }
 0x81c   : > { %1641 = vadd.xlane.f32.xlu1 %v1640_v51 }
 0x82d   : > { %1706 = vrot.lane.b32.xlu1 %v3720_v50, %s3474_s14 }
 0x831   : > { %1755 = vrot.lane.b32.xlu1 %v3714_v39, %s3475_s15 }
 0x834   : > { %v1621_v52 = vpop.xlane.xlu0 %1620 }
 0x835   : > { %v1627_v54 = vsub.f32 %v1606_v32, %v1621_v52 }
 0x837   : > { %v1633_v55 = vmul.f32 1.442695, %v1627_v54 }
 0x838   : > { %v1624_v56 = vpop.xlane.xlu0 %1623 }
 0x839   : > { %3398 = vpow2.f32 %v1633_v55  ;;  %v1628_v57 = vsub.f32 %v1609_v35, %v1624_v56 }
 0x83b   : > { %v1635_v59 = vmul.f32 1.442695, %v1628_v57 }
 0x83d   : > { %3400 = vpow2.f32 %v1635_v59 }
 0x843   : > { %v3399_v58 = vpop.eup %3398 }
 0x844   : > { %v1643_v60 = vsel %vm1128_vm2, %v3399_v58, 0.0 }
 0x845   : > { %1644 = vadd.xlane.f32.xlu0 %v1643_v60 }
 0x847   : > { %v3401_v0 = vpop.eup %3400 }
 0x848   : > { %v1646_v2 = vsel %vm1128_vm2, %v3401_v0, 0.0 }
 0x855   : > { %1647 = vadd.xlane.f32.xlu1 %v1646_v2 }
 0x85b   : > { %1659 = vrot.lane.b32.xlu0 %v3722_v53, %s3474_s14 }
 0x85f   : > { %1753 = vrot.lane.b32.xlu0 %v3716_v41, %s3475_s15 }
 0x866   : > { %1806 = vrot.lane.b32.xlu1 %v3727_v61, %s3475_s15 }
 0x86a   : > { %1804 = vrot.lane.b32.xlu1 %v3729_v62, %s3475_s15 }
 0x8a7   : > { %v1639_v4 = vpop.xlane.xlu0 %1638 }
 0x8a9   : > { %v1642_v39 = vpop.xlane.xlu1 %1641 }
 0x8aa   : > { %3402 = vrcp.f32 %v1642_v39 }
 0x8ab   : > { %3404 = vrcp.f32 %v1639_v4 }
 0x8ad   : > { %v1707_v3 = vpop.permute.xlu1 %1706 }
 0x8ae   : > { %3179 = vmatpush3.bf16.msra.mxu0 %v1707_v3 }
 0x8af   : > { %3190 = vmatprep.subr.bf16.mxu0 %v3471_v17 }
 0x8b1   : > { %v1756_v61 = vpop.permute.xlu1 %1755 }
 0x8b2   : > { %v1761_v62 = vsel %vm1033_vm1, %v1756_v61, 0 }
 0x8b4   : > { %v3403_v5 = vpop.eup %3402 }
 0x8b5   : > { %v3405_v7 = vpop.eup %3404  ;;  %v1654_v8 = vmul.f32 %v3403_v5, %v3397_v49 }
 0x8b6   : > { %v1653_v10 = vmul.f32 %v3405_v7, %v3395_v47 }
 0x8b8   : > { %v1657_v13 = vpack.c.bf16 %v1654_v8, %v1653_v10 }
 0x8d2   : > { %v1645_v6 = vpop.xlane.xlu0 %1644 }
 0x8d3   : > { %3406 = vrcp.f32 %v1645_v6 }
 0x8d6   : > { %v1660_v41 = vpop.permute.xlu0 %1659 }
 0x8d7   : > { %3173 = vmatpush3.bf16.msra.mxu1 %v1660_v41 }
 0x8d8   : > { %3184 = vmatprep.subr.bf16.mxu1 %v3471_v17 }
 0x8da   : > { %3175 = vmatmul.mubr.msk.bf16.vlgmr.msra.gmra.mrb[20].mxu1 %vm1128_vm2, %v1657_v13  ;;  %v1754_v18 = vpop.permute.xlu0 %1753 }
 0x8db   : > { %3186 = vmatprep.mubr.msk.bf16.mxu1 %vm3472_vm0, %v3471_v17 }
 0x8dd   : > { %v3407_v21 = vpop.eup %3406 }
 0x8de   : > { %v1655_v24 = vmul.f32 %v3407_v21, %v3399_v58 }
 0x8e0   : > { %3185 = vmatpush3.bf16.xpose.msra.mxu1 %v1761_v62 }
 0x8e1   : > { %3196 = vmatprep.subr.bf16.mxu1 %v3471_v17 }
 0x8e2   : > { %v1648_v16 = vpop.xlane.xlu1 %1647 }
 0x8e3   : > { %3408 = vrcp.f32 %v1648_v16 }
 0x8e6   : > { %v1807_v26 = vpop.permute.xlu1 %1806 }
 0x8e7   : > { %3187 = vmatmul.mubr.msk.bf16.vlgmr.msra.gmra.mrb[24].mxu1 %vm1033_vm1, %v1754_v18  ;;  %v1812_v31 = vsel %vm1033_vm1, %v1807_v26, 0 }
 0x8e8   : > { %3198 = vmatprep.mubr.msk.bf16.mxu1 %vm3472_vm0, %v3471_v17 }
 0x8ea   : > { %v1805_v32 = vpop.permute.xlu1 %1804 }
 0x8ed   : > { %v3409_v23 = vpop.eup %3408 }
 0x8ee   : > { %v1656_v25 = vmul.f32 %v3409_v23, %v3401_v0 }
 0x8f0   : > { %v1658_v28 = vpack.c.bf16 %v1656_v25, %v1655_v24 }
 0x8f2   : > { %3181 = vmatmul.mubr.msk.bf16.vlgmr.msra.gmra.mrb[32].mxu0 %vm1128_vm2, %v1658_v28 }
 0x8f3   : > { %3191 = vmatpush3.bf16.xpose.msra.mxu0 %v1812_v31  ;;  %3192 = vmatprep.mubr.msk.bf16.mxu0 %vm3472_vm0, %v3471_v17 }
 0x8f4   : > { %3202 = vmatprep.subr.bf16.mxu0 %v3471_v17 }
 0x8fa   : > { %3193 = vmatmul.mubr.msk.bf16.vlgmr.msra.gmra.mrb[36].mxu0 %vm1033_vm1, %v1805_v32 }
 0x8fb   : > { %3204 = vmatprep.mubr.msk.bf16.mxu0 %vm3472_vm0, %v3471_v17 }
 0x9ad   : > { %v1699_v33 = vpop.f32.mrb[20].mxu1 }
 0x9ae   : > { %v3176_v34 = vpop.f32.mrb[21].mxu1 }
 0x9af   : > { %v1702_v35 = vpop.f32.mrb[22].mxu1 }
 0x9b0   : > { %v3254_v36 = vpack.i.bf16 %v1702_v35, %v1699_v33  ;;  %v3177_v37 = vpop.f32.mrb[23].mxu1  ;;  %v3306_v35 = vld [vmem:[%s3584_s17] sm:$0xff]  }
 0x9b1   : > { %v3308_v37 = vld [vmem:[%s3584_s17 + $0x10] sm:$0xff]  }
 0x9ba   : > { %v1797_v38 = vpop.f32.mrb[24].mxu1 }
 0x9bb   : > { %v3188_v40 = vpop.f32.mrb[25].mxu1  ;;  %v1855_v42 = vsel %vm1128_vm2, %v1797_v38, -inf }
 0x9bc   : > { %1856 = vmax.xlane.f32.xlu0 %v1855_v42  ;;  %v1800_v44 = vpop.f32.mrb[26].mxu1  ;;  %v3310_v40 = vld [vmem:[%s3584_s17 + $0x20] sm:$0xff]   ;;  %v3311_v42 = vld [vmem:[%s3584_s17 + $0x28] sm:$0xff]  }
 0x9bd   : > { %v3189_v45 = vpop.f32.mrb[27].mxu1  ;;  %v1858_v46 = vsel %vm1128_vm2, %v1800_v44, -inf }
 0x9be   : > { %1859 = vmax.xlane.f32.xlu1 %v1858_v46 }
 0x9c5   : > { %v1746_v47 = vpop.f32.mrb[32].mxu0 }
 0x9c6   : > { %v3182_v48 = vpop.f32.mrb[33].mxu0 }
 0x9c7   : > { %v1749_v49 = vpop.f32.mrb[34].mxu0 }
 0x9c8   : > { %v3259_v51 = vpack.i.bf16 %v1749_v49, %v1746_v47  ;;  %v3183_v17 = vpop.f32.mrb[35].mxu0 }
 0x9cd   : > { %v1848_v52 = vpop.f32.mrb[36].mxu0 }
 0x9ce   : > { %v3194_v54 = vpop.f32.mrb[37].mxu0  ;;  %v1861_v55 = vsel %vm1128_vm2, %v1848_v52, -inf }
 0x9cf   : > { %1862 = vmax.xlane.f32.xlu0 %v1861_v55  ;;  %v1851_v56 = vpop.f32.mrb[38].mxu0 }
 0x9d0   : > { %v3195_v57 = vpop.f32.mrb[39].mxu0  ;;  %v1864_v58 = vsel %vm1128_vm2, %v1851_v56, -inf }
 0x9d3   : > { %1865 = vmax.xlane.f32.xlu0 %v1864_v58 }
 0xa49   : > { %v1857_v59 = vpop.xlane.xlu0 %1856 }
 0xa4a   : > { %v1867_v60 = vsub.f32 %v1797_v38, %v1857_v59  ;;  %v3309_v38 = vld [vmem:[%s3584_s17 + $0x18] sm:$0xff]  }
 0xa4b   : > { %v1860_v0 = vpop.xlane.xlu1 %1859 }
 0xa4c   : > { %v1871_v2 = vmul.f32 1.442695, %v1867_v60  ;;  %v1868_v39 = vsub.f32 %v1800_v44, %v1860_v0  ;;  %v3312_v44 = vld [vmem:[%s3584_s17 + $0x30] sm:$0xff]  }
 0xa4e   : > { %3410 = vpow2.f32 %v1871_v2  ;;  %v1873_v3 = vmul.f32 1.442695, %v1868_v39 }
 0xa50   : > { %3412 = vpow2.f32 %v1873_v3 }
 0xa58   : > { %v3411_v4 = vpop.eup %3410 }
 0xa59   : > { %v1879_v5 = vsel %vm1128_vm2, %v3411_v4, 0.0 }
 0xa5a   : > { %v3413_v6 = vpop.eup %3412  ;;  %1880 = vadd.xlane.f32.xlu0 %v1879_v5 }
 0xa5b   : > { %v1882_v7 = vsel %vm1128_vm2, %v3413_v6, 0.0 }
 0xa5c   : > { %1883 = vadd.xlane.f32.xlu1 %v1882_v7  ;;  %v1863_v8 = vpop.xlane.xlu0 %1862 }
 0xa5d   : > { %v1869_v10 = vsub.f32 %v1848_v52, %v1863_v8 }
 0xa5f   : > { %v1875_v41 = vmul.f32 1.442695, %v1869_v10 }
 0xa60   : > { %v1866_v13 = vpop.xlane.xlu0 %1865 }
 0xa61   : > { %3414 = vpow2.f32 %v1875_v41  ;;  %v1870_v61 = vsub.f32 %v1851_v56, %v1866_v13 }
 0xa63   : > { %v1877_v62 = vmul.f32 1.442695, %v1870_v61 }
 0xa65   : > { %3416 = vpow2.f32 %v1877_v62 }
 0xa6b   : > { %v3415_v16 = vpop.eup %3414 }
 0xa6c   : > { %v1885_v18 = vsel %vm1128_vm2, %v3415_v16, 0.0 }
 0xa6d   : > { %1886 = vadd.xlane.f32.xlu0 %v1885_v18 }
 0xa6f   : > { %v3417_v21 = vpop.eup %3416 }
 0xa70   : > { %v1888_v23 = vsel %vm1128_vm2, %v3417_v21, 0.0 }
 0xa71   : > { %1889 = vadd.xlane.f32.xlu1 %v1888_v23 }
 0xa82   : > { %1948 = vrot.lane.b32.xlu1 %v3720_v50, %s3475_s15 }
 0xa83   : > { %1901 = vrot.lane.b32.xlu0 %v3722_v53, %s3475_s15 }
 0xa86   : > { %3245 = vrot.lane.b32.xlu1 %v3244_v15, %s3475_s15 }
 0xa87   : > { %3255 = vrot.lane.b32.xlu0 %v3254_v36, %s3474_s14  ;;  %v3307_v36 = vld [vmem:[%s3584_s17 + $0x8] sm:$0xff]  }
 0xa8a   : > { %3250 = vrot.lane.b32.xlu1 %v3249_v30, %s3475_s15 }
 0xa8e   : > { %3260 = vrot.lane.b32.xlu1 %v3259_v51, %s3474_s14  ;;  %v3313_v51 = vld [vmem:[%s3584_s17 + $0x38] sm:$0xff]   ;;  %s4138_s14 = sld [smem:[#allocation9_spill]] (!%p3003_p5) }
 0xae7   : > { %v1881_v25 = vpop.xlane.xlu0 %1880 }
 0xae9   : > { %v1884_v24 = vpop.xlane.xlu1 %1883 }
 0xaea   : > { %3418 = vrcp.f32 %v1884_v24 }
 0xaeb   : > { %3420 = vrcp.f32 %v1881_v25 }
 0xaf4   : > { %v3419_v50 = vpop.eup %3418 }
 0xaf5   : > { %v3421_v26 = vpop.eup %3420  ;;  %v1896_v28 = vmul.f32 %v3419_v50, %v3413_v6 }
 0xaf6   : > { %v1895_v12 = vmul.f32 %v3421_v26, %v3411_v4 }
 0xaf8   : > { %v1899_v27 = vpack.c.bf16 %v1896_v28, %v1895_v12 }
 0xafa   : > { %v1887_v53 = vpop.xlane.xlu0 %1886 }
 0xafb   : > { %3422 = vrcp.f32 %v1887_v53 }
 0xafe   : > { %v1890_v14 = vpop.xlane.xlu1 %1889  ;;  %v1902_v15 = vpop.permute.xlu0 %1901 }
 0xaff   : > { %3424 = vrcp.f32 %v1890_v14  ;;  %3197 = vmatpush3.bf16.msra.mxu1 %v1902_v15 }
 0xb00   : > { %3208 = vmatprep.subr.bf16.mxu1 %v3306_v35 }
 0xb02   : > { %v1949_v29 = vpop.permute.xlu1 %1948  ;;  %3199 = vmatmul.mubr.msk.bf16.vlgmr.msra.gmra.mrb[28].mxu1 %vm1128_vm2, %v1899_v27  ;;  %v3256_v60 = vpop.permute.xlu0 %3255 }
 0xb03   : > { %3203 = vmatpush3.bf16.msra.mxu0 %v1949_v29  ;;  %3209 = vmatpush3.bf16.msra.mxu1 %v3306_v35  ;;  %v3258_v39 = vunpack.i.h.bf16 %v3256_v60  ;;  %v3257_v3 = vunpack.i.l.bf16 %v3256_v60  ;;  %v3451_v35 = vld [vmem:[#allocation2 + $0x8] sm:$0xff] }
 0xb04   : > { %3210 = vmatprep.subr.bf16.mxu1 %v3307_v36 }
 0xb05   : > { %v3423_v30 = vpop.eup %3422 }
 0xb06   : > { %v1897_v32 = vmul.f32 %v3423_v30, %v3415_v16  ;;  %v3246_v57 = vpop.permute.xlu1 %3245 }
 0xb07   : > { %3211 = vmatpush3.bf16.msra.mxu1 %v3307_v36  ;;  %v3248_v58 = vunpack.i.h.bf16 %v3246_v57  ;;  %v3247_v59 = vunpack.i.l.bf16 %v3246_v57 }
 0xb08   : > { %3212 = vmatprep.subr.bf16.mxu1 %v3308_v37 }
 0xb09   : > { %v3425_v31 = vpop.eup %3424  ;;  %v2044_v0 = vsel %vm1033_vm1, %v3778_v1, %v3248_v58  ;;  %v2043_v2 = vsel %vm1033_vm1, %v3776_v63, %v3247_v59 }
 0xb0a   : > { %v1898_v33 = vmul.f32 %v3425_v31, %v3417_v21  ;;  %v3251_v5 = vpop.permute.xlu1 %3250  ;;  %v2048_v8 = vsel %vm2047_vm3, %v2043_v2, %v3257_v3  ;;  %v2049_v10 = vsel %vm2047_vm3, %v2044_v0, %v3258_v39 }
 0xb0b   : > { %3213 = vmatpush3.bf16.msra.mxu1 %v3308_v37  ;;  %v3253_v63 = vunpack.i.h.bf16 %v3251_v5  ;;  %v3252_v62 = vunpack.i.l.bf16 %v3251_v5  ;;  %v3452_v37 = vld [vmem:[#allocation2 + $0x10] sm:$0xff]  ;;  %v3322_v5 = vld [vmem:[%s3612_s3 + $0x24] ss:$8 sps:$4 sm:$0xff]  }
 0xb0c   : > { %v1900_v34 = vpack.c.bf16 %v1898_v33, %v1897_v32  ;;  %3214 = vmatprep.subr.bf16.mxu1 %v3309_v38  ;;  %v3450_v32 = vld [vmem:[#allocation2] sm:$0xff] }
 0xb0d   : > { %v2046_v23 = vsel %vm1033_vm1, %v3784_v11, %v3253_v63  ;;  %v2045_v24 = vsel %vm1033_vm1, %v3782_v9, %v3252_v62  ;;  %v2959_v11 = vld [vmem:[%s4134_s21] ss:$0 sm:$0xff]  ;;  %v3337_v62 = vld [vmem:[%s3612_s3 + $0x74] ss:$8 sps:$4 sm:$0xff]  }
 0xb0e   : > { %3205 = vmatmul.mubr.msk.bf16.vlgmr.msra.gmra.mrb[40].mxu0 %vm1128_vm2, %v1900_v34  ;;  %v3261_v61 = vpop.permute.xlu1 %3260  ;;  %v3332_v63 = vld [vmem:[%s3612_s3 + $0x60] ss:$8 sps:$4 sm:$0xff]  }
 0xb0f   : > { %2391 = vmatprep.mubr.bf16.mxu0 %v3470_v43  ;;  %3215 = vmatpush3.bf16.msra.mxu1 %v3309_v38  ;;  %v3263_v16 = vunpack.i.h.bf16 %v3261_v61  ;;  %v3262_v18 = vunpack.i.l.bf16 %v3261_v61  ;;  %v3334_v61 = vld [vmem:[%s3612_s3 + $0x64] ss:$8 sps:$4 sm:$0xff]  }
 0xb10   : > { %3216 = vmatprep.subr.bf16.mxu1 %v3310_v40 }
 0xb11   : > { %v2050_v53 = vsel %vm2047_vm3, %v2045_v24, %v3262_v18  ;;  %v2051_v26 = vsel %vm2047_vm3, %v2046_v23, %v3263_v16  ;;  %v3335_v16 = vld [vmem:[%s3612_s3 + $0x70] ss:$8 sps:$4 sm:$0xff]  }
 0xb13   : > { %3217 = vmatpush3.bf16.msra.mxu1 %v3310_v40 }
 0xb14   : > { %3218 = vmatprep.subr.bf16.mxu1 %v3311_v42 }
 0xb17   : > { %3219 = vmatpush3.bf16.msra.mxu1 %v3311_v42  ;;  %v3453_v42 = vld [vmem:[#allocation2 + $0x18] sm:$0xff] }
 0xb18   : > { %3220 = vmatprep.subr.bf16.mxu1 %v3312_v44 }
 0xb1b   : > { %3221 = vmatpush3.bf16.msra.mxu1 %v3312_v44 }
 0xb1c   : > { %3222 = vmatprep.subr.bf16.mxu1 %v3313_v51 }
 0xb1f   : > { %3223 = vmatpush3.bf16.msra.mxu1 %v3313_v51 }
 0xbd5   : > { %v1941_v45 = vpop.f32.mrb[28].mxu1 }
 0xbd6   : > { %v3200_v46 = vpop.f32.mrb[29].mxu1 }
 0xbd7   : > { %v1944_v47 = vpop.f32.mrb[30].mxu1  ;;  %v3316_v46 = vld [vmem:[%s3612_s3 + $0x4] ss:$8 sps:$4 sm:$0xff]  }
 0xbd8   : > { %v3264_v48 = vpack.i.bf16 %v1944_v47, %v1941_v45  ;;  %v3201_v49 = vpop.f32.mrb[31].mxu1  ;;  %v3314_v45 = vld [vmem:[%s3612_s3] ss:$8 sps:$4 sm:$0xff]   ;;  %v3319_v47 = vld [vmem:[%s3612_s3 + $0x14] ss:$8 sps:$4 sm:$0xff]   ;;  %2359 = vmatprep.subr.bf16.mxu0 %v3316_v46 }
 0xbd9   : > { %2360 = vmatpush1.bf16.msra.mxu0 %v3314_v45 }
 0xbda   : > { %3265 = vrot.lane.b32.xlu0 %v3264_v48, %s3473_s26  ;;  %v3317_v48 = vld [vmem:[%s3612_s3 + $0x10] ss:$8 sps:$4 sm:$0xff]   ;;  %2361 = vmatprep.subr.bf16.mxu0 %v3319_v47 }
 0xbdd   : > { %2362 = vmatpush1.bf16.msra.mxu0 %v3317_v48 }
 0xbde   : > { %2363 = vmatprep.subr.bf16.mxu0 %v3322_v5  ;;  %v3351_v5 = vld [vmem:[%s3623_s2 + $0x30] sm:$0xff]  }
 0xbe1   : > { %v1988_v17 = vpop.f32.mrb[40].mxu0 }
 0xbe2   : > { %v3206_v52 = vpop.f32.mrb[41].mxu0 }
 0xbe3   : > { %v1991_v54 = vpop.f32.mrb[42].mxu0 }
 0xbe4   : > { %v3269_v55 = vpack.i.bf16 %v1991_v54, %v1988_v17  ;;  %v3207_v56 = vpop.f32.mrb[43].mxu0 }
 0xbe6   : > { %3270 = vrot.lane.b32.xlu1 %v3269_v55, %s3473_s26 }
 0xc4c   : > { %v3266_v4 = vpop.permute.xlu0 %3265 }
 0xc4d   : > { %v3268_v6 = vunpack.i.h.bf16 %v3266_v4  ;;  %v3267_v7 = vunpack.i.l.bf16 %v3266_v4 }
 0xc4f   : > { %v2053_v41 = vsel %vm2052_vm4, %v2048_v8, %v3267_v7  ;;  %v2054_v13 = vsel %vm2052_vm4, %v2049_v10, %v3268_v6  ;;  %v3320_v6 = vld [vmem:[%s3612_s3 + $0x20] ss:$8 sps:$4 sm:$0xff]   ;;  %v3325_v7 = vld [vmem:[%s3612_s3 + $0x34] ss:$8 sps:$4 sm:$0xff]   ;;  %v3323_v8 = vld [vmem:[%s3612_s3 + $0x30] ss:$8 sps:$4 sm:$0xff]  }
 0xc50   : > { %v2057_v1 = vpack.c.bf16 %v2054_v13, %v2053_v41  ;;  %2364 = vmatpush1.bf16.msra.mxu0 %v3320_v6  ;;  %v3328_v10 = vld [vmem:[%s3612_s3 + $0x44] ss:$8 sps:$4 sm:$0xff]   ;;  %v3326_v41 = vld [vmem:[%s3612_s3 + $0x40] ss:$8 sps:$4 sm:$0xff]   ;;  %v3331_v13 = vld [vmem:[%s3612_s3 + $0x54] ss:$8 sps:$4 sm:$0xff]  }
 0xc51   : > { %2365 = vmatprep.subr.bf16.mxu0 %v3325_v7  ;;  %v3352_v6 = vld [vmem:[%s3623_s2 + $0x78] sm:$0xff]  }
 0xc52   : > { %3224 = vmatprep.mubr.bf16.mxu1 %v2057_v1  ;;  %v3329_v1 = vld [vmem:[%s3612_s3 + $0x50] ss:$8 sps:$4 sm:$0xff]  }
 0xc53   : > { %v3353_v7 = vld [vmem:[%s3623_s2 + $0x38] sm:$0xff]  }
 0xc54   : > { %2366 = vmatpush1.bf16.msra.mxu0 %v3323_v8  ;;  %v2267_v8 = vld [vmem:[%s3618_s29] sm:$0x3] }
 0xc55   : > { %2367 = vmatprep.subr.bf16.mxu0 %v3328_v10  ;;  %v2272_v10 = vrot.slane %v2267_v8, %v780_v20 }
 0xc58   : > { %v3271_v21 = vpop.permute.xlu1 %3270  ;;  %2368 = vmatpush1.bf16.msra.mxu0 %v3326_v41  ;;  %v2276_v41 = vrot.slane %v2267_v8, %v784_v22 }
 0xc59   : > { %v3273_v25 = vunpack.i.h.bf16 %v3271_v21  ;;  %v3272_v50 = vunpack.i.l.bf16 %v3271_v21  ;;  %2369 = vmatprep.subr.bf16.mxu0 %v3331_v13 }
 0xc5b   : > { %v2056_v28 = vsel %vm2052_vm4, %v2051_v26, %v3273_v25  ;;  %v2055_v12 = vsel %vm2052_vm4, %v2050_v53, %v3272_v50 }
 0xc5c   : > { %v2058_v14 = vpack.c.bf16 %v2056_v28, %v2055_v12  ;;  %2370 = vmatpush1.bf16.msra.mxu0 %v3329_v1 }
 0xc5d   : > { %2371 = vmatprep.subr.bf16.mxu0 %v3334_v61 }
 0xc5e   : > { %3225 = vmatmul.mubr.bf16.vlgmr.msra.gmra.mrb[32].mxu1 %v2058_v14 }
 0xc60   : > { %2372 = vmatpush1.bf16.msra.mxu0 %v3332_v63 }
 0xc61   : > { %2373 = vmatprep.subr.bf16.mxu0 %v3337_v62 }
 0xc64   : > { %2374 = vmatpush1.bf16.msra.mxu0 %v3335_v16 }
 0xd31   : > { %v3226_v15 = vpop.f32.mrb[32].mxu1 }
 0xd32   : > { %v2164_v27 = vpop.f32.mrb[33].mxu1  ;;  %v2173_v31 = vadd.f32 %v3226_v15, %v2959_v11 }
 0xd33   : > { %v2165_v9 = vadd.f32 %v2959_v11, %v2164_v27  ;;  %v3227_v29 = vpop.f32.mrb[34].mxu1  ;;  %v2968_v27 = vld [vmem:[%s637_s30] ss:$0 sm:$0xff] }
 0xd34   : > { %v2167_v30 = vpop.f32.mrb[35].mxu1  ;;  %v3933_v38 = vadd.f32 %v3452_v37, %v2173_v31  ;;  %v2176_v40 = vadd.f32 %v3227_v29, %v2959_v11 }
 0xd35   : > { %v3928_v33 = vadd.f32 %v3450_v32, %v2165_v9  ;;  %v2168_v34 = vadd.f32 %v2959_v11, %v2167_v30 }
 0xd36   : > { %v3937_v44 = vadd.f32 %v3453_v42, %v2176_v40 }
 0xd37   : > { %v3930_v36 = vadd.f32 %v3451_v35, %v2168_v34  ;;  %2185 = vadd.xlane.f32.xlu0 %v3928_v33  ;;  %v2969_v34 = vld [vmem:[%s4135_s25] ss:$0 sm:$0xff] }
 0xd39   : > { %2187 = vadd.xlane.f32.xlu1 %v3930_v36 }
 0xd3b   : > { %2189 = vadd.xlane.f32.xlu0 %v3933_v38 }
 0xd3f   : > { %2191 = vadd.xlane.f32.xlu0 %v3937_v44 }
 0xdc4   : > { %v2186_v49 = vpop.xlane.xlu0 %2185 }
 0xdc5   : > { %v2193_v51 = vmul.f32 0.0078125, %v2186_v49 }
 0xdc6   : > { %v2188_v17 = vpop.xlane.xlu1 %2187 }
 0xdc7   : > { %v2197_v52 = vsub.f32 %v3928_v33, %v2193_v51  ;;  %v2194_v54 = vmul.f32 0.0078125, %v2188_v17 }
 0xdc8   : > { %v2190_v55 = vpop.xlane.xlu0 %2189 }
 0xdc9   : > { %v2198_v56 = vsub.f32 %v3930_v36, %v2194_v54  ;;  %v2195_v57 = vmul.f32 0.0078125, %v2190_v55  ;;  %v2201_v58 = vmul.f32 %v2197_v52, %v2197_v52  ;;  %v3338_v54 = vld [vmem:[%s3623_s2 + $0x40] sm:$0xff]  }
 0xdca   : > { %v3339_v55 = vld [vmem:[%s3623_s2] sm:$0xff]   ;;  %3064 = vmatprep.subr.bf16.mxu1 %v3338_v54 }
 0xdcb   : > { %v2199_v59 = vsub.f32 %v3933_v38, %v2195_v57  ;;  %2205 = vadd.xlane.f32.xlu0 %v2201_v58  ;;  %v2202_v60 = vmul.f32 %v2198_v56, %v2198_v56  ;;  %3065 = vmatpush3.bf16.msra.mxu1 %v3339_v55  ;;  %v3341_v57 = vld [vmem:[%s3623_s2 + $0x8] sm:$0xff]   ;;  %v3343_v58 = vld [vmem:[%s3623_s2 + $0x10] sm:$0xff]  }
 0xdcc   : > { %v2192_v0 = vpop.xlane.xlu0 %2191 }
 0xdcd   : > { %v2196_v2 = vmul.f32 0.0078125, %v2192_v0  ;;  %2207 = vadd.xlane.f32.xlu1 %v2202_v60  ;;  %v2203_v39 = vmul.f32 %v2199_v59, %v2199_v59  ;;  %v3345_v60 = vld [vmem:[%s3623_s2 + $0x18] sm:$0xff]   ;;  %v3346_v0 = vld [vmem:[%s3623_s2 + $0x60] sm:$0xff]  }
 0xdcf   : > { %v2200_v3 = vsub.f32 %v3937_v44, %v2196_v2  ;;  %2209 = vadd.xlane.f32.xlu0 %v2203_v39  ;;  %v3347_v2 = vld [vmem:[%s3623_s2 + $0x20] sm:$0xff]   ;;  %v3348_v39 = vld [vmem:[%s3623_s2 + $0x68] sm:$0xff]  }
 0xdd1   : > { %v2204_v4 = vmul.f32 %v2200_v3, %v2200_v3 }
 0xdd3   : > { %2211 = vadd.xlane.f32.xlu1 %v2204_v4  ;;  %v3350_v4 = vld [vmem:[%s3623_s2 + $0x70] sm:$0xff]  }
 0xe58   : > { %v2206_v18 = vpop.xlane.xlu0 %2205 }
 0xe59   : > { %v2213_v21 = vmul.f32 0.0078125, %v2206_v18 }
 0xe5a   : > { %v2208_v23 = vpop.xlane.xlu1 %2207 }
 0xe5b   : > { %v2217_v24 = vadd.f32 1e-05, %v2213_v21  ;;  %v2214_v25 = vmul.f32 0.0078125, %v2208_v23 }
 0xe5c   : > { %v2210_v50 = vpop.xlane.xlu0 %2209 }
 0xe5d   : > { %3426 = vrsqrt.f32 %v2217_v24  ;;  %v2218_v53 = vadd.f32 1e-05, %v2214_v25  ;;  %v2215_v26 = vmul.f32 0.0078125, %v2210_v50 }
 0xe5f   : > { %3428 = vrsqrt.f32 %v2218_v53  ;;  %v2219_v28 = vadd.f32 1e-05, %v2215_v26 }
 0xe60   : > { %v2212_v12 = vpop.xlane.xlu1 %2211 }
 0xe61   : > { %3430 = vrsqrt.f32 %v2219_v28  ;;  %v2216_v14 = vmul.f32 0.0078125, %v2212_v12 }
 0xe63   : > { %v2220_v11 = vadd.f32 1e-05, %v2216_v14 }
 0xe65   : > { %3432 = vrsqrt.f32 %v2220_v11 }
 0xe67   : > { %v3427_v15 = vpop.eup %3426 }
 0xe68   : > { %v2225_v9 = vmul.f32 %v3427_v15, %v2197_v52 }
 0xe69   : > { %v3429_v29 = vpop.eup %3428 }
 0xe6a   : > { %v2226_v30 = vmul.f32 %v3429_v29, %v2198_v56  ;;  %v2235_v31 = vmul.f32 %v2968_v27, %v2225_v9  ;;  %v3340_v56 = vld [vmem:[%s3623_s2 + $0x48] sm:$0xff]  }
 0xe6b   : > { %v3431_v32 = vpop.eup %3430  ;;  %3066 = vmatprep.subr.bf16.mxu1 %v3340_v56 }
 0xe6c   : > { %v2236_v35 = vmul.f32 %v2968_v27, %v2226_v30  ;;  %v2245_v37 = vadd.f32 %v2969_v34, %v2235_v31  ;;  %v2227_v42 = vmul.f32 %v3431_v32, %v2199_v59  ;;  %3067 = vmatpush3.bf16.msra.mxu1 %v3341_v57  ;;  %v3344_v59 = vld [vmem:[%s3623_s2 + $0x58] sm:$0xff]  }
 0xe6e   : > { %v2246_v40 = vadd.f32 %v2969_v34, %v2236_v35  ;;  %v2237_v48 = vmul.f32 %v2968_v27, %v2227_v42 }
 0xe6f   : > { %v3433_v45 = vpop.eup %3432 }
 0xe70   : > { %v2249_v46 = vpack.c.bf16 %v2246_v40, %v2245_v37  ;;  %v2228_v47 = vmul.f32 %v3433_v45, %v2200_v3  ;;  %v2247_v17 = vadd.f32 %v2969_v34, %v2237_v48  ;;  %v3349_v3 = vld [vmem:[%s3623_s2 + $0x28] sm:$0xff]  }
 0xe72   : > { %2392 = vmatmul.mubr.bf16.vlgmr.msra.gmra.mrb[44].mxu0 %v2249_v46  ;;  %v2238_v49 = vmul.f32 %v2968_v27, %v2228_v47 }
 0xe73   : > { %2401 = vmatprep.mubr.bf16.mxu0 %v3470_v43  ;;  %v3342_v43 = vld [vmem:[%s3623_s2 + $0x50] sm:$0xff]  }
 0xe74   : > { %v2248_v51 = vadd.f32 %v2969_v34, %v2238_v49  ;;  %3068 = vmatprep.subr.bf16.mxu1 %v3342_v43 }
 0xe75   : > { %3069 = vmatpush3.bf16.msra.mxu1 %v3343_v58 }
 0xe76   : > { %v2250_v52 = vpack.c.bf16 %v2248_v51, %v2247_v17  ;;  %3070 = vmatprep.subr.bf16.mxu1 %v3344_v59 }
 0xe79   : > { %3071 = vmatpush3.bf16.msra.mxu1 %v3345_v60 }
 0xe7a   : > { %2402 = vmatmul.mubr.bf16.gmra.mrb[48].mxu0 %v2250_v52  ;;  %3072 = vmatprep.subr.bf16.mxu1 %v3346_v0 }
 0xe7d   : > { %3073 = vmatpush3.bf16.msra.mxu1 %v3347_v2 }
 0xe7e   : > { %3074 = vmatprep.subr.bf16.mxu1 %v3348_v39 }
 0xe81   : > { %3075 = vmatpush3.bf16.msra.mxu1 %v3349_v3 }
 0xe82   : > { %3076 = vmatprep.subr.bf16.mxu1 %v3350_v4 }
 0xe85   : > { %3077 = vmatpush3.bf16.msra.mxu1 %v3351_v5 }
 0xe86   : > { %3078 = vmatprep.subr.bf16.mxu1 %v3352_v6 }
 0xe89   : > { %3079 = vmatpush3.bf16.msra.mxu1 %v3353_v7 }
 0xf45   : > { %v2393_v13 = vpop.f32.mrb[44].mxu0 }
 0xf46   : > { %v3992_v1 = vadd.f32 %v2393_v13, %v2272_v10  ;;  %v2395_v61 = vpop.f32.mrb[45].mxu0 }
 0xf47   : > { %v3994_v63 = vadd.f32 %v2395_v61, %v2276_v41  ;;  %v2397_v62 = vpop.f32.mrb[46].mxu0 }
 0xf48   : > { %v2420_v16 = vmul.f32 0.044715, %v3992_v1  ;;  %v3997_v18 = vadd.f32 %v2397_v62, %v2272_v10  ;;  %v2399_v21 = vpop.f32.mrb[47].mxu0  ;;  %v2412_v62 = vmul.f32 0.5, %v3992_v1 }
 0xf49   : > { %v2421_v23 = vmul.f32 0.044715, %v3994_v63  ;;  %v4000_v24 = vadd.f32 %v2399_v21, %v2276_v41 }
 0xf4a   : > { %v2428_v20 = vmul.f32 %v2420_v16, %v3992_v1  ;;  %v2422_v19 = vmul.f32 0.044715, %v3997_v18  ;;  %v2414_v16 = vmul.f32 0.5, %v3997_v18 }
 0xf4b   : > { %v2429_v22 = vmul.f32 %v2421_v23, %v3994_v63  ;;  %v2423_v25 = vmul.f32 0.044715, %v4000_v24  ;;  %v2413_v23 = vmul.f32 0.5, %v3994_v63 }
 0xf4c   : > { %v2436_v50 = vmul.f32 %v2428_v20, %v3992_v1  ;;  %v2430_v53 = vmul.f32 %v2422_v19, %v3997_v18  ;;  %v2415_v20 = vmul.f32 0.5, %v4000_v24 }
 0xf4d   : > { %v2437_v26 = vmul.f32 %v2429_v22, %v3994_v63  ;;  %v2431_v28 = vmul.f32 %v2423_v25, %v4000_v24  ;;  %v2403_v12 = vpop.f32.mrb[48].mxu0 }
 0xf4e   : > { %v2444_v14 = vadd.f32 %v2436_v50, %v3992_v1  ;;  %v2438_v11 = vmul.f32 %v2430_v53, %v3997_v18  ;;  %v4012_v15 = vadd.f32 %v2403_v12, %v2272_v10  ;;  %v2405_v27 = vpop.f32.mrb[49].mxu0 }
 0xf4f   : > { %v2439_v9 = vmul.f32 %v2431_v28, %v4000_v24  ;;  %v4015_v29 = vadd.f32 %v2405_v27, %v2276_v41  ;;  %v2407_v30 = vpop.f32.mrb[50].mxu0  ;;  %v2445_v31 = vadd.f32 %v2437_v26, %v3994_v63 }
 0xf50   : > { %v2452_v32 = vmul.f32 0.7978846, %v2444_v14  ;;  %v2446_v34 = vadd.f32 %v2438_v11, %v3997_v18  ;;  %v2424_v35 = vmul.f32 0.044715, %v4012_v15  ;;  %v2408_v37 = vadd.f32 %v2407_v30, %v2272_v10  ;;  %v2409_v40 = vpop.f32.mrb[51].mxu0 }
 0xf51   : > { %v2425_v42 = vmul.f32 0.044715, %v4015_v29  ;;  %v2410_v45 = vadd.f32 %v2409_v40, %v2276_v41  ;;  %v2447_v46 = vadd.f32 %v2439_v9, %v4000_v24  ;;  %v2453_v47 = vmul.f32 0.7978846, %v2445_v31 }
 0xf52   : > { %3434 = vtanh.f32 %v2452_v32  ;;  %v2454_v48 = vmul.f32 0.7978846, %v2446_v34  ;;  %v2432_v49 = vmul.f32 %v2424_v35, %v4012_v15  ;;  %v2426_v51 = vmul.f32 0.044715, %v2408_v37 }
 0xf53   : > { %v2433_v17 = vmul.f32 %v2425_v42, %v4015_v29  ;;  %v2427_v52 = vmul.f32 0.044715, %v2410_v45  ;;  %v2455_v54 = vmul.f32 0.7978846, %v2447_v46  ;;  %3436 = vtanh.f32 %v2453_v47 }
 0xf54   : > { %3438 = vtanh.f32 %v2454_v48  ;;  %v2440_v55 = vmul.f32 %v2432_v49, %v4012_v15  ;;  %v2434_v56 = vmul.f32 %v2426_v51, %v2408_v37  ;;  %v2416_v63 = vmul.f32 0.5, %v4012_v15 }
 0xf55   : > { %v2441_v57 = vmul.f32 %v2433_v17, %v4015_v29  ;;  %v2435_v43 = vmul.f32 %v2427_v52, %v2410_v45  ;;  %3440 = vtanh.f32 %v2455_v54  ;;  %v2418_v18 = vmul.f32 0.5, %v2408_v37 }
 0xf56   : > { %v2442_v58 = vmul.f32 %v2434_v56, %v2408_v37  ;;  %v2448_v59 = vadd.f32 %v2440_v55, %v4012_v15  ;;  %v2417_v30 = vmul.f32 0.5, %v4015_v29  ;;  %v2419_v31 = vmul.f32 0.5, %v2410_v45  ;;  %v2986_v15 = vld [vmem:[%s657_s16] ss:$0 sm:$0xff]  ;;  %s4136_s16 = sld [smem:[#allocation7_spill]] (!%p3003_p5) }
 0xf57   : > { %v2443_v60 = vmul.f32 %v2435_v43, %v2410_v45  ;;  %v2449_v0 = vadd.f32 %v2441_v57, %v4015_v29 }
 0xf58   : > { %v2450_v2 = vadd.f32 %v2442_v58, %v2408_v37  ;;  %v2456_v39 = vmul.f32 0.7978846, %v2448_v59 }
 0xf59   : > { %v2451_v3 = vadd.f32 %v2443_v60, %v2410_v45  ;;  %v2457_v4 = vmul.f32 0.7978846, %v2449_v0 }
 0xf5a   : > { %v2458_v5 = vmul.f32 0.7978846, %v2450_v2  ;;  %3442 = vtanh.f32 %v2456_v39 }
 0xf5b   : > { %v2459_v6 = vmul.f32 0.7978846, %v2451_v3  ;;  %3444 = vtanh.f32 %v2457_v4 }
 0xf5c   : > { %v3435_v7 = vpop.eup %3434  ;;  %3446 = vtanh.f32 %v2458_v5 }
 0xf5d   : > { %v3437_v8 = vpop.eup %3436  ;;  %v2468_v10 = vadd.f32 1.0, %v3435_v7  ;;  %3448 = vtanh.f32 %v2459_v6 }
 0xf5e   : > { %v3439_v41 = vpop.eup %3438  ;;  %v2469_v13 = vadd.f32 1.0, %v3437_v8 }
 0xf5f   : > { %v3441_v61 = vpop.eup %3440  ;;  %v2470_v21 = vadd.f32 1.0, %v3439_v41  ;;  %v2476_v22 = vmul.f32 %v2468_v10, %v2412_v62 }
 0xf60   : > { %v2471_v19 = vadd.f32 1.0, %v3441_v61  ;;  %v2477_v50 = vmul.f32 %v2469_v13, %v2413_v23 }
 0xf61   : > { %v2478_v25 = vmul.f32 %v2470_v21, %v2414_v16 }
 0xf62   : > { %v2479_v53 = vmul.f32 %v2471_v19, %v2415_v20 }
 0xf63   : > { %v2484_v26 = vpack.c.bf16 %v2478_v25, %v2476_v22 }
 0xf64   : > { %v3443_v28 = vpop.eup %3442  ;;  %v2485_v12 = vpack.c.bf16 %v2479_v53, %v2477_v50 }
 0xf65   : > { %v3445_v14 = vpop.eup %3444  ;;  %v2472_v11 = vadd.f32 1.0, %v3443_v28 }
 0xf66   : > { %v3447_v27 = vpop.eup %3446  ;;  %2655 = vmatprep.mubr.bf16.mxu1 %v2485_v12  ;;  %v2473_v1 = vadd.f32 1.0, %v3445_v14 }
 0xf67   : > { %v3449_v9 = vpop.eup %3448  ;;  %2656 = vmatmul.mubr.bf16.vlgmr.msra.gmra.mrb[36].mxu1 %v2484_v26  ;;  %v2474_v24 = vadd.f32 1.0, %v3447_v27  ;;  %v2480_v34 = vmul.f32 %v2472_v11, %v2416_v63  ;;  %v3005_v63 = vld [vmem:[%s4137_s27] ss:$0 sm:$0xff] (!%p3003_p5) }
 0xf68   : > { %v2475_v32 = vadd.f32 1.0, %v3449_v9  ;;  %v2481_v40 = vmul.f32 %v2473_v1, %v2417_v30  ;;  %v3004_v1 = vld [vmem:[%s4136_s16] ss:$0 sm:$0xff] (!%p3003_p5) }
 0xf69   : > { %v2482_v35 = vmul.f32 %v2474_v24, %v2418_v18 }
 0xf6a   : > { %v2483_v42 = vmul.f32 %v2475_v32, %v2419_v31 }
 0xf6b   : > { %v2486_v46 = vpack.c.bf16 %v2482_v35, %v2480_v34 }
 0xf6c   : > { %v2487_v47 = vpack.c.bf16 %v2483_v42, %v2481_v40 }
 0xf6e   : > { %2663 = vmatprep.mubr.bf16.mxu1 %v2487_v47 }
 0xf6f   : > { %2664 = vmatmul.mubr.bf16.gmra.mrb[40].mxu1 %v2486_v46 }
0x103a   : > { %v3080_v48 = vpop.f32.mrb[36].mxu1 }
0x103b   : > { %v3081_v37 = vpop.f32.mrb[37].mxu1 }
0x103c   : > { %v3082_v49 = vadd.f32 %v3081_v37, %v3080_v48  ;;  %v3083_v51 = vpop.f32.mrb[38].mxu1 }
0x103d   : > { %v3084_v29 = vpop.f32.mrb[39].mxu1 }
0x103e   : > { %v2658_v45 = vadd.f32 %v3082_v49, %v2986_v15  ;;  %v3085_v17 = vadd.f32 %v3084_v29, %v3083_v51 }
0x1040   : > { %v4040_v52 = vadd.f32 %v2658_v45, %v3928_v33  ;;  %v2661_v54 = vadd.f32 %v3085_v17, %v2986_v15 }
0x1042   : > { %2676 = vst [vmem:[#allocation2] sm:$0xff] %v4040_v52  ;;  %v4044_v55 = vadd.f32 %v2661_v54, %v3930_v36  ;;  %v3086_v56 = vpop.f32.mrb[40].mxu1  ;;  %2686 = vadd.xlane.f32.xlu0 (!%p3003_p5), %v4040_v52 }
0x1043   : > { %v3087_v57 = vpop.f32.mrb[41].mxu1 }
0x1044   : > { %2677 = vst [vmem:[#allocation2 + $0x8] sm:$0xff] %v4044_v55  ;;  %v3088_v43 = vadd.f32 %v3087_v57, %v3086_v56  ;;  %v3089_v58 = vpop.f32.mrb[42].mxu1 }
0x1045   : > { %v3090_v59 = vpop.f32.mrb[43].mxu1 }
0x1046   : > { %v2666_v60 = vadd.f32 %v3088_v43, %v2986_v15  ;;  %v3091_v0 = vadd.f32 %v3090_v59, %v3089_v58  ;;  %2683 = sbr.rel (%p3003_p5) target bundleno = 4486 (0x1186), region = 88  ;;  %2688 = vadd.xlane.f32.xlu0 (!%p3003_p5), %v4044_v55 }
0x1048   : > { %v4048_v2 = vadd.f32 %v2666_v60, %v3933_v38  ;;  %v2669_v33 = vadd.f32 %v3091_v0, %v2986_v15 }
0x104a   : > { %2678 = vst [vmem:[#allocation2 + $0x10] sm:$0xff] %v4048_v2  ;;  %v4052_v39 = vadd.f32 %v2669_v33, %v3937_v44  ;;  %2690 = vadd.xlane.f32.xlu1 (!%p3003_p5), %v4048_v2 }
0x104c   : > { %2679 = vst [vmem:[#allocation2 + $0x18] sm:$0xff] %v4052_v39 }
0x104e   : > { %2692 = vadd.xlane.f32.xlu1 %v4052_v39 }
0x10cf   : > { %v2687_v36 = vpop.xlane.xlu0 %2686 }
0x10d0   : > { %v2694_v3 = vmul.f32 0.0078125, %v2687_v36 }
0x10d2   : > { %v2698_v44 = vsub.f32 %v4040_v52, %v2694_v3 }
0x10d3   : > { %v2689_v6 = vpop.xlane.xlu0 %2688 }
0x10d4   : > { %v2695_v8 = vmul.f32 0.0078125, %v2689_v6  ;;  %v2702_v10 = vmul.f32 %v2698_v44, %v2698_v44 }
0x10d6   : > { %v2699_v13 = vsub.f32 %v4044_v55, %v2695_v8  ;;  %2706 = vadd.xlane.f32.xlu0 %v2702_v10 }
0x10d7   : > { %v2691_v38 = vpop.xlane.xlu1 %2690 }
0x10d8   : > { %v2696_v4 = vmul.f32 0.0078125, %v2691_v38  ;;  %v2703_v16 = vmul.f32 %v2699_v13, %v2699_v13 }
0x10da   : > { %v2700_v5 = vsub.f32 %v4048_v2, %v2696_v4  ;;  %2708 = vadd.xlane.f32.xlu1 %v2703_v16 }
0x10db   : > { %v2693_v7 = vpop.xlane.xlu1 %2692 }
0x10dc   : > { %v2697_v41 = vmul.f32 0.0078125, %v2693_v7  ;;  %v2704_v62 = vmul.f32 %v2700_v5, %v2700_v5 }
0x10de   : > { %v2701_v61 = vsub.f32 %v4052_v39, %v2697_v41  ;;  %2710 = vadd.xlane.f32.xlu0 %v2704_v62 }
0x10e0   : > { %v2705_v21 = vmul.f32 %v2701_v61, %v2701_v61 }
0x10e2   : > { %2712 = vadd.xlane.f32.xlu1 %v2705_v21 }
0x1163   : > { %v2707_v23 = vpop.xlane.xlu0 %2706 }
0x1164   : > { %v2714_v20 = vmul.f32 0.0078125, %v2707_v23 }
0x1166   : > { %v2718_v19 = vadd.f32 1e-05, %v2714_v20 }
0x1167   : > { %v2709_v22 = vpop.xlane.xlu1 %2708 }
0x1168   : > { %3454 = vrsqrt.f32 %v2718_v19  ;;  %v2715_v50 = vmul.f32 0.0078125, %v2709_v22 }
0x116a   : > { %v2719_v26 = vadd.f32 1e-05, %v2715_v50 }
0x116b   : > { %v2711_v25 = vpop.xlane.xlu0 %2710 }
0x116c   : > { %v2716_v53 = vmul.f32 0.0078125, %v2711_v25  ;;  %3456 = vrsqrt.f32 %v2719_v26 }
0x116e   : > { %v2720_v28 = vadd.f32 1e-05, %v2716_v53 }
0x116f   : > { %v2713_v12 = vpop.xlane.xlu1 %2712 }
0x1170   : > { %v2717_v14 = vmul.f32 0.0078125, %v2713_v12  ;;  %3458 = vrsqrt.f32 %v2720_v28 }
0x1172   : > { %v2721_v11 = vadd.f32 1e-05, %v2717_v14  ;;  %v3455_v27 = vpop.eup %3454 }
0x1173   : > { %v2726_v9 = vmul.f32 %v3455_v27, %v2698_v44 }
0x1174   : > { %3460 = vrsqrt.f32 %v2721_v11 }
0x1175   : > { %v2736_v18 = vmul.f32 %v3004_v1, %v2726_v9 }
0x1176   : > { %v3457_v24 = vpop.eup %3456 }
0x1177   : > { %v2746_v31 = vadd.f32 %v3005_v63, %v2736_v18  ;;  %v2727_v32 = vmul.f32 %v3457_v24, %v2699_v13 }
0x1179   : > { %2750 = vst [vmem:[%s4138_s14] sm:$0xff] %v2746_v31  ;;  %v2737_v35 = vmul.f32 %v3004_v1, %v2727_v32 }
0x117a   : > { %v3459_v30 = vpop.eup %3458 }
0x117b   : > { %v2728_v34 = vmul.f32 %v3459_v30, %v2700_v5  ;;  %v2747_v46 = vadd.f32 %v3005_v63, %v2737_v35 }
0x117d   : > { %v2738_v42 = vmul.f32 %v3004_v1, %v2728_v34  ;;  %2751 = vst [vmem:[%s4138_s14 + $0x8] sm:$0xff] %v2747_v46 }
0x117e   : > { %v3461_v40 = vpop.eup %3460 }
0x117f   : > { %v2729_v47 = vmul.f32 %v3461_v40, %v2701_v61  ;;  %v2748_v48 = vadd.f32 %v3005_v63, %v2738_v42 }
0x1181   : > { %v2739_v15 = vmul.f32 %v3004_v1, %v2729_v47  ;;  %2752 = vst [vmem:[%s4138_s14 + $0x10] sm:$0xff] %v2748_v48 }
0x1183   : > { %v2749_v37 = vadd.f32 %v3005_v63, %v2739_v15 }
0x1185   : > { %2753 = vst [vmem:[%s4138_s14 + $0x18] sm:$0xff] %v2749_v37 }
0x1186 PF: > { %p3006_p6 = scmp.ge.s32.totalorder %s3562_s19, 1 }
0x1187   : > { %s4139_s25 = sld [smem:[#allocation9_spill]] (!%p3006_p6) }
0x1188   : > { %2757 = sbr.rel (%p3006_p6) target bundleno = 4495 (0x118f), region = 92 }
0x118d   : > { %2758 = vst [vmem:[%s4139_s25] sm:$0xff] (!%p3006_p6), %v4040_v52  ;;  %2759 = vst [vmem:[%s4139_s25 + $0x8] sm:$0xff] (!%p3006_p6), %v4044_v55 }
0x118e   : > { %2760 = vst [vmem:[%s4139_s25 + $0x10] sm:$0xff] (!%p3006_p6), %v4048_v2  ;;  %2761 = vst [vmem:[%s4139_s25 + $0x18] sm:$0xff] (!%p3006_p6), %v4052_v39 }
0x118f PF: > { %s4140_s19 = sld [smem:[#allocation3_spill]] }
0x1195   : > { %s25_s18 = sadd.s32 1, %s4140_s19  }
0x1196   : > { %p22_p7 = scmp.ge.s32.totalorder %s25_s18, 4  }
0x1198   :  { %24 = sbr.rel (!%p22_p7) target bundleno = 7 (0x7), region = 151 }

</bundles_post_ra>
